<compile_context>
chip_gen: v6e
topology: v6e:2x2x1
jax: 0.10.0
libtpu: 0.0.40
codegen_flags: <defaults>
</compile_context>

<pallas_src>
import functools

import jax
import jax.numpy as jnp
from jax.experimental import pallas as pl
from jax.experimental.pallas import tpu as pltpu


_ACT_DTYPE = jnp.bfloat16  # activation / weight storage dtype (accumulation stays f32)


# ----------------------------------------------------------------------------
# Pallas kernel: fused  (row-tile) x (K, Cout) matmul + bias + optional LeakyReLU
# ----------------------------------------------------------------------------
def _mm_bias_act_kernel(x_ref, w_ref, b_ref, o_ref, *, apply_act, slope):
    # x_ref: (TM, K) bf16, w_ref: (K, Cout) bf16 (VMEM-resident across the grid),
    # b_ref: (1, Cout) f32.  Accumulate in f32, epilogue in f32.
    y = jnp.dot(x_ref[...], w_ref[...], preferred_element_type=jnp.float32)
    y = y + b_ref[...]
    if apply_act:
        y = jnp.where(y >= 0, y, slope * y)
    o_ref[...] = y.astype(o_ref.dtype)


def _choose_row_tile(m, cap=512):
    """Pick a row-tile size (multiple of 8 or the full extent) and padded M."""
    if m <= cap:
        return m, m                      # single block == full dim (always legal)
    for tm in (cap, 256, 128, 64, 32, 16, 8):
        if m % tm == 0:
            return tm, m
    m_pad = ((m + cap - 1) // cap) * cap  # fall back: zero-pad rows to a tile multiple
    return cap, m_pad


def _matmul_bias_act(x, w, b, *, apply_act, slope, out_dtype):
    """x: (M, K), w: (K, Cout), b: (Cout,) -> (M, Cout) with fused bias (+LeakyReLU)."""
    M, K = x.shape
    Cout = w.shape[-1]
    tm, m_pad = _choose_row_tile(M)
    if m_pad != M:
        x = jnp.pad(x, ((0, m_pad - M), (0, 0)))
    b2 = b.reshape(1, Cout).astype(jnp.float32)

    kernel = functools.partial(_mm_bias_act_kernel, apply_act=apply_act, slope=slope)
    out = pl.pallas_call(
        kernel,
        out_shape=jax.ShapeDtypeStruct((m_pad, Cout), out_dtype),
        grid=(m_pad // tm,),
        in_specs=[
            pl.BlockSpec((tm, K), lambda i: (i, 0)),      # row tile of activations
            pl.BlockSpec((K, Cout), lambda i: (0, 0)),    # weights: VMEM-resident
            pl.BlockSpec((1, Cout), lambda i: (0, 0)),    # bias:    VMEM-resident
        ],
        out_specs=pl.BlockSpec((tm, Cout), lambda i: (i, 0)),
        compiler_params=pltpu.CompilerParams(
            # Row tiles are independent -> shard across TensorCores (v7x megacore).
            dimension_semantics=("parallel",),
        ),
    )(x, w, b2)
    if m_pad != M:
        out = out[:M]
    return out


# ----------------------------------------------------------------------------
# Conv / upsample / pool wrappers
# ----------------------------------------------------------------------------
def conv3x3(x, w, b, *, apply_act, slope=0.2, out_dtype=_ACT_DTYPE):
    """3x3 conv, stride 1, padding 1, bias, optional LeakyReLU.  x: (N,H,W,Cin)."""
    N, H, W, Cin = x.shape
    Cout = w.shape[-1]
    xb = x.astype(_ACT_DTYPE)
    xp = jnp.pad(xb, ((0, 0), (1, 1), (1, 1), (0, 0)))
    # im2col with K ordered (dy, dx, cin) -> matches w.reshape(9*Cin, Cout).
    cols = [xp[:, dy:dy + H, dx:dx + W, :] for dy in range(3) for dx in range(3)]
    xcol = jnp.concatenate(cols, axis=-1).reshape(N * H * W, 9 * Cin)
    wcol = w.reshape(9 * Cin, Cout).astype(_ACT_DTYPE)
    out = _matmul_bias_act(xcol, wcol, b, apply_act=apply_act, slope=slope,
                           out_dtype=out_dtype)
    return out.reshape(N, H, W, Cout)


def conv_transpose2x2(x, w, b, out_dtype=_ACT_DTYPE):
    """ConvTranspose2d(kernel=2, stride=2) with bias.  x: (N,H,W,Cin), w: (2,2,Cin,Cout)."""
    N, H, W, Cin = x.shape
    Cout = w.shape[-1]
    x_flat = x.astype(_ACT_DTYPE).reshape(N * H * W, Cin)
    # output columns ordered (di, dj, cout)
    w_flat = (w.reshape(4, Cin, Cout).transpose(1, 0, 2)
               .reshape(Cin, 4 * Cout).astype(_ACT_DTYPE))
    b4 = jnp.tile(b, 4)
    out = _matmul_bias_act(x_flat, w_flat, b4, apply_act=False, slope=0.0,
                           out_dtype=out_dtype)
    out = out.reshape(N, H, W, 2, 2, Cout)                    # (N, i, j, di, dj, c)
    out = out.transpose(0, 1, 3, 2, 4, 5).reshape(N, 2 * H, 2 * W, Cout)
    return out


def avg_pool2x2(x):
    """F.avg_pool2d(x, 2) in NHWC.  Plain strided-slice average: XLA fuses this into
    the following conv's im2col gather, so there is no stacked copy / extra launch."""
    a = x[:, 0::2, 0::2, :]
    b = x[:, 0::2, 1::2, :]
    c = x[:, 1::2, 0::2, :]
    d = x[:, 1::2, 1::2, :]
    return ((a + b) + (c + d)) * jnp.asarray(0.25, x.dtype)


# ----------------------------------------------------------------------------
# Parameter init (deterministic, synthetic) and forward pass
# ----------------------------------------------------------------------------
def _conv_param(key, cin, cout, k):
    k1, k2 = jax.random.split(key)
    fan_in = k * k * cin
    w = jax.random.normal(k1, (k, k, cin, cout), jnp.float32) / jnp.sqrt(
        jnp.float32(fan_in)
    )
    b = 0.01 * jax.random.normal(k2, (cout,), jnp.float32)
    return w, b


def init_unet_params(key, in_channel=1, out_channel=2, depth=4, wf=8):
    params = {"down": [], "up": [], "last": None}
    prev = in_channel
    for i in range(depth):
        cout = (2 ** i) * wf
        key, k1, k2 = jax.random.split(key, 3)
        w1, b1 = _conv_param(k1, prev, cout, 3)
        w2, b2 = _conv_param(k2, cout, cout, 3)
        params["down"].append((w1, b1, w2, b2))
        prev = cout
    for i in reversed(range(depth - 1)):
        cout = (2 ** i) * wf
        key, ku, k1, k2 = jax.random.split(key, 4)
        up_w, up_b = _conv_param(ku, prev, cout, 2)          # (2,2,Cin,Cout)
        w1, b1 = _conv_param(k1, prev, cout, 3)              # ConvBlock(in=prev, out=cout)
        w2, b2 = _conv_param(k2, cout, cout, 3)
        params["up"].append((up_w, up_b, (w1, b1, w2, b2)))
        prev = cout
    key, kl = jax.random.split(key)
    params["last"] = _conv_param(kl, prev, out_channel, 3)
    return params


def _crop(layer, target_hw):
    _, lh, lw, _ = layer.shape
    th, tw = target_hw
    dh = (lh - th) // 2
    dw = (lw - tw) // 2
    return layer[:, dh:dh + th, dw:dw + tw, :]


def _conv_block(p, x, slope):
    w1, b1, w2, b2 = p
    x = conv3x3(x, w1, b1, apply_act=True, slope=slope)
    x = conv3x3(x, w2, b2, apply_act=True, slope=slope)
    return x


def unet_forward(params, x, *, depth=4, slope=0.2):
    """x: (N, H, W, Cin) NHWC.  Returns (N, H, W, out_channel) float32."""
    block_down = []
    for i, p in enumerate(params["down"]):
        x = _conv_block(p, x, slope)
        if i != depth - 1:
            block_down.append(x)
            x = avg_pool2x2(x)
    for i, (up_w, up_b, cb) in enumerate(params["up"]):
        up_right = conv_transpose2x2(x, up_w, up_b)
        bridge = _crop(block_down[-i - 1], up_right.shape[1:3])
        cat = jnp.concatenate([bridge, up_right], axis=-1)   # [crop_left, up_right]
        x = _conv_block(cb, cat, slope)
    wl, bl = params["last"]
    out = conv3x3(x, wl, bl, apply_act=False, slope=slope, out_dtype=jnp.float32)
    return out


# ----------------------------------------------------------------------------
# Main
# ----------------------------------------------------------------------------
if __name__ == "__main__":
    key = jax.random.PRNGKey(0)
    k_param, k_x = jax.random.split(key)

    N, Cin, H, W = 2, 1, 16, 16         # small shapes; module default in_channel=1
    OUT_CH, DEPTH, WF = 2, 4, 8         # wf shrunk from 64 -> 8 for a small test

    params = init_unet_params(k_param, in_channel=Cin, out_channel=OUT_CH,
                              depth=DEPTH, wf=WF)

    x_nchw = jax.random.normal(k_x, (N, Cin, H, W), jnp.float32)
    x_nhwc = jnp.transpose(x_nchw, (0, 2, 3, 1))          # NCHW -> NHWC

    fwd = jax.jit(functools.partial(unet_forward, depth=DEPTH, slope=0.2))
    out_nhwc = fwd(params, x_nhwc)
    out_nchw = jnp.transpose(out_nhwc, (0, 3, 1, 2))      # back to PyTorch NCHW
    jax.block_until_ready(out_nchw)

    assert out_nchw.shape == (N, OUT_CH, H, W), out_nchw.shape
    assert bool(jnp.all(jnp.isfinite(out_nchw)))
    print("KERNEL_OK")
</pallas_src>

<mosaic_0001>
module attributes {stable_mosaic.version = 11 : i64} {
  func.func @_mm_bias_act_kernel(%arg0: i32, %arg1: memref<512x9xbf16, #tpu.memory_space<vmem>>, %arg2: memref<9x8xbf16, #tpu.memory_space<vmem>>, %arg3: memref<1x8xf32, #tpu.memory_space<vmem>>, %arg4: memref<512x8xbf16, #tpu.memory_space<vmem>>) attributes {dimension_semantics = [#tpu.dimension_semantics<parallel>], iteration_bounds = array<i64: 1>, scalar_prefetch = 0 : i64, scratch_operands = 0 : i64, tpu.core_type = #tpu.core_type<tc>, window_params = [{transform_indices = @transform_0, window_bounds = array<i64: 512, 9>}, {pipeline_mode = #tpu.pipeline_mode<synchronous>, transform_indices = @transform_1, window_bounds = array<i64: 9, 8>}, {pipeline_mode = #tpu.pipeline_mode<synchronous>, transform_indices = @transform_2, window_bounds = array<i64: 1, 8>}, {transform_indices = @transform_3, window_bounds = array<i64: 512, 8>}]} {
    %c0 = arith.constant 0 : index
    %c0_0 = arith.constant 0 : index
    %0 = vector.load %arg1[%c0, %c0_0] : memref<512x9xbf16, #tpu.memory_space<vmem>>, vector<512x9xbf16>
    %c0_1 = arith.constant 0 : index
    %c0_2 = arith.constant 0 : index
    %1 = vector.load %arg2[%c0_1, %c0_2] : memref<9x8xbf16, #tpu.memory_space<vmem>>, vector<9x8xbf16>
    %cst = arith.constant dense<0.000000e+00> : vector<512x8xf32>
    %2 = tpu.matmul %0, %1, %cst {dimension_numbers = #tpu.dot_dimension_numbers<[1], [0], [0], [1], [0, 0, 1, 1], [], []>} : vector<512x9xbf16>, vector<9x8xbf16>, vector<512x8xf32> -> vector<512x8xf32>
    %c0_3 = arith.constant 0 : index
    %c0_4 = arith.constant 0 : index
    %3 = vector.load %arg3[%c0_3, %c0_4] : memref<1x8xf32, #tpu.memory_space<vmem>>, vector<1x8xf32>
    %4 = vector.broadcast %3 : vector<1x8xf32> to vector<512x8xf32>
    %5 = arith.addf %2, %4 : vector<512x8xf32>
    %cst_5 = arith.constant 0.000000e+00 : f32
    %6 = vector.broadcast %cst_5 : f32 to vector<512x8xf32>
    %7 = arith.cmpf oge, %5, %6 : vector<512x8xf32>
    %cst_6 = arith.constant 2.000000e-01 : f32
    %8 = vector.broadcast %cst_6 : f32 to vector<512x8xf32>
    %9 = arith.mulf %8, %5 : vector<512x8xf32>
    %10 = arith.select %7, %5, %9 : vector<512x8xi1>, vector<512x8xf32>
    %11 = arith.truncf %10 : vector<512x8xf32> to vector<512x8xbf16>
    %c0_7 = arith.constant 0 : index
    %c0_8 = arith.constant 0 : index
    %12 = vector.load %arg4[%c0_7, %c0_8] : memref<512x8xbf16, #tpu.memory_space<vmem>>, vector<512x8xbf16>
    tpu.vector_store %arg4[%c0_7, %c0_8], %11 {strides = array<i32>} : memref<512x8xbf16, #tpu.memory_space<vmem>>, vector<512x8xbf16>,
    return
  }
  func.func @transform_0(%arg0: i32) -> (i32, i32) {
    %c0_i32 = arith.constant 0 : i32
    %c0_i32_0 = arith.constant 0 : i32
    return %arg0, %c0_i32 : i32, i32
  }
  func.func @transform_1(%arg0: i32) -> (i32, i32) {
    %c0_i32 = arith.constant 0 : i32
    %c0_i32_0 = arith.constant 0 : i32
    %c0_i32_1 = arith.constant 0 : i32
    return %c0_i32, %c0_i32_0 : i32, i32
  }
  func.func @transform_2(%arg0: i32) -> (i32, i32) {
    %c0_i32 = arith.constant 0 : i32
    %c0_i32_0 = arith.constant 0 : i32
    %c0_i32_1 = arith.constant 0 : i32
    return %c0_i32, %c0_i32_0 : i32, i32
  }
  func.func @transform_3(%arg0: i32) -> (i32, i32) {
    %c0_i32 = arith.constant 0 : i32
    %c0_i32_0 = arith.constant 0 : i32
    return %arg0, %c0_i32 : i32, i32
  }
}

module attributes {stable_mosaic.version = 11 : i64} {
  func.func @_mm_bias_act_kernel(%arg0: i32, %arg1: memref<512x72xbf16, #tpu.memory_space<vmem>>, %arg2: memref<72x8xbf16, #tpu.memory_space<vmem>>, %arg3: memref<1x8xf32, #tpu.memory_space<vmem>>, %arg4: memref<512x8xbf16, #tpu.memory_space<vmem>>) attributes {dimension_semantics = [#tpu.dimension_semantics<parallel>], iteration_bounds = array<i64: 1>, scalar_prefetch = 0 : i64, scratch_operands = 0 : i64, tpu.core_type = #tpu.core_type<tc>, window_params = [{transform_indices = @transform_0, window_bounds = array<i64: 512, 72>}, {pipeline_mode = #tpu.pipeline_mode<synchronous>, transform_indices = @transform_1, window_bounds = array<i64: 72, 8>}, {pipeline_mode = #tpu.pipeline_mode<synchronous>, transform_indices = @transform_2, window_bounds = array<i64: 1, 8>}, {transform_indices = @transform_3, window_bounds = array<i64: 512, 8>}]} {
    %c0 = arith.constant 0 : index
    %c0_0 = arith.constant 0 : index
    %0 = vector.load %arg1[%c0, %c0_0] : memref<512x72xbf16, #tpu.memory_space<vmem>>, vector<512x72xbf16>
    %c0_1 = arith.constant 0 : index
    %c0_2 = arith.constant 0 : index
    %1 = vector.load %arg2[%c0_1, %c0_2] : memref<72x8xbf16, #tpu.memory_space<vmem>>, vector<72x8xbf16>
    %cst = arith.constant dense<0.000000e+00> : vector<512x8xf32>
    %2 = tpu.matmul %0, %1, %cst {dimension_numbers = #tpu.dot_dimension_numbers<[1], [0], [0], [1], [0, 0, 1, 1], [], []>} : vector<512x72xbf16>, vector<72x8xbf16>, vector<512x8xf32> -> vector<512x8xf32>
    %c0_3 = arith.constant 0 : index
    %c0_4 = arith.constant 0 : index
    %3 = vector.load %arg3[%c0_3, %c0_4] : memref<1x8xf32, #tpu.memory_space<vmem>>, vector<1x8xf32>
    %4 = vector.broadcast %3 : vector<1x8xf32> to vector<512x8xf32>
    %5 = arith.addf %2, %4 : vector<512x8xf32>
    %cst_5 = arith.constant 0.000000e+00 : f32
    %6 = vector.broadcast %cst_5 : f32 to vector<512x8xf32>
    %7 = arith.cmpf oge, %5, %6 : vector<512x8xf32>
    %cst_6 = arith.constant 2.000000e-01 : f32
    %8 = vector.broadcast %cst_6 : f32 to vector<512x8xf32>
    %9 = arith.mulf %8, %5 : vector<512x8xf32>
    %10 = arith.select %7, %5, %9 : vector<512x8xi1>, vector<512x8xf32>
    %11 = arith.truncf %10 : vector<512x8xf32> to vector<512x8xbf16>
    %c0_7 = arith.constant 0 : index
    %c0_8 = arith.constant 0 : index
    %12 = vector.load %arg4[%c0_7, %c0_8] : memref<512x8xbf16, #tpu.memory_space<vmem>>, vector<512x8xbf16>
    tpu.vector_store %arg4[%c0_7, %c0_8], %11 {strides = array<i32>} : memref<512x8xbf16, #tpu.memory_space<vmem>>, vector<512x8xbf16>,
    return
  }
  func.func @transform_0(%arg0: i32) -> (i32, i32) {
    %c0_i32 = arith.constant 0 : i32
    %c0_i32_0 = arith.constant 0 : i32
    return %arg0, %c0_i32 : i32, i32
  }
  func.func @transform_1(%arg0: i32) -> (i32, i32) {
    %c0_i32 = arith.constant 0 : i32
    %c0_i32_0 = arith.constant 0 : i32
    %c0_i32_1 = arith.constant 0 : i32
    return %c0_i32, %c0_i32_0 : i32, i32
  }
  func.func @transform_2(%arg0: i32) -> (i32, i32) {
    %c0_i32 = arith.constant 0 : i32
    %c0_i32_0 = arith.constant 0 : i32
    %c0_i32_1 = arith.constant 0 : i32
    return %c0_i32, %c0_i32_0 : i32, i32
  }
  func.func @transform_3(%arg0: i32) -> (i32, i32) {
    %c0_i32 = arith.constant 0 : i32
    %c0_i32_0 = arith.constant 0 : i32
    return %arg0, %c0_i32 : i32, i32
  }
}

module attributes {stable_mosaic.version = 11 : i64} {
  func.func @_mm_bias_act_kernel(%arg0: i32, %arg1: memref<128x72xbf16, #tpu.memory_space<vmem>>, %arg2: memref<72x16xbf16, #tpu.memory_space<vmem>>, %arg3: memref<1x16xf32, #tpu.memory_space<vmem>>, %arg4: memref<128x16xbf16, #tpu.memory_space<vmem>>) attributes {dimension_semantics = [#tpu.dimension_semantics<parallel>], iteration_bounds = array<i64: 1>, scalar_prefetch = 0 : i64, scratch_operands = 0 : i64, tpu.core_type = #tpu.core_type<tc>, window_params = [{transform_indices = @transform_0, window_bounds = array<i64: 128, 72>}, {pipeline_mode = #tpu.pipeline_mode<synchronous>, transform_indices = @transform_1, window_bounds = array<i64: 72, 16>}, {pipeline_mode = #tpu.pipeline_mode<synchronous>, transform_indices = @transform_2, window_bounds = array<i64: 1, 16>}, {transform_indices = @transform_3, window_bounds = array<i64: 128, 16>}]} {
    %c0 = arith.constant 0 : index
    %c0_0 = arith.constant 0 : index
    %0 = vector.load %arg1[%c0, %c0_0] : memref<128x72xbf16, #tpu.memory_space<vmem>>, vector<128x72xbf16>
    %c0_1 = arith.constant 0 : index
    %c0_2 = arith.constant 0 : index
    %1 = vector.load %arg2[%c0_1, %c0_2] : memref<72x16xbf16, #tpu.memory_space<vmem>>, vector<72x16xbf16>
    %cst = arith.constant dense<0.000000e+00> : vector<128x16xf32>
    %2 = tpu.matmul %0, %1, %cst {dimension_numbers = #tpu.dot_dimension_numbers<[1], [0], [0], [1], [0, 0, 1, 1], [], []>} : vector<128x72xbf16>, vector<72x16xbf16>, vector<128x16xf32> -> vector<128x16xf32>
    %c0_3 = arith.constant 0 : index
    %c0_4 = arith.constant 0 : index
    %3 = vector.load %arg3[%c0_3, %c0_4] : memref<1x16xf32, #tpu.memory_space<vmem>>, vector<1x16xf32>
    %4 = vector.broadcast %3 : vector<1x16xf32> to vector<128x16xf32>
    %5 = arith.addf %2, %4 : vector<128x16xf32>
    %cst_5 = arith.constant 0.000000e+00 : f32
    %6 = vector.broadcast %cst_5 : f32 to vector<128x16xf32>
    %7 = arith.cmpf oge, %5, %6 : vector<128x16xf32>
    %cst_6 = arith.constant 2.000000e-01 : f32
    %8 = vector.broadcast %cst_6 : f32 to vector<128x16xf32>
    %9 = arith.mulf %8, %5 : vector<128x16xf32>
    %10 = arith.select %7, %5, %9 : vector<128x16xi1>, vector<128x16xf32>
    %11 = arith.truncf %10 : vector<128x16xf32> to vector<128x16xbf16>
    %c0_7 = arith.constant 0 : index
    %c0_8 = arith.constant 0 : index
    %12 = vector.load %arg4[%c0_7, %c0_8] : memref<128x16xbf16, #tpu.memory_space<vmem>>, vector<128x16xbf16>
    tpu.vector_store %arg4[%c0_7, %c0_8], %11 {strides = array<i32>} : memref<128x16xbf16, #tpu.memory_space<vmem>>, vector<128x16xbf16>,
    return
  }
  func.func @transform_0(%arg0: i32) -> (i32, i32) {
    %c0_i32 = arith.constant 0 : i32
    %c0_i32_0 = arith.constant 0 : i32
    return %arg0, %c0_i32 : i32, i32
  }
  func.func @transform_1(%arg0: i32) -> (i32, i32) {
    %c0_i32 = arith.constant 0 : i32
    %c0_i32_0 = arith.constant 0 : i32
    %c0_i32_1 = arith.constant 0 : i32
    return %c0_i32, %c0_i32_0 : i32, i32
  }
  func.func @transform_2(%arg0: i32) -> (i32, i32) {
    %c0_i32 = arith.constant 0 : i32
    %c0_i32_0 = arith.constant 0 : i32
    %c0_i32_1 = arith.constant 0 : i32
    return %c0_i32, %c0_i32_0 : i32, i32
  }
  func.func @transform_3(%arg0: i32) -> (i32, i32) {
    %c0_i32 = arith.constant 0 : i32
    %c0_i32_0 = arith.constant 0 : i32
    return %arg0, %c0_i32 : i32, i32
  }
}

module attributes {stable_mosaic.version = 11 : i64} {
  func.func @_mm_bias_act_kernel(%arg0: i32, %arg1: memref<128x144xbf16, #tpu.memory_space<vmem>>, %arg2: memref<144x16xbf16, #tpu.memory_space<vmem>>, %arg3: memref<1x16xf32, #tpu.memory_space<vmem>>, %arg4: memref<128x16xbf16, #tpu.memory_space<vmem>>) attributes {dimension_semantics = [#tpu.dimension_semantics<parallel>], iteration_bounds = array<i64: 1>, scalar_prefetch = 0 : i64, scratch_operands = 0 : i64, tpu.core_type = #tpu.core_type<tc>, window_params = [{transform_indices = @transform_0, window_bounds = array<i64: 128, 144>}, {pipeline_mode = #tpu.pipeline_mode<synchronous>, transform_indices = @transform_1, window_bounds = array<i64: 144, 16>}, {pipeline_mode = #tpu.pipeline_mode<synchronous>, transform_indices = @transform_2, window_bounds = array<i64: 1, 16>}, {transform_indices = @transform_3, window_bounds = array<i64: 128, 16>}]} {
    %c0 = arith.constant 0 : index
    %c0_0 = arith.constant 0 : index
    %0 = vector.load %arg1[%c0, %c0_0] : memref<128x144xbf16, #tpu.memory_space<vmem>>, vector<128x144xbf16>
    %c0_1 = arith.constant 0 : index
    %c0_2 = arith.constant 0 : index
    %1 = vector.load %arg2[%c0_1, %c0_2] : memref<144x16xbf16, #tpu.memory_space<vmem>>, vector<144x16xbf16>
    %cst = arith.constant dense<0.000000e+00> : vector<128x16xf32>
    %2 = tpu.matmul %0, %1, %cst {dimension_numbers = #tpu.dot_dimension_numbers<[1], [0], [0], [1], [0, 0, 1, 1], [], []>} : vector<128x144xbf16>, vector<144x16xbf16>, vector<128x16xf32> -> vector<128x16xf32>
    %c0_3 = arith.constant 0 : index
    %c0_4 = arith.constant 0 : index
    %3 = vector.load %arg3[%c0_3, %c0_4] : memref<1x16xf32, #tpu.memory_space<vmem>>, vector<1x16xf32>
    %4 = vector.broadcast %3 : vector<1x16xf32> to vector<128x16xf32>
    %5 = arith.addf %2, %4 : vector<128x16xf32>
    %cst_5 = arith.constant 0.000000e+00 : f32
    %6 = vector.broadcast %cst_5 : f32 to vector<128x16xf32>
    %7 = arith.cmpf oge, %5, %6 : vector<128x16xf32>
    %cst_6 = arith.constant 2.000000e-01 : f32
    %8 = vector.broadcast %cst_6 : f32 to vector<128x16xf32>
    %9 = arith.mulf %8, %5 : vector<128x16xf32>
    %10 = arith.select %7, %5, %9 : vector<128x16xi1>, vector<128x16xf32>
    %11 = arith.truncf %10 : vector<128x16xf32> to vector<128x16xbf16>
    %c0_7 = arith.constant 0 : index
    %c0_8 = arith.constant 0 : index
    %12 = vector.load %arg4[%c0_7, %c0_8] : memref<128x16xbf16, #tpu.memory_space<vmem>>, vector<128x16xbf16>
    tpu.vector_store %arg4[%c0_7, %c0_8], %11 {strides = array<i32>} : memref<128x16xbf16, #tpu.memory_space<vmem>>, vector<128x16xbf16>,
    return
  }
  func.func @transform_0(%arg0: i32) -> (i32, i32) {
    %c0_i32 = arith.constant 0 : i32
    %c0_i32_0 = arith.constant 0 : i32
    return %arg0, %c0_i32 : i32, i32
  }
  func.func @transform_1(%arg0: i32) -> (i32, i32) {
    %c0_i32 = arith.constant 0 : i32
    %c0_i32_0 = arith.constant 0 : i32
    %c0_i32_1 = arith.constant 0 : i32
    return %c0_i32, %c0_i32_0 : i32, i32
  }
  func.func @transform_2(%arg0: i32) -> (i32, i32) {
    %c0_i32 = arith.constant 0 : i32
    %c0_i32_0 = arith.constant 0 : i32
    %c0_i32_1 = arith.constant 0 : i32
    return %c0_i32, %c0_i32_0 : i32, i32
  }
  func.func @transform_3(%arg0: i32) -> (i32, i32) {
    %c0_i32 = arith.constant 0 : i32
    %c0_i32_0 = arith.constant 0 : i32
    return %arg0, %c0_i32 : i32, i32
  }
}

module attributes {stable_mosaic.version = 11 : i64} {
  func.func @_mm_bias_act_kernel(%arg0: i32, %arg1: memref<32x144xbf16, #tpu.memory_space<vmem>>, %arg2: memref<144x32xbf16, #tpu.memory_space<vmem>>, %arg3: memref<1x32xf32, #tpu.memory_space<vmem>>, %arg4: memref<32x32xbf16, #tpu.memory_space<vmem>>) attributes {dimension_semantics = [#tpu.dimension_semantics<parallel>], iteration_bounds = array<i64: 1>, scalar_prefetch = 0 : i64, scratch_operands = 0 : i64, tpu.core_type = #tpu.core_type<tc>, window_params = [{transform_indices = @transform_0, window_bounds = array<i64: 32, 144>}, {pipeline_mode = #tpu.pipeline_mode<synchronous>, transform_indices = @transform_1, window_bounds = array<i64: 144, 32>}, {pipeline_mode = #tpu.pipeline_mode<synchronous>, transform_indices = @transform_2, window_bounds = array<i64: 1, 32>}, {transform_indices = @transform_3, window_bounds = array<i64: 32, 32>}]} {
    %c0 = arith.constant 0 : index
    %c0_0 = arith.constant 0 : index
    %0 = vector.load %arg1[%c0, %c0_0] : memref<32x144xbf16, #tpu.memory_space<vmem>>, vector<32x144xbf16>
    %c0_1 = arith.constant 0 : index
    %c0_2 = arith.constant 0 : index
    %1 = vector.load %arg2[%c0_1, %c0_2] : memref<144x32xbf16, #tpu.memory_space<vmem>>, vector<144x32xbf16>
    %cst = arith.constant dense<0.000000e+00> : vector<32x32xf32>
    %2 = tpu.matmul %0, %1, %cst {dimension_numbers = #tpu.dot_dimension_numbers<[1], [0], [0], [1], [0, 0, 1, 1], [], []>} : vector<32x144xbf16>, vector<144x32xbf16>, vector<32x32xf32> -> vector<32x32xf32>
    %c0_3 = arith.constant 0 : index
    %c0_4 = arith.constant 0 : index
    %3 = vector.load %arg3[%c0_3, %c0_4] : memref<1x32xf32, #tpu.memory_space<vmem>>, vector<1x32xf32>
    %4 = vector.broadcast %3 : vector<1x32xf32> to vector<32x32xf32>
    %5 = arith.addf %2, %4 : vector<32x32xf32>
    %cst_5 = arith.constant 0.000000e+00 : f32
    %6 = vector.broadcast %cst_5 : f32 to vector<32x32xf32>
    %7 = arith.cmpf oge, %5, %6 : vector<32x32xf32>
    %cst_6 = arith.constant 2.000000e-01 : f32
    %8 = vector.broadcast %cst_6 : f32 to vector<32x32xf32>
    %9 = arith.mulf %8, %5 : vector<32x32xf32>
    %10 = arith.select %7, %5, %9 : vector<32x32xi1>, vector<32x32xf32>
    %11 = arith.truncf %10 : vector<32x32xf32> to vector<32x32xbf16>
    %c0_7 = arith.constant 0 : index
    %c0_8 = arith.constant 0 : index
    %12 = vector.load %arg4[%c0_7, %c0_8] : memref<32x32xbf16, #tpu.memory_space<vmem>>, vector<32x32xbf16>
    tpu.vector_store %arg4[%c0_7, %c0_8], %11 {strides = array<i32>} : memref<32x32xbf16, #tpu.memory_space<vmem>>, vector<32x32xbf16>,
    return
  }
  func.func @transform_0(%arg0: i32) -> (i32, i32) {
    %c0_i32 = arith.constant 0 : i32
    %c0_i32_0 = arith.constant 0 : i32
    return %arg0, %c0_i32 : i32, i32
  }
  func.func @transform_1(%arg0: i32) -> (i32, i32) {
    %c0_i32 = arith.constant 0 : i32
    %c0_i32_0 = arith.constant 0 : i32
    %c0_i32_1 = arith.constant 0 : i32
    return %c0_i32, %c0_i32_0 : i32, i32
  }
  func.func @transform_2(%arg0: i32) -> (i32, i32) {
    %c0_i32 = arith.constant 0 : i32
    %c0_i32_0 = arith.constant 0 : i32
    %c0_i32_1 = arith.constant 0 : i32
    return %c0_i32, %c0_i32_0 : i32, i32
  }
  func.func @transform_3(%arg0: i32) -> (i32, i32) {
    %c0_i32 = arith.constant 0 : i32
    %c0_i32_0 = arith.constant 0 : i32
    return %arg0, %c0_i32 : i32, i32
  }
}

module attributes {stable_mosaic.version = 11 : i64} {
  func.func @_mm_bias_act_kernel(%arg0: i32, %arg1: memref<32x288xbf16, #tpu.memory_space<vmem>>, %arg2: memref<288x32xbf16, #tpu.memory_space<vmem>>, %arg3: memref<1x32xf32, #tpu.memory_space<vmem>>, %arg4: memref<32x32xbf16, #tpu.memory_space<vmem>>) attributes {dimension_semantics = [#tpu.dimension_semantics<parallel>], iteration_bounds = array<i64: 1>, scalar_prefetch = 0 : i64, scratch_operands = 0 : i64, tpu.core_type = #tpu.core_type<tc>, window_params = [{transform_indices = @transform_0, window_bounds = array<i64: 32, 288>}, {pipeline_mode = #tpu.pipeline_mode<synchronous>, transform_indices = @transform_1, window_bounds = array<i64: 288, 32>}, {pipeline_mode = #tpu.pipeline_mode<synchronous>, transform_indices = @transform_2, window_bounds = array<i64: 1, 32>}, {transform_indices = @transform_3, window_bounds = array<i64: 32, 32>}]} {
    %c0 = arith.constant 0 : index
    %c0_0 = arith.constant 0 : index
    %0 = vector.load %arg1[%c0, %c0_0] : memref<32x288xbf16, #tpu.memory_space<vmem>>, vector<32x288xbf16>
    %c0_1 = arith.constant 0 : index
    %c0_2 = arith.constant 0 : index
    %1 = vector.load %arg2[%c0_1, %c0_2] : memref<288x32xbf16, #tpu.memory_space<vmem>>, vector<288x32xbf16>
    %cst = arith.constant dense<0.000000e+00> : vector<32x32xf32>
    %2 = tpu.matmul %0, %1, %cst {dimension_numbers = #tpu.dot_dimension_numbers<[1], [0], [0], [1], [0, 0, 1, 1], [], []>} : vector<32x288xbf16>, vector<288x32xbf16>, vector<32x32xf32> -> vector<32x32xf32>
    %c0_3 = arith.constant 0 : index
    %c0_4 = arith.constant 0 : index
    %3 = vector.load %arg3[%c0_3, %c0_4] : memref<1x32xf32, #tpu.memory_space<vmem>>, vector<1x32xf32>
    %4 = vector.broadcast %3 : vector<1x32xf32> to vector<32x32xf32>
    %5 = arith.addf %2, %4 : vector<32x32xf32>
    %cst_5 = arith.constant 0.000000e+00 : f32
    %6 = vector.broadcast %cst_5 : f32 to vector<32x32xf32>
    %7 = arith.cmpf oge, %5, %6 : vector<32x32xf32>
    %cst_6 = arith.constant 2.000000e-01 : f32
    %8 = vector.broadcast %cst_6 : f32 to vector<32x32xf32>
    %9 = arith.mulf %8, %5 : vector<32x32xf32>
    %10 = arith.select %7, %5, %9 : vector<32x32xi1>, vector<32x32xf32>
    %11 = arith.truncf %10 : vector<32x32xf32> to vector<32x32xbf16>
    %c0_7 = arith.constant 0 : index
    %c0_8 = arith.constant 0 : index
    %12 = vector.load %arg4[%c0_7, %c0_8] : memref<32x32xbf16, #tpu.memory_space<vmem>>, vector<32x32xbf16>
    tpu.vector_store %arg4[%c0_7, %c0_8], %11 {strides = array<i32>} : memref<32x32xbf16, #tpu.memory_space<vmem>>, vector<32x32xbf16>,
    return
  }
  func.func @transform_0(%arg0: i32) -> (i32, i32) {
    %c0_i32 = arith.constant 0 : i32
    %c0_i32_0 = arith.constant 0 : i32
    return %arg0, %c0_i32 : i32, i32
  }
  func.func @transform_1(%arg0: i32) -> (i32, i32) {
    %c0_i32 = arith.constant 0 : i32
    %c0_i32_0 = arith.constant 0 : i32
    %c0_i32_1 = arith.constant 0 : i32
    return %c0_i32, %c0_i32_0 : i32, i32
  }
  func.func @transform_2(%arg0: i32) -> (i32, i32) {
    %c0_i32 = arith.constant 0 : i32
    %c0_i32_0 = arith.constant 0 : i32
    %c0_i32_1 = arith.constant 0 : i32
    return %c0_i32, %c0_i32_0 : i32, i32
  }
  func.func @transform_3(%arg0: i32) -> (i32, i32) {
    %c0_i32 = arith.constant 0 : i32
    %c0_i32_0 = arith.constant 0 : i32
    return %arg0, %c0_i32 : i32, i32
  }
}

module attributes {stable_mosaic.version = 11 : i64} {
  func.func @_mm_bias_act_kernel(%arg0: i32, %arg1: memref<8x576xbf16, #tpu.memory_space<vmem>>, %arg2: memref<576x64xbf16, #tpu.memory_space<vmem>>, %arg3: memref<1x64xf32, #tpu.memory_space<vmem>>, %arg4: memref<8x64xbf16, #tpu.memory_space<vmem>>) attributes {dimension_semantics = [#tpu.dimension_semantics<parallel>], iteration_bounds = array<i64: 1>, scalar_prefetch = 0 : i64, scratch_operands = 0 : i64, tpu.core_type = #tpu.core_type<tc>, window_params = [{transform_indices = @transform_0, window_bounds = array<i64: 8, 576>}, {pipeline_mode = #tpu.pipeline_mode<synchronous>, transform_indices = @transform_1, window_bounds = array<i64: 576, 64>}, {pipeline_mode = #tpu.pipeline_mode<synchronous>, transform_indices = @transform_2, window_bounds = array<i64: 1, 64>}, {transform_indices = @transform_3, window_bounds = array<i64: 8, 64>}]} {
    %c0 = arith.constant 0 : index
    %c0_0 = arith.constant 0 : index
    %0 = vector.load %arg1[%c0, %c0_0] : memref<8x576xbf16, #tpu.memory_space<vmem>>, vector<8x576xbf16>
    %c0_1 = arith.constant 0 : index
    %c0_2 = arith.constant 0 : index
    %1 = vector.load %arg2[%c0_1, %c0_2] : memref<576x64xbf16, #tpu.memory_space<vmem>>, vector<576x64xbf16>
    %cst = arith.constant dense<0.000000e+00> : vector<8x64xf32>
    %2 = tpu.matmul %0, %1, %cst {dimension_numbers = #tpu.dot_dimension_numbers<[1], [0], [0], [1], [0, 0, 1, 1], [], []>} : vector<8x576xbf16>, vector<576x64xbf16>, vector<8x64xf32> -> vector<8x64xf32>
    %c0_3 = arith.constant 0 : index
    %c0_4 = arith.constant 0 : index
    %3 = vector.load %arg3[%c0_3, %c0_4] : memref<1x64xf32, #tpu.memory_space<vmem>>, vector<1x64xf32>
    %4 = vector.broadcast %3 : vector<1x64xf32> to vector<8x64xf32>
    %5 = arith.addf %2, %4 : vector<8x64xf32>
    %cst_5 = arith.constant 0.000000e+00 : f32
    %6 = vector.broadcast %cst_5 : f32 to vector<8x64xf32>
    %7 = arith.cmpf oge, %5, %6 : vector<8x64xf32>
    %cst_6 = arith.constant 2.000000e-01 : f32
    %8 = vector.broadcast %cst_6 : f32 to vector<8x64xf32>
    %9 = arith.mulf %8, %5 : vector<8x64xf32>
    %10 = arith.select %7, %5, %9 : vector<8x64xi1>, vector<8x64xf32>
    %11 = arith.truncf %10 : vector<8x64xf32> to vector<8x64xbf16>
    %c0_7 = arith.constant 0 : index
    %c0_8 = arith.constant 0 : index
    %12 = vector.load %arg4[%c0_7, %c0_8] : memref<8x64xbf16, #tpu.memory_space<vmem>>, vector<8x64xbf16>
    tpu.vector_store %arg4[%c0_7, %c0_8], %11 {strides = array<i32>} : memref<8x64xbf16, #tpu.memory_space<vmem>>, vector<8x64xbf16>,
    return
  }
  func.func @transform_0(%arg0: i32) -> (i32, i32) {
    %c0_i32 = arith.constant 0 : i32
    %c0_i32_0 = arith.constant 0 : i32
    return %arg0, %c0_i32 : i32, i32
  }
  func.func @transform_1(%arg0: i32) -> (i32, i32) {
    %c0_i32 = arith.constant 0 : i32
    %c0_i32_0 = arith.constant 0 : i32
    %c0_i32_1 = arith.constant 0 : i32
    return %c0_i32, %c0_i32_0 : i32, i32
  }
  func.func @transform_2(%arg0: i32) -> (i32, i32) {
    %c0_i32 = arith.constant 0 : i32
    %c0_i32_0 = arith.constant 0 : i32
    %c0_i32_1 = arith.constant 0 : i32
    return %c0_i32, %c0_i32_0 : i32, i32
  }
  func.func @transform_3(%arg0: i32) -> (i32, i32) {
    %c0_i32 = arith.constant 0 : i32
    %c0_i32_0 = arith.constant 0 : i32
    return %arg0, %c0_i32 : i32, i32
  }
}

module attributes {stable_mosaic.version = 11 : i64} {
  func.func @_mm_bias_act_kernel(%arg0: i32, %arg1: memref<8x288xbf16, #tpu.memory_space<vmem>>, %arg2: memref<288x64xbf16, #tpu.memory_space<vmem>>, %arg3: memref<1x64xf32, #tpu.memory_space<vmem>>, %arg4: memref<8x64xbf16, #tpu.memory_space<vmem>>) attributes {dimension_semantics = [#tpu.dimension_semantics<parallel>], iteration_bounds = array<i64: 1>, scalar_prefetch = 0 : i64, scratch_operands = 0 : i64, tpu.core_type = #tpu.core_type<tc>, window_params = [{transform_indices = @transform_0, window_bounds = array<i64: 8, 288>}, {pipeline_mode = #tpu.pipeline_mode<synchronous>, transform_indices = @transform_1, window_bounds = array<i64: 288, 64>}, {pipeline_mode = #tpu.pipeline_mode<synchronous>, transform_indices = @transform_2, window_bounds = array<i64: 1, 64>}, {transform_indices = @transform_3, window_bounds = array<i64: 8, 64>}]} {
    %c0 = arith.constant 0 : index
    %c0_0 = arith.constant 0 : index
    %0 = vector.load %arg1[%c0, %c0_0] : memref<8x288xbf16, #tpu.memory_space<vmem>>, vector<8x288xbf16>
    %c0_1 = arith.constant 0 : index
    %c0_2 = arith.constant 0 : index
    %1 = vector.load %arg2[%c0_1, %c0_2] : memref<288x64xbf16, #tpu.memory_space<vmem>>, vector<288x64xbf16>
    %cst = arith.constant dense<0.000000e+00> : vector<8x64xf32>
    %2 = tpu.matmul %0, %1, %cst {dimension_numbers = #tpu.dot_dimension_numbers<[1], [0], [0], [1], [0, 0, 1, 1], [], []>} : vector<8x288xbf16>, vector<288x64xbf16>, vector<8x64xf32> -> vector<8x64xf32>
    %c0_3 = arith.constant 0 : index
    %c0_4 = arith.constant 0 : index
    %3 = vector.load %arg3[%c0_3, %c0_4] : memref<1x64xf32, #tpu.memory_space<vmem>>, vector<1x64xf32>
    %4 = vector.broadcast %3 : vector<1x64xf32> to vector<8x64xf32>
    %5 = arith.addf %2, %4 : vector<8x64xf32>
    %cst_5 = arith.constant 0.000000e+00 : f32
    %6 = vector.broadcast %cst_5 : f32 to vector<8x64xf32>
    %7 = arith.cmpf oge, %5, %6 : vector<8x64xf32>
    %cst_6 = arith.constant 2.000000e-01 : f32
    %8 = vector.broadcast %cst_6 : f32 to vector<8x64xf32>
    %9 = arith.mulf %8, %5 : vector<8x64xf32>
    %10 = arith.select %7, %5, %9 : vector<8x64xi1>, vector<8x64xf32>
    %11 = arith.truncf %10 : vector<8x64xf32> to vector<8x64xbf16>
    %c0_7 = arith.constant 0 : index
    %c0_8 = arith.constant 0 : index
    %12 = vector.load %arg4[%c0_7, %c0_8] : memref<8x64xbf16, #tpu.memory_space<vmem>>, vector<8x64xbf16>
    tpu.vector_store %arg4[%c0_7, %c0_8], %11 {strides = array<i32>} : memref<8x64xbf16, #tpu.memory_space<vmem>>, vector<8x64xbf16>,
    return
  }
  func.func @transform_0(%arg0: i32) -> (i32, i32) {
    %c0_i32 = arith.constant 0 : i32
    %c0_i32_0 = arith.constant 0 : i32
    return %arg0, %c0_i32 : i32, i32
  }
  func.func @transform_1(%arg0: i32) -> (i32, i32) {
    %c0_i32 = arith.constant 0 : i32
    %c0_i32_0 = arith.constant 0 : i32
    %c0_i32_1 = arith.constant 0 : i32
    return %c0_i32, %c0_i32_0 : i32, i32
  }
  func.func @transform_2(%arg0: i32) -> (i32, i32) {
    %c0_i32 = arith.constant 0 : i32
    %c0_i32_0 = arith.constant 0 : i32
    %c0_i32_1 = arith.constant 0 : i32
    return %c0_i32, %c0_i32_0 : i32, i32
  }
  func.func @transform_3(%arg0: i32) -> (i32, i32) {
    %c0_i32 = arith.constant 0 : i32
    %c0_i32_0 = arith.constant 0 : i32
    return %arg0, %c0_i32 : i32, i32
  }
}

module attributes {stable_mosaic.version = 11 : i64} {
  func.func @_mm_bias_act_kernel(%arg0: i32, %arg1: memref<8x64xbf16, #tpu.memory_space<vmem>>, %arg2: memref<64x128xbf16, #tpu.memory_space<vmem>>, %arg3: memref<1x128xf32, #tpu.memory_space<vmem>>, %arg4: memref<8x128xbf16, #tpu.memory_space<vmem>>) attributes {dimension_semantics = [#tpu.dimension_semantics<parallel>], iteration_bounds = array<i64: 1>, scalar_prefetch = 0 : i64, scratch_operands = 0 : i64, tpu.core_type = #tpu.core_type<tc>, window_params = [{transform_indices = @transform_0, window_bounds = array<i64: 8, 64>}, {pipeline_mode = #tpu.pipeline_mode<synchronous>, transform_indices = @transform_1, window_bounds = array<i64: 64, 128>}, {pipeline_mode = #tpu.pipeline_mode<synchronous>, transform_indices = @transform_2, window_bounds = array<i64: 1, 128>}, {transform_indices = @transform_3, window_bounds = array<i64: 8, 128>}]} {
    %c0 = arith.constant 0 : index
    %c0_0 = arith.constant 0 : index
    %0 = vector.load %arg1[%c0, %c0_0] : memref<8x64xbf16, #tpu.memory_space<vmem>>, vector<8x64xbf16>
    %c0_1 = arith.constant 0 : index
    %c0_2 = arith.constant 0 : index
    %1 = vector.load %arg2[%c0_1, %c0_2] : memref<64x128xbf16, #tpu.memory_space<vmem>>, vector<64x128xbf16>
    %cst = arith.constant dense<0.000000e+00> : vector<8x128xf32>
    %2 = tpu.matmul %0, %1, %cst {dimension_numbers = #tpu.dot_dimension_numbers<[1], [0], [0], [1], [0, 0, 1, 1], [], []>} : vector<8x64xbf16>, vector<64x128xbf16>, vector<8x128xf32> -> vector<8x128xf32>
    %c0_3 = arith.constant 0 : index
    %c0_4 = arith.constant 0 : index
    %3 = vector.load %arg3[%c0_3, %c0_4] : memref<1x128xf32, #tpu.memory_space<vmem>>, vector<1x128xf32>
    %4 = vector.broadcast %3 : vector<1x128xf32> to vector<8x128xf32>
    %5 = arith.addf %2, %4 : vector<8x128xf32>
    %6 = arith.truncf %5 : vector<8x128xf32> to vector<8x128xbf16>
    %c0_5 = arith.constant 0 : index
    %c0_6 = arith.constant 0 : index
    %7 = vector.load %arg4[%c0_5, %c0_6] : memref<8x128xbf16, #tpu.memory_space<vmem>>, vector<8x128xbf16>
    tpu.vector_store %arg4[%c0_5, %c0_6], %6 {strides = array<i32>} : memref<8x128xbf16, #tpu.memory_space<vmem>>, vector<8x128xbf16>,
    return
  }
  func.func @transform_0(%arg0: i32) -> (i32, i32) {
    %c0_i32 = arith.constant 0 : i32
    %c0_i32_0 = arith.constant 0 : i32
    return %arg0, %c0_i32 : i32, i32
  }
  func.func @transform_1(%arg0: i32) -> (i32, i32) {
    %c0_i32 = arith.constant 0 : i32
    %c0_i32_0 = arith.constant 0 : i32
    %c0_i32_1 = arith.constant 0 : i32
    return %c0_i32, %c0_i32_0 : i32, i32
  }
  func.func @transform_2(%arg0: i32) -> (i32, i32) {
    %c0_i32 = arith.constant 0 : i32
    %c0_i32_0 = arith.constant 0 : i32
    %c0_i32_1 = arith.constant 0 : i32
    return %c0_i32, %c0_i32_0 : i32, i32
  }
  func.func @transform_3(%arg0: i32) -> (i32, i32) {
    %c0_i32 = arith.constant 0 : i32
    %c0_i32_0 = arith.constant 0 : i32
    return %arg0, %c0_i32 : i32, i32
  }
}

module attributes {stable_mosaic.version = 11 : i64} {
  func.func @_mm_bias_act_kernel(%arg0: i32, %arg1: memref<32x576xbf16, #tpu.memory_space<vmem>>, %arg2: memref<576x32xbf16, #tpu.memory_space<vmem>>, %arg3: memref<1x32xf32, #tpu.memory_space<vmem>>, %arg4: memref<32x32xbf16, #tpu.memory_space<vmem>>) attributes {dimension_semantics = [#tpu.dimension_semantics<parallel>], iteration_bounds = array<i64: 1>, scalar_prefetch = 0 : i64, scratch_operands = 0 : i64, tpu.core_type = #tpu.core_type<tc>, window_params = [{transform_indices = @transform_0, window_bounds = array<i64: 32, 576>}, {pipeline_mode = #tpu.pipeline_mode<synchronous>, transform_indices = @transform_1, window_bounds = array<i64: 576, 32>}, {pipeline_mode = #tpu.pipeline_mode<synchronous>, transform_indices = @transform_2, window_bounds = array<i64: 1, 32>}, {transform_indices = @transform_3, window_bounds = array<i64: 32, 32>}]} {
    %c0 = arith.constant 0 : index
    %c0_0 = arith.constant 0 : index
    %0 = vector.load %arg1[%c0, %c0_0] : memref<32x576xbf16, #tpu.memory_space<vmem>>, vector<32x576xbf16>
    %c0_1 = arith.constant 0 : index
    %c0_2 = arith.constant 0 : index
    %1 = vector.load %arg2[%c0_1, %c0_2] : memref<576x32xbf16, #tpu.memory_space<vmem>>, vector<576x32xbf16>
    %cst = arith.constant dense<0.000000e+00> : vector<32x32xf32>
    %2 = tpu.matmul %0, %1, %cst {dimension_numbers = #tpu.dot_dimension_numbers<[1], [0], [0], [1], [0, 0, 1, 1], [], []>} : vector<32x576xbf16>, vector<576x32xbf16>, vector<32x32xf32> -> vector<32x32xf32>
    %c0_3 = arith.constant 0 : index
    %c0_4 = arith.constant 0 : index
    %3 = vector.load %arg3[%c0_3, %c0_4] : memref<1x32xf32, #tpu.memory_space<vmem>>, vector<1x32xf32>
    %4 = vector.broadcast %3 : vector<1x32xf32> to vector<32x32xf32>
    %5 = arith.addf %2, %4 : vector<32x32xf32>
    %cst_5 = arith.constant 0.000000e+00 : f32
    %6 = vector.broadcast %cst_5 : f32 to vector<32x32xf32>
    %7 = arith.cmpf oge, %5, %6 : vector<32x32xf32>
    %cst_6 = arith.constant 2.000000e-01 : f32
    %8 = vector.broadcast %cst_6 : f32 to vector<32x32xf32>
    %9 = arith.mulf %8, %5 : vector<32x32xf32>
    %10 = arith.select %7, %5, %9 : vector<32x32xi1>, vector<32x32xf32>
    %11 = arith.truncf %10 : vector<32x32xf32> to vector<32x32xbf16>
    %c0_7 = arith.constant 0 : index
    %c0_8 = arith.constant 0 : index
    %12 = vector.load %arg4[%c0_7, %c0_8] : memref<32x32xbf16, #tpu.memory_space<vmem>>, vector<32x32xbf16>
    tpu.vector_store %arg4[%c0_7, %c0_8], %11 {strides = array<i32>} : memref<32x32xbf16, #tpu.memory_space<vmem>>, vector<32x32xbf16>,
    return
  }
  func.func @transform_0(%arg0: i32) -> (i32, i32) {
    %c0_i32 = arith.constant 0 : i32
    %c0_i32_0 = arith.constant 0 : i32
    return %arg0, %c0_i32 : i32, i32
  }
  func.func @transform_1(%arg0: i32) -> (i32, i32) {
    %c0_i32 = arith.constant 0 : i32
    %c0_i32_0 = arith.constant 0 : i32
    %c0_i32_1 = arith.constant 0 : i32
    return %c0_i32, %c0_i32_0 : i32, i32
  }
  func.func @transform_2(%arg0: i32) -> (i32, i32) {
    %c0_i32 = arith.constant 0 : i32
    %c0_i32_0 = arith.constant 0 : i32
    %c0_i32_1 = arith.constant 0 : i32
    return %c0_i32, %c0_i32_0 : i32, i32
  }
  func.func @transform_3(%arg0: i32) -> (i32, i32) {
    %c0_i32 = arith.constant 0 : i32
    %c0_i32_0 = arith.constant 0 : i32
    return %arg0, %c0_i32 : i32, i32
  }
}

module attributes {stable_mosaic.version = 11 : i64} {
  func.func @_mm_bias_act_kernel(%arg0: i32, %arg1: memref<32x32xbf16, #tpu.memory_space<vmem>>, %arg2: memref<32x64xbf16, #tpu.memory_space<vmem>>, %arg3: memref<1x64xf32, #tpu.memory_space<vmem>>, %arg4: memref<32x64xbf16, #tpu.memory_space<vmem>>) attributes {dimension_semantics = [#tpu.dimension_semantics<parallel>], iteration_bounds = array<i64: 1>, scalar_prefetch = 0 : i64, scratch_operands = 0 : i64, tpu.core_type = #tpu.core_type<tc>, window_params = [{transform_indices = @transform_0, window_bounds = array<i64: 32, 32>}, {pipeline_mode = #tpu.pipeline_mode<synchronous>, transform_indices = @transform_1, window_bounds = array<i64: 32, 64>}, {pipeline_mode = #tpu.pipeline_mode<synchronous>, transform_indices = @transform_2, window_bounds = array<i64: 1, 64>}, {transform_indices = @transform_3, window_bounds = array<i64: 32, 64>}]} {
    %c0 = arith.constant 0 : index
    %c0_0 = arith.constant 0 : index
    %0 = vector.load %arg1[%c0, %c0_0] : memref<32x32xbf16, #tpu.memory_space<vmem>>, vector<32x32xbf16>
    %c0_1 = arith.constant 0 : index
    %c0_2 = arith.constant 0 : index
    %1 = vector.load %arg2[%c0_1, %c0_2] : memref<32x64xbf16, #tpu.memory_space<vmem>>, vector<32x64xbf16>
    %cst = arith.constant dense<0.000000e+00> : vector<32x64xf32>
    %2 = tpu.matmul %0, %1, %cst {dimension_numbers = #tpu.dot_dimension_numbers<[1], [0], [0], [1], [0, 0, 1, 1], [], []>} : vector<32x32xbf16>, vector<32x64xbf16>, vector<32x64xf32> -> vector<32x64xf32>
    %c0_3 = arith.constant 0 : index
    %c0_4 = arith.constant 0 : index
    %3 = vector.load %arg3[%c0_3, %c0_4] : memref<1x64xf32, #tpu.memory_space<vmem>>, vector<1x64xf32>
    %4 = vector.broadcast %3 : vector<1x64xf32> to vector<32x64xf32>
    %5 = arith.addf %2, %4 : vector<32x64xf32>
    %6 = arith.truncf %5 : vector<32x64xf32> to vector<32x64xbf16>
    %c0_5 = arith.constant 0 : index
    %c0_6 = arith.constant 0 : index
    %7 = vector.load %arg4[%c0_5, %c0_6] : memref<32x64xbf16, #tpu.memory_space<vmem>>, vector<32x64xbf16>
    tpu.vector_store %arg4[%c0_5, %c0_6], %6 {strides = array<i32>} : memref<32x64xbf16, #tpu.memory_space<vmem>>, vector<32x64xbf16>,
    return
  }
  func.func @transform_0(%arg0: i32) -> (i32, i32) {
    %c0_i32 = arith.constant 0 : i32
    %c0_i32_0 = arith.constant 0 : i32
    return %arg0, %c0_i32 : i32, i32
  }
  func.func @transform_1(%arg0: i32) -> (i32, i32) {
    %c0_i32 = arith.constant 0 : i32
    %c0_i32_0 = arith.constant 0 : i32
    %c0_i32_1 = arith.constant 0 : i32
    return %c0_i32, %c0_i32_0 : i32, i32
  }
  func.func @transform_2(%arg0: i32) -> (i32, i32) {
    %c0_i32 = arith.constant 0 : i32
    %c0_i32_0 = arith.constant 0 : i32
    %c0_i32_1 = arith.constant 0 : i32
    return %c0_i32, %c0_i32_0 : i32, i32
  }
  func.func @transform_3(%arg0: i32) -> (i32, i32) {
    %c0_i32 = arith.constant 0 : i32
    %c0_i32_0 = arith.constant 0 : i32
    return %arg0, %c0_i32 : i32, i32
  }
}

module attributes {stable_mosaic.version = 11 : i64} {
  func.func @_mm_bias_act_kernel(%arg0: i32, %arg1: memref<128x288xbf16, #tpu.memory_space<vmem>>, %arg2: memref<288x16xbf16, #tpu.memory_space<vmem>>, %arg3: memref<1x16xf32, #tpu.memory_space<vmem>>, %arg4: memref<128x16xbf16, #tpu.memory_space<vmem>>) attributes {dimension_semantics = [#tpu.dimension_semantics<parallel>], iteration_bounds = array<i64: 1>, scalar_prefetch = 0 : i64, scratch_operands = 0 : i64, tpu.core_type = #tpu.core_type<tc>, window_params = [{transform_indices = @transform_0, window_bounds = array<i64: 128, 288>}, {pipeline_mode = #tpu.pipeline_mode<synchronous>, transform_indices = @transform_1, window_bounds = array<i64: 288, 16>}, {pipeline_mode = #tpu.pipeline_mode<synchronous>, transform_indices = @transform_2, window_bounds = array<i64: 1, 16>}, {transform_indices = @transform_3, window_bounds = array<i64: 128, 16>}]} {
    %c0 = arith.constant 0 : index
    %c0_0 = arith.constant 0 : index
    %0 = vector.load %arg1[%c0, %c0_0] : memref<128x288xbf16, #tpu.memory_space<vmem>>, vector<128x288xbf16>
    %c0_1 = arith.constant 0 : index
    %c0_2 = arith.constant 0 : index
    %1 = vector.load %arg2[%c0_1, %c0_2] : memref<288x16xbf16, #tpu.memory_space<vmem>>, vector<288x16xbf16>
    %cst = arith.constant dense<0.000000e+00> : vector<128x16xf32>
    %2 = tpu.matmul %0, %1, %cst {dimension_numbers = #tpu.dot_dimension_numbers<[1], [0], [0], [1], [0, 0, 1, 1], [], []>} : vector<128x288xbf16>, vector<288x16xbf16>, vector<128x16xf32> -> vector<128x16xf32>
    %c0_3 = arith.constant 0 : index
    %c0_4 = arith.constant 0 : index
    %3 = vector.load %arg3[%c0_3, %c0_4] : memref<1x16xf32, #tpu.memory_space<vmem>>, vector<1x16xf32>
    %4 = vector.broadcast %3 : vector<1x16xf32> to vector<128x16xf32>
    %5 = arith.addf %2, %4 : vector<128x16xf32>
    %cst_5 = arith.constant 0.000000e+00 : f32
    %6 = vector.broadcast %cst_5 : f32 to vector<128x16xf32>
    %7 = arith.cmpf oge, %5, %6 : vector<128x16xf32>
    %cst_6 = arith.constant 2.000000e-01 : f32
    %8 = vector.broadcast %cst_6 : f32 to vector<128x16xf32>
    %9 = arith.mulf %8, %5 : vector<128x16xf32>
    %10 = arith.select %7, %5, %9 : vector<128x16xi1>, vector<128x16xf32>
    %11 = arith.truncf %10 : vector<128x16xf32> to vector<128x16xbf16>
    %c0_7 = arith.constant 0 : index
    %c0_8 = arith.constant 0 : index
    %12 = vector.load %arg4[%c0_7, %c0_8] : memref<128x16xbf16, #tpu.memory_space<vmem>>, vector<128x16xbf16>
    tpu.vector_store %arg4[%c0_7, %c0_8], %11 {strides = array<i32>} : memref<128x16xbf16, #tpu.memory_space<vmem>>, vector<128x16xbf16>,
    return
  }
  func.func @transform_0(%arg0: i32) -> (i32, i32) {
    %c0_i32 = arith.constant 0 : i32
    %c0_i32_0 = arith.constant 0 : i32
    return %arg0, %c0_i32 : i32, i32
  }
  func.func @transform_1(%arg0: i32) -> (i32, i32) {
    %c0_i32 = arith.constant 0 : i32
    %c0_i32_0 = arith.constant 0 : i32
    %c0_i32_1 = arith.constant 0 : i32
    return %c0_i32, %c0_i32_0 : i32, i32
  }
  func.func @transform_2(%arg0: i32) -> (i32, i32) {
    %c0_i32 = arith.constant 0 : i32
    %c0_i32_0 = arith.constant 0 : i32
    %c0_i32_1 = arith.constant 0 : i32
    return %c0_i32, %c0_i32_0 : i32, i32
  }
  func.func @transform_3(%arg0: i32) -> (i32, i32) {
    %c0_i32 = arith.constant 0 : i32
    %c0_i32_0 = arith.constant 0 : i32
    return %arg0, %c0_i32 : i32, i32
  }
}

module attributes {stable_mosaic.version = 11 : i64} {
  func.func @_mm_bias_act_kernel(%arg0: i32, %arg1: memref<128x16xbf16, #tpu.memory_space<vmem>>, %arg2: memref<16x32xbf16, #tpu.memory_space<vmem>>, %arg3: memref<1x32xf32, #tpu.memory_space<vmem>>, %arg4: memref<128x32xbf16, #tpu.memory_space<vmem>>) attributes {dimension_semantics = [#tpu.dimension_semantics<parallel>], iteration_bounds = array<i64: 1>, scalar_prefetch = 0 : i64, scratch_operands = 0 : i64, tpu.core_type = #tpu.core_type<tc>, window_params = [{transform_indices = @transform_0, window_bounds = array<i64: 128, 16>}, {pipeline_mode = #tpu.pipeline_mode<synchronous>, transform_indices = @transform_1, window_bounds = array<i64: 16, 32>}, {pipeline_mode = #tpu.pipeline_mode<synchronous>, transform_indices = @transform_2, window_bounds = array<i64: 1, 32>}, {transform_indices = @transform_3, window_bounds = array<i64: 128, 32>}]} {
    %c0 = arith.constant 0 : index
    %c0_0 = arith.constant 0 : index
    %0 = vector.load %arg1[%c0, %c0_0] : memref<128x16xbf16, #tpu.memory_space<vmem>>, vector<128x16xbf16>
    %c0_1 = arith.constant 0 : index
    %c0_2 = arith.constant 0 : index
    %1 = vector.load %arg2[%c0_1, %c0_2] : memref<16x32xbf16, #tpu.memory_space<vmem>>, vector<16x32xbf16>
    %cst = arith.constant dense<0.000000e+00> : vector<128x32xf32>
    %2 = tpu.matmul %0, %1, %cst {dimension_numbers = #tpu.dot_dimension_numbers<[1], [0], [0], [1], [0, 0, 1, 1], [], []>} : vector<128x16xbf16>, vector<16x32xbf16>, vector<128x32xf32> -> vector<128x32xf32>
    %c0_3 = arith.constant 0 : index
    %c0_4 = arith.constant 0 : index
    %3 = vector.load %arg3[%c0_3, %c0_4] : memref<1x32xf32, #tpu.memory_space<vmem>>, vector<1x32xf32>
    %4 = vector.broadcast %3 : vector<1x32xf32> to vector<128x32xf32>
    %5 = arith.addf %2, %4 : vector<128x32xf32>
    %6 = arith.truncf %5 : vector<128x32xf32> to vector<128x32xbf16>
    %c0_5 = arith.constant 0 : index
    %c0_6 = arith.constant 0 : index
    %7 = vector.load %arg4[%c0_5, %c0_6] : memref<128x32xbf16, #tpu.memory_space<vmem>>, vector<128x32xbf16>
    tpu.vector_store %arg4[%c0_5, %c0_6], %6 {strides = array<i32>} : memref<128x32xbf16, #tpu.memory_space<vmem>>, vector<128x32xbf16>,
    return
  }
  func.func @transform_0(%arg0: i32) -> (i32, i32) {
    %c0_i32 = arith.constant 0 : i32
    %c0_i32_0 = arith.constant 0 : i32
    return %arg0, %c0_i32 : i32, i32
  }
  func.func @transform_1(%arg0: i32) -> (i32, i32) {
    %c0_i32 = arith.constant 0 : i32
    %c0_i32_0 = arith.constant 0 : i32
    %c0_i32_1 = arith.constant 0 : i32
    return %c0_i32, %c0_i32_0 : i32, i32
  }
  func.func @transform_2(%arg0: i32) -> (i32, i32) {
    %c0_i32 = arith.constant 0 : i32
    %c0_i32_0 = arith.constant 0 : i32
    %c0_i32_1 = arith.constant 0 : i32
    return %c0_i32, %c0_i32_0 : i32, i32
  }
  func.func @transform_3(%arg0: i32) -> (i32, i32) {
    %c0_i32 = arith.constant 0 : i32
    %c0_i32_0 = arith.constant 0 : i32
    return %arg0, %c0_i32 : i32, i32
  }
}

module attributes {stable_mosaic.version = 11 : i64} {
  func.func @_mm_bias_act_kernel(%arg0: i32, %arg1: memref<512x144xbf16, #tpu.memory_space<vmem>>, %arg2: memref<144x8xbf16, #tpu.memory_space<vmem>>, %arg3: memref<1x8xf32, #tpu.memory_space<vmem>>, %arg4: memref<512x8xbf16, #tpu.memory_space<vmem>>) attributes {dimension_semantics = [#tpu.dimension_semantics<parallel>], iteration_bounds = array<i64: 1>, scalar_prefetch = 0 : i64, scratch_operands = 0 : i64, tpu.core_type = #tpu.core_type<tc>, window_params = [{transform_indices = @transform_0, window_bounds = array<i64: 512, 144>}, {pipeline_mode = #tpu.pipeline_mode<synchronous>, transform_indices = @transform_1, window_bounds = array<i64: 144, 8>}, {pipeline_mode = #tpu.pipeline_mode<synchronous>, transform_indices = @transform_2, window_bounds = array<i64: 1, 8>}, {transform_indices = @transform_3, window_bounds = array<i64: 512, 8>}]} {
    %c0 = arith.constant 0 : index
    %c0_0 = arith.constant 0 : index
    %0 = vector.load %arg1[%c0, %c0_0] : memref<512x144xbf16, #tpu.memory_space<vmem>>, vector<512x144xbf16>
    %c0_1 = arith.constant 0 : index
    %c0_2 = arith.constant 0 : index
    %1 = vector.load %arg2[%c0_1, %c0_2] : memref<144x8xbf16, #tpu.memory_space<vmem>>, vector<144x8xbf16>
    %cst = arith.constant dense<0.000000e+00> : vector<512x8xf32>
    %2 = tpu.matmul %0, %1, %cst {dimension_numbers = #tpu.dot_dimension_numbers<[1], [0], [0], [1], [0, 0, 1, 1], [], []>} : vector<512x144xbf16>, vector<144x8xbf16>, vector<512x8xf32> -> vector<512x8xf32>
    %c0_3 = arith.constant 0 : index
    %c0_4 = arith.constant 0 : index
    %3 = vector.load %arg3[%c0_3, %c0_4] : memref<1x8xf32, #tpu.memory_space<vmem>>, vector<1x8xf32>
    %4 = vector.broadcast %3 : vector<1x8xf32> to vector<512x8xf32>
    %5 = arith.addf %2, %4 : vector<512x8xf32>
    %cst_5 = arith.constant 0.000000e+00 : f32
    %6 = vector.broadcast %cst_5 : f32 to vector<512x8xf32>
    %7 = arith.cmpf oge, %5, %6 : vector<512x8xf32>
    %cst_6 = arith.constant 2.000000e-01 : f32
    %8 = vector.broadcast %cst_6 : f32 to vector<512x8xf32>
    %9 = arith.mulf %8, %5 : vector<512x8xf32>
    %10 = arith.select %7, %5, %9 : vector<512x8xi1>, vector<512x8xf32>
    %11 = arith.truncf %10 : vector<512x8xf32> to vector<512x8xbf16>
    %c0_7 = arith.constant 0 : index
    %c0_8 = arith.constant 0 : index
    %12 = vector.load %arg4[%c0_7, %c0_8] : memref<512x8xbf16, #tpu.memory_space<vmem>>, vector<512x8xbf16>
    tpu.vector_store %arg4[%c0_7, %c0_8], %11 {strides = array<i32>} : memref<512x8xbf16, #tpu.memory_space<vmem>>, vector<512x8xbf16>,
    return
  }
  func.func @transform_0(%arg0: i32) -> (i32, i32) {
    %c0_i32 = arith.constant 0 : i32
    %c0_i32_0 = arith.constant 0 : i32
    return %arg0, %c0_i32 : i32, i32
  }
  func.func @transform_1(%arg0: i32) -> (i32, i32) {
    %c0_i32 = arith.constant 0 : i32
    %c0_i32_0 = arith.constant 0 : i32
    %c0_i32_1 = arith.constant 0 : i32
    return %c0_i32, %c0_i32_0 : i32, i32
  }
  func.func @transform_2(%arg0: i32) -> (i32, i32) {
    %c0_i32 = arith.constant 0 : i32
    %c0_i32_0 = arith.constant 0 : i32
    %c0_i32_1 = arith.constant 0 : i32
    return %c0_i32, %c0_i32_0 : i32, i32
  }
  func.func @transform_3(%arg0: i32) -> (i32, i32) {
    %c0_i32 = arith.constant 0 : i32
    %c0_i32_0 = arith.constant 0 : i32
    return %arg0, %c0_i32 : i32, i32
  }
}

module attributes {stable_mosaic.version = 11 : i64} {
  func.func @_mm_bias_act_kernel(%arg0: i32, %arg1: memref<512x72xbf16, #tpu.memory_space<vmem>>, %arg2: memref<72x2xbf16, #tpu.memory_space<vmem>>, %arg3: memref<1x2xf32, #tpu.memory_space<vmem>>, %arg4: memref<512x2xf32, #tpu.memory_space<vmem>>) attributes {dimension_semantics = [#tpu.dimension_semantics<parallel>], iteration_bounds = array<i64: 1>, scalar_prefetch = 0 : i64, scratch_operands = 0 : i64, tpu.core_type = #tpu.core_type<tc>, window_params = [{transform_indices = @transform_0, window_bounds = array<i64: 512, 72>}, {pipeline_mode = #tpu.pipeline_mode<synchronous>, transform_indices = @transform_1, window_bounds = array<i64: 72, 2>}, {pipeline_mode = #tpu.pipeline_mode<synchronous>, transform_indices = @transform_2, window_bounds = array<i64: 1, 2>}, {transform_indices = @transform_3, window_bounds = array<i64: 512, 2>}]} {
    %c0 = arith.constant 0 : index
    %c0_0 = arith.constant 0 : index
    %0 = vector.load %arg1[%c0, %c0_0] : memref<512x72xbf16, #tpu.memory_space<vmem>>, vector<512x72xbf16>
    %c0_1 = arith.constant 0 : index
    %c0_2 = arith.constant 0 : index
    %1 = vector.load %arg2[%c0_1, %c0_2] : memref<72x2xbf16, #tpu.memory_space<vmem>>, vector<72x2xbf16>
    %cst = arith.constant dense<0.000000e+00> : vector<512x2xf32>
    %2 = tpu.matmul %0, %1, %cst {dimension_numbers = #tpu.dot_dimension_numbers<[1], [0], [0], [1], [0, 0, 1, 1], [], []>} : vector<512x72xbf16>, vector<72x2xbf16>, vector<512x2xf32> -> vector<512x2xf32>
    %c0_3 = arith.constant 0 : index
    %c0_4 = arith.constant 0 : index
    %3 = vector.load %arg3[%c0_3, %c0_4] : memref<1x2xf32, #tpu.memory_space<vmem>>, vector<1x2xf32>
    %4 = vector.broadcast %3 : vector<1x2xf32> to vector<512x2xf32>
    %5 = arith.addf %2, %4 : vector<512x2xf32>
    %c0_5 = arith.constant 0 : index
    %c0_6 = arith.constant 0 : index
    %6 = vector.load %arg4[%c0_5, %c0_6] : memref<512x2xf32, #tpu.memory_space<vmem>>, vector<512x2xf32>
    tpu.vector_store %arg4[%c0_5, %c0_6], %5 {strides = array<i32>} : memref<512x2xf32, #tpu.memory_space<vmem>>, vector<512x2xf32>,
    return
  }
  func.func @transform_0(%arg0: i32) -> (i32, i32) {
    %c0_i32 = arith.constant 0 : i32
    %c0_i32_0 = arith.constant 0 : i32
    return %arg0, %c0_i32 : i32, i32
  }
  func.func @transform_1(%arg0: i32) -> (i32, i32) {
    %c0_i32 = arith.constant 0 : i32
    %c0_i32_0 = arith.constant 0 : i32
    %c0_i32_1 = arith.constant 0 : i32
    return %c0_i32, %c0_i32_0 : i32, i32
  }
  func.func @transform_2(%arg0: i32) -> (i32, i32) {
    %c0_i32 = arith.constant 0 : i32
    %c0_i32_0 = arith.constant 0 : i32
    %c0_i32_1 = arith.constant 0 : i32
    return %c0_i32, %c0_i32_0 : i32, i32
  }
  func.func @transform_3(%arg0: i32) -> (i32, i32) {
    %c0_i32 = arith.constant 0 : i32
    %c0_i32_0 = arith.constant 0 : i32
    return %arg0, %c0_i32 : i32, i32
  }
}

</mosaic_0001>

<bundles_post_ra>
// kernel: unet_forward.18
= control target key start
LH: loop header
LB: loop body
LE: loop exit
PB: predicated region body
PF: predicated region fallthrough
CT: control target
= control target key end

     0   :  { %vm350_vm0 = vcmask 1043456   ;;  %vm351_vm1 = vcmask 1044480   ;;  %vm253_vm2 = vcmask 72704   ;;  %v1492_v1 = vmov 65535   ;;  %s1996_s1 = inlined_call_operand.vmem [shape: bf16[9,8], index: 1, kind: input, shape index: {}]   ;;  %s1997_s0 = inlined_call_operand.vmem [shape: bf16[512,9], index: 0, kind: input, shape index: {}]   ;;  %s1998_s2 = inlined_call_operand.vmem [shape: f32[1,8], index: 2, kind: input, shape index: {}]   ;;  %s1999_s3 = inlined_call_operand.vmem [shape: bf16[512,8], index: 3, kind: output, shape index: {}]  }
   0x1   :  { %v1459_v0 = vld [vmem:[%s1996_s1] sm:$0x1f]   ;;  %v352_v2 = vsel %vm350_vm0, 4294967295, %v1492_v1  ;;  %v1462_v7 = vld [vmem:[%s1997_s0 + $0x8] sm:$0xff]   ;;  %v1464_v9 = vld [vmem:[%s1997_s0 + $0x10] sm:$0xff]   ;;  %vm1094_vm5 = vcmask 60416  }
   0x2   :  { %v1460_v3 = vld [vmem:[%s1997_s0] sm:$0xff]   ;;  %v353_v4 = vsel %vm351_vm1, %v352_v2, 0  ;;  %v1463_v8 = vld [vmem:[%s1997_s0 + $0x88] sm:$0xff]   ;;  %v1465_v10 = vld [vmem:[%s1997_s0 + $0x90] sm:$0xff]  }
   0x3   :  { %v1461_v5 = vld [vmem:[%s1997_s0 + $0x80] sm:$0xff]   ;;  %v355_v6 = vand.u32 %v1459_v0, %v353_v4  ;;  %1392 = vmatprep.mubr.msk.bf16.mxu0 %vm253_vm2, %v1460_v3  ;;  %v1466_v11 = vld [vmem:[%s1997_s0 + $0x18] sm:$0xff]   ;;  %v1470_v15 = vld [vmem:[%s1997_s0 + $0x28] sm:$0xff]  }
   0x4   :  { %1424 = vmatprep.mubr.msk.bf16.mxu1 %vm253_vm2, %v1461_v5  ;;  %v1467_v12 = vld [vmem:[%s1997_s0 + $0x98] sm:$0xff]   ;;  %v1468_v13 = vld [vmem:[%s1997_s0 + $0x20] sm:$0xff]   ;;  %v1471_v16 = vld [vmem:[%s1997_s0 + $0xa8] sm:$0xff]  }
   0x5   :  { %1390 = vmatprep.subr.bf16.mxu0 %v355_v6  ;;  %1456 = vmatprep.subr.bf16.mxu1 %v355_v6  ;;  %v1469_v14 = vld [vmem:[%s1997_s0 + $0xa0] sm:$0xff]   ;;  %v1472_v17 = vld [vmem:[%s1997_s0 + $0x30] sm:$0xff]   ;;  %v1474_v19 = vld [vmem:[%s1997_s0 + $0x38] sm:$0xff]  }
   0x6   :  { %1391 = vmatpush3.bf16.msra.mxu0 %v355_v6  ;;  %1457 = vmatpush3.bf16.msra.mxu1 %v355_v6  ;;  %v1473_v18 = vld [vmem:[%s1997_s0 + $0xb0] sm:$0xff]   ;;  %v1475_v20 = vld [vmem:[%s1997_s0 + $0xb8] sm:$0xff]   ;;  %v1476_v21 = vld [vmem:[%s1997_s0 + $0x40] sm:$0xff]  }
   0x7   :  { %v1477_v22 = vld [vmem:[%s1997_s0 + $0xc0] sm:$0xff]   ;;  %v1478_v23 = vld [vmem:[%s1997_s0 + $0x48] sm:$0xff]   ;;  %v1480_v25 = vld [vmem:[%s1997_s0 + $0x50] sm:$0xff]  }
   0x8   :  { %v1479_v24 = vld [vmem:[%s1997_s0 + $0xc8] sm:$0xff]   ;;  %v1481_v26 = vld [vmem:[%s1997_s0 + $0xd0] sm:$0xff]   ;;  %v1482_v27 = vld [vmem:[%s1997_s0 + $0x58] sm:$0xff]  }
   0x9   :  { %1393 = vmatmul.mubr.msk.bf16.vlgmr.msra.gmra.mxu0 %vm253_vm2, %v1462_v7  ;;  %1425 = vmatmul.mubr.msk.bf16.vlgmr.msra.gmra.mxu1 %vm253_vm2, %v1463_v8  ;;  %v1483_v28 = vld [vmem:[%s1997_s0 + $0xd8] sm:$0xff]   ;;  %v1484_v29 = vld [vmem:[%s1997_s0 + $0x60] sm:$0xff]   ;;  %v1486_v31 = vld [vmem:[%s1997_s0 + $0x68] sm:$0xff]  }
   0xa   :  { %1396 = vmatprep.mubr.msk.bf16.mxu0 %vm253_vm2, %v1464_v9  ;;  %1428 = vmatprep.mubr.msk.bf16.mxu1 %vm253_vm2, %v1465_v10  ;;  %v1485_v30 = vld [vmem:[%s1997_s0 + $0xe0] sm:$0xff]   ;;  %v1487_v32 = vld [vmem:[%s1997_s0 + $0xe8] sm:$0xff]   ;;  %v1488_v33 = vld [vmem:[%s1997_s0 + $0x70] sm:$0xff]  }
   0xb   :  { %v1489_v34 = vld [vmem:[%s1997_s0 + $0xf0] sm:$0xff]   ;;  %v1490_v35 = vld [vmem:[%s1997_s0 + $0x78] sm:$0xff]   ;;  %v1647_v37 = vld [vmem:[%s1998_s2] ss:$0 sm:$0xff] }
   0xc   :  { %v1491_v36 = vld [vmem:[%s1997_s0 + $0xf8] sm:$0xff]  }
  0x11   :  { %1397 = vmatmul.mubr.msk.bf16.gmra.mxu0 %vm253_vm2, %v1466_v11  ;;  %1429 = vmatmul.mubr.msk.bf16.gmra.mxu1 %vm253_vm2, %v1467_v12 }
  0x12   :  { %1400 = vmatprep.mubr.msk.bf16.mxu0 %vm253_vm2, %v1468_v13  ;;  %1432 = vmatprep.mubr.msk.bf16.mxu1 %vm253_vm2, %v1469_v14 }
  0x19   :  { %1401 = vmatmul.mubr.msk.bf16.gmra.mxu0 %vm253_vm2, %v1470_v15  ;;  %1433 = vmatmul.mubr.msk.bf16.gmra.mxu1 %vm253_vm2, %v1471_v16 }
  0x1a   :  { %1404 = vmatprep.mubr.msk.bf16.mxu0 %vm253_vm2, %v1472_v17  ;;  %1436 = vmatprep.mubr.msk.bf16.mxu1 %vm253_vm2, %v1473_v18 }
  0x21   :  { %1405 = vmatmul.mubr.msk.bf16.gmra.mxu0 %vm253_vm2, %v1474_v19  ;;  %1437 = vmatmul.mubr.msk.bf16.gmra.mxu1 %vm253_vm2, %v1475_v20 }
  0x22   :  { %1408 = vmatprep.mubr.msk.bf16.mxu0 %vm253_vm2, %v1476_v21  ;;  %1440 = vmatprep.mubr.msk.bf16.mxu1 %vm253_vm2, %v1477_v22 }
  0x29   :  { %1409 = vmatmul.mubr.msk.bf16.gmra.mxu0 %vm253_vm2, %v1478_v23  ;;  %1441 = vmatmul.mubr.msk.bf16.gmra.mxu1 %vm253_vm2, %v1479_v24 }
  0x2a   :  { %1412 = vmatprep.mubr.msk.bf16.mxu0 %vm253_vm2, %v1480_v25  ;;  %1444 = vmatprep.mubr.msk.bf16.mxu1 %vm253_vm2, %v1481_v26 }
  0x31   :  { %1413 = vmatmul.mubr.msk.bf16.gmra.mxu0 %vm253_vm2, %v1482_v27  ;;  %1445 = vmatmul.mubr.msk.bf16.gmra.mxu1 %vm253_vm2, %v1483_v28 }
  0x32   :  { %1416 = vmatprep.mubr.msk.bf16.mxu0 %vm253_vm2, %v1484_v29  ;;  %1448 = vmatprep.mubr.msk.bf16.mxu1 %vm253_vm2, %v1485_v30 }
  0x39   :  { %1417 = vmatmul.mubr.msk.bf16.gmra.mxu0 %vm253_vm2, %v1486_v31  ;;  %1449 = vmatmul.mubr.msk.bf16.gmra.mxu1 %vm253_vm2, %v1487_v32 }
  0x3a   :  { %1420 = vmatprep.mubr.msk.bf16.mxu0 %vm253_vm2, %v1488_v33  ;;  %1452 = vmatprep.mubr.msk.bf16.mxu1 %vm253_vm2, %v1489_v34 }
  0x41   :  { %1421 = vmatmul.mubr.msk.bf16.gmra.mxu0 %vm253_vm2, %v1490_v35  ;;  %1453 = vmatmul.mubr.msk.bf16.gmra.mxu1 %vm253_vm2, %v1491_v36 }
  0xc9   :  { %v1394_v38 = vpop.f32.mrf.mxu0  ;;  %v1426_v39 = vpop.f32.mrf.mxu1 }
  0xca   :  { %v400_v40 = vadd.f32 %v1394_v38, %v1647_v37  ;;  %v528_v41 = vadd.f32 %v1426_v39, %v1647_v37 }
  0xcb   :  { %v391_v42 = vpop.f32.mrf.mxu0  ;;  %v519_v43 = vpop.f32.mrf.mxu1 }
  0xcc   :  { %vm648_vm3 = vcmp.ge.f32.partialorder %v400_v40, 0.0  ;;  %v712_v44 = vmul.f32 0.2, %v400_v40  ;;  %vm680_vm4 = vcmp.ge.f32.partialorder %v528_v41, 0.0  ;;  %v744_v45 = vmul.f32 0.2, %v528_v41 }
  0xcd   :  { %v392_v46 = vadd.f32 %v1647_v37, %v391_v42  ;;  %v520_v47 = vadd.f32 %v1647_v37, %v519_v43  ;;  %v1395_v48 = vpop.f32.mrf.mxu0  ;;  %v1427_v49 = vpop.f32.mrf.mxu1 }
  0xce   :  { %v776_v50 = vsel %vm648_vm3, %v400_v40, %v712_v44  ;;  %v808_v51 = vsel %vm680_vm4, %v528_v41, %v744_v45  ;;  %v403_v52 = vadd.f32 %v1395_v48, %v1647_v37  ;;  %v531_v53 = vadd.f32 %v1427_v49, %v1647_v37 }
  0xcf   :  { %v1295_v54 = vpack.c.bf16 %v776_v50, %v776_v50  ;;  %v1327_v55 = vpack.c.bf16 %v808_v51, %v808_v51  ;;  %vm646_vm6 = vcmp.ge.f32.partialorder %v392_v46, 0.0  ;;  %v710_v56 = vmul.f32 0.2, %v392_v46  ;;  %v394_v57 = vpop.f32.mrf.mxu0  ;;  %v522_v58 = vpop.f32.mrf.mxu1 }
  0xd0   :  { %vm678_vm7 = vcmp.ge.f32.partialorder %v520_v47, 0.0  ;;  %v742_v59 = vmul.f32 0.2, %v520_v47  ;;  %vm649_vm8 = vcmp.ge.f32.partialorder %v403_v52, 0.0  ;;  %v713_v60 = vmul.f32 0.2, %v403_v52 }
  0xd1   :  { %1097 = vst.msk [vmem:[%s1999_s3 + $0x8] sm:$0xf] %vm1094_vm5, %v1295_v54  ;;  %1129 = vst.msk [vmem:[%s1999_s3 + $0x88] sm:$0xf] %vm1094_vm5, %v1327_v55  ;;  %v774_v61 = vsel %vm646_vm6, %v392_v46, %v710_v56  ;;  %vm681_vm9 = vcmp.ge.f32.partialorder %v531_v53, 0.0  ;;  %v395_v63 = vadd.f32 %v1647_v37, %v394_v57  ;;  %v1398_v0 = vpop.f32.mrf.mxu0  ;;  %v1430_v1 = vpop.f32.mrf.mxu1  ;;  %v523_v5 = vadd.f32 %v1647_v37, %v522_v58 }
  0xd2   :  { %v745_v62 = vmul.f32 0.2, %v531_v53  ;;  %v1293_v2 = vpack.c.bf16 %v774_v61, %v774_v61  ;;  %v806_v3 = vsel %vm678_vm7, %v520_v47, %v742_v59  ;;  %v777_v4 = vsel %vm649_vm8, %v403_v52, %v713_v60 }
  0xd3   :  { %v1325_v6 = vpack.c.bf16 %v806_v3, %v806_v3  ;;  %v1296_v7 = vpack.c.bf16 %v777_v4, %v777_v4  ;;  %vm647_vm10 = vcmp.ge.f32.partialorder %v395_v63, 0.0  ;;  %v407_v9 = vpop.f32.mrf.mxu0  ;;  %v535_v10 = vpop.f32.mrf.mxu1  ;;  %v711_v12 = vmul.f32 0.2, %v395_v63 }
  0xd4   :  { %v809_v8 = vsel %vm681_vm9, %v531_v53, %v745_v62  ;;  %1095 = vst.msk [vmem:[%s1999_s3] sm:$0xf] %vm1094_vm5, %v1293_v2  ;;  %vm679_vm11 = vcmp.ge.f32.partialorder %v523_v5, 0.0  ;;  %v743_v13 = vmul.f32 0.2, %v523_v5  ;;  %v416_v14 = vadd.f32 %v1398_v0, %v1647_v37 }
  0xd5   :  { %v1328_v11 = vpack.c.bf16 %v809_v8, %v809_v8  ;;  %1127 = vst.msk [vmem:[%s1999_s3 + $0x80] sm:$0xf] %vm1094_vm5, %v1325_v6  ;;  %1098 = vst.msk [vmem:[%s1999_s3 + $0xc] sm:$0xf] %vm1094_vm5, %v1296_v7  ;;  %v544_v15 = vadd.f32 %v1430_v1, %v1647_v37  ;;  %v408_v16 = vadd.f32 %v1647_v37, %v407_v9  ;;  %v1399_v18 = vpop.f32.mrf.mxu0  ;;  %v1431_v19 = vpop.f32.mrf.mxu1 }
  0xd6   :  { %v536_v17 = vadd.f32 %v1647_v37, %v535_v10  ;;  %v775_v20 = vsel %vm647_vm10, %v395_v63, %v711_v12  ;;  %v807_v21 = vsel %vm679_vm11, %v523_v5, %v743_v13  ;;  %v419_v22 = vadd.f32 %v1399_v18, %v1647_v37 }
  0xd7   :  { %1130 = vst.msk [vmem:[%s1999_s3 + $0x8c] sm:$0xf] %vm1094_vm5, %v1328_v11  ;;  %v547_v23 = vadd.f32 %v1431_v19, %v1647_v37  ;;  %v1294_v24 = vpack.c.bf16 %v775_v20, %v775_v20  ;;  %v1326_v25 = vpack.c.bf16 %v807_v21, %v807_v21  ;;  %vm652_vm12 = vcmp.ge.f32.partialorder %v416_v14, 0.0  ;;  %v410_v27 = vpop.f32.mrf.mxu0  ;;  %v538_v28 = vpop.f32.mrf.mxu1 }
  0xd8   :  { %v716_v26 = vmul.f32 0.2, %v416_v14  ;;  %vm684_vm13 = vcmp.ge.f32.partialorder %v544_v15, 0.0  ;;  %v748_v29 = vmul.f32 0.2, %v544_v15  ;;  %vm650_vm14 = vcmp.ge.f32.partialorder %v408_v16, 0.0 }
  0xd9   :  { %v714_v30 = vmul.f32 0.2, %v408_v16  ;;  %1096 = vst.msk [vmem:[%s1999_s3 + $0x4] sm:$0xf] %vm1094_vm5, %v1294_v24  ;;  %1128 = vst.msk [vmem:[%s1999_s3 + $0x84] sm:$0xf] %vm1094_vm5, %v1326_v25  ;;  %v1402_v33 = vpop.f32.mrf.mxu0  ;;  %v1434_v34 = vpop.f32.mrf.mxu1  ;;  %v411_v48 = vadd.f32 %v1647_v37, %v410_v27  ;;  %v539_v50 = vadd.f32 %v1647_v37, %v538_v28 }
  0xda   :  { %v780_v31 = vsel %vm652_vm12, %v416_v14, %v716_v26  ;;  %vm682_vm15 = vcmp.ge.f32.partialorder %v536_v17, 0.0  ;;  %v746_v32 = vmul.f32 0.2, %v536_v17  ;;  %vm653_vm0 = vcmp.ge.f32.partialorder %v419_v22, 0.0 }
  0xdb   :  { %v1299_v35 = vpack.c.bf16 %v780_v31, %v780_v31  ;;  %v812_v36 = vsel %vm684_vm13, %v544_v15, %v748_v29  ;;  %v778_v38 = vsel %vm650_vm14, %v408_v16, %v714_v30  ;;  %v717_v39 = vmul.f32 0.2, %v419_v22  ;;  %v423_v43 = vpop.f32.mrf.mxu0  ;;  %v551_v44 = vpop.f32.mrf.mxu1 }
  0xdc   :  { %v1331_v40 = vpack.c.bf16 %v812_v36, %v812_v36  ;;  %v1297_v41 = vpack.c.bf16 %v778_v38, %v778_v38  ;;  %v810_v42 = vsel %vm682_vm15, %v536_v17, %v746_v32  ;;  %vm685_vm1 = vcmp.ge.f32.partialorder %v547_v23, 0.0 }
  0xdd   :  { %1101 = vst.msk [vmem:[%s1999_s3 + $0x18] sm:$0xf] %vm1094_vm5, %v1299_v35  ;;  %v1329_v45 = vpack.c.bf16 %v810_v42, %v810_v42  ;;  %v781_v46 = vsel %vm653_vm0, %v419_v22, %v717_v39  ;;  %v749_v47 = vmul.f32 0.2, %v547_v23  ;;  %v432_v51 = vadd.f32 %v1402_v33, %v1647_v37  ;;  %v1403_v53 = vpop.f32.mrf.mxu0  ;;  %v1435_v54 = vpop.f32.mrf.mxu1 }
  0xde   :  { %1133 = vst.msk [vmem:[%s1999_s3 + $0x98] sm:$0xf] %vm1094_vm5, %v1331_v40  ;;  %1099 = vst.msk [vmem:[%s1999_s3 + $0x10] sm:$0xf] %vm1094_vm5, %v1297_v41  ;;  %v1300_v49 = vpack.c.bf16 %v781_v46, %v781_v46  ;;  %v560_v52 = vadd.f32 %v1434_v34, %v1647_v37  ;;  %vm651_vm2 = vcmp.ge.f32.partialorder %v411_v48, 0.0  ;;  %v424_v57 = vadd.f32 %v1647_v37, %v423_v43 }
  0xdf   :  { %1131 = vst.msk [vmem:[%s1999_s3 + $0x90] sm:$0xf] %vm1094_vm5, %v1329_v45  ;;  %v813_v55 = vsel %vm685_vm1, %v547_v23, %v749_v47  ;;  %v715_v56 = vmul.f32 0.2, %v411_v48  ;;  %vm683_vm3 = vcmp.ge.f32.partialorder %v539_v50, 0.0  ;;  %vm656_vm4 = vcmp.ge.f32.partialorder %v432_v51, 0.0  ;;  %v426_v60 = vpop.f32.mrf.mxu0  ;;  %v554_v61 = vpop.f32.mrf.mxu1 }
  0xe0   :  { %1102 = vst.msk [vmem:[%s1999_s3 + $0x1c] sm:$0xf] %vm1094_vm5, %v1300_v49  ;;  %v1332_v58 = vpack.c.bf16 %v813_v55, %v813_v55  ;;  %v747_v59 = vmul.f32 0.2, %v539_v50  ;;  %v720_v63 = vmul.f32 0.2, %v432_v51  ;;  %v552_v9 = vadd.f32 %v1647_v37, %v551_v44 }
  0xe1   :  { %v779_v62 = vsel %vm651_vm2, %v411_v48, %v715_v56  ;;  %vm688_vm6 = vcmp.ge.f32.partialorder %v560_v52, 0.0  ;;  %v752_v0 = vmul.f32 0.2, %v560_v52  ;;  %vm654_vm7 = vcmp.ge.f32.partialorder %v424_v57, 0.0  ;;  %v1406_v4 = vpop.f32.mrf.mxu0  ;;  %v1438_v5 = vpop.f32.mrf.mxu1 }
  0xe2   :  { %1134 = vst.msk [vmem:[%s1999_s3 + $0x9c] sm:$0xf] %vm1094_vm5, %v1332_v58  ;;  %v1298_v1 = vpack.c.bf16 %v779_v62, %v779_v62  ;;  %v811_v2 = vsel %vm683_vm3, %v539_v50, %v747_v59  ;;  %v718_v3 = vmul.f32 0.2, %v424_v57  ;;  %v784_v7 = vsel %vm656_vm4, %v432_v51, %v720_v63 }
  0xe3   :  { %v1330_v6 = vpack.c.bf16 %v811_v2, %v811_v2  ;;  %v816_v8 = vsel %vm688_vm6, %v560_v52, %v752_v0  ;;  %v1303_v10 = vpack.c.bf16 %v784_v7, %v784_v7  ;;  %v435_v13 = vadd.f32 %v1403_v53, %v1647_v37  ;;  %v439_v14 = vpop.f32.mrf.mxu0  ;;  %v567_v15 = vpop.f32.mrf.mxu1 }
  0xe4   :  { %1100 = vst.msk [vmem:[%s1999_s3 + $0x14] sm:$0xf] %vm1094_vm5, %v1298_v1  ;;  %v1335_v11 = vpack.c.bf16 %v816_v8, %v816_v8  ;;  %v782_v12 = vsel %vm654_vm7, %v424_v57, %v718_v3  ;;  %vm686_vm8 = vcmp.ge.f32.partialorder %v552_v9, 0.0  ;;  %v750_v17 = vmul.f32 0.2, %v552_v9 }
  0xe5   :  { %1132 = vst.msk [vmem:[%s1999_s3 + $0x94] sm:$0xf] %vm1094_vm5, %v1330_v6  ;;  %v1301_v16 = vpack.c.bf16 %v782_v12, %v782_v12  ;;  %v563_v18 = vadd.f32 %v1435_v54, %v1647_v37  ;;  %1105 = vst.msk [vmem:[%s1999_s3 + $0x28] sm:$0xf] %vm1094_vm5, %v1303_v10  ;;  %vm657_vm9 = vcmp.ge.f32.partialorder %v435_v13, 0.0  ;;  %v427_v20 = vadd.f32 %v1647_v37, %v426_v60  ;;  %v1407_v22 = vpop.f32.mrf.mxu0  ;;  %v1439_v23 = vpop.f32.mrf.mxu1 }
  0xe6   :  { %1137 = vst.msk [vmem:[%s1999_s3 + $0xa8] sm:$0xf] %vm1094_vm5, %v1335_v11  ;;  %v721_v19 = vmul.f32 0.2, %v435_v13  ;;  %v555_v21 = vadd.f32 %v1647_v37, %v554_v61  ;;  %v814_v24 = vsel %vm686_vm8, %v552_v9, %v750_v17  ;;  %v448_v26 = vadd.f32 %v1406_v4, %v1647_v37 }
  0xe7   :  { %1103 = vst.msk [vmem:[%s1999_s3 + $0x20] sm:$0xf] %vm1094_vm5, %v1301_v16  ;;  %vm689_vm10 = vcmp.ge.f32.partialorder %v563_v18, 0.0  ;;  %v753_v25 = vmul.f32 0.2, %v563_v18  ;;  %v1333_v27 = vpack.c.bf16 %v814_v24, %v814_v24  ;;  %vm655_vm11 = vcmp.ge.f32.partialorder %v427_v20, 0.0  ;;  %v442_v30 = vpop.f32.mrf.mxu0  ;;  %v570_v31 = vpop.f32.mrf.mxu1 }
  0xe8   :  { %v785_v28 = vsel %vm657_vm9, %v435_v13, %v721_v19  ;;  %v719_v29 = vmul.f32 0.2, %v427_v20  ;;  %vm687_vm12 = vcmp.ge.f32.partialorder %v555_v21, 0.0  ;;  %v751_v34 = vmul.f32 0.2, %v555_v21 }
  0xe9   :  { %v1304_v32 = vpack.c.bf16 %v785_v28, %v785_v28  ;;  %v817_v33 = vsel %vm689_vm10, %v563_v18, %v753_v25  ;;  %1135 = vst.msk [vmem:[%s1999_s3 + $0xa0] sm:$0xf] %vm1094_vm5, %v1333_v27  ;;  %vm660_vm13 = vcmp.ge.f32.partialorder %v448_v26, 0.0  ;;  %v724_v38 = vmul.f32 0.2, %v448_v26  ;;  %v1410_v39 = vpop.f32.mrf.mxu0  ;;  %v1442_v40 = vpop.f32.mrf.mxu1 }
  0xea   :  { %v1336_v35 = vpack.c.bf16 %v817_v33, %v817_v33  ;;  %v783_v36 = vsel %vm655_vm11, %v427_v20, %v719_v29  ;;  %v815_v42 = vsel %vm687_vm12, %v555_v21, %v751_v34  ;;  %v576_v43 = vadd.f32 %v1438_v5, %v1647_v37 }
  0xeb   :  { %1106 = vst.msk [vmem:[%s1999_s3 + $0x2c] sm:$0xf] %vm1094_vm5, %v1304_v32  ;;  %v1302_v41 = vpack.c.bf16 %v783_v36, %v783_v36  ;;  %v440_v44 = vadd.f32 %v1647_v37, %v439_v14  ;;  %v1334_v45 = vpack.c.bf16 %v815_v42, %v815_v42  ;;  %v788_v46 = vsel %vm660_vm13, %v448_v26, %v724_v38  ;;  %v455_v49 = vpop.f32.mrf.mxu0  ;;  %v583_v50 = vpop.f32.mrf.mxu1 }
  0xec   :  { %1138 = vst.msk [vmem:[%s1999_s3 + $0xac] sm:$0xf] %vm1094_vm5, %v1336_v35  ;;  %v568_v47 = vadd.f32 %v1647_v37, %v567_v15  ;;  %v451_v48 = vadd.f32 %v1407_v22, %v1647_v37  ;;  %v1307_v51 = vpack.c.bf16 %v788_v46, %v788_v46  ;;  %vm692_vm14 = vcmp.ge.f32.partialorder %v576_v43, 0.0 }
  0xed   :  { %1104 = vst.msk [vmem:[%s1999_s3 + $0x24] sm:$0xf] %vm1094_vm5, %v1302_v41  ;;  %v756_v52 = vmul.f32 0.2, %v576_v43  ;;  %vm658_vm15 = vcmp.ge.f32.partialorder %v440_v44, 0.0  ;;  %v1411_v55 = vpop.f32.mrf.mxu0  ;;  %v1443_v56 = vpop.f32.mrf.mxu1  ;;  %v579_v59 = vadd.f32 %v1439_v23, %v1647_v37  ;;  %v443_v60 = vadd.f32 %v1647_v37, %v442_v30 }
  0xee   :  { %1136 = vst.msk [vmem:[%s1999_s3 + $0xa4] sm:$0xf] %vm1094_vm5, %v1334_v45  ;;  %v722_v53 = vmul.f32 0.2, %v440_v44  ;;  %vm690_vm0 = vcmp.ge.f32.partialorder %v568_v47, 0.0  ;;  %vm661_vm1 = vcmp.ge.f32.partialorder %v451_v48, 0.0  ;;  %v571_v0 = vadd.f32 %v1647_v37, %v570_v31 }
  0xef   :  { %v754_v54 = vmul.f32 0.2, %v568_v47  ;;  %1109 = vst.msk [vmem:[%s1999_s3 + $0x38] sm:$0xf] %vm1094_vm5, %v1307_v51  ;;  %v820_v57 = vsel %vm692_vm14, %v576_v43, %v756_v52  ;;  %v725_v58 = vmul.f32 0.2, %v451_v48  ;;  %v1783_v1 = vpop.f32.mrf.mxu0  ;;  %v1785_v2 = vpop.f32.mrf.mxu1  ;;  %v464_v12 = vadd.f32 %v1410_v39, %v1647_v37 }
  0xf0   :  { %v1339_v61 = vpack.c.bf16 %v820_v57, %v820_v57  ;;  %v786_v62 = vsel %vm658_vm15, %v440_v44, %v722_v53  ;;  %vm693_vm2 = vcmp.ge.f32.partialorder %v579_v59, 0.0  ;;  %v757_v7 = vmul.f32 0.2, %v579_v59 }
  0xf1   :  { %v818_v63 = vsel %vm690_vm0, %v568_v47, %v754_v54  ;;  %v1305_v3 = vpack.c.bf16 %v786_v62, %v786_v62  ;;  %v789_v5 = vsel %vm661_vm1, %v451_v48, %v725_v58  ;;  %vm659_vm3 = vcmp.ge.f32.partialorder %v443_v60, 0.0  ;;  %v1414_v9 = vpop.f32.mrf.mxu0  ;;  %v1446_v10 = vpop.f32.mrf.mxu1 }
  0xf2   :  { %v1337_v4 = vpack.c.bf16 %v818_v63, %v818_v63  ;;  %1141 = vst.msk [vmem:[%s1999_s3 + $0xb8] sm:$0xf] %vm1094_vm5, %v1339_v61  ;;  %v1308_v6 = vpack.c.bf16 %v789_v5, %v789_v5  ;;  %v723_v8 = vmul.f32 0.2, %v443_v60  ;;  %vm691_vm4 = vcmp.ge.f32.partialorder %v571_v0, 0.0 }
  0xf3   :  { %1107 = vst.msk [vmem:[%s1999_s3 + $0x30] sm:$0xf] %vm1094_vm5, %v1305_v3  ;;  %v755_v11 = vmul.f32 0.2, %v571_v0  ;;  %v592_v13 = vadd.f32 %v1442_v40, %v1647_v37  ;;  %v821_v14 = vsel %vm693_vm2, %v579_v59, %v757_v7  ;;  %v456_v16 = vadd.f32 %v1647_v37, %v455_v49  ;;  %v471_v18 = vpop.f32.mrf.mxu0  ;;  %v1808_v19 = vpop.f32.mrf.mxu1 }
  0xf4   :  { %1139 = vst.msk [vmem:[%s1999_s3 + $0xb0] sm:$0xf] %vm1094_vm5, %v1337_v4  ;;  %1110 = vst.msk [vmem:[%s1999_s3 + $0x3c] sm:$0xf] %vm1094_vm5, %v1308_v6  ;;  %v787_v15 = vsel %vm659_vm3, %v443_v60, %v723_v8  ;;  %v584_v17 = vadd.f32 %v1647_v37, %v583_v50  ;;  %v1340_v20 = vpack.c.bf16 %v821_v14, %v821_v14  ;;  %vm664_vm6 = vcmp.ge.f32.partialorder %v464_v12, 0.0 }
  0xf5   :  { %v1306_v21 = vpack.c.bf16 %v787_v15, %v787_v15  ;;  %v819_v22 = vsel %vm691_vm4, %v571_v0, %v755_v11  ;;  %v728_v24 = vmul.f32 0.2, %v464_v12  ;;  %vm696_vm7 = vcmp.ge.f32.partialorder %v592_v13, 0.0  ;;  %v1810_v26 = vpop.f32.mrf.mxu0  ;;  %v1812_v27 = vpop.f32.mrf.mxu1 }
  0xf6   :  { %v1338_v23 = vpack.c.bf16 %v819_v22, %v819_v22  ;;  %v760_v25 = vmul.f32 0.2, %v592_v13  ;;  %1142 = vst.msk [vmem:[%s1999_s3 + $0xbc] sm:$0xf] %vm1094_vm5, %v1340_v20  ;;  %vm662_vm8 = vcmp.ge.f32.partialorder %v456_v16, 0.0  ;;  %vm694_vm9 = vcmp.ge.f32.partialorder %v584_v17, 0.0 }
  0xf7   :  { %1108 = vst.msk [vmem:[%s1999_s3 + $0x34] sm:$0xf] %vm1094_vm5, %v1306_v21  ;;  %v726_v28 = vmul.f32 0.2, %v456_v16  ;;  %v758_v29 = vmul.f32 0.2, %v584_v17  ;;  %v792_v30 = vsel %vm664_vm6, %v464_v12, %v728_v24  ;;  %v467_v32 = vadd.f32 %v1411_v55, %v1647_v37  ;;  %v1828_v34 = vpop.f32.mrf.mxu0  ;;  %v1830_v35 = vpop.f32.mrf.mxu1 }
  0xf8   :  { %1140 = vst.msk [vmem:[%s1999_s3 + $0xb4] sm:$0xf] %vm1094_vm5, %v1338_v23  ;;  %v824_v31 = vsel %vm696_vm7, %v592_v13, %v760_v25  ;;  %v595_v33 = vadd.f32 %v1443_v56, %v1647_v37  ;;  %v1311_v36 = vpack.c.bf16 %v792_v30, %v792_v30  ;;  %v459_v47 = vadd.f32 %v1647_v37, %v1783_v1 }
  0xf9   :  { %v1343_v38 = vpack.c.bf16 %v824_v31, %v824_v31  ;;  %v790_v39 = vsel %vm662_vm8, %v456_v16, %v726_v28  ;;  %v822_v40 = vsel %vm694_vm9, %v584_v17, %v758_v29  ;;  %vm665_vm10 = vcmp.ge.f32.partialorder %v467_v32, 0.0  ;;  %v1418_v44 = vpop.f32.mrf.mxu0  ;;  %v1832_v45 = vpop.f32.mrf.mxu1 }
  0xfa   :  { %v1309_v41 = vpack.c.bf16 %v790_v39, %v790_v39  ;;  %v1341_v42 = vpack.c.bf16 %v822_v40, %v822_v40  ;;  %v729_v43 = vmul.f32 0.2, %v467_v32  ;;  %1113 = vst.msk [vmem:[%s1999_s3 + $0x48] sm:$0xf] %vm1094_vm5, %v1311_v36  ;;  %vm697_vm11 = vcmp.ge.f32.partialorder %v595_v33, 0.0 }
  0xfb   :  { %1145 = vst.msk [vmem:[%s1999_s3 + $0xc8] sm:$0xf] %vm1094_vm5, %v1343_v38  ;;  %v761_v46 = vmul.f32 0.2, %v595_v33  ;;  %v587_v48 = vadd.f32 %v1647_v37, %v1785_v2  ;;  %v480_v50 = vadd.f32 %v1414_v9, %v1647_v37  ;;  %v608_v51 = vadd.f32 %v1446_v10, %v1647_v37  ;;  %v487_v58 = vpop.f32.mrf.mxu0  ;;  %v615_v59 = vpop.f32.mrf.mxu1 }
  0xfc   :  { %1111 = vst.msk [vmem:[%s1999_s3 + $0x40] sm:$0xf] %vm1094_vm5, %v1309_v41  ;;  %1143 = vst.msk [vmem:[%s1999_s3 + $0xc0] sm:$0xf] %vm1094_vm5, %v1341_v42  ;;  %v793_v49 = vsel %vm665_vm10, %v467_v32, %v729_v43  ;;  %v472_v52 = vadd.f32 %v1647_v37, %v471_v18  ;;  %vm663_vm12 = vcmp.ge.f32.partialorder %v459_v47, 0.0  ;;  %v600_v5 = vadd.f32 %v1647_v37, %v1808_v19 }
  0xfd   :  { %v1312_v53 = vpack.c.bf16 %v793_v49, %v793_v49  ;;  %v825_v54 = vsel %vm697_vm11, %v595_v33, %v761_v46  ;;  %v727_v55 = vmul.f32 0.2, %v459_v47  ;;  %vm695_vm13 = vcmp.ge.f32.partialorder %v587_v48, 0.0  ;;  %v1419_v10 = vpop.f32.mrf.mxu0  ;;  %v1451_v11 = vpop.f32.mrf.mxu1 }
  0xfe   :  { %v1344_v56 = vpack.c.bf16 %v825_v54, %v825_v54  ;;  %v759_v57 = vmul.f32 0.2, %v587_v48  ;;  %vm668_vm14 = vcmp.ge.f32.partialorder %v480_v50, 0.0  ;;  %v732_v61 = vmul.f32 0.2, %v480_v50 }
  0xff   :  { %1114 = vst.msk [vmem:[%s1999_s3 + $0x4c] sm:$0xf] %vm1094_vm5, %v1312_v53  ;;  %v791_v60 = vsel %vm663_vm12, %v459_v47, %v727_v55  ;;  %vm700_vm15 = vcmp.ge.f32.partialorder %v608_v51, 0.0  ;;  %v764_v62 = vmul.f32 0.2, %v608_v51  ;;  %vm666_vm0 = vcmp.ge.f32.partialorder %v472_v52, 0.0  ;;  %v490_v24 = vpop.f32.mrf.mxu0  ;;  %v618_v25 = vpop.f32.mrf.mxu1 }
 0x100   :  { %1146 = vst.msk [vmem:[%s1999_s3 + $0xcc] sm:$0xf] %vm1094_vm5, %v1344_v56  ;;  %v1310_v63 = vpack.c.bf16 %v791_v60, %v791_v60  ;;  %v823_v0 = vsel %vm695_vm13, %v587_v48, %v759_v57  ;;  %v730_v1 = vmul.f32 0.2, %v472_v52  ;;  %v796_v3 = vsel %vm668_vm14, %v480_v50, %v732_v61 }
 0x101   :  { %v1342_v2 = vpack.c.bf16 %v823_v0, %v823_v0  ;;  %v828_v4 = vsel %vm700_vm15, %v608_v51, %v764_v62  ;;  %v1315_v6 = vpack.c.bf16 %v796_v3, %v796_v3  ;;  %v483_v9 = vadd.f32 %v1810_v26, %v1647_v37  ;;  %v1422_v41 = vpop.f32.mrf.mxu0  ;;  %v1454_v42 = vpop.f32.mrf.mxu1 }
 0x102   :  { %1112 = vst.msk [vmem:[%s1999_s3 + $0x44] sm:$0xf] %vm1094_vm5, %v1310_v63  ;;  %v1347_v7 = vpack.c.bf16 %v828_v4, %v828_v4  ;;  %v794_v8 = vsel %vm666_vm0, %v472_v52, %v730_v1  ;;  %vm698_vm1 = vcmp.ge.f32.partialorder %v600_v5, 0.0  ;;  %v762_v13 = vmul.f32 0.2, %v600_v5 }
 0x103   :  { %1144 = vst.msk [vmem:[%s1999_s3 + $0xc4] sm:$0xf] %vm1094_vm5, %v1342_v2  ;;  %v1313_v12 = vpack.c.bf16 %v794_v8, %v794_v8  ;;  %v611_v14 = vadd.f32 %v1812_v27, %v1647_v37  ;;  %1117 = vst.msk [vmem:[%s1999_s3 + $0x58] sm:$0xf] %vm1094_vm5, %v1315_v6  ;;  %vm669_vm2 = vcmp.ge.f32.partialorder %v483_v9, 0.0  ;;  %v475_v16 = vadd.f32 %v1647_v37, %v1828_v34  ;;  %v503_v55 = vpop.f32.mrf.mxu0  ;;  %v631_v56 = vpop.f32.mrf.mxu1 }
 0x104   :  { %1149 = vst.msk [vmem:[%s1999_s3 + $0xd8] sm:$0xf] %vm1094_vm5, %v1347_v7  ;;  %v733_v15 = vmul.f32 0.2, %v483_v9  ;;  %v603_v17 = vadd.f32 %v1647_v37, %v1830_v35  ;;  %v826_v18 = vsel %vm698_vm1, %v600_v5, %v762_v13  ;;  %v496_v20 = vadd.f32 %v1418_v44, %v1647_v37 }
 0x105   :  { %1115 = vst.msk [vmem:[%s1999_s3 + $0x50] sm:$0xf] %vm1094_vm5, %v1313_v12  ;;  %vm701_vm3 = vcmp.ge.f32.partialorder %v611_v14, 0.0  ;;  %v765_v19 = vmul.f32 0.2, %v611_v14  ;;  %v1345_v21 = vpack.c.bf16 %v826_v18, %v826_v18  ;;  %vm667_vm4 = vcmp.ge.f32.partialorder %v475_v16, 0.0  ;;  %v1423_v6 = vpop.f32.mrf.mxu0  ;;  %v1455_v7 = vpop.f32.mrf.mxu1 }
 0x106   :  { %v797_v22 = vsel %vm669_vm2, %v483_v9, %v733_v15  ;;  %v731_v23 = vmul.f32 0.2, %v475_v16  ;;  %vm699_vm6 = vcmp.ge.f32.partialorder %v603_v17, 0.0  ;;  %v763_v28 = vmul.f32 0.2, %v603_v17 }
 0x107   :  { %v1316_v26 = vpack.c.bf16 %v797_v22, %v797_v22  ;;  %v829_v27 = vsel %vm701_vm3, %v611_v14, %v765_v19  ;;  %1147 = vst.msk [vmem:[%s1999_s3 + $0xd0] sm:$0xf] %vm1094_vm5, %v1345_v21  ;;  %vm672_vm7 = vcmp.ge.f32.partialorder %v496_v20, 0.0  ;;  %v736_v31 = vmul.f32 0.2, %v496_v20  ;;  %v634_v21 = vpop.f32.mrf.mxu1 }
 0x108   :  { %v1348_v29 = vpack.c.bf16 %v829_v27, %v829_v27  ;;  %v795_v30 = vsel %vm667_vm4, %v475_v16, %v731_v23  ;;  %v827_v33 = vsel %vm699_vm6, %v603_v17, %v763_v28  ;;  %v624_v34 = vadd.f32 %v1832_v45, %v1647_v37 }
 0x109   :  { %1118 = vst.msk [vmem:[%s1999_s3 + $0x5c] sm:$0xf] %vm1094_vm5, %v1316_v26  ;;  %v1314_v32 = vpack.c.bf16 %v795_v30, %v795_v30  ;;  %v488_v35 = vadd.f32 %v1647_v37, %v487_v58  ;;  %v1346_v36 = vpack.c.bf16 %v827_v33, %v827_v33  ;;  %v800_v38 = vsel %vm672_vm7, %v496_v20, %v736_v31  ;;  %v506_v20 = vpop.f32.mrf.mxu0 }
 0x10a   :  { %1150 = vst.msk [vmem:[%s1999_s3 + $0xdc] sm:$0xf] %vm1094_vm5, %v1348_v29  ;;  %v616_v39 = vadd.f32 %v1647_v37, %v615_v59  ;;  %v499_v40 = vadd.f32 %v1419_v10, %v1647_v37  ;;  %v1319_v43 = vpack.c.bf16 %v800_v38, %v800_v38  ;;  %vm704_vm8 = vcmp.ge.f32.partialorder %v624_v34, 0.0 }
 0x10b   :  { %1116 = vst.msk [vmem:[%s1999_s3 + $0x54] sm:$0xf] %vm1094_vm5, %v1314_v32  ;;  %v768_v44 = vmul.f32 0.2, %v624_v34  ;;  %vm670_vm9 = vcmp.ge.f32.partialorder %v488_v35, 0.0  ;;  %v627_v49 = vadd.f32 %v1451_v11, %v1647_v37  ;;  %v491_v50 = vadd.f32 %v1647_v37, %v490_v24 }
 0x10c   :  { %1148 = vst.msk [vmem:[%s1999_s3 + $0xd4] sm:$0xf] %vm1094_vm5, %v1346_v36  ;;  %v734_v45 = vmul.f32 0.2, %v488_v35  ;;  %vm702_vm10 = vcmp.ge.f32.partialorder %v616_v39, 0.0  ;;  %vm673_vm11 = vcmp.ge.f32.partialorder %v499_v40, 0.0  ;;  %v619_v54 = vadd.f32 %v1647_v37, %v618_v25 }
 0x10d   :  { %v766_v46 = vmul.f32 0.2, %v616_v39  ;;  %1121 = vst.msk [vmem:[%s1999_s3 + $0x68] sm:$0xf] %vm1094_vm5, %v1319_v43  ;;  %v832_v47 = vsel %vm704_vm8, %v624_v34, %v768_v44  ;;  %v737_v48 = vmul.f32 0.2, %v499_v40  ;;  %v512_v0 = vadd.f32 %v1422_v41, %v1647_v37 }
 0x10e   :  { %v1351_v51 = vpack.c.bf16 %v832_v47, %v832_v47  ;;  %v798_v52 = vsel %vm670_vm9, %v488_v35, %v734_v45  ;;  %vm705_vm12 = vcmp.ge.f32.partialorder %v627_v49, 0.0  ;;  %v769_v61 = vmul.f32 0.2, %v627_v49 }
 0x10f   :  { %v830_v53 = vsel %vm702_vm10, %v616_v39, %v766_v46  ;;  %v1317_v57 = vpack.c.bf16 %v798_v52, %v798_v52  ;;  %v801_v59 = vsel %vm673_vm11, %v499_v40, %v737_v48  ;;  %vm671_vm13 = vcmp.ge.f32.partialorder %v491_v50, 0.0 }
 0x110   :  { %v1349_v58 = vpack.c.bf16 %v830_v53, %v830_v53  ;;  %1153 = vst.msk [vmem:[%s1999_s3 + $0xe8] sm:$0xf] %vm1094_vm5, %v1351_v51  ;;  %v1320_v60 = vpack.c.bf16 %v801_v59, %v801_v59  ;;  %v735_v62 = vmul.f32 0.2, %v491_v50  ;;  %vm703_vm14 = vcmp.ge.f32.partialorder %v619_v54, 0.0 }
 0x111   :  { %1119 = vst.msk [vmem:[%s1999_s3 + $0x60] sm:$0xf] %vm1094_vm5, %v1317_v57  ;;  %v767_v63 = vmul.f32 0.2, %v619_v54  ;;  %v640_v1 = vadd.f32 %v1454_v42, %v1647_v37  ;;  %v833_v2 = vsel %vm705_vm12, %v627_v49, %v769_v61  ;;  %v504_v4 = vadd.f32 %v1647_v37, %v503_v55 }
 0x112   :  { %1151 = vst.msk [vmem:[%s1999_s3 + $0xe0] sm:$0xf] %vm1094_vm5, %v1349_v58  ;;  %1122 = vst.msk [vmem:[%s1999_s3 + $0x6c] sm:$0xf] %vm1094_vm5, %v1320_v60  ;;  %v799_v3 = vsel %vm671_vm13, %v491_v50, %v735_v62  ;;  %v632_v5 = vadd.f32 %v1647_v37, %v631_v56  ;;  %v1352_v8 = vpack.c.bf16 %v833_v2, %v833_v2  ;;  %vm676_vm15 = vcmp.ge.f32.partialorder %v512_v0, 0.0 }
 0x113   :  { %v1318_v9 = vpack.c.bf16 %v799_v3, %v799_v3  ;;  %v831_v10 = vsel %vm703_vm14, %v619_v54, %v767_v63  ;;  %v740_v12 = vmul.f32 0.2, %v512_v0  ;;  %vm708_vm0 = vcmp.ge.f32.partialorder %v640_v1, 0.0 }
 0x114   :  { %v1350_v11 = vpack.c.bf16 %v831_v10, %v831_v10  ;;  %v772_v13 = vmul.f32 0.2, %v640_v1  ;;  %1154 = vst.msk [vmem:[%s1999_s3 + $0xec] sm:$0xf] %vm1094_vm5, %v1352_v8  ;;  %vm674_vm1 = vcmp.ge.f32.partialorder %v504_v4, 0.0  ;;  %vm706_vm2 = vcmp.ge.f32.partialorder %v632_v5, 0.0 }
 0x115   :  { %1120 = vst.msk [vmem:[%s1999_s3 + $0x64] sm:$0xf] %vm1094_vm5, %v1318_v9  ;;  %v738_v14 = vmul.f32 0.2, %v504_v4  ;;  %v770_v15 = vmul.f32 0.2, %v632_v5  ;;  %v804_v16 = vsel %vm676_vm15, %v512_v0, %v740_v12  ;;  %v515_v18 = vadd.f32 %v1423_v6, %v1647_v37 }
 0x116   :  { %1152 = vst.msk [vmem:[%s1999_s3 + $0xe4] sm:$0xf] %vm1094_vm5, %v1350_v11  ;;  %v836_v17 = vsel %vm708_vm0, %v640_v1, %v772_v13  ;;  %v643_v19 = vadd.f32 %v1455_v7, %v1647_v37  ;;  %v1323_v22 = vpack.c.bf16 %v804_v16, %v804_v16  ;;  %v507_v30 = vadd.f32 %v1647_v37, %v506_v20 }
 0x117   :  { %v1355_v23 = vpack.c.bf16 %v836_v17, %v836_v17  ;;  %v802_v24 = vsel %vm674_vm1, %v504_v4, %v738_v14  ;;  %v834_v25 = vsel %vm706_vm2, %v632_v5, %v770_v15  ;;  %vm677_vm3 = vcmp.ge.f32.partialorder %v515_v18, 0.0 }
 0x118   :  { %v1321_v26 = vpack.c.bf16 %v802_v24, %v802_v24  ;;  %v1353_v27 = vpack.c.bf16 %v834_v25, %v834_v25  ;;  %v741_v28 = vmul.f32 0.2, %v515_v18  ;;  %1125 = vst.msk [vmem:[%s1999_s3 + $0x78] sm:$0xf] %vm1094_vm5, %v1323_v22  ;;  %vm709_vm4 = vcmp.ge.f32.partialorder %v643_v19, 0.0 }
 0x119   :  { %1157 = vst.msk [vmem:[%s1999_s3 + $0xf8] sm:$0xf] %vm1094_vm5, %v1355_v23  ;;  %v773_v29 = vmul.f32 0.2, %v643_v19  ;;  %v635_v31 = vadd.f32 %v1647_v37, %v634_v21  ;;  %vm675_vm6 = vcmp.ge.f32.partialorder %v507_v30, 0.0 }
 0x11a   :  { %1123 = vst.msk [vmem:[%s1999_s3 + $0x70] sm:$0xf] %vm1094_vm5, %v1321_v26  ;;  %1155 = vst.msk [vmem:[%s1999_s3 + $0xf0] sm:$0xf] %vm1094_vm5, %v1353_v27  ;;  %v805_v32 = vsel %vm677_vm3, %v515_v18, %v741_v28  ;;  %v739_v35 = vmul.f32 0.2, %v507_v30 }
 0x11b   :  { %v1324_v33 = vpack.c.bf16 %v805_v32, %v805_v32  ;;  %v837_v34 = vsel %vm709_vm4, %v643_v19, %v773_v29  ;;  %vm707_vm7 = vcmp.ge.f32.partialorder %v635_v31, 0.0  ;;  %v771_v38 = vmul.f32 0.2, %v635_v31 }
 0x11c   :  { %v1356_v36 = vpack.c.bf16 %v837_v34, %v837_v34  ;;  %v803_v37 = vsel %vm675_vm6, %v507_v30, %v739_v35 }
 0x11d   :  { %1126 = vst.msk [vmem:[%s1999_s3 + $0x7c] sm:$0xf] %vm1094_vm5, %v1324_v33  ;;  %v1322_v39 = vpack.c.bf16 %v803_v37, %v803_v37  ;;  %v835_v40 = vsel %vm707_vm7, %v635_v31, %v771_v38 }
 0x11e   :  { %1158 = vst.msk [vmem:[%s1999_s3 + $0xfc] sm:$0xf] %vm1094_vm5, %v1356_v36  ;;  %v1354_v41 = vpack.c.bf16 %v835_v40, %v835_v40 }
 0x11f   :  { %1124 = vst.msk [vmem:[%s1999_s3 + $0x74] sm:$0xf] %vm1094_vm5, %v1322_v39 }
 0x120   :  { %1156 = vst.msk [vmem:[%s1999_s3 + $0xf4] sm:$0xf] %vm1094_vm5, %v1354_v41 }

// kernel: unet_forward.19
= control target key start
LH: loop header
LB: loop body
LE: loop exit
PB: predicated region body
PF: predicated region fallthrough
CT: control target
= control target key end

     0   :  { %vm379_vm0 = vcmask 1043456   ;;  %vm282_vm1 = vcmask 588800   ;;  %vm1120_vm4 = vcmask 60416   ;;  %s2062_s1 = inlined_call_operand.vmem [shape: bf16[72,8], index: 1, kind: input, shape index: {}]   ;;  %s2063_s0 = inlined_call_operand.vmem [shape: bf16[512,72], index: 0, kind: input, shape index: {}]   ;;  %s2064_s2 = inlined_call_operand.vmem [shape: f32[1,8], index: 2, kind: input, shape index: {}]   ;;  %s2065_s3 = inlined_call_operand.vmem [shape: bf16[512,8], index: 3, kind: output, shape index: {}]  }
   0x1   :  { %v1510_v0 = vld [vmem:[%s2062_s1 + $0x20] ss:$0 sps:$4 sm:$0xff]   ;;  %v1511_v1 = vld [vmem:[%s2062_s1 + $0x18] sm:$0xff]   ;;  %v1512_v3 = vld [vmem:[%s2062_s1 + $0x10] sm:$0xff]  }
   0x2   :  { %1508 = vmatprep.subr.msk.bf16.mxu0 %vm379_vm0, %v1510_v0  ;;  %1509 = vmatprep.subr.msk.bf16.mxu1 %vm379_vm0, %v1510_v0  ;;  %v381_v2 = vsel %vm379_vm0, %v1510_v0, 0  ;;  %v1515_v4 = vld [vmem:[%s2063_s0] sm:$0xff]   ;;  %v1513_v6 = vld [vmem:[%s2062_s1 + $0x8] sm:$0xff]   ;;  %v1519_v10 = vld [vmem:[%s2063_s0 + $0x10] sm:$0xff]  }
   0x3   :  { %1425 = vmatpush3.bf16.msra.mxu0 %v381_v2  ;;  %1503 = vmatpush3.bf16.msra.mxu1 %v381_v2  ;;  %v1516_v5 = vld [vmem:[%s2063_s0 + $0x80] sm:$0xff]   ;;  %v1517_v8 = vld [vmem:[%s2063_s0 + $0x8] sm:$0xff]   ;;  %v1520_v11 = vld [vmem:[%s2063_s0 + $0x90] sm:$0xff]  }
   0x4   :  { %1426 = vmatprep.subr.bf16.mxu0 %v1511_v1  ;;  %1499 = vmatprep.subr.bf16.mxu1 %v1511_v1  ;;  %v1514_v7 = vld [vmem:[%s2062_s1] sm:$0xff]   ;;  %v1518_v9 = vld [vmem:[%s2063_s0 + $0x88] sm:$0xff]   ;;  %v1521_v12 = vld [vmem:[%s2063_s0 + $0x18] sm:$0xff]  }
   0x5   :  { %1434 = vmatprep.mubr.msk.bf16.mxu0 %vm282_vm1, %v1515_v4  ;;  %1466 = vmatprep.mubr.msk.bf16.mxu1 %vm282_vm1, %v1516_v5  ;;  %v1522_v13 = vld [vmem:[%s2063_s0 + $0x98] sm:$0xff]   ;;  %v1523_v14 = vld [vmem:[%s2063_s0 + $0x20] sm:$0xff]   ;;  %v1525_v16 = vld [vmem:[%s2063_s0 + $0x28] sm:$0xff]  }
   0x6   :  { %v1524_v15 = vld [vmem:[%s2063_s0 + $0xa0] sm:$0xff]   ;;  %v1526_v17 = vld [vmem:[%s2063_s0 + $0xa8] sm:$0xff]   ;;  %v1527_v18 = vld [vmem:[%s2063_s0 + $0x30] sm:$0xff]  }
   0x7   :  { %1427 = vmatpush3.bf16.msra.mxu0 %v1511_v1  ;;  %1504 = vmatpush3.bf16.msra.mxu1 %v1511_v1  ;;  %v1528_v19 = vld [vmem:[%s2063_s0 + $0xb0] sm:$0xff]   ;;  %v1529_v20 = vld [vmem:[%s2063_s0 + $0x38] sm:$0xff]   ;;  %v1531_v22 = vld [vmem:[%s2063_s0 + $0x40] sm:$0xff]  }
   0x8   :  { %1428 = vmatprep.subr.bf16.mxu0 %v1512_v3  ;;  %1500 = vmatprep.subr.bf16.mxu1 %v1512_v3  ;;  %v1530_v21 = vld [vmem:[%s2063_s0 + $0xb8] sm:$0xff]   ;;  %v1532_v23 = vld [vmem:[%s2063_s0 + $0xc0] sm:$0xff]   ;;  %v1533_v24 = vld [vmem:[%s2063_s0 + $0x48] sm:$0xff]  }
   0x9   :  { %v1534_v25 = vld [vmem:[%s2063_s0 + $0xc8] sm:$0xff]   ;;  %v1535_v26 = vld [vmem:[%s2063_s0 + $0x50] sm:$0xff]   ;;  %v1537_v28 = vld [vmem:[%s2063_s0 + $0x58] sm:$0xff]  }
   0xa   :  { %v1536_v27 = vld [vmem:[%s2063_s0 + $0xd0] sm:$0xff]   ;;  %v1538_v29 = vld [vmem:[%s2063_s0 + $0xd8] sm:$0xff]   ;;  %v1539_v30 = vld [vmem:[%s2063_s0 + $0x60] sm:$0xff]  }
   0xb   :  { %1429 = vmatpush3.bf16.msra.mxu0 %v1512_v3  ;;  %1505 = vmatpush3.bf16.msra.mxu1 %v1512_v3  ;;  %v1540_v31 = vld [vmem:[%s2063_s0 + $0xe0] sm:$0xff]   ;;  %v1541_v32 = vld [vmem:[%s2063_s0 + $0x68] sm:$0xff]   ;;  %v1543_v34 = vld [vmem:[%s2063_s0 + $0x70] sm:$0xff]  }
   0xc   :  { %1430 = vmatprep.subr.bf16.mxu0 %v1513_v6  ;;  %1501 = vmatprep.subr.bf16.mxu1 %v1513_v6  ;;  %v1542_v33 = vld [vmem:[%s2063_s0 + $0xe8] sm:$0xff]   ;;  %v1544_v35 = vld [vmem:[%s2063_s0 + $0xf0] sm:$0xff]   ;;  %v1545_v36 = vld [vmem:[%s2063_s0 + $0x78] sm:$0xff]  }
   0xd   :  { %v1546_v37 = vld [vmem:[%s2063_s0 + $0xf8] sm:$0xff]   ;;  %v1713_v38 = vld [vmem:[%s2064_s2] ss:$0 sm:$0xff] }
   0xf   :  { %1431 = vmatpush3.bf16.msra.mxu0 %v1513_v6  ;;  %1506 = vmatpush3.bf16.msra.mxu1 %v1513_v6 }
  0x10   :  { %1432 = vmatprep.subr.bf16.mxu0 %v1514_v7  ;;  %1502 = vmatprep.subr.bf16.mxu1 %v1514_v7 }
  0x13   :  { %1433 = vmatpush3.bf16.msra.mxu0 %v1514_v7  ;;  %1507 = vmatpush3.bf16.msra.mxu1 %v1514_v7 }
  0x16   :  { %1435 = vmatmul.mubr.msk.bf16.vlgmr.msra.gmra.mxu0 %vm282_vm1, %v1517_v8  ;;  %1467 = vmatmul.mubr.msk.bf16.vlgmr.msra.gmra.mxu1 %vm282_vm1, %v1518_v9 }
  0x17   :  { %1438 = vmatprep.mubr.msk.bf16.mxu0 %vm282_vm1, %v1519_v10  ;;  %1470 = vmatprep.mubr.msk.bf16.mxu1 %vm282_vm1, %v1520_v11 }
  0x1e   :  { %1439 = vmatmul.mubr.msk.bf16.gmra.mxu0 %vm282_vm1, %v1521_v12  ;;  %1471 = vmatmul.mubr.msk.bf16.gmra.mxu1 %vm282_vm1, %v1522_v13 }
  0x1f   :  { %1442 = vmatprep.mubr.msk.bf16.mxu0 %vm282_vm1, %v1523_v14  ;;  %1474 = vmatprep.mubr.msk.bf16.mxu1 %vm282_vm1, %v1524_v15 }
  0x26   :  { %1443 = vmatmul.mubr.msk.bf16.gmra.mxu0 %vm282_vm1, %v1525_v16  ;;  %1475 = vmatmul.mubr.msk.bf16.gmra.mxu1 %vm282_vm1, %v1526_v17 }
  0x27   :  { %1446 = vmatprep.mubr.msk.bf16.mxu0 %vm282_vm1, %v1527_v18  ;;  %1478 = vmatprep.mubr.msk.bf16.mxu1 %vm282_vm1, %v1528_v19 }
  0x2e   :  { %1447 = vmatmul.mubr.msk.bf16.gmra.mxu0 %vm282_vm1, %v1529_v20  ;;  %1479 = vmatmul.mubr.msk.bf16.gmra.mxu1 %vm282_vm1, %v1530_v21 }
  0x2f   :  { %1450 = vmatprep.mubr.msk.bf16.mxu0 %vm282_vm1, %v1531_v22  ;;  %1482 = vmatprep.mubr.msk.bf16.mxu1 %vm282_vm1, %v1532_v23 }
  0x36   :  { %1451 = vmatmul.mubr.msk.bf16.gmra.mxu0 %vm282_vm1, %v1533_v24  ;;  %1483 = vmatmul.mubr.msk.bf16.gmra.mxu1 %vm282_vm1, %v1534_v25 }
  0x37   :  { %1454 = vmatprep.mubr.msk.bf16.mxu0 %vm282_vm1, %v1535_v26  ;;  %1486 = vmatprep.mubr.msk.bf16.mxu1 %vm282_vm1, %v1536_v27 }
  0x3e   :  { %1455 = vmatmul.mubr.msk.bf16.gmra.mxu0 %vm282_vm1, %v1537_v28  ;;  %1487 = vmatmul.mubr.msk.bf16.gmra.mxu1 %vm282_vm1, %v1538_v29 }
  0x3f   :  { %1458 = vmatprep.mubr.msk.bf16.mxu0 %vm282_vm1, %v1539_v30  ;;  %1490 = vmatprep.mubr.msk.bf16.mxu1 %vm282_vm1, %v1540_v31 }
  0x46   :  { %1459 = vmatmul.mubr.msk.bf16.gmra.mxu0 %vm282_vm1, %v1541_v32  ;;  %1491 = vmatmul.mubr.msk.bf16.gmra.mxu1 %vm282_vm1, %v1542_v33 }
  0x47   :  { %1462 = vmatprep.mubr.msk.bf16.mxu0 %vm282_vm1, %v1543_v34  ;;  %1494 = vmatprep.mubr.msk.bf16.mxu1 %vm282_vm1, %v1544_v35 }
  0x4e   :  { %1463 = vmatmul.mubr.msk.bf16.gmra.mxu0 %vm282_vm1, %v1545_v36  ;;  %1495 = vmatmul.mubr.msk.bf16.gmra.mxu1 %vm282_vm1, %v1546_v37 }
  0xd6   :  { %v1436_v39 = vpop.f32.mrf.mxu0  ;;  %v1468_v40 = vpop.f32.mrf.mxu1 }
  0xd7   :  { %v426_v41 = vadd.f32 %v1436_v39, %v1713_v38  ;;  %v554_v42 = vadd.f32 %v1468_v40, %v1713_v38 }
  0xd8   :  { %v417_v43 = vpop.f32.mrf.mxu0  ;;  %v545_v44 = vpop.f32.mrf.mxu1 }
  0xd9   :  { %vm674_vm2 = vcmp.ge.f32.partialorder %v426_v41, 0.0  ;;  %v738_v45 = vmul.f32 0.2, %v426_v41  ;;  %vm706_vm3 = vcmp.ge.f32.partialorder %v554_v42, 0.0  ;;  %v770_v46 = vmul.f32 0.2, %v554_v42 }
  0xda   :  { %v418_v47 = vadd.f32 %v1713_v38, %v417_v43  ;;  %v546_v48 = vadd.f32 %v1713_v38, %v545_v44  ;;  %v1437_v49 = vpop.f32.mrf.mxu0  ;;  %v1469_v50 = vpop.f32.mrf.mxu1 }
  0xdb   :  { %v802_v51 = vsel %vm674_vm2, %v426_v41, %v738_v45  ;;  %v834_v52 = vsel %vm706_vm3, %v554_v42, %v770_v46  ;;  %v429_v53 = vadd.f32 %v1437_v49, %v1713_v38  ;;  %v557_v54 = vadd.f32 %v1469_v50, %v1713_v38 }
  0xdc   :  { %v1325_v55 = vpack.c.bf16 %v802_v51, %v802_v51  ;;  %v1357_v56 = vpack.c.bf16 %v834_v52, %v834_v52  ;;  %vm672_vm5 = vcmp.ge.f32.partialorder %v418_v47, 0.0  ;;  %v736_v57 = vmul.f32 0.2, %v418_v47  ;;  %v420_v58 = vpop.f32.mrf.mxu0  ;;  %v548_v59 = vpop.f32.mrf.mxu1 }
  0xdd   :  { %vm704_vm6 = vcmp.ge.f32.partialorder %v546_v48, 0.0  ;;  %v768_v60 = vmul.f32 0.2, %v546_v48  ;;  %vm675_vm7 = vcmp.ge.f32.partialorder %v429_v53, 0.0  ;;  %v739_v61 = vmul.f32 0.2, %v429_v53 }
  0xde   :  { %1123 = vst.msk [vmem:[%s2065_s3 + $0x8] sm:$0xf] %vm1120_vm4, %v1325_v55  ;;  %1155 = vst.msk [vmem:[%s2065_s3 + $0x88] sm:$0xf] %vm1120_vm4, %v1357_v56  ;;  %v800_v62 = vsel %vm672_vm5, %v418_v47, %v736_v57  ;;  %vm707_vm8 = vcmp.ge.f32.partialorder %v557_v54, 0.0  ;;  %v421_v0 = vadd.f32 %v1713_v38, %v420_v58  ;;  %v1440_v1 = vpop.f32.mrf.mxu0  ;;  %v1472_v2 = vpop.f32.mrf.mxu1  ;;  %v549_v6 = vadd.f32 %v1713_v38, %v548_v59 }
  0xdf   :  { %v771_v63 = vmul.f32 0.2, %v557_v54  ;;  %v1323_v3 = vpack.c.bf16 %v800_v62, %v800_v62  ;;  %v832_v4 = vsel %vm704_vm6, %v546_v48, %v768_v60  ;;  %v803_v5 = vsel %vm675_vm7, %v429_v53, %v739_v61 }
  0xe0   :  { %v1355_v7 = vpack.c.bf16 %v832_v4, %v832_v4  ;;  %v1326_v8 = vpack.c.bf16 %v803_v5, %v803_v5  ;;  %vm673_vm9 = vcmp.ge.f32.partialorder %v421_v0, 0.0  ;;  %v433_v10 = vpop.f32.mrf.mxu0  ;;  %v561_v11 = vpop.f32.mrf.mxu1  ;;  %v737_v13 = vmul.f32 0.2, %v421_v0 }
  0xe1   :  { %v835_v9 = vsel %vm707_vm8, %v557_v54, %v771_v63  ;;  %1121 = vst.msk [vmem:[%s2065_s3] sm:$0xf] %vm1120_vm4, %v1323_v3  ;;  %vm705_vm10 = vcmp.ge.f32.partialorder %v549_v6, 0.0  ;;  %v769_v14 = vmul.f32 0.2, %v549_v6  ;;  %v442_v15 = vadd.f32 %v1440_v1, %v1713_v38 }
  0xe2   :  { %v1358_v12 = vpack.c.bf16 %v835_v9, %v835_v9  ;;  %1153 = vst.msk [vmem:[%s2065_s3 + $0x80] sm:$0xf] %vm1120_vm4, %v1355_v7  ;;  %1124 = vst.msk [vmem:[%s2065_s3 + $0xc] sm:$0xf] %vm1120_vm4, %v1326_v8  ;;  %v570_v16 = vadd.f32 %v1472_v2, %v1713_v38  ;;  %v434_v17 = vadd.f32 %v1713_v38, %v433_v10  ;;  %v1441_v19 = vpop.f32.mrf.mxu0  ;;  %v1473_v20 = vpop.f32.mrf.mxu1 }
  0xe3   :  { %v562_v18 = vadd.f32 %v1713_v38, %v561_v11  ;;  %v801_v21 = vsel %vm673_vm9, %v421_v0, %v737_v13  ;;  %v833_v22 = vsel %vm705_vm10, %v549_v6, %v769_v14  ;;  %v445_v23 = vadd.f32 %v1441_v19, %v1713_v38 }
  0xe4   :  { %1156 = vst.msk [vmem:[%s2065_s3 + $0x8c] sm:$0xf] %vm1120_vm4, %v1358_v12  ;;  %v573_v24 = vadd.f32 %v1473_v20, %v1713_v38  ;;  %v1324_v25 = vpack.c.bf16 %v801_v21, %v801_v21  ;;  %v1356_v26 = vpack.c.bf16 %v833_v22, %v833_v22  ;;  %vm678_vm11 = vcmp.ge.f32.partialorder %v442_v15, 0.0  ;;  %v436_v28 = vpop.f32.mrf.mxu0  ;;  %v564_v29 = vpop.f32.mrf.mxu1 }
  0xe5   :  { %v742_v27 = vmul.f32 0.2, %v442_v15  ;;  %vm710_vm12 = vcmp.ge.f32.partialorder %v570_v16, 0.0  ;;  %v774_v30 = vmul.f32 0.2, %v570_v16  ;;  %vm676_vm13 = vcmp.ge.f32.partialorder %v434_v17, 0.0 }
  0xe6   :  { %v740_v31 = vmul.f32 0.2, %v434_v17  ;;  %1122 = vst.msk [vmem:[%s2065_s3 + $0x4] sm:$0xf] %vm1120_vm4, %v1324_v25  ;;  %1154 = vst.msk [vmem:[%s2065_s3 + $0x84] sm:$0xf] %vm1120_vm4, %v1356_v26  ;;  %v1444_v34 = vpop.f32.mrf.mxu0  ;;  %v1476_v35 = vpop.f32.mrf.mxu1  ;;  %v437_v49 = vadd.f32 %v1713_v38, %v436_v28  ;;  %v565_v51 = vadd.f32 %v1713_v38, %v564_v29 }
  0xe7   :  { %v806_v32 = vsel %vm678_vm11, %v442_v15, %v742_v27  ;;  %vm708_vm14 = vcmp.ge.f32.partialorder %v562_v18, 0.0  ;;  %v772_v33 = vmul.f32 0.2, %v562_v18  ;;  %vm679_vm15 = vcmp.ge.f32.partialorder %v445_v23, 0.0 }
  0xe8   :  { %v1329_v36 = vpack.c.bf16 %v806_v32, %v806_v32  ;;  %v838_v37 = vsel %vm710_vm12, %v570_v16, %v774_v30  ;;  %v804_v39 = vsel %vm676_vm13, %v434_v17, %v740_v31  ;;  %v743_v40 = vmul.f32 0.2, %v445_v23  ;;  %v449_v44 = vpop.f32.mrf.mxu0  ;;  %v577_v45 = vpop.f32.mrf.mxu1 }
  0xe9   :  { %v1361_v41 = vpack.c.bf16 %v838_v37, %v838_v37  ;;  %v1327_v42 = vpack.c.bf16 %v804_v39, %v804_v39  ;;  %v836_v43 = vsel %vm708_vm14, %v562_v18, %v772_v33  ;;  %vm711_vm0 = vcmp.ge.f32.partialorder %v573_v24, 0.0 }
  0xea   :  { %1127 = vst.msk [vmem:[%s2065_s3 + $0x18] sm:$0xf] %vm1120_vm4, %v1329_v36  ;;  %v1359_v46 = vpack.c.bf16 %v836_v43, %v836_v43  ;;  %v807_v47 = vsel %vm679_vm15, %v445_v23, %v743_v40  ;;  %v775_v48 = vmul.f32 0.2, %v573_v24  ;;  %v458_v52 = vadd.f32 %v1444_v34, %v1713_v38  ;;  %v1445_v54 = vpop.f32.mrf.mxu0  ;;  %v1477_v55 = vpop.f32.mrf.mxu1 }
  0xeb   :  { %1159 = vst.msk [vmem:[%s2065_s3 + $0x98] sm:$0xf] %vm1120_vm4, %v1361_v41  ;;  %1125 = vst.msk [vmem:[%s2065_s3 + $0x10] sm:$0xf] %vm1120_vm4, %v1327_v42  ;;  %v1330_v50 = vpack.c.bf16 %v807_v47, %v807_v47  ;;  %v586_v53 = vadd.f32 %v1476_v35, %v1713_v38  ;;  %vm677_vm1 = vcmp.ge.f32.partialorder %v437_v49, 0.0  ;;  %v450_v58 = vadd.f32 %v1713_v38, %v449_v44 }
  0xec   :  { %1157 = vst.msk [vmem:[%s2065_s3 + $0x90] sm:$0xf] %vm1120_vm4, %v1359_v46  ;;  %v839_v56 = vsel %vm711_vm0, %v573_v24, %v775_v48  ;;  %v741_v57 = vmul.f32 0.2, %v437_v49  ;;  %vm709_vm2 = vcmp.ge.f32.partialorder %v565_v51, 0.0  ;;  %vm682_vm3 = vcmp.ge.f32.partialorder %v458_v52, 0.0  ;;  %v452_v61 = vpop.f32.mrf.mxu0  ;;  %v580_v62 = vpop.f32.mrf.mxu1 }
  0xed   :  { %1128 = vst.msk [vmem:[%s2065_s3 + $0x1c] sm:$0xf] %vm1120_vm4, %v1330_v50  ;;  %v1362_v59 = vpack.c.bf16 %v839_v56, %v839_v56  ;;  %v773_v60 = vmul.f32 0.2, %v565_v51  ;;  %v746_v0 = vmul.f32 0.2, %v458_v52  ;;  %v578_v10 = vadd.f32 %v1713_v38, %v577_v45 }
  0xee   :  { %v805_v63 = vsel %vm677_vm1, %v437_v49, %v741_v57  ;;  %vm714_vm5 = vcmp.ge.f32.partialorder %v586_v53, 0.0  ;;  %v778_v1 = vmul.f32 0.2, %v586_v53  ;;  %vm680_vm6 = vcmp.ge.f32.partialorder %v450_v58, 0.0  ;;  %v1448_v5 = vpop.f32.mrf.mxu0  ;;  %v1480_v6 = vpop.f32.mrf.mxu1 }
  0xef   :  { %1160 = vst.msk [vmem:[%s2065_s3 + $0x9c] sm:$0xf] %vm1120_vm4, %v1362_v59  ;;  %v1328_v2 = vpack.c.bf16 %v805_v63, %v805_v63  ;;  %v837_v3 = vsel %vm709_vm2, %v565_v51, %v773_v60  ;;  %v744_v4 = vmul.f32 0.2, %v450_v58  ;;  %v810_v8 = vsel %vm682_vm3, %v458_v52, %v746_v0 }
  0xf0   :  { %v1360_v7 = vpack.c.bf16 %v837_v3, %v837_v3  ;;  %v842_v9 = vsel %vm714_vm5, %v586_v53, %v778_v1  ;;  %v1333_v11 = vpack.c.bf16 %v810_v8, %v810_v8  ;;  %v461_v14 = vadd.f32 %v1445_v54, %v1713_v38  ;;  %v465_v15 = vpop.f32.mrf.mxu0  ;;  %v593_v16 = vpop.f32.mrf.mxu1 }
  0xf1   :  { %1126 = vst.msk [vmem:[%s2065_s3 + $0x14] sm:$0xf] %vm1120_vm4, %v1328_v2  ;;  %v1365_v12 = vpack.c.bf16 %v842_v9, %v842_v9  ;;  %v808_v13 = vsel %vm680_vm6, %v450_v58, %v744_v4  ;;  %vm712_vm7 = vcmp.ge.f32.partialorder %v578_v10, 0.0  ;;  %v776_v18 = vmul.f32 0.2, %v578_v10 }
  0xf2   :  { %1158 = vst.msk [vmem:[%s2065_s3 + $0x94] sm:$0xf] %vm1120_vm4, %v1360_v7  ;;  %v1331_v17 = vpack.c.bf16 %v808_v13, %v808_v13  ;;  %v589_v19 = vadd.f32 %v1477_v55, %v1713_v38  ;;  %1131 = vst.msk [vmem:[%s2065_s3 + $0x28] sm:$0xf] %vm1120_vm4, %v1333_v11  ;;  %vm683_vm8 = vcmp.ge.f32.partialorder %v461_v14, 0.0  ;;  %v453_v21 = vadd.f32 %v1713_v38, %v452_v61  ;;  %v1449_v23 = vpop.f32.mrf.mxu0  ;;  %v1481_v24 = vpop.f32.mrf.mxu1 }
  0xf3   :  { %1163 = vst.msk [vmem:[%s2065_s3 + $0xa8] sm:$0xf] %vm1120_vm4, %v1365_v12  ;;  %v747_v20 = vmul.f32 0.2, %v461_v14  ;;  %v581_v22 = vadd.f32 %v1713_v38, %v580_v62  ;;  %v840_v25 = vsel %vm712_vm7, %v578_v10, %v776_v18  ;;  %v474_v27 = vadd.f32 %v1448_v5, %v1713_v38 }
  0xf4   :  { %1129 = vst.msk [vmem:[%s2065_s3 + $0x20] sm:$0xf] %vm1120_vm4, %v1331_v17  ;;  %vm715_vm9 = vcmp.ge.f32.partialorder %v589_v19, 0.0  ;;  %v779_v26 = vmul.f32 0.2, %v589_v19  ;;  %v1363_v28 = vpack.c.bf16 %v840_v25, %v840_v25  ;;  %vm681_vm10 = vcmp.ge.f32.partialorder %v453_v21, 0.0  ;;  %v468_v31 = vpop.f32.mrf.mxu0  ;;  %v596_v32 = vpop.f32.mrf.mxu1 }
  0xf5   :  { %v811_v29 = vsel %vm683_vm8, %v461_v14, %v747_v20  ;;  %v745_v30 = vmul.f32 0.2, %v453_v21  ;;  %vm713_vm11 = vcmp.ge.f32.partialorder %v581_v22, 0.0  ;;  %v777_v35 = vmul.f32 0.2, %v581_v22 }
  0xf6   :  { %v1334_v33 = vpack.c.bf16 %v811_v29, %v811_v29  ;;  %v843_v34 = vsel %vm715_vm9, %v589_v19, %v779_v26  ;;  %1161 = vst.msk [vmem:[%s2065_s3 + $0xa0] sm:$0xf] %vm1120_vm4, %v1363_v28  ;;  %vm686_vm12 = vcmp.ge.f32.partialorder %v474_v27, 0.0  ;;  %v750_v39 = vmul.f32 0.2, %v474_v27  ;;  %v1452_v40 = vpop.f32.mrf.mxu0  ;;  %v1484_v41 = vpop.f32.mrf.mxu1 }
  0xf7   :  { %v1366_v36 = vpack.c.bf16 %v843_v34, %v843_v34  ;;  %v809_v37 = vsel %vm681_vm10, %v453_v21, %v745_v30  ;;  %v841_v43 = vsel %vm713_vm11, %v581_v22, %v777_v35  ;;  %v602_v44 = vadd.f32 %v1480_v6, %v1713_v38 }
  0xf8   :  { %1132 = vst.msk [vmem:[%s2065_s3 + $0x2c] sm:$0xf] %vm1120_vm4, %v1334_v33  ;;  %v1332_v42 = vpack.c.bf16 %v809_v37, %v809_v37  ;;  %v466_v45 = vadd.f32 %v1713_v38, %v465_v15  ;;  %v1364_v46 = vpack.c.bf16 %v841_v43, %v841_v43  ;;  %v814_v47 = vsel %vm686_vm12, %v474_v27, %v750_v39  ;;  %v481_v50 = vpop.f32.mrf.mxu0  ;;  %v609_v51 = vpop.f32.mrf.mxu1 }
  0xf9   :  { %1164 = vst.msk [vmem:[%s2065_s3 + $0xac] sm:$0xf] %vm1120_vm4, %v1366_v36  ;;  %v594_v48 = vadd.f32 %v1713_v38, %v593_v16  ;;  %v477_v49 = vadd.f32 %v1449_v23, %v1713_v38  ;;  %v1337_v52 = vpack.c.bf16 %v814_v47, %v814_v47  ;;  %vm718_vm13 = vcmp.ge.f32.partialorder %v602_v44, 0.0 }
  0xfa   :  { %1130 = vst.msk [vmem:[%s2065_s3 + $0x24] sm:$0xf] %vm1120_vm4, %v1332_v42  ;;  %v782_v53 = vmul.f32 0.2, %v602_v44  ;;  %vm684_vm14 = vcmp.ge.f32.partialorder %v466_v45, 0.0  ;;  %v1453_v56 = vpop.f32.mrf.mxu0  ;;  %v1485_v57 = vpop.f32.mrf.mxu1  ;;  %v605_v60 = vadd.f32 %v1481_v24, %v1713_v38  ;;  %v469_v61 = vadd.f32 %v1713_v38, %v468_v31 }
  0xfb   :  { %1162 = vst.msk [vmem:[%s2065_s3 + $0xa4] sm:$0xf] %vm1120_vm4, %v1364_v46  ;;  %v748_v54 = vmul.f32 0.2, %v466_v45  ;;  %vm716_vm15 = vcmp.ge.f32.partialorder %v594_v48, 0.0  ;;  %vm687_vm0 = vcmp.ge.f32.partialorder %v477_v49, 0.0  ;;  %v597_v1 = vadd.f32 %v1713_v38, %v596_v32 }
  0xfc   :  { %v780_v55 = vmul.f32 0.2, %v594_v48  ;;  %1135 = vst.msk [vmem:[%s2065_s3 + $0x38] sm:$0xf] %vm1120_vm4, %v1337_v52  ;;  %v846_v58 = vsel %vm718_vm13, %v602_v44, %v782_v53  ;;  %v751_v59 = vmul.f32 0.2, %v477_v49  ;;  %v1849_v2 = vpop.f32.mrf.mxu0  ;;  %v1851_v3 = vpop.f32.mrf.mxu1  ;;  %v490_v13 = vadd.f32 %v1452_v40, %v1713_v38 }
  0xfd   :  { %v1369_v62 = vpack.c.bf16 %v846_v58, %v846_v58  ;;  %v812_v63 = vsel %vm684_vm14, %v466_v45, %v748_v54  ;;  %vm719_vm1 = vcmp.ge.f32.partialorder %v605_v60, 0.0  ;;  %v783_v8 = vmul.f32 0.2, %v605_v60 }
  0xfe   :  { %v844_v0 = vsel %vm716_vm15, %v594_v48, %v780_v55  ;;  %v1335_v4 = vpack.c.bf16 %v812_v63, %v812_v63  ;;  %v815_v6 = vsel %vm687_vm0, %v477_v49, %v751_v59  ;;  %vm685_vm2 = vcmp.ge.f32.partialorder %v469_v61, 0.0  ;;  %v1456_v10 = vpop.f32.mrf.mxu0  ;;  %v1488_v11 = vpop.f32.mrf.mxu1 }
  0xff   :  { %v1367_v5 = vpack.c.bf16 %v844_v0, %v844_v0  ;;  %1167 = vst.msk [vmem:[%s2065_s3 + $0xb8] sm:$0xf] %vm1120_vm4, %v1369_v62  ;;  %v1338_v7 = vpack.c.bf16 %v815_v6, %v815_v6  ;;  %v749_v9 = vmul.f32 0.2, %v469_v61  ;;  %vm717_vm3 = vcmp.ge.f32.partialorder %v597_v1, 0.0 }
 0x100   :  { %1133 = vst.msk [vmem:[%s2065_s3 + $0x30] sm:$0xf] %vm1120_vm4, %v1335_v4  ;;  %v781_v12 = vmul.f32 0.2, %v597_v1  ;;  %v618_v14 = vadd.f32 %v1484_v41, %v1713_v38  ;;  %v847_v15 = vsel %vm719_vm1, %v605_v60, %v783_v8  ;;  %v482_v17 = vadd.f32 %v1713_v38, %v481_v50  ;;  %v497_v19 = vpop.f32.mrf.mxu0  ;;  %v1874_v20 = vpop.f32.mrf.mxu1 }
 0x101   :  { %1165 = vst.msk [vmem:[%s2065_s3 + $0xb0] sm:$0xf] %vm1120_vm4, %v1367_v5  ;;  %1136 = vst.msk [vmem:[%s2065_s3 + $0x3c] sm:$0xf] %vm1120_vm4, %v1338_v7  ;;  %v813_v16 = vsel %vm685_vm2, %v469_v61, %v749_v9  ;;  %v610_v18 = vadd.f32 %v1713_v38, %v609_v51  ;;  %v1370_v21 = vpack.c.bf16 %v847_v15, %v847_v15  ;;  %vm690_vm5 = vcmp.ge.f32.partialorder %v490_v13, 0.0 }
 0x102   :  { %v1336_v22 = vpack.c.bf16 %v813_v16, %v813_v16  ;;  %v845_v23 = vsel %vm717_vm3, %v597_v1, %v781_v12  ;;  %v754_v25 = vmul.f32 0.2, %v490_v13  ;;  %vm722_vm6 = vcmp.ge.f32.partialorder %v618_v14, 0.0  ;;  %v1876_v27 = vpop.f32.mrf.mxu0  ;;  %v1878_v28 = vpop.f32.mrf.mxu1 }
 0x103   :  { %v1368_v24 = vpack.c.bf16 %v845_v23, %v845_v23  ;;  %v786_v26 = vmul.f32 0.2, %v618_v14  ;;  %1168 = vst.msk [vmem:[%s2065_s3 + $0xbc] sm:$0xf] %vm1120_vm4, %v1370_v21  ;;  %vm688_vm7 = vcmp.ge.f32.partialorder %v482_v17, 0.0  ;;  %vm720_vm8 = vcmp.ge.f32.partialorder %v610_v18, 0.0 }
 0x104   :  { %1134 = vst.msk [vmem:[%s2065_s3 + $0x34] sm:$0xf] %vm1120_vm4, %v1336_v22  ;;  %v752_v29 = vmul.f32 0.2, %v482_v17  ;;  %v784_v30 = vmul.f32 0.2, %v610_v18  ;;  %v818_v31 = vsel %vm690_vm5, %v490_v13, %v754_v25  ;;  %v493_v33 = vadd.f32 %v1453_v56, %v1713_v38  ;;  %v1894_v35 = vpop.f32.mrf.mxu0  ;;  %v1896_v36 = vpop.f32.mrf.mxu1 }
 0x105   :  { %1166 = vst.msk [vmem:[%s2065_s3 + $0xb4] sm:$0xf] %vm1120_vm4, %v1368_v24  ;;  %v850_v32 = vsel %vm722_vm6, %v618_v14, %v786_v26  ;;  %v621_v34 = vadd.f32 %v1485_v57, %v1713_v38  ;;  %v1341_v37 = vpack.c.bf16 %v818_v31, %v818_v31  ;;  %v485_v48 = vadd.f32 %v1713_v38, %v1849_v2 }
 0x106   :  { %v1373_v39 = vpack.c.bf16 %v850_v32, %v850_v32  ;;  %v816_v40 = vsel %vm688_vm7, %v482_v17, %v752_v29  ;;  %v848_v41 = vsel %vm720_vm8, %v610_v18, %v784_v30  ;;  %vm691_vm9 = vcmp.ge.f32.partialorder %v493_v33, 0.0  ;;  %v1460_v45 = vpop.f32.mrf.mxu0  ;;  %v1898_v46 = vpop.f32.mrf.mxu1 }
 0x107   :  { %v1339_v42 = vpack.c.bf16 %v816_v40, %v816_v40  ;;  %v1371_v43 = vpack.c.bf16 %v848_v41, %v848_v41  ;;  %v755_v44 = vmul.f32 0.2, %v493_v33  ;;  %1139 = vst.msk [vmem:[%s2065_s3 + $0x48] sm:$0xf] %vm1120_vm4, %v1341_v37  ;;  %vm723_vm10 = vcmp.ge.f32.partialorder %v621_v34, 0.0 }
 0x108   :  { %1171 = vst.msk [vmem:[%s2065_s3 + $0xc8] sm:$0xf] %vm1120_vm4, %v1373_v39  ;;  %v787_v47 = vmul.f32 0.2, %v621_v34  ;;  %v613_v49 = vadd.f32 %v1713_v38, %v1851_v3  ;;  %v506_v51 = vadd.f32 %v1456_v10, %v1713_v38  ;;  %v634_v52 = vadd.f32 %v1488_v11, %v1713_v38  ;;  %v513_v59 = vpop.f32.mrf.mxu0  ;;  %v641_v60 = vpop.f32.mrf.mxu1 }
 0x109   :  { %1137 = vst.msk [vmem:[%s2065_s3 + $0x40] sm:$0xf] %vm1120_vm4, %v1339_v42  ;;  %1169 = vst.msk [vmem:[%s2065_s3 + $0xc0] sm:$0xf] %vm1120_vm4, %v1371_v43  ;;  %v819_v50 = vsel %vm691_vm9, %v493_v33, %v755_v44  ;;  %v498_v53 = vadd.f32 %v1713_v38, %v497_v19  ;;  %vm689_vm11 = vcmp.ge.f32.partialorder %v485_v48, 0.0  ;;  %v626_v6 = vadd.f32 %v1713_v38, %v1874_v20 }
 0x10a   :  { %v1342_v54 = vpack.c.bf16 %v819_v50, %v819_v50  ;;  %v851_v55 = vsel %vm723_vm10, %v621_v34, %v787_v47  ;;  %v753_v56 = vmul.f32 0.2, %v485_v48  ;;  %vm721_vm12 = vcmp.ge.f32.partialorder %v613_v49, 0.0  ;;  %v1461_v11 = vpop.f32.mrf.mxu0  ;;  %v1493_v12 = vpop.f32.mrf.mxu1 }
 0x10b   :  { %v1374_v57 = vpack.c.bf16 %v851_v55, %v851_v55  ;;  %v785_v58 = vmul.f32 0.2, %v613_v49  ;;  %vm694_vm13 = vcmp.ge.f32.partialorder %v506_v51, 0.0  ;;  %v758_v62 = vmul.f32 0.2, %v506_v51 }
 0x10c   :  { %1140 = vst.msk [vmem:[%s2065_s3 + $0x4c] sm:$0xf] %vm1120_vm4, %v1342_v54  ;;  %v817_v61 = vsel %vm689_vm11, %v485_v48, %v753_v56  ;;  %vm726_vm14 = vcmp.ge.f32.partialorder %v634_v52, 0.0  ;;  %v790_v63 = vmul.f32 0.2, %v634_v52  ;;  %vm692_vm15 = vcmp.ge.f32.partialorder %v498_v53, 0.0  ;;  %v516_v25 = vpop.f32.mrf.mxu0  ;;  %v644_v26 = vpop.f32.mrf.mxu1 }
 0x10d   :  { %1172 = vst.msk [vmem:[%s2065_s3 + $0xcc] sm:$0xf] %vm1120_vm4, %v1374_v57  ;;  %v1340_v0 = vpack.c.bf16 %v817_v61, %v817_v61  ;;  %v849_v1 = vsel %vm721_vm12, %v613_v49, %v785_v58  ;;  %v756_v2 = vmul.f32 0.2, %v498_v53  ;;  %v822_v4 = vsel %vm694_vm13, %v506_v51, %v758_v62 }
 0x10e   :  { %v1372_v3 = vpack.c.bf16 %v849_v1, %v849_v1  ;;  %v854_v5 = vsel %vm726_vm14, %v634_v52, %v790_v63  ;;  %v1345_v7 = vpack.c.bf16 %v822_v4, %v822_v4  ;;  %v509_v10 = vadd.f32 %v1876_v27, %v1713_v38  ;;  %v1464_v42 = vpop.f32.mrf.mxu0  ;;  %v1496_v43 = vpop.f32.mrf.mxu1 }
 0x10f   :  { %1138 = vst.msk [vmem:[%s2065_s3 + $0x44] sm:$0xf] %vm1120_vm4, %v1340_v0  ;;  %v1377_v8 = vpack.c.bf16 %v854_v5, %v854_v5  ;;  %v820_v9 = vsel %vm692_vm15, %v498_v53, %v756_v2  ;;  %vm724_vm0 = vcmp.ge.f32.partialorder %v626_v6, 0.0  ;;  %v788_v14 = vmul.f32 0.2, %v626_v6 }
 0x110   :  { %1170 = vst.msk [vmem:[%s2065_s3 + $0xc4] sm:$0xf] %vm1120_vm4, %v1372_v3  ;;  %v1343_v13 = vpack.c.bf16 %v820_v9, %v820_v9  ;;  %v637_v15 = vadd.f32 %v1878_v28, %v1713_v38  ;;  %1143 = vst.msk [vmem:[%s2065_s3 + $0x58] sm:$0xf] %vm1120_vm4, %v1345_v7  ;;  %vm695_vm1 = vcmp.ge.f32.partialorder %v509_v10, 0.0  ;;  %v501_v17 = vadd.f32 %v1713_v38, %v1894_v35  ;;  %v529_v56 = vpop.f32.mrf.mxu0  ;;  %v657_v57 = vpop.f32.mrf.mxu1 }
 0x111   :  { %1175 = vst.msk [vmem:[%s2065_s3 + $0xd8] sm:$0xf] %vm1120_vm4, %v1377_v8  ;;  %v759_v16 = vmul.f32 0.2, %v509_v10  ;;  %v629_v18 = vadd.f32 %v1713_v38, %v1896_v36  ;;  %v852_v19 = vsel %vm724_vm0, %v626_v6, %v788_v14  ;;  %v522_v21 = vadd.f32 %v1460_v45, %v1713_v38 }
 0x112   :  { %1141 = vst.msk [vmem:[%s2065_s3 + $0x50] sm:$0xf] %vm1120_vm4, %v1343_v13  ;;  %vm727_vm2 = vcmp.ge.f32.partialorder %v637_v15, 0.0  ;;  %v791_v20 = vmul.f32 0.2, %v637_v15  ;;  %v1375_v22 = vpack.c.bf16 %v852_v19, %v852_v19  ;;  %vm693_vm3 = vcmp.ge.f32.partialorder %v501_v17, 0.0  ;;  %v1465_v7 = vpop.f32.mrf.mxu0  ;;  %v1497_v8 = vpop.f32.mrf.mxu1 }
 0x113   :  { %v823_v23 = vsel %vm695_vm1, %v509_v10, %v759_v16  ;;  %v757_v24 = vmul.f32 0.2, %v501_v17  ;;  %vm725_vm5 = vcmp.ge.f32.partialorder %v629_v18, 0.0  ;;  %v789_v29 = vmul.f32 0.2, %v629_v18 }
 0x114   :  { %v1346_v27 = vpack.c.bf16 %v823_v23, %v823_v23  ;;  %v855_v28 = vsel %vm727_vm2, %v637_v15, %v791_v20  ;;  %1173 = vst.msk [vmem:[%s2065_s3 + $0xd0] sm:$0xf] %vm1120_vm4, %v1375_v22  ;;  %vm698_vm6 = vcmp.ge.f32.partialorder %v522_v21, 0.0  ;;  %v762_v32 = vmul.f32 0.2, %v522_v21  ;;  %v660_v22 = vpop.f32.mrf.mxu1 }
 0x115   :  { %v1378_v30 = vpack.c.bf16 %v855_v28, %v855_v28  ;;  %v821_v31 = vsel %vm693_vm3, %v501_v17, %v757_v24  ;;  %v853_v34 = vsel %vm725_vm5, %v629_v18, %v789_v29  ;;  %v650_v35 = vadd.f32 %v1898_v46, %v1713_v38 }
 0x116   :  { %1144 = vst.msk [vmem:[%s2065_s3 + $0x5c] sm:$0xf] %vm1120_vm4, %v1346_v27  ;;  %v1344_v33 = vpack.c.bf16 %v821_v31, %v821_v31  ;;  %v514_v36 = vadd.f32 %v1713_v38, %v513_v59  ;;  %v1376_v37 = vpack.c.bf16 %v853_v34, %v853_v34  ;;  %v826_v39 = vsel %vm698_vm6, %v522_v21, %v762_v32  ;;  %v532_v21 = vpop.f32.mrf.mxu0 }
 0x117   :  { %1176 = vst.msk [vmem:[%s2065_s3 + $0xdc] sm:$0xf] %vm1120_vm4, %v1378_v30  ;;  %v642_v40 = vadd.f32 %v1713_v38, %v641_v60  ;;  %v525_v41 = vadd.f32 %v1461_v11, %v1713_v38  ;;  %v1349_v44 = vpack.c.bf16 %v826_v39, %v826_v39  ;;  %vm730_vm7 = vcmp.ge.f32.partialorder %v650_v35, 0.0 }
 0x118   :  { %1142 = vst.msk [vmem:[%s2065_s3 + $0x54] sm:$0xf] %vm1120_vm4, %v1344_v33  ;;  %v794_v45 = vmul.f32 0.2, %v650_v35  ;;  %vm696_vm8 = vcmp.ge.f32.partialorder %v514_v36, 0.0  ;;  %v653_v50 = vadd.f32 %v1493_v12, %v1713_v38  ;;  %v517_v51 = vadd.f32 %v1713_v38, %v516_v25 }
 0x119   :  { %1174 = vst.msk [vmem:[%s2065_s3 + $0xd4] sm:$0xf] %vm1120_vm4, %v1376_v37  ;;  %v760_v46 = vmul.f32 0.2, %v514_v36  ;;  %vm728_vm9 = vcmp.ge.f32.partialorder %v642_v40, 0.0  ;;  %vm699_vm10 = vcmp.ge.f32.partialorder %v525_v41, 0.0  ;;  %v645_v55 = vadd.f32 %v1713_v38, %v644_v26 }
 0x11a   :  { %v792_v47 = vmul.f32 0.2, %v642_v40  ;;  %1147 = vst.msk [vmem:[%s2065_s3 + $0x68] sm:$0xf] %vm1120_vm4, %v1349_v44  ;;  %v858_v48 = vsel %vm730_vm7, %v650_v35, %v794_v45  ;;  %v763_v49 = vmul.f32 0.2, %v525_v41  ;;  %v538_v1 = vadd.f32 %v1464_v42, %v1713_v38 }
 0x11b   :  { %v1381_v52 = vpack.c.bf16 %v858_v48, %v858_v48  ;;  %v824_v53 = vsel %vm696_vm8, %v514_v36, %v760_v46  ;;  %vm731_vm11 = vcmp.ge.f32.partialorder %v653_v50, 0.0  ;;  %v795_v62 = vmul.f32 0.2, %v653_v50 }
 0x11c   :  { %v856_v54 = vsel %vm728_vm9, %v642_v40, %v792_v47  ;;  %v1347_v58 = vpack.c.bf16 %v824_v53, %v824_v53  ;;  %v827_v60 = vsel %vm699_vm10, %v525_v41, %v763_v49  ;;  %vm697_vm12 = vcmp.ge.f32.partialorder %v517_v51, 0.0 }
 0x11d   :  { %v1379_v59 = vpack.c.bf16 %v856_v54, %v856_v54  ;;  %1179 = vst.msk [vmem:[%s2065_s3 + $0xe8] sm:$0xf] %vm1120_vm4, %v1381_v52  ;;  %v1350_v61 = vpack.c.bf16 %v827_v60, %v827_v60  ;;  %v761_v63 = vmul.f32 0.2, %v517_v51  ;;  %vm729_vm13 = vcmp.ge.f32.partialorder %v645_v55, 0.0 }
 0x11e   :  { %1145 = vst.msk [vmem:[%s2065_s3 + $0x60] sm:$0xf] %vm1120_vm4, %v1347_v58  ;;  %v793_v0 = vmul.f32 0.2, %v645_v55  ;;  %v666_v2 = vadd.f32 %v1496_v43, %v1713_v38  ;;  %v859_v3 = vsel %vm731_vm11, %v653_v50, %v795_v62  ;;  %v530_v5 = vadd.f32 %v1713_v38, %v529_v56 }
 0x11f   :  { %1177 = vst.msk [vmem:[%s2065_s3 + $0xe0] sm:$0xf] %vm1120_vm4, %v1379_v59  ;;  %1148 = vst.msk [vmem:[%s2065_s3 + $0x6c] sm:$0xf] %vm1120_vm4, %v1350_v61  ;;  %v825_v4 = vsel %vm697_vm12, %v517_v51, %v761_v63  ;;  %v658_v6 = vadd.f32 %v1713_v38, %v657_v57  ;;  %v1382_v9 = vpack.c.bf16 %v859_v3, %v859_v3  ;;  %vm702_vm14 = vcmp.ge.f32.partialorder %v538_v1, 0.0 }
 0x120   :  { %v1348_v10 = vpack.c.bf16 %v825_v4, %v825_v4  ;;  %v857_v11 = vsel %vm729_vm13, %v645_v55, %v793_v0  ;;  %v766_v13 = vmul.f32 0.2, %v538_v1  ;;  %vm734_vm15 = vcmp.ge.f32.partialorder %v666_v2, 0.0 }
 0x121   :  { %v1380_v12 = vpack.c.bf16 %v857_v11, %v857_v11  ;;  %v798_v14 = vmul.f32 0.2, %v666_v2  ;;  %1180 = vst.msk [vmem:[%s2065_s3 + $0xec] sm:$0xf] %vm1120_vm4, %v1382_v9  ;;  %vm700_vm0 = vcmp.ge.f32.partialorder %v530_v5, 0.0  ;;  %vm732_vm1 = vcmp.ge.f32.partialorder %v658_v6, 0.0 }
 0x122   :  { %1146 = vst.msk [vmem:[%s2065_s3 + $0x64] sm:$0xf] %vm1120_vm4, %v1348_v10  ;;  %v764_v15 = vmul.f32 0.2, %v530_v5  ;;  %v796_v16 = vmul.f32 0.2, %v658_v6  ;;  %v830_v17 = vsel %vm702_vm14, %v538_v1, %v766_v13  ;;  %v541_v19 = vadd.f32 %v1465_v7, %v1713_v38 }
 0x123   :  { %1178 = vst.msk [vmem:[%s2065_s3 + $0xe4] sm:$0xf] %vm1120_vm4, %v1380_v12  ;;  %v862_v18 = vsel %vm734_vm15, %v666_v2, %v798_v14  ;;  %v669_v20 = vadd.f32 %v1497_v8, %v1713_v38  ;;  %v1353_v23 = vpack.c.bf16 %v830_v17, %v830_v17  ;;  %v533_v31 = vadd.f32 %v1713_v38, %v532_v21 }
 0x124   :  { %v1385_v24 = vpack.c.bf16 %v862_v18, %v862_v18  ;;  %v828_v25 = vsel %vm700_vm0, %v530_v5, %v764_v15  ;;  %v860_v26 = vsel %vm732_vm1, %v658_v6, %v796_v16  ;;  %vm703_vm2 = vcmp.ge.f32.partialorder %v541_v19, 0.0 }
 0x125   :  { %v1351_v27 = vpack.c.bf16 %v828_v25, %v828_v25  ;;  %v1383_v28 = vpack.c.bf16 %v860_v26, %v860_v26  ;;  %v767_v29 = vmul.f32 0.2, %v541_v19  ;;  %1151 = vst.msk [vmem:[%s2065_s3 + $0x78] sm:$0xf] %vm1120_vm4, %v1353_v23  ;;  %vm735_vm3 = vcmp.ge.f32.partialorder %v669_v20, 0.0 }
 0x126   :  { %1183 = vst.msk [vmem:[%s2065_s3 + $0xf8] sm:$0xf] %vm1120_vm4, %v1385_v24  ;;  %v799_v30 = vmul.f32 0.2, %v669_v20  ;;  %v661_v32 = vadd.f32 %v1713_v38, %v660_v22  ;;  %vm701_vm5 = vcmp.ge.f32.partialorder %v533_v31, 0.0 }
 0x127   :  { %1149 = vst.msk [vmem:[%s2065_s3 + $0x70] sm:$0xf] %vm1120_vm4, %v1351_v27  ;;  %1181 = vst.msk [vmem:[%s2065_s3 + $0xf0] sm:$0xf] %vm1120_vm4, %v1383_v28  ;;  %v831_v33 = vsel %vm703_vm2, %v541_v19, %v767_v29  ;;  %v765_v36 = vmul.f32 0.2, %v533_v31 }
 0x128   :  { %v1354_v34 = vpack.c.bf16 %v831_v33, %v831_v33  ;;  %v863_v35 = vsel %vm735_vm3, %v669_v20, %v799_v30  ;;  %vm733_vm6 = vcmp.ge.f32.partialorder %v661_v32, 0.0  ;;  %v797_v39 = vmul.f32 0.2, %v661_v32 }
 0x129   :  { %v1386_v37 = vpack.c.bf16 %v863_v35, %v863_v35  ;;  %v829_v38 = vsel %vm701_vm5, %v533_v31, %v765_v36 }
 0x12a   :  { %1152 = vst.msk [vmem:[%s2065_s3 + $0x7c] sm:$0xf] %vm1120_vm4, %v1354_v34  ;;  %v1352_v40 = vpack.c.bf16 %v829_v38, %v829_v38  ;;  %v861_v41 = vsel %vm733_vm6, %v661_v32, %v797_v39 }
 0x12b   :  { %1184 = vst.msk [vmem:[%s2065_s3 + $0xfc] sm:$0xf] %vm1120_vm4, %v1386_v37  ;;  %v1384_v42 = vpack.c.bf16 %v861_v41, %v861_v41 }
 0x12c   :  { %1150 = vst.msk [vmem:[%s2065_s3 + $0x74] sm:$0xf] %vm1120_vm4, %v1352_v40 }
 0x12d   :  { %1182 = vst.msk [vmem:[%s2065_s3 + $0xf4] sm:$0xf] %vm1120_vm4, %v1384_v42 }

// kernel: unet_forward.20
= control target key start
LH: loop header
LB: loop body
LE: loop exit
PB: predicated region body
PF: predicated region fallthrough
CT: control target
= control target key end

     0   :  { %vm139_vm0 = vcmask 1043456   ;;  %vm114_vm1 = vcmask 588800   ;;  %vm352_vm4 = vcmask 125952   ;;  %s644_s1 = inlined_call_operand.vmem [shape: bf16[72,16], index: 1, kind: input, shape index: {}]   ;;  %s645_s0 = inlined_call_operand.vmem [shape: bf16[128,72], index: 0, kind: input, shape index: {}]   ;;  %s646_s2 = inlined_call_operand.vmem [shape: f32[1,16], index: 2, kind: input, shape index: {}]   ;;  %s647_s3 = inlined_call_operand.vmem [shape: bf16[128,16], index: 3, kind: output, shape index: {}]  }
   0x1   :  { %v478_v0 = vld [vmem:[%s644_s1 + $0x20] ss:$0 sps:$4 sm:$0xff]   ;;  %v479_v1 = vld [vmem:[%s644_s1 + $0x18] sm:$0xff]   ;;  %v480_v3 = vld [vmem:[%s644_s1 + $0x10] sm:$0xff]  }
   0x2   :  { %476 = vmatprep.subr.msk.bf16.mxu0 %vm139_vm0, %v478_v0  ;;  %477 = vmatprep.subr.msk.bf16.mxu1 %vm139_vm0, %v478_v0  ;;  %v141_v2 = vsel %vm139_vm0, %v478_v0, 0  ;;  %v483_v4 = vld [vmem:[%s645_s0] sm:$0xff]   ;;  %v481_v6 = vld [vmem:[%s644_s1 + $0x8] sm:$0xff]   ;;  %v487_v10 = vld [vmem:[%s645_s0 + $0x10] sm:$0xff]  }
   0x3   :  { %441 = vmatpush3.bf16.msra.mxu0 %v141_v2  ;;  %471 = vmatpush3.bf16.msra.mxu1 %v141_v2  ;;  %v484_v5 = vld [vmem:[%s645_s0 + $0x20] sm:$0xff]   ;;  %v485_v8 = vld [vmem:[%s645_s0 + $0x8] sm:$0xff]   ;;  %v488_v11 = vld [vmem:[%s645_s0 + $0x30] sm:$0xff]  }
   0x4   :  { %442 = vmatprep.subr.bf16.mxu0 %v479_v1  ;;  %467 = vmatprep.subr.bf16.mxu1 %v479_v1  ;;  %v482_v7 = vld [vmem:[%s644_s1] sm:$0xff]   ;;  %v486_v9 = vld [vmem:[%s645_s0 + $0x28] sm:$0xff]   ;;  %v489_v12 = vld [vmem:[%s645_s0 + $0x18] sm:$0xff]  }
   0x5   :  { %450 = vmatprep.mubr.msk.bf16.mxu0 %vm114_vm1, %v483_v4  ;;  %458 = vmatprep.mubr.msk.bf16.mxu1 %vm114_vm1, %v484_v5  ;;  %v490_v13 = vld [vmem:[%s645_s0 + $0x38] sm:$0xff]   ;;  %v561_v14 = vld [vmem:[%s646_s2] ss:$0 sm:$0xff] }
   0x7   :  { %443 = vmatpush3.bf16.msra.mxu0 %v479_v1  ;;  %472 = vmatpush3.bf16.msra.mxu1 %v479_v1 }
   0x8   :  { %444 = vmatprep.subr.bf16.mxu0 %v480_v3  ;;  %468 = vmatprep.subr.bf16.mxu1 %v480_v3 }
   0xb   :  { %445 = vmatpush3.bf16.msra.mxu0 %v480_v3  ;;  %473 = vmatpush3.bf16.msra.mxu1 %v480_v3 }
   0xc   :  { %446 = vmatprep.subr.bf16.mxu0 %v481_v6  ;;  %469 = vmatprep.subr.bf16.mxu1 %v481_v6 }
   0xf   :  { %447 = vmatpush3.bf16.msra.mxu0 %v481_v6  ;;  %474 = vmatpush3.bf16.msra.mxu1 %v481_v6 }
  0x10   :  { %448 = vmatprep.subr.bf16.mxu0 %v482_v7  ;;  %470 = vmatprep.subr.bf16.mxu1 %v482_v7 }
  0x13   :  { %449 = vmatpush3.bf16.msra.mxu0 %v482_v7  ;;  %475 = vmatpush3.bf16.msra.mxu1 %v482_v7 }
  0x16   :  { %451 = vmatmul.mubr.msk.bf16.vlgmr.msra.gmra.mxu0 %vm114_vm1, %v485_v8  ;;  %459 = vmatmul.mubr.msk.bf16.vlgmr.msra.gmra.mxu1 %vm114_vm1, %v486_v9 }
  0x17   :  { %454 = vmatprep.mubr.msk.bf16.mxu0 %vm114_vm1, %v487_v10  ;;  %462 = vmatprep.mubr.msk.bf16.mxu1 %vm114_vm1, %v488_v11 }
  0x1e   :  { %455 = vmatmul.mubr.msk.bf16.gmra.mxu0 %vm114_vm1, %v489_v12  ;;  %463 = vmatmul.mubr.msk.bf16.gmra.mxu1 %vm114_vm1, %v490_v13 }
  0xd6   :  { %v452_v15 = vpop.f32.mrf.mxu0  ;;  %v460_v16 = vpop.f32.mrf.mxu1 }
  0xd7   :  { %v186_v17 = vadd.f32 %v452_v15, %v561_v14  ;;  %v218_v18 = vadd.f32 %v460_v16, %v561_v14 }
  0xd8   :  { %v177_v19 = vpop.f32.mrf.mxu0  ;;  %v209_v20 = vpop.f32.mrf.mxu1 }
  0xd9   :  { %vm242_vm2 = vcmp.ge.f32.partialorder %v186_v17, 0.0  ;;  %v258_v21 = vmul.f32 0.2, %v186_v17  ;;  %vm250_vm3 = vcmp.ge.f32.partialorder %v218_v18, 0.0  ;;  %v266_v22 = vmul.f32 0.2, %v218_v18 }
  0xda   :  { %v178_v23 = vadd.f32 %v561_v14, %v177_v19  ;;  %v210_v24 = vadd.f32 %v561_v14, %v209_v20  ;;  %v453_v25 = vpop.f32.mrf.mxu0  ;;  %v461_v26 = vpop.f32.mrf.mxu1 }
  0xdb   :  { %v274_v27 = vsel %vm242_vm2, %v186_v17, %v258_v21  ;;  %v282_v28 = vsel %vm250_vm3, %v218_v18, %v266_v22  ;;  %v189_v29 = vadd.f32 %v453_v25, %v561_v14  ;;  %v221_v30 = vadd.f32 %v461_v26, %v561_v14 }
  0xdc   :  { %v413_v31 = vpack.c.bf16 %v274_v27, %v274_v27  ;;  %v421_v32 = vpack.c.bf16 %v282_v28, %v282_v28  ;;  %vm240_vm5 = vcmp.ge.f32.partialorder %v178_v23, 0.0  ;;  %v256_v33 = vmul.f32 0.2, %v178_v23  ;;  %v180_v34 = vpop.f32.mrf.mxu0  ;;  %v212_v35 = vpop.f32.mrf.mxu1 }
  0xdd   :  { %vm248_vm6 = vcmp.ge.f32.partialorder %v210_v24, 0.0  ;;  %v264_v36 = vmul.f32 0.2, %v210_v24  ;;  %vm243_vm7 = vcmp.ge.f32.partialorder %v189_v29, 0.0  ;;  %v259_v37 = vmul.f32 0.2, %v189_v29 }
  0xde   :  { %355 = vst.msk [vmem:[%s647_s3 + $0x8] sm:$0xf] %vm352_vm4, %v413_v31  ;;  %363 = vst.msk [vmem:[%s647_s3 + $0x28] sm:$0xf] %vm352_vm4, %v421_v32  ;;  %v272_v38 = vsel %vm240_vm5, %v178_v23, %v256_v33  ;;  %vm251_vm8 = vcmp.ge.f32.partialorder %v221_v30, 0.0  ;;  %v181_v40 = vadd.f32 %v561_v14, %v180_v34  ;;  %v456_v41 = vpop.f32.mrf.mxu0  ;;  %v464_v42 = vpop.f32.mrf.mxu1  ;;  %v213_v46 = vadd.f32 %v561_v14, %v212_v35 }
  0xdf   :  { %v267_v39 = vmul.f32 0.2, %v221_v30  ;;  %v411_v43 = vpack.c.bf16 %v272_v38, %v272_v38  ;;  %v280_v44 = vsel %vm248_vm6, %v210_v24, %v264_v36  ;;  %v275_v45 = vsel %vm243_vm7, %v189_v29, %v259_v37 }
  0xe0   :  { %v419_v47 = vpack.c.bf16 %v280_v44, %v280_v44  ;;  %v414_v48 = vpack.c.bf16 %v275_v45, %v275_v45  ;;  %vm241_vm9 = vcmp.ge.f32.partialorder %v181_v40, 0.0  ;;  %v193_v50 = vpop.f32.mrf.mxu0  ;;  %v225_v51 = vpop.f32.mrf.mxu1  ;;  %v257_v53 = vmul.f32 0.2, %v181_v40 }
  0xe1   :  { %v283_v49 = vsel %vm251_vm8, %v221_v30, %v267_v39  ;;  %353 = vst.msk [vmem:[%s647_s3] sm:$0xf] %vm352_vm4, %v411_v43  ;;  %vm249_vm10 = vcmp.ge.f32.partialorder %v213_v46, 0.0  ;;  %v265_v54 = vmul.f32 0.2, %v213_v46  ;;  %v202_v55 = vadd.f32 %v456_v41, %v561_v14 }
  0xe2   :  { %v422_v52 = vpack.c.bf16 %v283_v49, %v283_v49  ;;  %361 = vst.msk [vmem:[%s647_s3 + $0x20] sm:$0xf] %vm352_vm4, %v419_v47  ;;  %356 = vst.msk [vmem:[%s647_s3 + $0xc] sm:$0xf] %vm352_vm4, %v414_v48  ;;  %v234_v56 = vadd.f32 %v464_v42, %v561_v14  ;;  %v194_v57 = vadd.f32 %v561_v14, %v193_v50  ;;  %v457_v59 = vpop.f32.mrf.mxu0  ;;  %v465_v60 = vpop.f32.mrf.mxu1 }
  0xe3   :  { %v226_v58 = vadd.f32 %v561_v14, %v225_v51  ;;  %v273_v61 = vsel %vm241_vm9, %v181_v40, %v257_v53  ;;  %v281_v62 = vsel %vm249_vm10, %v213_v46, %v265_v54  ;;  %v205_v63 = vadd.f32 %v457_v59, %v561_v14 }
  0xe4   :  { %364 = vst.msk [vmem:[%s647_s3 + $0x2c] sm:$0xf] %vm352_vm4, %v422_v52  ;;  %v237_v0 = vadd.f32 %v465_v60, %v561_v14  ;;  %v412_v1 = vpack.c.bf16 %v273_v61, %v273_v61  ;;  %v420_v2 = vpack.c.bf16 %v281_v62, %v281_v62  ;;  %vm246_vm11 = vcmp.ge.f32.partialorder %v202_v55, 0.0  ;;  %v196_v8 = vpop.f32.mrf.mxu0  ;;  %v228_v13 = vpop.f32.mrf.mxu1 }
  0xe5   :  { %v262_v3 = vmul.f32 0.2, %v202_v55  ;;  %vm254_vm12 = vcmp.ge.f32.partialorder %v234_v56, 0.0  ;;  %v270_v4 = vmul.f32 0.2, %v234_v56  ;;  %vm244_vm13 = vcmp.ge.f32.partialorder %v194_v57, 0.0 }
  0xe6   :  { %v260_v5 = vmul.f32 0.2, %v194_v57  ;;  %354 = vst.msk [vmem:[%s647_s3 + $0x4] sm:$0xf] %vm352_vm4, %v412_v1  ;;  %362 = vst.msk [vmem:[%s647_s3 + $0x24] sm:$0xf] %vm352_vm4, %v420_v2  ;;  %v197_v21 = vadd.f32 %v561_v14, %v196_v8  ;;  %v229_v23 = vadd.f32 %v561_v14, %v228_v13 }
  0xe7   :  { %v278_v6 = vsel %vm246_vm11, %v202_v55, %v262_v3  ;;  %vm252_vm14 = vcmp.ge.f32.partialorder %v226_v58, 0.0  ;;  %v268_v7 = vmul.f32 0.2, %v226_v58  ;;  %vm247_vm15 = vcmp.ge.f32.partialorder %v205_v63, 0.0 }
  0xe8   :  { %v417_v9 = vpack.c.bf16 %v278_v6, %v278_v6  ;;  %v286_v10 = vsel %vm254_vm12, %v234_v56, %v270_v4  ;;  %v276_v11 = vsel %vm244_vm13, %v194_v57, %v260_v5  ;;  %v263_v12 = vmul.f32 0.2, %v205_v63 }
  0xe9   :  { %v425_v15 = vpack.c.bf16 %v286_v10, %v286_v10  ;;  %v415_v16 = vpack.c.bf16 %v276_v11, %v276_v11  ;;  %v284_v17 = vsel %vm252_vm14, %v226_v58, %v268_v7  ;;  %vm255_vm0 = vcmp.ge.f32.partialorder %v237_v0, 0.0 }
  0xea   :  { %359 = vst.msk [vmem:[%s647_s3 + $0x18] sm:$0xf] %vm352_vm4, %v417_v9  ;;  %v423_v18 = vpack.c.bf16 %v284_v17, %v284_v17  ;;  %v279_v19 = vsel %vm247_vm15, %v205_v63, %v263_v12  ;;  %v271_v20 = vmul.f32 0.2, %v237_v0  ;;  %vm245_vm1 = vcmp.ge.f32.partialorder %v197_v21, 0.0 }
  0xeb   :  { %367 = vst.msk [vmem:[%s647_s3 + $0x38] sm:$0xf] %vm352_vm4, %v425_v15  ;;  %357 = vst.msk [vmem:[%s647_s3 + $0x10] sm:$0xf] %vm352_vm4, %v415_v16  ;;  %v418_v22 = vpack.c.bf16 %v279_v19, %v279_v19  ;;  %v261_v25 = vmul.f32 0.2, %v197_v21 }
  0xec   :  { %365 = vst.msk [vmem:[%s647_s3 + $0x30] sm:$0xf] %vm352_vm4, %v423_v18  ;;  %v287_v24 = vsel %vm255_vm0, %v237_v0, %v271_v20  ;;  %vm253_vm2 = vcmp.ge.f32.partialorder %v229_v23, 0.0  ;;  %v269_v27 = vmul.f32 0.2, %v229_v23 }
  0xed   :  { %360 = vst.msk [vmem:[%s647_s3 + $0x1c] sm:$0xf] %vm352_vm4, %v418_v22  ;;  %v426_v26 = vpack.c.bf16 %v287_v24, %v287_v24  ;;  %v277_v28 = vsel %vm245_vm1, %v197_v21, %v261_v25 }
  0xee   :  { %v416_v14 = vpack.c.bf16 %v277_v28, %v277_v28  ;;  %v285_v29 = vsel %vm253_vm2, %v229_v23, %v269_v27 }
  0xef   :  { %368 = vst.msk [vmem:[%s647_s3 + $0x3c] sm:$0xf] %vm352_vm4, %v426_v26  ;;  %v424_v30 = vpack.c.bf16 %v285_v29, %v285_v29 }
  0xf0   :  { %358 = vst.msk [vmem:[%s647_s3 + $0x14] sm:$0xf] %vm352_vm4, %v416_v14 }
  0xf1   :  { %366 = vst.msk [vmem:[%s647_s3 + $0x34] sm:$0xf] %vm352_vm4, %v424_v30 }

// kernel: unet_forward.21
= control target key start
LH: loop header
LB: loop body
LE: loop exit
PB: predicated region body
PF: predicated region fallthrough
CT: control target
= control target key end

     0   :  { %v555_v0 = vmov 0   ;;  %vm182_vm0 = vcmask 130048   ;;  %vm416_vm3 = vcmask 125952   ;;  %s744_s1 = inlined_call_operand.vmem [shape: bf16[144,16], index: 1, kind: input, shape index: {}]   ;;  %s745_s0 = inlined_call_operand.vmem [shape: bf16[128,144], index: 0, kind: input, shape index: {}]   ;;  %s746_s2 = inlined_call_operand.vmem [shape: f32[1,16], index: 2, kind: input, shape index: {}]   ;;  %s747_s3 = inlined_call_operand.vmem [shape: bf16[128,16], index: 3, kind: output, shape index: {}]  }
   0x1   :  { %207 = vmatprep.subr.bf16.mxu0 %v555_v0  ;;  %503 = vmatprep.subr.bf16.mxu1 %v555_v0  ;;  %v522_v1 = vld [vmem:[%s744_s1 + $0x38] sm:$0xff]   ;;  %v523_v2 = vld [vmem:[%s744_s1 + $0x30] sm:$0xff]   ;;  %v524_v3 = vld [vmem:[%s744_s1 + $0x28] sm:$0xff]  }
   0x2   :  { %208 = vmatpush1.bf16.msra.mxu0 %v522_v1  ;;  %512 = vmatpush1.bf16.msra.mxu1 %v522_v1  ;;  %v525_v4 = vld [vmem:[%s744_s1 + $0x20] sm:$0xff]   ;;  %v526_v7 = vld [vmem:[%s744_s1 + $0x18] sm:$0xff]   ;;  %v527_v8 = vld [vmem:[%s744_s1 + $0x10] sm:$0xff]  }
   0x3   :  { %209 = vmatprep.subr.bf16.mxu0 %v555_v0  ;;  %504 = vmatprep.subr.bf16.mxu1 %v555_v0  ;;  %v533_v5 = vld [vmem:[%s745_s0 + $0x4] ss:$8 sps:$4 sm:$0xff]   ;;  %v531_v12 = vld [vmem:[%s745_s0] ss:$8 sps:$4 sm:$0xff]   ;;  %v537_v14 = vld [vmem:[%s745_s0 + $0x14] ss:$8 sps:$4 sm:$0xff]  }
   0x4   :  { %v536_v6 = vld [vmem:[%s745_s0 + $0x44] ss:$8 sps:$4 sm:$0xff]   ;;  %463 = vmatprep.mubr.msk.bf16.mxu0 %vm182_vm0, %v533_v5  ;;  %v534_v13 = vld [vmem:[%s745_s0 + $0x40] ss:$8 sps:$4 sm:$0xff]   ;;  %v539_v15 = vld [vmem:[%s745_s0 + $0x54] ss:$8 sps:$4 sm:$0xff]  }
   0x5   :  { %467 = vmatprep.mubr.msk.bf16.mxu1 %vm182_vm0, %v536_v6  ;;  %v528_v9 = vld [vmem:[%s744_s1 + $0x8] sm:$0xff]   ;;  %v529_v10 = vld [vmem:[%s744_s1] sm:$0xff]   ;;  %v541_v16 = vld [vmem:[%s745_s0 + $0x10] ss:$8 sps:$4 sm:$0xff]  }
   0x6   :  { %210 = vmatpush1.bf16.msra.mxu0 %v523_v2  ;;  %513 = vmatpush1.bf16.msra.mxu1 %v523_v2  ;;  %v530_v11 = vld [vmem:[%s744_s1 + $0x40] sm:$0xff]   ;;  %v542_v17 = vld [vmem:[%s745_s0 + $0x50] ss:$8 sps:$4 sm:$0xff]   ;;  %v549_v22 = vld [vmem:[%s745_s0 + $0x34] ss:$8 sps:$4 sm:$0xff]  }
   0x7   :  { %211 = vmatprep.subr.bf16.mxu0 %v555_v0  ;;  %505 = vmatprep.subr.bf16.mxu1 %v555_v0  ;;  %v543_v18 = vld [vmem:[%s745_s0 + $0x24] ss:$8 sps:$4 sm:$0xff]   ;;  %v547_v20 = vld [vmem:[%s745_s0 + $0x20] ss:$8 sps:$4 sm:$0xff]   ;;  %v551_v23 = vld [vmem:[%s745_s0 + $0x74] ss:$8 sps:$4 sm:$0xff]  }
   0x8   :  { %v545_v19 = vld [vmem:[%s745_s0 + $0x64] ss:$8 sps:$4 sm:$0xff]   ;;  %v548_v21 = vld [vmem:[%s745_s0 + $0x60] ss:$8 sps:$4 sm:$0xff]   ;;  %v553_v24 = vld [vmem:[%s745_s0 + $0x30] ss:$8 sps:$4 sm:$0xff]  }
   0x9   :  { %v554_v25 = vld [vmem:[%s745_s0 + $0x70] ss:$8 sps:$4 sm:$0xff]   ;;  %v662_v26 = vld [vmem:[%s746_s2] ss:$0 sm:$0xff] }
   0xa   :  { %212 = vmatpush1.bf16.msra.mxu0 %v524_v3  ;;  %514 = vmatpush1.bf16.msra.mxu1 %v524_v3 }
   0xb   :  { %213 = vmatprep.subr.bf16.mxu0 %v555_v0  ;;  %506 = vmatprep.subr.bf16.mxu1 %v555_v0 }
   0xe   :  { %214 = vmatpush1.bf16.msra.mxu0 %v525_v4  ;;  %515 = vmatpush1.bf16.msra.mxu1 %v525_v4 }
   0xf   :  { %215 = vmatprep.subr.bf16.mxu0 %v555_v0  ;;  %507 = vmatprep.subr.bf16.mxu1 %v555_v0 }
  0x12   :  { %216 = vmatpush1.bf16.msra.mxu0 %v526_v7  ;;  %516 = vmatpush1.bf16.msra.mxu1 %v526_v7 }
  0x13   :  { %217 = vmatprep.subr.bf16.mxu0 %v555_v0  ;;  %508 = vmatprep.subr.bf16.mxu1 %v555_v0 }
  0x16   :  { %218 = vmatpush1.bf16.msra.mxu0 %v527_v8  ;;  %517 = vmatpush1.bf16.msra.mxu1 %v527_v8 }
  0x17   :  { %219 = vmatprep.subr.bf16.mxu0 %v555_v0  ;;  %509 = vmatprep.subr.bf16.mxu1 %v555_v0 }
  0x1a   :  { %220 = vmatpush1.bf16.msra.mxu0 %v528_v9  ;;  %518 = vmatpush1.bf16.msra.mxu1 %v528_v9 }
  0x1b   :  { %221 = vmatprep.subr.bf16.mxu0 %v555_v0  ;;  %510 = vmatprep.subr.bf16.mxu1 %v555_v0 }
  0x1e   :  { %222 = vmatpush1.bf16.msra.mxu0 %v529_v10  ;;  %519 = vmatpush1.bf16.msra.mxu1 %v529_v10 }
  0x1f   :  { %237 = vmatprep.subr.bf16.mxu0 %v555_v0  ;;  %511 = vmatprep.subr.bf16.mxu1 %v555_v0 }
  0x22   :  { %238 = vmatpush2.bf16.msra.mxu0 %v530_v11  ;;  %520 = vmatpush2.bf16.msra.mxu1 %v530_v11 }
  0x25   :  { %240 = vmatmul.mubr.bf16.vlgmr.msra.gmra.mxu0 %v531_v12  ;;  %272 = vmatmul.mubr.bf16.vlgmr.msra.gmra.mxu1 %v534_v13 }
  0x26   :  { %464 = vmatprep.mubr.msk.bf16.mxu0 %vm182_vm0, %v537_v14  ;;  %468 = vmatprep.mubr.msk.bf16.mxu1 %vm182_vm0, %v539_v15 }
  0x2d   :  { %248 = vmatmul.mubr.bf16.gmra.mxu0 %v541_v16  ;;  %280 = vmatmul.mubr.bf16.gmra.mxu1 %v542_v17 }
  0x2e   :  { %465 = vmatprep.mubr.msk.bf16.mxu0 %vm182_vm0, %v543_v18  ;;  %469 = vmatprep.mubr.msk.bf16.mxu1 %vm182_vm0, %v545_v19 }
  0x35   :  { %256 = vmatmul.mubr.bf16.gmra.mxu0 %v547_v20  ;;  %288 = vmatmul.mubr.bf16.gmra.mxu1 %v548_v21 }
  0x36   :  { %466 = vmatprep.mubr.msk.bf16.mxu0 %vm182_vm0, %v549_v22  ;;  %470 = vmatprep.mubr.msk.bf16.mxu1 %vm182_vm0, %v551_v23 }
  0x3d   :  { %264 = vmatmul.mubr.bf16.gmra.mxu0 %v553_v24  ;;  %296 = vmatmul.mubr.bf16.gmra.mxu1 %v554_v25 }
  0xe5   :  { %v241_v27 = vpop.f32.mrf.mxu0  ;;  %v273_v28 = vpop.f32.mrf.mxu1 }
  0xe6   :  { %v242_v29 = vadd.f32 %v662_v26, %v241_v27  ;;  %v274_v30 = vadd.f32 %v662_v26, %v273_v28 }
  0xe7   :  { %v243_v31 = vpop.f32.mrf.mxu0  ;;  %v275_v32 = vpop.f32.mrf.mxu1 }
  0xe8   :  { %vm304_vm1 = vcmp.ge.f32.partialorder %v242_v29, 0.0  ;;  %v320_v33 = vmul.f32 0.2, %v242_v29  ;;  %vm312_vm2 = vcmp.ge.f32.partialorder %v274_v30, 0.0  ;;  %v328_v34 = vmul.f32 0.2, %v274_v30 }
  0xe9   :  { %v244_v35 = vpop.f32.mrf.mxu0  ;;  %v276_v36 = vpop.f32.mrf.mxu1 }
  0xea   :  { %v336_v37 = vsel %vm304_vm1, %v242_v29, %v320_v33  ;;  %v344_v38 = vsel %vm312_vm2, %v274_v30, %v328_v34  ;;  %v245_v39 = vadd.f32 %v662_v26, %v244_v35  ;;  %v277_v40 = vadd.f32 %v662_v26, %v276_v36 }
  0xeb   :  { %v487_v41 = vpack.c.bf16 %v336_v37, %v336_v37  ;;  %v495_v42 = vpack.c.bf16 %v344_v38, %v344_v38  ;;  %v246_v43 = vpop.f32.mrf.mxu0  ;;  %v278_v44 = vpop.f32.mrf.mxu1 }
  0xec   :  { %vm305_vm4 = vcmp.ge.f32.partialorder %v245_v39, 0.0  ;;  %v321_v45 = vmul.f32 0.2, %v245_v39  ;;  %vm313_vm5 = vcmp.ge.f32.partialorder %v277_v40, 0.0  ;;  %v329_v46 = vmul.f32 0.2, %v277_v40 }
  0xed   :  { %417 = vst.msk [vmem:[%s747_s3] sm:$0xf] %vm416_vm3, %v487_v41  ;;  %425 = vst.msk [vmem:[%s747_s3 + $0x20] sm:$0xf] %vm416_vm3, %v495_v42  ;;  %v249_v47 = vpop.f32.mrf.mxu0  ;;  %v281_v48 = vpop.f32.mrf.mxu1 }
  0xee   :  { %v337_v49 = vsel %vm305_vm4, %v245_v39, %v321_v45  ;;  %v345_v50 = vsel %vm313_vm5, %v277_v40, %v329_v46  ;;  %v250_v51 = vadd.f32 %v662_v26, %v249_v47  ;;  %v282_v52 = vadd.f32 %v662_v26, %v281_v48 }
  0xef   :  { %v488_v53 = vpack.c.bf16 %v337_v49, %v337_v49  ;;  %v496_v54 = vpack.c.bf16 %v345_v50, %v345_v50  ;;  %v251_v55 = vpop.f32.mrf.mxu0  ;;  %v283_v56 = vpop.f32.mrf.mxu1 }
  0xf0   :  { %vm306_vm6 = vcmp.ge.f32.partialorder %v250_v51, 0.0  ;;  %v322_v57 = vmul.f32 0.2, %v250_v51  ;;  %vm314_vm7 = vcmp.ge.f32.partialorder %v282_v52, 0.0  ;;  %v330_v58 = vmul.f32 0.2, %v282_v52 }
  0xf1   :  { %418 = vst.msk [vmem:[%s747_s3 + $0x4] sm:$0xf] %vm416_vm3, %v488_v53  ;;  %426 = vst.msk [vmem:[%s747_s3 + $0x24] sm:$0xf] %vm416_vm3, %v496_v54  ;;  %v252_v59 = vpop.f32.mrf.mxu0  ;;  %v284_v60 = vpop.f32.mrf.mxu1 }
  0xf2   :  { %v338_v61 = vsel %vm306_vm6, %v250_v51, %v322_v57  ;;  %v346_v62 = vsel %vm314_vm7, %v282_v52, %v330_v58  ;;  %v253_v63 = vadd.f32 %v662_v26, %v252_v59  ;;  %v285_v0 = vadd.f32 %v662_v26, %v284_v60 }
  0xf3   :  { %v489_v1 = vpack.c.bf16 %v338_v61, %v338_v61  ;;  %v497_v2 = vpack.c.bf16 %v346_v62, %v346_v62  ;;  %v254_v3 = vpop.f32.mrf.mxu0  ;;  %v286_v4 = vpop.f32.mrf.mxu1 }
  0xf4   :  { %vm307_vm8 = vcmp.ge.f32.partialorder %v253_v63, 0.0  ;;  %v323_v5 = vmul.f32 0.2, %v253_v63  ;;  %vm315_vm9 = vcmp.ge.f32.partialorder %v285_v0, 0.0  ;;  %v331_v6 = vmul.f32 0.2, %v285_v0 }
  0xf5   :  { %419 = vst.msk [vmem:[%s747_s3 + $0x8] sm:$0xf] %vm416_vm3, %v489_v1  ;;  %427 = vst.msk [vmem:[%s747_s3 + $0x28] sm:$0xf] %vm416_vm3, %v497_v2  ;;  %v257_v7 = vpop.f32.mrf.mxu0  ;;  %v289_v8 = vpop.f32.mrf.mxu1 }
  0xf6   :  { %v339_v9 = vsel %vm307_vm8, %v253_v63, %v323_v5  ;;  %v347_v10 = vsel %vm315_vm9, %v285_v0, %v331_v6  ;;  %v258_v11 = vadd.f32 %v662_v26, %v257_v7  ;;  %v290_v12 = vadd.f32 %v662_v26, %v289_v8 }
  0xf7   :  { %v490_v13 = vpack.c.bf16 %v339_v9, %v339_v9  ;;  %v498_v14 = vpack.c.bf16 %v347_v10, %v347_v10  ;;  %v259_v15 = vpop.f32.mrf.mxu0  ;;  %v291_v16 = vpop.f32.mrf.mxu1 }
  0xf8   :  { %vm308_vm10 = vcmp.ge.f32.partialorder %v258_v11, 0.0  ;;  %v324_v17 = vmul.f32 0.2, %v258_v11  ;;  %vm316_vm11 = vcmp.ge.f32.partialorder %v290_v12, 0.0  ;;  %v332_v18 = vmul.f32 0.2, %v290_v12 }
  0xf9   :  { %420 = vst.msk [vmem:[%s747_s3 + $0xc] sm:$0xf] %vm416_vm3, %v490_v13  ;;  %428 = vst.msk [vmem:[%s747_s3 + $0x2c] sm:$0xf] %vm416_vm3, %v498_v14  ;;  %v260_v19 = vpop.f32.mrf.mxu0  ;;  %v292_v20 = vpop.f32.mrf.mxu1 }
  0xfa   :  { %v340_v21 = vsel %vm308_vm10, %v258_v11, %v324_v17  ;;  %v348_v22 = vsel %vm316_vm11, %v290_v12, %v332_v18  ;;  %v261_v23 = vadd.f32 %v662_v26, %v260_v19  ;;  %v293_v24 = vadd.f32 %v662_v26, %v292_v20 }
  0xfb   :  { %v491_v25 = vpack.c.bf16 %v340_v21, %v340_v21  ;;  %v499_v27 = vpack.c.bf16 %v348_v22, %v348_v22  ;;  %v262_v28 = vpop.f32.mrf.mxu0  ;;  %v294_v29 = vpop.f32.mrf.mxu1 }
  0xfc   :  { %vm309_vm12 = vcmp.ge.f32.partialorder %v261_v23, 0.0  ;;  %v325_v30 = vmul.f32 0.2, %v261_v23  ;;  %vm317_vm13 = vcmp.ge.f32.partialorder %v293_v24, 0.0  ;;  %v333_v31 = vmul.f32 0.2, %v293_v24 }
  0xfd   :  { %421 = vst.msk [vmem:[%s747_s3 + $0x10] sm:$0xf] %vm416_vm3, %v491_v25  ;;  %429 = vst.msk [vmem:[%s747_s3 + $0x30] sm:$0xf] %vm416_vm3, %v499_v27  ;;  %v265_v32 = vpop.f32.mrf.mxu0  ;;  %v297_v33 = vpop.f32.mrf.mxu1 }
  0xfe   :  { %v341_v34 = vsel %vm309_vm12, %v261_v23, %v325_v30  ;;  %v349_v35 = vsel %vm317_vm13, %v293_v24, %v333_v31  ;;  %v266_v36 = vadd.f32 %v662_v26, %v265_v32  ;;  %v298_v37 = vadd.f32 %v662_v26, %v297_v33 }
  0xff   :  { %v492_v38 = vpack.c.bf16 %v341_v34, %v341_v34  ;;  %v500_v39 = vpack.c.bf16 %v349_v35, %v349_v35  ;;  %v267_v40 = vpop.f32.mrf.mxu0  ;;  %v299_v41 = vpop.f32.mrf.mxu1 }
 0x100   :  { %vm310_vm14 = vcmp.ge.f32.partialorder %v266_v36, 0.0  ;;  %v326_v42 = vmul.f32 0.2, %v266_v36  ;;  %vm318_vm15 = vcmp.ge.f32.partialorder %v298_v37, 0.0  ;;  %v334_v43 = vmul.f32 0.2, %v298_v37 }
 0x101   :  { %422 = vst.msk [vmem:[%s747_s3 + $0x14] sm:$0xf] %vm416_vm3, %v492_v38  ;;  %430 = vst.msk [vmem:[%s747_s3 + $0x34] sm:$0xf] %vm416_vm3, %v500_v39  ;;  %v268_v44 = vpop.f32.mrf.mxu0  ;;  %v300_v45 = vpop.f32.mrf.mxu1 }
 0x102   :  { %v342_v46 = vsel %vm310_vm14, %v266_v36, %v326_v42  ;;  %v350_v47 = vsel %vm318_vm15, %v298_v37, %v334_v43  ;;  %v269_v48 = vadd.f32 %v662_v26, %v268_v44  ;;  %v301_v49 = vadd.f32 %v662_v26, %v300_v45 }
 0x103   :  { %v493_v50 = vpack.c.bf16 %v342_v46, %v342_v46  ;;  %v501_v51 = vpack.c.bf16 %v350_v47, %v350_v47  ;;  %v270_v52 = vpop.f32.mrf.mxu0  ;;  %v302_v53 = vpop.f32.mrf.mxu1 }
 0x104   :  { %vm311_vm0 = vcmp.ge.f32.partialorder %v269_v48, 0.0  ;;  %v327_v54 = vmul.f32 0.2, %v269_v48  ;;  %vm319_vm1 = vcmp.ge.f32.partialorder %v301_v49, 0.0  ;;  %v335_v55 = vmul.f32 0.2, %v301_v49 }
 0x105   :  { %423 = vst.msk [vmem:[%s747_s3 + $0x18] sm:$0xf] %vm416_vm3, %v493_v50  ;;  %431 = vst.msk [vmem:[%s747_s3 + $0x38] sm:$0xf] %vm416_vm3, %v501_v51 }
 0x106   :  { %v343_v56 = vsel %vm311_vm0, %v269_v48, %v327_v54  ;;  %v351_v26 = vsel %vm319_vm1, %v301_v49, %v335_v55 }
 0x107   :  { %v494_v57 = vpack.c.bf16 %v343_v56, %v343_v56  ;;  %v502_v58 = vpack.c.bf16 %v351_v26, %v351_v26 }
 0x109   :  { %424 = vst.msk [vmem:[%s747_s3 + $0x1c] sm:$0xf] %vm416_vm3, %v494_v57  ;;  %432 = vst.msk [vmem:[%s747_s3 + $0x3c] sm:$0xf] %vm416_vm3, %v502_v58 }

// kernel: unet_forward.22
= control target key start
LH: loop header
LB: loop body
LE: loop exit
PB: predicated region body
PF: predicated region fallthrough
CT: control target
= control target key end

     0   :  { %v267_v0 = vmov 0   ;;  %vm116_vm0 = vcmask 130048   ;;  %vm200_vm3 = vcmask 257024   ;;  %s346_s1 = inlined_call_operand.vmem [shape: bf16[144,32], index: 1, kind: input, shape index: {}]   ;;  %s347_s0 = inlined_call_operand.vmem [shape: bf16[32,144], index: 0, kind: input, shape index: {}]   ;;  %s348_s2 = inlined_call_operand.vmem [shape: f32[1,32], index: 2, kind: input, shape index: {}]   ;;  %s349_s3 = inlined_call_operand.vmem [shape: bf16[32,32], index: 3, kind: output, shape index: {}]  }
   0x1   :  { %123 = vmatprep.subr.bf16.mxu0 %v267_v0  ;;  %233 = vmatprep.subr.bf16.mxu1 %v267_v0  ;;  %v252_v1 = vld [vmem:[%s346_s1 + $0x38] sm:$0xff]   ;;  %v253_v2 = vld [vmem:[%s346_s1 + $0x30] sm:$0xff]   ;;  %v254_v3 = vld [vmem:[%s346_s1 + $0x28] sm:$0xff]  }
   0x2   :  { %124 = vmatpush1.bf16.msra.mxu0 %v252_v1  ;;  %242 = vmatpush1.bf16.msra.mxu1 %v252_v1  ;;  %v255_v4 = vld [vmem:[%s346_s1 + $0x20] sm:$0xff]   ;;  %v266_v6 = vld [vmem:[%s347_s0 + $0x14] ss:$8 sps:$4 sm:$0xff]   ;;  %v258_v9 = vld [vmem:[%s346_s1 + $0x8] sm:$0xff]  }
   0x3   :  { %125 = vmatprep.subr.bf16.mxu0 %v267_v0  ;;  %234 = vmatprep.subr.bf16.mxu1 %v267_v0  ;;  %v263_v5 = vld [vmem:[%s347_s0 + $0x4] ss:$8 sps:$4 sm:$0xff]   ;;  %v256_v7 = vld [vmem:[%s346_s1 + $0x18] sm:$0xff]   ;;  %v257_v8 = vld [vmem:[%s346_s1 + $0x10] sm:$0xff]  }
   0x4   :  { %223 = vmatprep.mubr.msk.bf16.mxu0 %vm116_vm0, %v263_v5  ;;  %224 = vmatprep.mubr.msk.bf16.mxu1 %vm116_vm0, %v266_v6  ;;  %v259_v10 = vld [vmem:[%s346_s1] sm:$0xff]   ;;  %v264_v13 = vld [vmem:[%s347_s0 + $0x10] ss:$8 sps:$4 sm:$0xff]  }
   0x5   :  { %v260_v11 = vld [vmem:[%s346_s1 + $0x40] sm:$0xff]  }
   0x6   :  { %126 = vmatpush1.bf16.msra.mxu0 %v253_v2  ;;  %243 = vmatpush1.bf16.msra.mxu1 %v253_v2  ;;  %v261_v12 = vld [vmem:[%s347_s0] ss:$8 sps:$4 sm:$0xff]  }
   0x7   :  { %127 = vmatprep.subr.bf16.mxu0 %v267_v0  ;;  %235 = vmatprep.subr.bf16.mxu1 %v267_v0  ;;  %v209_v14 = vld [vmem:[%s348_s2] ss:$0 sm:$0xff] }
   0xa   :  { %128 = vmatpush1.bf16.msra.mxu0 %v254_v3  ;;  %244 = vmatpush1.bf16.msra.mxu1 %v254_v3 }
   0xb   :  { %129 = vmatprep.subr.bf16.mxu0 %v267_v0  ;;  %236 = vmatprep.subr.bf16.mxu1 %v267_v0 }
   0xe   :  { %130 = vmatpush1.bf16.msra.mxu0 %v255_v4  ;;  %245 = vmatpush1.bf16.msra.mxu1 %v255_v4 }
   0xf   :  { %131 = vmatprep.subr.bf16.mxu0 %v267_v0  ;;  %237 = vmatprep.subr.bf16.mxu1 %v267_v0 }
  0x12   :  { %132 = vmatpush1.bf16.msra.mxu0 %v256_v7  ;;  %246 = vmatpush1.bf16.msra.mxu1 %v256_v7 }
  0x13   :  { %133 = vmatprep.subr.bf16.mxu0 %v267_v0  ;;  %238 = vmatprep.subr.bf16.mxu1 %v267_v0 }
  0x16   :  { %134 = vmatpush1.bf16.msra.mxu0 %v257_v8  ;;  %247 = vmatpush1.bf16.msra.mxu1 %v257_v8 }
  0x17   :  { %135 = vmatprep.subr.bf16.mxu0 %v267_v0  ;;  %239 = vmatprep.subr.bf16.mxu1 %v267_v0 }
  0x1a   :  { %136 = vmatpush1.bf16.msra.mxu0 %v258_v9  ;;  %248 = vmatpush1.bf16.msra.mxu1 %v258_v9 }
  0x1b   :  { %137 = vmatprep.subr.bf16.mxu0 %v267_v0  ;;  %240 = vmatprep.subr.bf16.mxu1 %v267_v0 }
  0x1e   :  { %138 = vmatpush1.bf16.msra.mxu0 %v259_v10  ;;  %249 = vmatpush1.bf16.msra.mxu1 %v259_v10 }
  0x1f   :  { %153 = vmatprep.subr.bf16.mxu0 %v267_v0  ;;  %241 = vmatprep.subr.bf16.mxu1 %v267_v0 }
  0x22   :  { %154 = vmatpush2.bf16.msra.mxu0 %v260_v11  ;;  %250 = vmatpush2.bf16.msra.mxu1 %v260_v11 }
  0x25   :  { %156 = vmatmul.mubr.bf16.vlgmr.msra.gmra.mxu0 %v261_v12  ;;  %164 = vmatmul.mubr.bf16.vlgmr.msra.gmra.mxu1 %v264_v13 }
  0xe5   :  { %v157_v15 = vpop.f32.mrf.mxu0  ;;  %v165_v16 = vpop.f32.mrf.mxu1 }
  0xe6   :  { %v158_v17 = vadd.f32 %v209_v14, %v157_v15  ;;  %v166_v18 = vadd.f32 %v209_v14, %v165_v16 }
  0xe7   :  { %v159_v19 = vpop.f32.mrf.mxu0  ;;  %v167_v20 = vpop.f32.mrf.mxu1 }
  0xe8   :  { %vm172_vm1 = vcmp.ge.f32.partialorder %v158_v17, 0.0  ;;  %v176_v21 = vmul.f32 0.2, %v158_v17  ;;  %vm174_vm2 = vcmp.ge.f32.partialorder %v166_v18, 0.0  ;;  %v178_v22 = vmul.f32 0.2, %v166_v18 }
  0xe9   :  { %v160_v23 = vpop.f32.mrf.mxu0  ;;  %v168_v24 = vpop.f32.mrf.mxu1 }
  0xea   :  { %v180_v25 = vsel %vm172_vm1, %v158_v17, %v176_v21  ;;  %v182_v26 = vsel %vm174_vm2, %v166_v18, %v178_v22  ;;  %v161_v27 = vadd.f32 %v209_v14, %v160_v23  ;;  %v169_v28 = vadd.f32 %v209_v14, %v168_v24 }
  0xeb   :  { %v229_v29 = vpack.c.bf16 %v180_v25, %v180_v25  ;;  %v231_v30 = vpack.c.bf16 %v182_v26, %v182_v26  ;;  %v162_v31 = vpop.f32.mrf.mxu0  ;;  %v170_v32 = vpop.f32.mrf.mxu1 }
  0xec   :  { %vm173_vm4 = vcmp.ge.f32.partialorder %v161_v27, 0.0  ;;  %v177_v33 = vmul.f32 0.2, %v161_v27  ;;  %vm175_vm5 = vcmp.ge.f32.partialorder %v169_v28, 0.0  ;;  %v179_v34 = vmul.f32 0.2, %v169_v28 }
  0xed   :  { %201 = vst.msk [vmem:[%s349_s3] sm:$0xf] %vm200_vm3, %v229_v29  ;;  %203 = vst.msk [vmem:[%s349_s3 + $0x8] sm:$0xf] %vm200_vm3, %v231_v30 }
  0xee   :  { %v181_v35 = vsel %vm173_vm4, %v161_v27, %v177_v33  ;;  %v183_v36 = vsel %vm175_vm5, %v169_v28, %v179_v34 }
  0xef   :  { %v230_v37 = vpack.c.bf16 %v181_v35, %v181_v35  ;;  %v232_v38 = vpack.c.bf16 %v183_v36, %v183_v36 }
  0xf1   :  { %202 = vst.msk [vmem:[%s349_s3 + $0x4] sm:$0xf] %vm200_vm3, %v230_v37  ;;  %204 = vst.msk [vmem:[%s349_s3 + $0xc] sm:$0xf] %vm200_vm3, %v232_v38 }

// kernel: unet_forward.23
= control target key start
LH: loop header
LB: loop body
LE: loop exit
PB: predicated region body
PF: predicated region fallthrough
CT: control target
= control target key end

     0   :  { %vm204_vm0 = vcmask 261120   ;;  %vm337_vm2 = vcmask 257024   ;;  %s558_s1 = inlined_call_operand.vmem [shape: bf16[288,32], index: 1, kind: input, shape index: {}]   ;;  %s559_s0 = inlined_call_operand.vmem [shape: bf16[32,288], index: 0, kind: input, shape index: {}]   ;;  %s560_s2 = inlined_call_operand.vmem [shape: f32[1,32], index: 2, kind: input, shape index: {}]   ;;  %s561_s3 = inlined_call_operand.vmem [shape: bf16[32,32], index: 3, kind: output, shape index: {}]  }
   0x1   :  { %v421_v0 = vld [vmem:[%s558_s1 + $0x78] sm:$0xff]   ;;  %v423_v2 = vld [vmem:[%s558_s1 + $0x70] sm:$0xff]   ;;  %v425_v4 = vld [vmem:[%s558_s1 + $0x68] sm:$0xff]  }
   0x2   :  { %v422_v1 = vld [vmem:[%s558_s1 + $0x38] sm:$0xff]   ;;  %381 = vmatprep.subr.bf16.mxu0 %v421_v0  ;;  %v424_v3 = vld [vmem:[%s558_s1 + $0x30] sm:$0xff]   ;;  %v426_v5 = vld [vmem:[%s558_s1 + $0x28] sm:$0xff]  }
   0x3   :  { %382 = vmatpush3.bf16.msra.mxu0 %v422_v1  ;;  %v427_v6 = vld [vmem:[%s558_s1 + $0x60] sm:$0xff]   ;;  %v429_v8 = vld [vmem:[%s558_s1 + $0x58] sm:$0xff]   ;;  %v436_v10 = vld [vmem:[%s558_s1 + $0x88] sm:$0xff]  }
   0x4   :  { %383 = vmatprep.subr.bf16.mxu0 %v423_v2  ;;  %v428_v7 = vld [vmem:[%s558_s1 + $0x20] sm:$0xff]   ;;  %v430_v9 = vld [vmem:[%s558_s1 + $0x18] sm:$0xff]   ;;  %v431_v11 = vld [vmem:[%s558_s1 + $0x50] sm:$0xff]   ;;  %413 = vmatprep.subr.bf16.mxu1 %v436_v10 }
   0x5   :  { %v432_v12 = vld [vmem:[%s558_s1 + $0x10] sm:$0xff]   ;;  %v433_v13 = vld [vmem:[%s558_s1 + $0x48] sm:$0xff]   ;;  %414 = vmatpush3.bf16.msra.mxu1 %v436_v10  ;;  %v441_v15 = vld [vmem:[%s558_s1 + $0x80] sm:$0xff]  }
   0x6   :  { %v440_v14 = vld [vmem:[%s559_s0 + $0x4] ss:$12 sps:$4 sm:$0xff]   ;;  %v442_v16 = vld [vmem:[%s559_s0 + $0x8] ss:$12 sps:$4 sm:$0xff]   ;;  %415 = vmatprep.subr.bf16.mxu1 %v441_v15  ;;  %v443_v17 = vld [vmem:[%s559_s0 + $0x20] ss:$12 sps:$4 sm:$0xff]  }
   0x7   :  { %384 = vmatpush3.bf16.msra.mxu0 %v424_v3  ;;  %243 = vmatprep.mubr.bf16.mxu0 %v440_v14  ;;  %v434_v18 = vld [vmem:[%s558_s1 + $0x8] sm:$0xff]   ;;  %v435_v19 = vld [vmem:[%s558_s1 + $0x40] sm:$0xff]  }
   0x8   :  { %385 = vmatprep.subr.bf16.mxu0 %v425_v4  ;;  %417 = vmatprep.mubr.msk.bf16.mxu1 %vm204_vm0, %v442_v16  ;;  %v437_v20 = vld [vmem:[%s558_s1] sm:$0xff]   ;;  %v444_v22 = vld [vmem:[%s559_s0 + $0x1c] ss:$12 sps:$4 sm:$0xff]  }
   0x9   :  { %416 = vmatpush3.bf16.msra.mxu1 %v441_v15  ;;  %v438_v21 = vld [vmem:[%s559_s0] ss:$12 sps:$4 sm:$0xff]   ;;  %v446_v23 = vld [vmem:[%s559_s0 + $0x18] ss:$12 sps:$4 sm:$0xff]  }
   0xa   :  { %v346_v28 = vld [vmem:[%s560_s2] ss:$0 sm:$0xff] }
   0xb   :  { %386 = vmatpush3.bf16.msra.mxu0 %v426_v5 }
   0xc   :  { %387 = vmatprep.subr.bf16.mxu0 %v427_v6  ;;  %418 = vmatmul.mubr.msk.bf16.vlgmr.msra.gmra.mxu1 %vm204_vm0, %v443_v17 }
   0xf   :  { %388 = vmatpush3.bf16.msra.mxu0 %v428_v7 }
  0x10   :  { %389 = vmatprep.subr.bf16.mxu0 %v429_v8 }
  0x13   :  { %390 = vmatpush3.bf16.msra.mxu0 %v430_v9 }
  0x14   :  { %391 = vmatprep.subr.bf16.mxu0 %v431_v11 }
  0x17   :  { %392 = vmatpush3.bf16.msra.mxu0 %v432_v12 }
  0x18   :  { %393 = vmatprep.subr.bf16.mxu0 %v433_v13 }
  0x1b   :  { %394 = vmatpush3.bf16.msra.mxu0 %v434_v18 }
  0x1c   :  { %395 = vmatprep.subr.bf16.mxu0 %v435_v19 }
  0x1f   :  { %396 = vmatpush3.bf16.msra.mxu0 %v437_v20 }
  0x22   :  { %244 = vmatmul.mubr.bf16.vlgmr.msra.gmra.mxu0 %v438_v21 }
  0x23   :  { %251 = vmatprep.mubr.bf16.mxu0 %v444_v22 }
  0x2a   :  { %252 = vmatmul.mubr.bf16.gmra.mxu0 %v446_v23 }
  0xcc   :  { %v419_v24 = vpop.f32.mrf.mxu1 }
  0xce   :  { %v294_v26 = vpop.f32.mrf.mxu1 }
  0xd0   :  { %v420_v31 = vpop.f32.mrf.mxu1 }
  0xd2   :  { %v297_v37 = vpop.f32.mrf.mxu1 }
  0xe2   :  { %v397_v25 = vpop.f32.mrf.mxu0 }
  0xe4   :  { %v398_v27 = vpop.f32.mrf.mxu0 }
  0xe5   :  { %v399_v29 = vadd.f32 %v398_v27, %v397_v25 }
  0xe6   :  { %v400_v30 = vpop.f32.mrf.mxu0 }
  0xe7   :  { %v246_v32 = vadd.f32 %v399_v29, %v346_v28 }
  0xe8   :  { %v401_v33 = vpop.f32.mrf.mxu0 }
  0xe9   :  { %v402_v34 = vadd.f32 %v401_v33, %v400_v30  ;;  %v295_v35 = vadd.f32 %v294_v26, %v246_v32 }
  0xea   :  { %v403_v36 = vpop.f32.mrf.mxu0 }
  0xeb   :  { %vm309_vm1 = vcmp.ge.f32.partialorder %v295_v35, 0.0  ;;  %v313_v38 = vmul.f32 0.2, %v295_v35  ;;  %v249_v39 = vadd.f32 %v402_v34, %v346_v28 }
  0xec   :  { %v404_v40 = vpop.f32.mrf.mxu0 }
  0xed   :  { %v317_v41 = vsel %vm309_vm1, %v295_v35, %v313_v38  ;;  %v405_v42 = vadd.f32 %v404_v40, %v403_v36  ;;  %v298_v43 = vadd.f32 %v297_v37, %v249_v39 }
  0xee   :  { %v377_v44 = vpack.c.bf16 %v317_v41, %v317_v41  ;;  %v406_v45 = vpop.f32.mrf.mxu0 }
  0xef   :  { %v254_v46 = vadd.f32 %v405_v42, %v346_v28  ;;  %vm310_vm3 = vcmp.ge.f32.partialorder %v298_v43, 0.0  ;;  %v314_v47 = vmul.f32 0.2, %v298_v43 }
  0xf0   :  { %338 = vst.msk [vmem:[%s561_s3] sm:$0xf] %vm337_vm2, %v377_v44  ;;  %v407_v48 = vpop.f32.mrf.mxu0 }
  0xf1   :  { %v303_v49 = vadd.f32 %v419_v24, %v254_v46  ;;  %v318_v50 = vsel %vm310_vm3, %v298_v43, %v314_v47  ;;  %v408_v51 = vadd.f32 %v407_v48, %v406_v45 }
  0xf2   :  { %v378_v52 = vpack.c.bf16 %v318_v50, %v318_v50 }
  0xf3   :  { %vm311_vm4 = vcmp.ge.f32.partialorder %v303_v49, 0.0  ;;  %v315_v53 = vmul.f32 0.2, %v303_v49  ;;  %v257_v54 = vadd.f32 %v408_v51, %v346_v28 }
  0xf4   :  { %339 = vst.msk [vmem:[%s561_s3 + $0x4] sm:$0xf] %vm337_vm2, %v378_v52 }
  0xf5   :  { %v319_v55 = vsel %vm311_vm4, %v303_v49, %v315_v53  ;;  %v306_v56 = vadd.f32 %v420_v31, %v257_v54 }
  0xf6   :  { %v379_v57 = vpack.c.bf16 %v319_v55, %v319_v55 }
  0xf7   :  { %vm312_vm5 = vcmp.ge.f32.partialorder %v306_v56, 0.0  ;;  %v316_v58 = vmul.f32 0.2, %v306_v56 }
  0xf8   :  { %340 = vst.msk [vmem:[%s561_s3 + $0x8] sm:$0xf] %vm337_vm2, %v379_v57 }
  0xf9   :  { %v320_v59 = vsel %vm312_vm5, %v306_v56, %v316_v58 }
  0xfa   :  { %v380_v60 = vpack.c.bf16 %v320_v59, %v320_v59 }
  0xfc   :  { %341 = vst.msk [vmem:[%s561_s3 + $0xc] sm:$0xf] %vm337_vm2, %v380_v60 }

// kernel: tile.19
= control target key start
LH: loop header
LB: loop body
LE: loop exit
PB: predicated region body
PF: predicated region fallthrough
CT: control target
= control target key end

     0   :  { %vm8_vm0 = vcmask 261120   ;;  %s40_s8 = smov 32   ;;  %s41_s9 = smov 64   ;;  %vm14_vm1 = vcmask 1048320   ;;  %vm20_vm2 = vcmask 785920   ;;  %vm26_vm3 = vcmask 523520   ;;  %s58_s0 = inlined_call_operand.vmem [shape: f32[4,32], index: 0, kind: input, shape index: {}]   ;;  %s59_s1 = inlined_call_operand.vmem [shape: f32[1,128], index: 1, kind: output, shape index: {}]  }
   0x1   :  { %v5_v0 = vld [vmem:[%s58_s0] sm:$0xf]  ;;  %s39_s0 = smov 96  }
   0x2   :  { %6 = vst [vmem:[#allocation1] sm:$0xf] %v5_v0 }
   0x9   :  { %v11_v1 = vld [vmem:[#allocation1 + $0x3] sm:$0x1]   ;;  %v23_v2 = vld [vmem:[#allocation1 + $0x1] sm:$0x1]   ;;  %v7_v3 = vld [vmem:[#allocation1] sm:$0x1]  }
   0xa   :  { %12 = vrot.lane.b32.xlu0 %v11_v1, %s39_s0  ;;  %24 = vrot.lane.b32.xlu1 %v23_v2, %s40_s8  ;;  %v17_v4 = vld [vmem:[#allocation1 + $0x2] sm:$0x1]   ;;  %9 = vst.msk [vmem:[#allocation0] sm:$0x1] %vm8_vm0, %v7_v3  }
   0xe   :  { %18 = vrot.lane.b32.xlu0 %v17_v4, %s41_s9 }
  0x7c   :  { %v13_v5 = vpop.permute.xlu0 %12   ;;  %v25_v6 = vpop.permute.xlu1 %24  }
  0x7d   :  { %15 = vst.msk [vmem:[#allocation0] sm:$0x1] %vm14_vm1, %v13_v5  }
  0x80   :  { %v19_v7 = vpop.permute.xlu0 %18  }
  0x81   :  { %21 = vst.msk [vmem:[#allocation0] sm:$0x1] %vm20_vm2, %v19_v7  }
  0x82   :  { %27 = vst.msk [vmem:[#allocation0] sm:$0x1] %vm26_vm3, %v25_v6  }
  0x89   :  { %v32_v8 = vld [vmem:[#allocation0] sm:$0x1] }
  0x8a   :  { %35 = vst [vmem:[%s59_s1] sm:$0x1] %v32_v8 }

// kernel: tile.18
= control target key start
LH: loop header
LB: loop body
LE: loop exit
PB: predicated region body
PF: predicated region fallthrough
CT: control target
= control target key end

     0   :  { %s22_s0 = inlined_call_operand.vmem [shape: f32[32], index: 0, kind: input, shape index: {}]   ;;  %s23_s1 = inlined_call_operand.vmem [shape: f32[4,32], index: 1, kind: output, shape index: {}]  }
   0x1   :  { %v4_v0 = vld [vmem:[%s22_s0] ss:$0 sm:$0xff] }
   0x2   :  { %5 = vst [vmem:[%s23_s1] sm:$0xf] %v4_v0 }

// kernel: unet_forward.24
= control target key start
LH: loop header
LB: loop body
LE: loop exit
PB: predicated region body
PF: predicated region fallthrough
CT: control target
= control target key end

     0   :  { %v351_v1 = vmov 0.0   ;;  %vm352_vm0 = vmmov 0   ;;  %vm178_vm1 = vcmask 261120   ;;  %vm266_vm3 = vcmask 519168   ;;  %s439_s1 = inlined_call_operand.vmem [shape: bf16[288,64], index: 1, kind: input, shape index: {}]   ;;  %s440_s0 = inlined_call_operand.vmem [shape: bf16[8,288], index: 0, kind: input, shape index: {}]   ;;  %s441_s2 = inlined_call_operand.vmem [shape: f32[1,64], index: 2, kind: input, shape index: {}]   ;;  %s442_s3 = inlined_call_operand.vmem [shape: bf16[8,64], index: 3, kind: output, shape index: {}]  }
   0x1   :  { %v330_v0 = vld [vmem:[%s439_s1 + $0x78] sm:$0xff]   ;;  %320 = vmatprep.subr.bf16.mxu1 %v351_v1  ;;  %324 = vmatprep.mubr.msk.bf16.mxu1 %vm352_vm0, %v351_v1  ;;  %v332_v3 = vld [vmem:[%s439_s1 + $0x70] sm:$0xff]   ;;  %v334_v5 = vld [vmem:[%s439_s1 + $0x68] sm:$0xff]  }
   0x2   :  { %v331_v2 = vld [vmem:[%s439_s1 + $0x38] sm:$0xff]   ;;  %295 = vmatprep.subr.bf16.mxu0 %v330_v0  ;;  %v333_v4 = vld [vmem:[%s439_s1 + $0x30] sm:$0xff]   ;;  %v335_v6 = vld [vmem:[%s439_s1 + $0x28] sm:$0xff]  }
   0x3   :  { %296 = vmatpush3.bf16.msra.mxu0 %v331_v2  ;;  %v336_v7 = vld [vmem:[%s439_s1 + $0x60] sm:$0xff]   ;;  %v338_v9 = vld [vmem:[%s439_s1 + $0x58] sm:$0xff]   ;;  %v344_v10 = vld [vmem:[%s439_s1 + $0x88] sm:$0xff]  }
   0x4   :  { %297 = vmatprep.subr.bf16.mxu0 %v332_v3  ;;  %v337_v8 = vld [vmem:[%s439_s1 + $0x20] sm:$0xff]   ;;  %v339_v11 = vld [vmem:[%s439_s1 + $0x18] sm:$0xff]   ;;  %v340_v12 = vld [vmem:[%s439_s1 + $0x50] sm:$0xff]   ;;  %321 = vmatpush3.bf16.msra.mxu1 %v344_v10 }
   0x5   :  { %322 = vmatprep.subr.bf16.mxu1 %v351_v1  ;;  %v347_v13 = vld [vmem:[%s439_s1 + $0x80] sm:$0xff]   ;;  %v341_v15 = vld [vmem:[%s439_s1 + $0x10] sm:$0xff]   ;;  %v350_v17 = vld [vmem:[%s440_s0 + $0x8] ss:$0 sps:$4 sm:$0xff]  }
   0x6   :  { %v15_v14 = vld [vmem:[%s440_s0] sm:$0xff]  ;;  %v342_v18 = vld [vmem:[%s439_s1 + $0x48] sm:$0xff]  }
   0x7   :  { %298 = vmatpush3.bf16.msra.mxu0 %v333_v4  ;;  %v274_v16 = vcombine.high %v15_v14, %v15_v14  ;;  %v343_v19 = vld [vmem:[%s439_s1 + $0x8] sm:$0xff]   ;;  %v345_v20 = vld [vmem:[%s439_s1 + $0x40] sm:$0xff]   ;;  %v273_v22 = vcombine.low %v15_v14, %v15_v14 }
   0x8   :  { %299 = vmatprep.subr.bf16.mxu0 %v334_v5  ;;  %323 = vmatpush3.bf16.msra.mxu1 %v347_v13  ;;  %v346_v21 = vld [vmem:[%s439_s1] sm:$0xff]  }
   0x9   :  { %214 = vmatprep.mubr.bf16.mxu0 %v274_v16  ;;  %v272_v28 = vld [vmem:[%s441_s2] ss:$0 sm:$0xff] }
   0xb   :  { %300 = vmatpush3.bf16.msra.mxu0 %v335_v6  ;;  %325 = vmatmul.mubr.msk.bf16.vlgmr.msra.gmra.mxu1 %vm178_vm1, %v350_v17 }
   0xc   :  { %301 = vmatprep.subr.bf16.mxu0 %v336_v7 }
   0xf   :  { %302 = vmatpush3.bf16.msra.mxu0 %v337_v8 }
  0x10   :  { %303 = vmatprep.subr.bf16.mxu0 %v338_v9 }
  0x13   :  { %304 = vmatpush3.bf16.msra.mxu0 %v339_v11 }
  0x14   :  { %305 = vmatprep.subr.bf16.mxu0 %v340_v12 }
  0x17   :  { %306 = vmatpush3.bf16.msra.mxu0 %v341_v15 }
  0x18   :  { %307 = vmatprep.subr.bf16.mxu0 %v342_v18 }
  0x1b   :  { %308 = vmatpush3.bf16.msra.mxu0 %v343_v19 }
  0x1c   :  { %309 = vmatprep.subr.bf16.mxu0 %v345_v20 }
  0x1f   :  { %310 = vmatpush3.bf16.msra.mxu0 %v346_v21 }
  0x22   :  { %215 = vmatmul.mubr.bf16.vlgmr.msra.gmra.mxu0 %v273_v22 }
  0xcb   :  { %v256_v23 = vpop.f32.mrf.mxu1 }
  0xcd   :  { %v326_v24 = vpop.f32.mrf.mxu1 }
  0xcf   :  { %v259_v25 = vpop.f32.mrf.mxu1 }
  0xd1   :  { %v327_v26 = vpop.f32.mrf.mxu1 }
  0xe2   :  { %v311_v27 = vpop.f32.mrf.mxu0 }
  0xe4   :  { %v312_v29 = vpop.f32.mrf.mxu0 }
  0xe5   :  { %v313_v30 = vadd.f32 %v312_v29, %v311_v27 }
  0xe6   :  { %v314_v31 = vpop.f32.mrf.mxu0 }
  0xe7   :  { %v217_v32 = vadd.f32 %v313_v30, %v272_v28 }
  0xe8   :  { %v315_v33 = vpop.f32.mrf.mxu0 }
  0xe9   :  { %v257_v34 = vadd.f32 %v256_v23, %v217_v32 }
  0xeb   :  { %vm262_vm2 = vcmp.ge.f32.partialorder %v257_v34, 0.0  ;;  %v263_v35 = vmul.f32 0.2, %v257_v34 }
  0xed   :  { %v264_v36 = vsel %vm262_vm2, %v257_v34, %v263_v35 }
  0xee   :  { %v265_v37 = vpack.c.bf16 %v264_v36, %v264_v36 }
  0xf0   :  { %267 = vst.msk [vmem:[%s442_s3] sm:$0xf] %vm266_vm3, %v265_v37 }

// kernel: unet_forward.25
= control target key start
LH: loop header
LB: loop body
LE: loop exit
PB: predicated region body
PF: predicated region fallthrough
CT: control target
= control target key end

     0   :  { %v611_v35 = vmov 0.0   ;;  %vm612_vm0 = vmmov 0   ;;  %vm330_vm1 = vcmask 523264   ;;  %vm458_vm3 = vcmask 519168   ;;  %s756_s1 = inlined_call_operand.vmem [shape: bf16[576,64], index: 1, kind: input, shape index: {}]   ;;  %s757_s0 = inlined_call_operand.vmem [shape: bf16[8,576], index: 0, kind: input, shape index: {}]   ;;  %s758_s2 = inlined_call_operand.vmem [shape: f32[1,64], index: 2, kind: input, shape index: {}]   ;;  %s759_s3 = inlined_call_operand.vmem [shape: bf16[8,64], index: 3, kind: output, shape index: {}]  }
   0x1   :  { %v570_v0 = vld [vmem:[%s756_s1 + $0x78] sm:$0xff]   ;;  %v574_v4 = vld [vmem:[%s756_s1 + $0x70] sm:$0xff]   ;;  %v578_v8 = vld [vmem:[%s756_s1 + $0x68] sm:$0xff]  }
   0x2   :  { %v571_v1 = vld [vmem:[%s756_s1 + $0x38] sm:$0xff]   ;;  %507 = vmatprep.subr.bf16.mxu0 %v570_v0  ;;  %v575_v5 = vld [vmem:[%s756_s1 + $0x30] sm:$0xff]   ;;  %v579_v9 = vld [vmem:[%s756_s1 + $0x28] sm:$0xff]  }
   0x3   :  { %v572_v2 = vld [vmem:[%s756_s1 + $0xf8] sm:$0xff]   ;;  %508 = vmatpush3.bf16.msra.mxu0 %v571_v1  ;;  %v576_v6 = vld [vmem:[%s756_s1 + $0xf0] sm:$0xff]   ;;  %v580_v10 = vld [vmem:[%s756_s1 + $0xe8] sm:$0xff]  }
   0x4   :  { %v573_v3 = vld [vmem:[%s756_s1 + $0xb8] sm:$0xff]   ;;  %529 = vmatprep.subr.bf16.mxu1 %v572_v2  ;;  %509 = vmatprep.subr.bf16.mxu0 %v574_v4  ;;  %v577_v7 = vld [vmem:[%s756_s1 + $0xb0] sm:$0xff]   ;;  %v581_v11 = vld [vmem:[%s756_s1 + $0xa8] sm:$0xff]  }
   0x5   :  { %530 = vmatpush3.bf16.msra.mxu1 %v573_v3  ;;  %v582_v12 = vld [vmem:[%s756_s1 + $0x60] sm:$0xff]   ;;  %v586_v16 = vld [vmem:[%s756_s1 + $0x58] sm:$0xff]   ;;  %v590_v20 = vld [vmem:[%s756_s1 + $0x50] sm:$0xff]  }
   0x6   :  { %531 = vmatprep.subr.bf16.mxu1 %v576_v6  ;;  %v583_v13 = vld [vmem:[%s756_s1 + $0x20] sm:$0xff]   ;;  %v587_v17 = vld [vmem:[%s756_s1 + $0x18] sm:$0xff]   ;;  %v591_v21 = vld [vmem:[%s756_s1 + $0x10] sm:$0xff]  }
   0x7   :  { %510 = vmatpush3.bf16.msra.mxu0 %v575_v5  ;;  %v584_v14 = vld [vmem:[%s756_s1 + $0xe0] sm:$0xff]   ;;  %v588_v18 = vld [vmem:[%s756_s1 + $0xd8] sm:$0xff]   ;;  %v592_v22 = vld [vmem:[%s756_s1 + $0xd0] sm:$0xff]  }
   0x8   :  { %511 = vmatprep.subr.bf16.mxu0 %v578_v8  ;;  %v585_v15 = vld [vmem:[%s756_s1 + $0xa0] sm:$0xff]   ;;  %v589_v19 = vld [vmem:[%s756_s1 + $0x98] sm:$0xff]   ;;  %v593_v23 = vld [vmem:[%s756_s1 + $0x90] sm:$0xff]  }
   0x9   :  { %532 = vmatpush3.bf16.msra.mxu1 %v577_v7  ;;  %v594_v24 = vld [vmem:[%s756_s1 + $0x48] sm:$0xff]   ;;  %v598_v28 = vld [vmem:[%s756_s1 + $0x40] sm:$0xff]   ;;  %v607_v39 = vld [vmem:[%s756_s1 + $0x118] sm:$0xff]  }
   0xa   :  { %533 = vmatprep.subr.bf16.mxu1 %v580_v10  ;;  %v595_v25 = vld [vmem:[%s756_s1 + $0x8] sm:$0xff]   ;;  %v599_v29 = vld [vmem:[%s756_s1] sm:$0xff]   ;;  %v608_v40 = vld [vmem:[%s756_s1 + $0x110] sm:$0xff]  }
   0xb   :  { %512 = vmatpush3.bf16.msra.mxu0 %v579_v9  ;;  %v596_v26 = vld [vmem:[%s756_s1 + $0xc8] sm:$0xff]   ;;  %v600_v30 = vld [vmem:[%s756_s1 + $0xc0] sm:$0xff]   ;;  %v603_v43 = vld [vmem:[%s757_s0 + $0x10] ss:$0 sps:$4 sm:$0xff]  }
   0xc   :  { %513 = vmatprep.subr.bf16.mxu0 %v582_v12  ;;  %v597_v27 = vld [vmem:[%s756_s1 + $0x88] sm:$0xff]   ;;  %v15_v31 = vld [vmem:[%s757_s0] sm:$0xff] }
   0xd   :  { %534 = vmatpush3.bf16.msra.mxu1 %v581_v11  ;;  %v465_v32 = vcombine.low %v15_v31, %v15_v31  ;;  %v466_v33 = vcombine.high %v15_v31, %v15_v31  ;;  %v604_v34 = vld [vmem:[%s756_s1 + $0x80] sm:$0xff]   ;;  %v16_v36 = vld [vmem:[%s757_s0 + $0x8] sm:$0xff] }
   0xe   :  { %535 = vmatprep.subr.bf16.mxu1 %v584_v14  ;;  %v467_v37 = vcombine.low %v16_v36, %v16_v36  ;;  %v468_v38 = vcombine.high %v16_v36, %v16_v36  ;;  %v609_v41 = vld [vmem:[%s756_s1 + $0x108] sm:$0xff]   ;;  %v610_v42 = vld [vmem:[%s756_s1 + $0x100] sm:$0xff]  }
   0xf   :  { %514 = vmatpush3.bf16.msra.mxu0 %v583_v13  ;;  %366 = vmatprep.mubr.bf16.mxu0 %v466_v33  ;;  %v464_v52 = vld [vmem:[%s758_s2] ss:$0 sm:$0xff] }
  0x10   :  { %515 = vmatprep.subr.bf16.mxu0 %v586_v16  ;;  %406 = vmatprep.mubr.bf16.mxu1 %v468_v38 }
  0x11   :  { %536 = vmatpush3.bf16.msra.mxu1 %v585_v15 }
  0x12   :  { %537 = vmatprep.subr.bf16.mxu1 %v588_v18 }
  0x13   :  { %516 = vmatpush3.bf16.msra.mxu0 %v587_v17 }
  0x14   :  { %517 = vmatprep.subr.bf16.mxu0 %v590_v20 }
  0x15   :  { %538 = vmatpush3.bf16.msra.mxu1 %v589_v19 }
  0x16   :  { %539 = vmatprep.subr.bf16.mxu1 %v592_v22 }
  0x17   :  { %518 = vmatpush3.bf16.msra.mxu0 %v591_v21 }
  0x18   :  { %519 = vmatprep.subr.bf16.mxu0 %v594_v24 }
  0x19   :  { %540 = vmatpush3.bf16.msra.mxu1 %v593_v23 }
  0x1a   :  { %541 = vmatprep.subr.bf16.mxu1 %v596_v26 }
  0x1b   :  { %520 = vmatpush3.bf16.msra.mxu0 %v595_v25 }
  0x1c   :  { %521 = vmatprep.subr.bf16.mxu0 %v598_v28 }
  0x1d   :  { %542 = vmatpush3.bf16.msra.mxu1 %v597_v27 }
  0x1e   :  { %543 = vmatprep.subr.bf16.mxu1 %v600_v30 }
  0x1f   :  { %522 = vmatpush3.bf16.msra.mxu0 %v599_v29 }
  0x20   :  { %556 = vmatprep.subr.bf16.mxu0 %v611_v35 }
  0x21   :  { %544 = vmatpush3.bf16.msra.mxu1 %v604_v34 }
  0x22   :  { %367 = vmatmul.mubr.bf16.vlgmr.msra.gmra.mxu0 %v465_v32 }
  0x23   :  { %557 = vmatpush3.bf16.msra.mxu0 %v607_v39  ;;  %564 = vmatprep.mubr.msk.bf16.mxu0 %vm612_vm0, %v611_v35 }
  0x24   :  { %407 = vmatmul.mubr.bf16.vlgmr.msra.gmra.mxu1 %v467_v37  ;;  %558 = vmatprep.subr.bf16.mxu0 %v611_v35 }
  0x27   :  { %559 = vmatpush3.bf16.msra.mxu0 %v608_v40 }
  0x28   :  { %560 = vmatprep.subr.bf16.mxu0 %v611_v35 }
  0x2b   :  { %561 = vmatpush3.bf16.msra.mxu0 %v609_v41 }
  0x2c   :  { %562 = vmatprep.subr.bf16.mxu0 %v611_v35 }
  0x2f   :  { %563 = vmatpush3.bf16.msra.mxu0 %v610_v42 }
  0x32   :  { %565 = vmatmul.mubr.msk.bf16.vlgmr.msra.gmra.mxu0 %vm330_vm1, %v603_v43 }
  0xe2   :  { %v523_v44 = vpop.f32.mrf.mxu0 }
  0xe4   :  { %v524_v45 = vpop.f32.mrf.mxu0  ;;  %v545_v46 = vpop.f32.mrf.mxu1 }
  0xe5   :  { %v525_v51 = vadd.f32 %v524_v45, %v523_v44 }
  0xe6   :  { %v526_v47 = vpop.f32.mrf.mxu0  ;;  %v546_v48 = vpop.f32.mrf.mxu1 }
  0xe7   :  { %v369_v54 = vadd.f32 %v525_v51, %v464_v52  ;;  %v547_v55 = vadd.f32 %v546_v48, %v545_v46 }
  0xe8   :  { %v527_v49 = vpop.f32.mrf.mxu0  ;;  %v548_v50 = vpop.f32.mrf.mxu1 }
  0xe9   :  { %v409_v56 = vadd.f32 %v547_v55, %v369_v54 }
  0xea   :  { %v549_v53 = vpop.f32.mrf.mxu1 }
  0xf2   :  { %v448_v57 = vpop.f32.mrf.mxu0 }
  0xf3   :  { %v449_v58 = vadd.f32 %v448_v57, %v409_v56 }
  0xf4   :  { %v566_v59 = vpop.f32.mrf.mxu0 }
  0xf5   :  { %vm454_vm2 = vcmp.ge.f32.partialorder %v449_v58, 0.0  ;;  %v455_v60 = vmul.f32 0.2, %v449_v58 }
  0xf6   :  { %v451_v61 = vpop.f32.mrf.mxu0 }
  0xf7   :  { %v456_v62 = vsel %vm454_vm2, %v449_v58, %v455_v60 }
  0xf8   :  { %v457_v63 = vpack.c.bf16 %v456_v62, %v456_v62  ;;  %v567_v0 = vpop.f32.mrf.mxu0 }
  0xfa   :  { %459 = vst.msk [vmem:[%s759_s3] sm:$0xf] %vm458_vm3, %v457_v63 }

// kernel: unet_forward.26
= control target key start
LH: loop header
LB: loop body
LE: loop exit
PB: predicated region body
PF: predicated region fallthrough
CT: control target
= control target key end

     0   :  { %v134_v0 = vmov 0.0   ;;  %vm135_vm0 = vmmov 0   ;;  %vm55_vm1 = vcmask 523264   ;;  %s177_s1 = inlined_call_operand.vmem [shape: bf16[64,128], index: 1, kind: input, shape index: {}]   ;;  %s178_s0 = inlined_call_operand.vmem [shape: bf16[8,64], index: 0, kind: input, shape index: {}]   ;;  %s179_s2 = inlined_call_operand.vmem [shape: f32[1,128], index: 2, kind: input, shape index: {}]   ;;  %s180_s3 = inlined_call_operand.vmem [shape: bf16[8,128], index: 3, kind: output, shape index: {}]  }
   0x1   :  { %116 = vmatprep.subr.bf16.mxu0 %v134_v0  ;;  %v130_v1 = vld [vmem:[%s177_s1 + $0x18] sm:$0xff]   ;;  %124 = vmatprep.mubr.msk.bf16.mxu0 %vm135_vm0, %v134_v0  ;;  %v131_v2 = vld [vmem:[%s177_s1 + $0x10] sm:$0xff]   ;;  %v132_v3 = vld [vmem:[%s177_s1 + $0x8] sm:$0xff]  }
   0x2   :  { %117 = vmatpush3.bf16.msra.mxu0 %v130_v1  ;;  %v133_v4 = vld [vmem:[%s177_s1] sm:$0xff]  }
   0x3   :  { %118 = vmatprep.subr.bf16.mxu0 %v134_v0  ;;  %v15_v5 = vld [vmem:[%s178_s0] sm:$0xf] }
   0x4   :  { %v105_v6 = vld [vmem:[%s179_s2] ss:$0 sm:$0xff] }
   0x6   :  { %119 = vmatpush3.bf16.msra.mxu0 %v131_v2 }
   0x7   :  { %120 = vmatprep.subr.bf16.mxu0 %v134_v0 }
   0xa   :  { %121 = vmatpush3.bf16.msra.mxu0 %v132_v3 }
   0xb   :  { %122 = vmatprep.subr.bf16.mxu0 %v134_v0 }
   0xe   :  { %123 = vmatpush3.bf16.msra.mxu0 %v133_v4 }
  0x11   :  { %125 = vmatmul.mubr.msk.bf16.vlgmr.msra.gmra.mxu0 %vm55_vm1, %v15_v5 }
  0xd1   :  { %v93_v7 = vpop.f32.mrf.mxu0 }
  0xd2   :  { %v94_v8 = vadd.f32 %v105_v6, %v93_v7 }
  0xd3   :  { %v126_v9 = vpop.f32.mrf.mxu0 }
  0xd4   :  { %v99_v10 = vpack.c.bf16 %v94_v8, %v94_v8 }
  0xd5   :  { %v96_v11 = vpop.f32.mrf.mxu0 }
  0xd6   :  { %100 = vst [vmem:[%s180_s3] sm:$0xf] %v99_v10 }
  0xd7   :  { %v127_v12 = vpop.f32.mrf.mxu0 }

// kernel: tile.23
= control target key start
LH: loop header
LB: loop body
LE: loop exit
PB: predicated region body
PF: predicated region fallthrough
CT: control target
= control target key end

     0   :  { %s22_s0 = inlined_call_operand.vmem [shape: f32[16], index: 0, kind: input, shape index: {}]   ;;  %s23_s1 = inlined_call_operand.vmem [shape: f32[4,16], index: 1, kind: output, shape index: {}]  }
   0x1   :  { %v4_v0 = vld [vmem:[%s22_s0] ss:$0 sm:$0xff] }
   0x2   :  { %5 = vst [vmem:[%s23_s1] sm:$0xf] %v4_v0 }

// kernel: tile.24
= control target key start
LH: loop header
LB: loop body
LE: loop exit
PB: predicated region body
PF: predicated region fallthrough
CT: control target
= control target key end

     0   :  { %vm8_vm0 = vcmask 130048   ;;  %s40_s8 = smov 16   ;;  %s41_s9 = smov 32   ;;  %vm14_vm1 = vcmask 523648   ;;  %vm20_vm2 = vcmask 392448   ;;  %vm26_vm3 = vcmask 261248   ;;  %s58_s0 = inlined_call_operand.vmem [shape: f32[4,16], index: 0, kind: input, shape index: {}]   ;;  %s59_s1 = inlined_call_operand.vmem [shape: f32[1,64], index: 1, kind: output, shape index: {}]  }
   0x1   :  { %v5_v0 = vld [vmem:[%s58_s0] sm:$0xf]  ;;  %s39_s0 = smov 48  }
   0x2   :  { %6 = vst [vmem:[#allocation1] sm:$0xf] %v5_v0 }
   0x9   :  { %v11_v1 = vld [vmem:[#allocation1 + $0x3] sm:$0x1]   ;;  %v23_v2 = vld [vmem:[#allocation1 + $0x1] sm:$0x1]   ;;  %v7_v3 = vld [vmem:[#allocation1] sm:$0x1]  }
   0xa   :  { %12 = vrot.lane.b32.xlu0 %v11_v1, %s39_s0  ;;  %24 = vrot.lane.b32.xlu1 %v23_v2, %s40_s8  ;;  %v17_v4 = vld [vmem:[#allocation1 + $0x2] sm:$0x1]   ;;  %9 = vst.msk [vmem:[#allocation0] sm:$0x1] %vm8_vm0, %v7_v3  }
   0xe   :  { %18 = vrot.lane.b32.xlu0 %v17_v4, %s41_s9 }
  0x7c   :  { %v13_v5 = vpop.permute.xlu0 %12   ;;  %v25_v6 = vpop.permute.xlu1 %24  }
  0x7d   :  { %15 = vst.msk [vmem:[#allocation0] sm:$0x1] %vm14_vm1, %v13_v5  }
  0x80   :  { %v19_v7 = vpop.permute.xlu0 %18  }
  0x81   :  { %21 = vst.msk [vmem:[#allocation0] sm:$0x1] %vm20_vm2, %v19_v7  }
  0x82   :  { %27 = vst.msk [vmem:[#allocation0] sm:$0x1] %vm26_vm3, %v25_v6  }
  0x89   :  { %v32_v8 = vld [vmem:[#allocation0] sm:$0x1] }
  0x8a   :  { %35 = vst [vmem:[%s59_s1] sm:$0x1] %v32_v8 }

// kernel: unet_forward.29
= control target key start
LH: loop header
LB: loop body
LE: loop exit
PB: predicated region body
PF: predicated region fallthrough
CT: control target
= control target key end

     0   :  { %vm52_vm0 = vcmask 261120   ;;  %vm124_vm1 = vcmask 519168   ;;  %s211_s1 = inlined_call_operand.vmem [shape: bf16[32,64], index: 1, kind: input, shape index: {}]   ;;  %s212_s0 = inlined_call_operand.vmem [shape: bf16[32,32], index: 0, kind: input, shape index: {}]   ;;  %s213_s2 = inlined_call_operand.vmem [shape: f32[1,64], index: 2, kind: input, shape index: {}]   ;;  %s214_s3 = inlined_call_operand.vmem [shape: bf16[32,64], index: 3, kind: output, shape index: {}]  }
   0x1   :  { %v160_v0 = vld [vmem:[%s211_s1 + $0x8] sm:$0xff]   ;;  %v161_v1 = vld [vmem:[%s211_s1] sm:$0xff]  }
   0x2   :  { %152 = vmatprep.subr.bf16.mxu0 %v160_v0  ;;  %v162_v2 = vld [vmem:[%s212_s0] sm:$0xff]   ;;  %v163_v3 = vld [vmem:[%s212_s0 + $0x8] sm:$0xff]  }
   0x3   :  { %153 = vmatpush3.bf16.msra.mxu0 %v160_v0  ;;  %156 = vmatprep.mubr.msk.bf16.mxu0 %vm52_vm0, %v162_v2  ;;  %v133_v4 = vld [vmem:[%s213_s2] ss:$0 sm:$0xff] }
   0x4   :  { %154 = vmatprep.subr.bf16.mxu0 %v161_v1 }
   0x7   :  { %155 = vmatpush3.bf16.msra.mxu0 %v161_v1 }
   0xa   :  { %157 = vmatmul.mubr.msk.bf16.vlgmr.msra.gmra.mxu0 %vm52_vm0, %v163_v3 }
  0xca   :  { %v158_v5 = vpop.f32.mrf.mxu0 }
  0xcb   :  { %v102_v6 = vadd.f32 %v158_v5, %v133_v4 }
  0xcc   :  { %v93_v7 = vpop.f32.mrf.mxu0 }
  0xcd   :  { %v146_v8 = vpack.c.bf16 %v102_v6, %v102_v6  ;;  %v94_v9 = vadd.f32 %v133_v4, %v93_v7 }
  0xce   :  { %v159_v10 = vpop.f32.mrf.mxu0 }
  0xcf   :  { %127 = vst.msk [vmem:[%s214_s3 + $0x8] sm:$0xf] %vm124_vm1, %v146_v8  ;;  %v144_v11 = vpack.c.bf16 %v94_v9, %v94_v9  ;;  %v105_v12 = vadd.f32 %v159_v10, %v133_v4 }
  0xd0   :  { %v96_v13 = vpop.f32.mrf.mxu0 }
  0xd1   :  { %125 = vst.msk [vmem:[%s214_s3] sm:$0xf] %vm124_vm1, %v144_v11  ;;  %v147_v14 = vpack.c.bf16 %v105_v12, %v105_v12  ;;  %v97_v15 = vadd.f32 %v133_v4, %v96_v13 }
  0xd3   :  { %128 = vst.msk [vmem:[%s214_s3 + $0xc] sm:$0xf] %vm124_vm1, %v147_v14  ;;  %v145_v16 = vpack.c.bf16 %v97_v15, %v97_v15 }
  0xd5   :  { %126 = vst.msk [vmem:[%s214_s3 + $0x4] sm:$0xf] %vm124_vm1, %v145_v16 }

// kernel: unet_forward.27
= control target key start
LH: loop header
LB: loop body
LE: loop exit
PB: predicated region body
PF: predicated region fallthrough
CT: control target
= control target key end

     0   :  { %vm372_vm0 = vcmask 523264   ;;  %vm554_vm2 = vcmask 257024   ;;  %s921_s1 = inlined_call_operand.vmem [shape: bf16[576,32], index: 1, kind: input, shape index: {}]   ;;  %s922_s0 = inlined_call_operand.vmem [shape: bf16[32,576], index: 0, kind: input, shape index: {}]   ;;  %s923_s2 = inlined_call_operand.vmem [shape: f32[1,32], index: 2, kind: input, shape index: {}]   ;;  %s924_s3 = inlined_call_operand.vmem [shape: bf16[32,32], index: 3, kind: output, shape index: {}]  }
   0x1   :  { %v694_v0 = vld [vmem:[%s921_s1 + $0x78] sm:$0xff]   ;;  %v698_v4 = vld [vmem:[%s921_s1 + $0x70] sm:$0xff]   ;;  %v702_v8 = vld [vmem:[%s921_s1 + $0x68] sm:$0xff]  }
   0x2   :  { %v695_v1 = vld [vmem:[%s921_s1 + $0xf8] sm:$0xff]   ;;  %620 = vmatprep.subr.bf16.mxu0 %v694_v0  ;;  %v699_v5 = vld [vmem:[%s921_s1 + $0xf0] sm:$0xff]   ;;  %v703_v9 = vld [vmem:[%s921_s1 + $0xe8] sm:$0xff]  }
   0x3   :  { %v696_v2 = vld [vmem:[%s921_s1 + $0x38] sm:$0xff]   ;;  %648 = vmatprep.subr.bf16.mxu1 %v695_v1  ;;  %v700_v6 = vld [vmem:[%s921_s1 + $0x30] sm:$0xff]   ;;  %v704_v10 = vld [vmem:[%s921_s1 + $0x28] sm:$0xff]  }
   0x4   :  { %v697_v3 = vld [vmem:[%s921_s1 + $0xb8] sm:$0xff]   ;;  %621 = vmatpush3.bf16.msra.mxu0 %v696_v2  ;;  %v701_v7 = vld [vmem:[%s921_s1 + $0xb0] sm:$0xff]   ;;  %v705_v11 = vld [vmem:[%s921_s1 + $0xa8] sm:$0xff]  }
   0x5   :  { %649 = vmatpush3.bf16.msra.mxu1 %v697_v3  ;;  %622 = vmatprep.subr.bf16.mxu0 %v698_v4  ;;  %v706_v12 = vld [vmem:[%s921_s1 + $0x60] sm:$0xff]   ;;  %v710_v16 = vld [vmem:[%s921_s1 + $0x58] sm:$0xff]   ;;  %v714_v20 = vld [vmem:[%s921_s1 + $0x50] sm:$0xff]  }
   0x6   :  { %650 = vmatprep.subr.bf16.mxu1 %v699_v5  ;;  %v707_v13 = vld [vmem:[%s921_s1 + $0xe0] sm:$0xff]   ;;  %v711_v17 = vld [vmem:[%s921_s1 + $0xd8] sm:$0xff]   ;;  %v715_v21 = vld [vmem:[%s921_s1 + $0xd0] sm:$0xff]  }
   0x7   :  { %v708_v14 = vld [vmem:[%s921_s1 + $0x20] sm:$0xff]   ;;  %v712_v18 = vld [vmem:[%s921_s1 + $0x18] sm:$0xff]   ;;  %v716_v22 = vld [vmem:[%s921_s1 + $0x10] sm:$0xff]  }
   0x8   :  { %623 = vmatpush3.bf16.msra.mxu0 %v700_v6  ;;  %v709_v15 = vld [vmem:[%s921_s1 + $0xa0] sm:$0xff]   ;;  %v713_v19 = vld [vmem:[%s921_s1 + $0x98] sm:$0xff]   ;;  %v717_v23 = vld [vmem:[%s921_s1 + $0x90] sm:$0xff]  }
   0x9   :  { %651 = vmatpush3.bf16.msra.mxu1 %v701_v7  ;;  %624 = vmatprep.subr.bf16.mxu0 %v702_v8  ;;  %v718_v24 = vld [vmem:[%s921_s1 + $0x48] sm:$0xff]   ;;  %v722_v28 = vld [vmem:[%s921_s1 + $0x40] sm:$0xff]   ;;  %v732_v36 = vld [vmem:[%s921_s1 + $0x118] sm:$0xff]  }
   0xa   :  { %652 = vmatprep.subr.bf16.mxu1 %v703_v9  ;;  %v719_v25 = vld [vmem:[%s921_s1 + $0xc8] sm:$0xff]   ;;  %v723_v29 = vld [vmem:[%s921_s1 + $0xc0] sm:$0xff]   ;;  %v733_v37 = vld [vmem:[%s921_s1 + $0x110] sm:$0xff]  }
   0xb   :  { %v720_v26 = vld [vmem:[%s921_s1 + $0x8] sm:$0xff]   ;;  %v724_v30 = vld [vmem:[%s921_s1] sm:$0xff]  }
   0xc   :  { %625 = vmatpush3.bf16.msra.mxu0 %v704_v10  ;;  %v721_v27 = vld [vmem:[%s921_s1 + $0x88] sm:$0xff]   ;;  %v725_v31 = vld [vmem:[%s921_s1 + $0x80] sm:$0xff]  }
   0xd   :  { %653 = vmatpush3.bf16.msra.mxu1 %v705_v11  ;;  %626 = vmatprep.subr.bf16.mxu0 %v706_v12  ;;  %v726_v32 = vld [vmem:[%s922_s0] ss:$20 sps:$4 sm:$0xff]   ;;  %v728_v33 = vld [vmem:[%s922_s0 + $0x4] ss:$20 sps:$4 sm:$0xff]   ;;  %v729_v34 = vld [vmem:[%s922_s0 + $0x8] ss:$20 sps:$4 sm:$0xff]  }
   0xe   :  { %654 = vmatprep.subr.bf16.mxu1 %v707_v13  ;;  %v731_v35 = vld [vmem:[%s922_s0 + $0xc] ss:$20 sps:$4 sm:$0xff]   ;;  %411 = vmatprep.mubr.bf16.mxu0 %v728_v33  ;;  %v736_v39 = vld [vmem:[%s922_s0 + $0x34] ss:$20 sps:$4 sm:$0xff]   ;;  %v739_v42 = vld [vmem:[%s922_s0 + $0x30] ss:$20 sps:$4 sm:$0xff]  }
   0xf   :  { %460 = vmatprep.mubr.bf16.mxu1 %v731_v35  ;;  %v734_v38 = vld [vmem:[%s922_s0 + $0x2c] ss:$20 sps:$4 sm:$0xff]   ;;  %v738_v40 = vld [vmem:[%s922_s0 + $0x28] ss:$20 sps:$4 sm:$0xff]   ;;  %v742_v43 = vld [vmem:[%s922_s0 + $0x10] ss:$20 sps:$4 sm:$0xff]  }
  0x10   :  { %627 = vmatpush3.bf16.msra.mxu0 %v708_v14  ;;  %v740_v41 = vld [vmem:[%s921_s1 + $0x108] sm:$0xff]   ;;  %v741_v44 = vld [vmem:[%s921_s1 + $0x100] sm:$0xff]  }
  0x11   :  { %655 = vmatpush3.bf16.msra.mxu1 %v709_v15  ;;  %628 = vmatprep.subr.bf16.mxu0 %v710_v16  ;;  %v743_v45 = vld [vmem:[%s922_s0 + $0x38] ss:$20 sps:$4 sm:$0xff]   ;;  %v563_v58 = vld [vmem:[%s923_s2] ss:$0 sm:$0xff] }
  0x12   :  { %656 = vmatprep.subr.bf16.mxu1 %v711_v17 }
  0x14   :  { %629 = vmatpush3.bf16.msra.mxu0 %v712_v18 }
  0x15   :  { %657 = vmatpush3.bf16.msra.mxu1 %v713_v19  ;;  %630 = vmatprep.subr.bf16.mxu0 %v714_v20 }
  0x16   :  { %658 = vmatprep.subr.bf16.mxu1 %v715_v21 }
  0x18   :  { %631 = vmatpush3.bf16.msra.mxu0 %v716_v22 }
  0x19   :  { %659 = vmatpush3.bf16.msra.mxu1 %v717_v23  ;;  %632 = vmatprep.subr.bf16.mxu0 %v718_v24 }
  0x1a   :  { %660 = vmatprep.subr.bf16.mxu1 %v719_v25 }
  0x1c   :  { %633 = vmatpush3.bf16.msra.mxu0 %v720_v26 }
  0x1d   :  { %661 = vmatpush3.bf16.msra.mxu1 %v721_v27  ;;  %634 = vmatprep.subr.bf16.mxu0 %v722_v28 }
  0x1e   :  { %662 = vmatprep.subr.bf16.mxu1 %v723_v29 }
  0x20   :  { %635 = vmatpush3.bf16.msra.mxu0 %v724_v30 }
  0x21   :  { %663 = vmatpush3.bf16.msra.mxu1 %v725_v31  ;;  %682 = vmatprep.subr.bf16.mxu0 %v732_v36 }
  0x23   :  { %412 = vmatmul.mubr.bf16.vlgmr.msra.gmra.mxu0 %v726_v32 }
  0x24   :  { %461 = vmatmul.mubr.bf16.vlgmr.msra.gmra.mxu1 %v729_v34  ;;  %683 = vmatpush3.bf16.msra.mxu0 %v732_v36 }
  0x25   :  { %684 = vmatprep.subr.bf16.mxu0 %v733_v37  ;;  %419 = vmatprep.mubr.bf16.mxu0 %v734_v38 }
  0x26   :  { %468 = vmatprep.mubr.bf16.mxu1 %v736_v39 }
  0x28   :  { %685 = vmatpush3.bf16.msra.mxu0 %v733_v37 }
  0x29   :  { %686 = vmatprep.subr.bf16.mxu0 %v740_v41 }
  0x2b   :  { %420 = vmatmul.mubr.bf16.gmra.mxu0 %v738_v40 }
  0x2c   :  { %469 = vmatmul.mubr.bf16.gmra.mxu1 %v739_v42  ;;  %690 = vmatprep.mubr.msk.bf16.mxu0 %vm372_vm0, %v742_v43 }
  0x2d   :  { %687 = vmatpush3.bf16.msra.mxu0 %v740_v41 }
  0x2e   :  { %688 = vmatprep.subr.bf16.mxu0 %v741_v44 }
  0x31   :  { %689 = vmatpush3.bf16.msra.mxu0 %v741_v44 }
  0x34   :  { %691 = vmatmul.mubr.msk.bf16.vlgmr.msra.gmra.mxu0 %vm372_vm0, %v743_v45 }
  0xe3   :  { %v636_v46 = vpop.f32.mrf.mxu0 }
  0xe4   :  { %v664_v47 = vpop.f32.mrf.mxu1 }
  0xe5   :  { %v637_v48 = vpop.f32.mrf.mxu0 }
  0xe6   :  { %v665_v49 = vpop.f32.mrf.mxu1  ;;  %v638_v56 = vadd.f32 %v637_v48, %v636_v46 }
  0xe7   :  { %v639_v50 = vpop.f32.mrf.mxu0  ;;  %v666_v3 = vadd.f32 %v665_v49, %v664_v47 }
  0xe8   :  { %v667_v51 = vpop.f32.mrf.mxu1  ;;  %v414_v2 = vadd.f32 %v638_v56, %v563_v58 }
  0xe9   :  { %v640_v52 = vpop.f32.mrf.mxu0 }
  0xea   :  { %v668_v53 = vpop.f32.mrf.mxu1  ;;  %v641_v63 = vadd.f32 %v640_v52, %v639_v50  ;;  %v463_v13 = vadd.f32 %v666_v3, %v414_v2 }
  0xeb   :  { %v642_v54 = vpop.f32.mrf.mxu0  ;;  %v669_v14 = vadd.f32 %v668_v53, %v667_v51 }
  0xec   :  { %v670_v55 = vpop.f32.mrf.mxu1  ;;  %v417_v8 = vadd.f32 %v641_v63, %v563_v58 }
  0xed   :  { %v643_v57 = vpop.f32.mrf.mxu0 }
  0xee   :  { %v644_v59 = vadd.f32 %v643_v57, %v642_v54  ;;  %v671_v60 = vpop.f32.mrf.mxu1  ;;  %v466_v20 = vadd.f32 %v669_v14, %v417_v8 }
  0xef   :  { %v672_v61 = vadd.f32 %v671_v60, %v670_v55  ;;  %v645_v62 = vpop.f32.mrf.mxu0 }
  0xf0   :  { %v422_v0 = vadd.f32 %v644_v59, %v563_v58  ;;  %v673_v1 = vpop.f32.mrf.mxu1 }
  0xf1   :  { %v646_v4 = vpop.f32.mrf.mxu0 }
  0xf2   :  { %v647_v5 = vadd.f32 %v646_v4, %v645_v62  ;;  %v674_v6 = vpop.f32.mrf.mxu1  ;;  %v471_v7 = vadd.f32 %v672_v61, %v422_v0 }
  0xf3   :  { %v675_v10 = vadd.f32 %v674_v6, %v673_v1 }
  0xf4   :  { %v425_v9 = vadd.f32 %v647_v5, %v563_v58  ;;  %v692_v11 = vpop.f32.mrf.mxu0 }
  0xf5   :  { %v520_v12 = vadd.f32 %v692_v11, %v471_v7 }
  0xf6   :  { %v511_v15 = vpop.f32.mrf.mxu0  ;;  %v474_v16 = vadd.f32 %v675_v10, %v425_v9 }
  0xf7   :  { %vm528_vm1 = vcmp.ge.f32.partialorder %v520_v12, 0.0  ;;  %v532_v17 = vmul.f32 0.2, %v520_v12  ;;  %v512_v18 = vadd.f32 %v511_v15, %v463_v13 }
  0xf8   :  { %v693_v19 = vpop.f32.mrf.mxu0 }
  0xf9   :  { %v536_v21 = vsel %vm528_vm1, %v520_v12, %v532_v17  ;;  %vm526_vm3 = vcmp.ge.f32.partialorder %v512_v18, 0.0  ;;  %v530_v22 = vmul.f32 0.2, %v512_v18  ;;  %v523_v23 = vadd.f32 %v693_v19, %v474_v16 }
  0xfa   :  { %v618_v24 = vpack.c.bf16 %v536_v21, %v536_v21  ;;  %v514_v25 = vpop.f32.mrf.mxu0 }
  0xfb   :  { %v534_v26 = vsel %vm526_vm3, %v512_v18, %v530_v22  ;;  %vm529_vm4 = vcmp.ge.f32.partialorder %v523_v23, 0.0  ;;  %v533_v27 = vmul.f32 0.2, %v523_v23  ;;  %v515_v28 = vadd.f32 %v514_v25, %v466_v20 }
  0xfc   :  { %557 = vst.msk [vmem:[%s924_s3 + $0x8] sm:$0xf] %vm554_vm2, %v618_v24  ;;  %v616_v29 = vpack.c.bf16 %v534_v26, %v534_v26 }
  0xfd   :  { %v537_v30 = vsel %vm529_vm4, %v523_v23, %v533_v27  ;;  %vm527_vm5 = vcmp.ge.f32.partialorder %v515_v28, 0.0  ;;  %v531_v31 = vmul.f32 0.2, %v515_v28 }
  0xfe   :  { %555 = vst.msk [vmem:[%s924_s3] sm:$0xf] %vm554_vm2, %v616_v29  ;;  %v619_v32 = vpack.c.bf16 %v537_v30, %v537_v30 }
  0xff   :  { %v535_v33 = vsel %vm527_vm5, %v515_v28, %v531_v31 }
 0x100   :  { %558 = vst.msk [vmem:[%s924_s3 + $0xc] sm:$0xf] %vm554_vm2, %v619_v32  ;;  %v617_v34 = vpack.c.bf16 %v535_v33, %v535_v33 }
 0x102   :  { %556 = vst.msk [vmem:[%s924_s3 + $0x4] sm:$0xf] %vm554_vm2, %v617_v34 }

// kernel: tile.28
= control target key start
LH: loop header
LB: loop body
LE: loop exit
PB: predicated region body
PF: predicated region fallthrough
CT: control target
= control target key end

     0   :  { %s22_s0 = inlined_call_operand.vmem [shape: f32[8], index: 0, kind: input, shape index: {}]   ;;  %s23_s1 = inlined_call_operand.vmem [shape: f32[4,8], index: 1, kind: output, shape index: {}]  }
   0x1   :  { %v4_v0 = vld [vmem:[%s22_s0] ss:$0 sm:$0xff] }
   0x2   :  { %5 = vst [vmem:[%s23_s1] sm:$0xf] %v4_v0 }

// kernel: tile.29
= control target key start
LH: loop header
LB: loop body
LE: loop exit
PB: predicated region body
PF: predicated region fallthrough
CT: control target
= control target key end

     0   :  { %vm8_vm0 = vcmask 64512   ;;  %s40_s8 = smov 8   ;;  %s41_s9 = smov 16   ;;  %vm14_vm1 = vcmask 261312   ;;  %vm20_vm2 = vcmask 195712   ;;  %vm26_vm3 = vcmask 130112   ;;  %s58_s0 = inlined_call_operand.vmem [shape: f32[4,8], index: 0, kind: input, shape index: {}]   ;;  %s59_s1 = inlined_call_operand.vmem [shape: f32[1,32], index: 1, kind: output, shape index: {}]  }
   0x1   :  { %v5_v0 = vld [vmem:[%s58_s0] sm:$0xf]  ;;  %s39_s0 = smov 24  }
   0x2   :  { %6 = vst [vmem:[#allocation1] sm:$0xf] %v5_v0 }
   0x9   :  { %v11_v1 = vld [vmem:[#allocation1 + $0x3] sm:$0x1]   ;;  %v23_v2 = vld [vmem:[#allocation1 + $0x1] sm:$0x1]   ;;  %v7_v3 = vld [vmem:[#allocation1] sm:$0x1]  }
   0xa   :  { %12 = vrot.lane.b32.xlu0 %v11_v1, %s39_s0  ;;  %24 = vrot.lane.b32.xlu1 %v23_v2, %s40_s8  ;;  %v17_v4 = vld [vmem:[#allocation1 + $0x2] sm:$0x1]   ;;  %9 = vst.msk [vmem:[#allocation0] sm:$0x1] %vm8_vm0, %v7_v3  }
   0xe   :  { %18 = vrot.lane.b32.xlu0 %v17_v4, %s41_s9 }
  0x7c   :  { %v13_v5 = vpop.permute.xlu0 %12   ;;  %v25_v6 = vpop.permute.xlu1 %24  }
  0x7d   :  { %15 = vst.msk [vmem:[#allocation0] sm:$0x1] %vm14_vm1, %v13_v5  }
  0x80   :  { %v19_v7 = vpop.permute.xlu0 %18  }
  0x81   :  { %21 = vst.msk [vmem:[#allocation0] sm:$0x1] %vm20_vm2, %v19_v7  }
  0x82   :  { %27 = vst.msk [vmem:[#allocation0] sm:$0x1] %vm26_vm3, %v25_v6  }
  0x89   :  { %v32_v8 = vld [vmem:[#allocation0] sm:$0x1] }
  0x8a   :  { %35 = vst [vmem:[%s59_s1] sm:$0x1] %v32_v8 }

// kernel: unet_forward.30
= control target key start
LH: loop header
LB: loop body
LE: loop exit
PB: predicated region body
PF: predicated region fallthrough
CT: control target
= control target key end

     0   :  { %vm318_vm0 = vcmask 261120   ;;  %vm649_vm2 = vcmask 125952   ;;  %s1182_s1 = inlined_call_operand.vmem [shape: bf16[288,16], index: 1, kind: input, shape index: {}]   ;;  %s1183_s0 = inlined_call_operand.vmem [shape: bf16[128,288], index: 0, kind: input, shape index: {}]   ;;  %s1184_s2 = inlined_call_operand.vmem [shape: f32[1,16], index: 2, kind: input, shape index: {}]   ;;  %s1185_s3 = inlined_call_operand.vmem [shape: bf16[128,16], index: 3, kind: output, shape index: {}]  }
   0x1   :  { %v863_v0 = vld [vmem:[%s1182_s1 + $0x78] sm:$0xff]   ;;  %v865_v2 = vld [vmem:[%s1182_s1 + $0x70] sm:$0xff]   ;;  %v867_v4 = vld [vmem:[%s1182_s1 + $0x68] sm:$0xff]  }
   0x2   :  { %v864_v1 = vld [vmem:[%s1182_s1 + $0x38] sm:$0xff]   ;;  %753 = vmatprep.subr.bf16.mxu0 %v863_v0  ;;  %847 = vmatprep.subr.bf16.mxu1 %v863_v0  ;;  %v866_v3 = vld [vmem:[%s1182_s1 + $0x30] sm:$0xff]   ;;  %v868_v5 = vld [vmem:[%s1182_s1 + $0x28] sm:$0xff]  }
   0x3   :  { %754 = vmatpush3.bf16.msra.mxu0 %v864_v1  ;;  %855 = vmatpush3.bf16.msra.mxu1 %v864_v1  ;;  %v869_v6 = vld [vmem:[%s1182_s1 + $0x60] sm:$0xff]   ;;  %v871_v8 = vld [vmem:[%s1182_s1 + $0x58] sm:$0xff]   ;;  %v873_v10 = vld [vmem:[%s1182_s1 + $0x50] sm:$0xff]  }
   0x4   :  { %755 = vmatprep.subr.bf16.mxu0 %v865_v2  ;;  %848 = vmatprep.subr.bf16.mxu1 %v865_v2  ;;  %v870_v7 = vld [vmem:[%s1182_s1 + $0x20] sm:$0xff]   ;;  %v872_v9 = vld [vmem:[%s1182_s1 + $0x18] sm:$0xff]   ;;  %v874_v13 = vld [vmem:[%s1182_s1 + $0x10] sm:$0xff]  }
   0x5   :  { %v881_v11 = vld [vmem:[%s1183_s0 + $0x4] ss:$12 sps:$4 sm:$0xff]   ;;  %v884_v12 = vld [vmem:[%s1183_s0 + $0x94] ss:$12 sps:$4 sm:$0xff]   ;;  %v875_v14 = vld [vmem:[%s1182_s1 + $0x48] sm:$0xff]  }
   0x6   :  { %375 = vmatprep.mubr.bf16.mxu0 %v881_v11  ;;  %423 = vmatprep.mubr.bf16.mxu1 %v884_v12  ;;  %v876_v15 = vld [vmem:[%s1182_s1 + $0x8] sm:$0xff]   ;;  %v877_v16 = vld [vmem:[%s1182_s1 + $0x40] sm:$0xff]   ;;  %v882_v20 = vld [vmem:[%s1183_s0 + $0x90] ss:$12 sps:$4 sm:$0xff]  }
   0x7   :  { %756 = vmatpush3.bf16.msra.mxu0 %v866_v3  ;;  %856 = vmatpush3.bf16.msra.mxu1 %v866_v3  ;;  %v878_v17 = vld [vmem:[%s1182_s1] sm:$0xff]   ;;  %v885_v19 = vld [vmem:[%s1182_s1 + $0x88] sm:$0xff]   ;;  %v896_v28 = vld [vmem:[%s1183_s0 + $0x30] ss:$12 sps:$4 sm:$0xff]  }
   0x8   :  { %757 = vmatprep.subr.bf16.mxu0 %v867_v4  ;;  %849 = vmatprep.subr.bf16.mxu1 %v867_v4  ;;  %v879_v18 = vld [vmem:[%s1183_s0] ss:$12 sps:$4 sm:$0xff]   ;;  %v886_v21 = vld [vmem:[%s1183_s0 + $0x1c] ss:$12 sps:$4 sm:$0xff]   ;;  %v890_v24 = vld [vmem:[%s1183_s0 + $0x18] ss:$12 sps:$4 sm:$0xff]  }
   0x9   :  { %v888_v22 = vld [vmem:[%s1183_s0 + $0xac] ss:$12 sps:$4 sm:$0xff]   ;;  %v892_v23 = vld [vmem:[%s1182_s1 + $0x80] sm:$0xff]   ;;  %v891_v25 = vld [vmem:[%s1183_s0 + $0xa8] ss:$12 sps:$4 sm:$0xff]  }
   0xa   :  { %v893_v26 = vld [vmem:[%s1183_s0 + $0x34] ss:$12 sps:$4 sm:$0xff]   ;;  %v898_v30 = vld [vmem:[%s1183_s0 + $0x4c] ss:$12 sps:$4 sm:$0xff]   ;;  %v902_v33 = vld [vmem:[%s1183_s0 + $0x50] ss:$12 sps:$4 sm:$0xff]  }
   0xb   :  { %758 = vmatpush3.bf16.msra.mxu0 %v868_v5  ;;  %857 = vmatpush3.bf16.msra.mxu1 %v868_v5  ;;  %v895_v27 = vld [vmem:[%s1183_s0 + $0x8] ss:$12 sps:$4 sm:$0xff]   ;;  %v897_v29 = vld [vmem:[%s1183_s0 + $0x20] ss:$12 sps:$4 sm:$0xff]   ;;  %v900_v31 = vld [vmem:[%s1183_s0 + $0x38] ss:$12 sps:$4 sm:$0xff]  }
   0xc   :  { %759 = vmatprep.subr.bf16.mxu0 %v869_v6  ;;  %850 = vmatprep.subr.bf16.mxu1 %v869_v6  ;;  %v901_v32 = vld [vmem:[%s1183_s0 + $0x48] ss:$12 sps:$4 sm:$0xff]   ;;  %v903_v34 = vld [vmem:[%s1183_s0 + $0x64] ss:$12 sps:$4 sm:$0xff]   ;;  %v906_v36 = vld [vmem:[%s1183_s0 + $0x60] ss:$12 sps:$4 sm:$0xff]  }
   0xd   :  { %v905_v35 = vld [vmem:[%s1183_s0 + $0x68] ss:$12 sps:$4 sm:$0xff]   ;;  %v907_v37 = vld [vmem:[%s1183_s0 + $0x80] ss:$12 sps:$4 sm:$0xff]   ;;  %v910_v39 = vld [vmem:[%s1183_s0 + $0x98] ss:$12 sps:$4 sm:$0xff]  }
   0xe   :  { %v908_v38 = vld [vmem:[%s1183_s0 + $0x7c] ss:$12 sps:$4 sm:$0xff]   ;;  %v911_v40 = vld [vmem:[%s1183_s0 + $0x78] ss:$12 sps:$4 sm:$0xff]   ;;  %v1086_v60 = vld [vmem:[%s1184_s2] ss:$0 sm:$0xff] }
   0xf   :  { %760 = vmatpush3.bf16.msra.mxu0 %v870_v7  ;;  %858 = vmatpush3.bf16.msra.mxu1 %v870_v7  ;;  %v912_v41 = vld [vmem:[%s1183_s0 + $0xb0] ss:$12 sps:$4 sm:$0xff]  }
  0x10   :  { %761 = vmatprep.subr.bf16.mxu0 %v871_v8  ;;  %851 = vmatprep.subr.bf16.mxu1 %v871_v8 }
  0x13   :  { %762 = vmatpush3.bf16.msra.mxu0 %v872_v9  ;;  %859 = vmatpush3.bf16.msra.mxu1 %v872_v9 }
  0x14   :  { %763 = vmatprep.subr.bf16.mxu0 %v873_v10  ;;  %852 = vmatprep.subr.bf16.mxu1 %v873_v10 }
  0x17   :  { %764 = vmatpush3.bf16.msra.mxu0 %v874_v13  ;;  %860 = vmatpush3.bf16.msra.mxu1 %v874_v13 }
  0x18   :  { %765 = vmatprep.subr.bf16.mxu0 %v875_v14  ;;  %853 = vmatprep.subr.bf16.mxu1 %v875_v14 }
  0x1b   :  { %766 = vmatpush3.bf16.msra.mxu0 %v876_v15  ;;  %861 = vmatpush3.bf16.msra.mxu1 %v876_v15 }
  0x1c   :  { %767 = vmatprep.subr.bf16.mxu0 %v877_v16  ;;  %854 = vmatprep.subr.bf16.mxu1 %v877_v16 }
  0x1f   :  { %768 = vmatpush3.bf16.msra.mxu0 %v878_v17  ;;  %862 = vmatpush3.bf16.msra.mxu1 %v878_v17 }
  0x20   :  { %827 = vmatprep.subr.bf16.mxu1 %v885_v19 }
  0x22   :  { %376 = vmatmul.mubr.bf16.vlgmr.msra.gmra.mxu0 %v879_v18  ;;  %424 = vmatmul.mubr.bf16.vlgmr.msra.gmra.mxu1 %v882_v20 }
  0x23   :  { %828 = vmatpush3.bf16.msra.mxu1 %v885_v19  ;;  %383 = vmatprep.mubr.bf16.mxu0 %v886_v21 }
  0x24   :  { %431 = vmatprep.mubr.bf16.mxu1 %v888_v22  ;;  %829 = vmatprep.subr.bf16.mxu1 %v892_v23 }
  0x27   :  { %830 = vmatpush3.bf16.msra.mxu1 %v892_v23 }
  0x2a   :  { %384 = vmatmul.mubr.bf16.gmra.mxu0 %v890_v24  ;;  %432 = vmatmul.mubr.bf16.gmra.mxu1 %v891_v25 }
  0x2b   :  { %391 = vmatprep.mubr.bf16.mxu0 %v893_v26  ;;  %831 = vmatprep.mubr.msk.bf16.mxu1 %vm318_vm0, %v895_v27 }
  0x32   :  { %392 = vmatmul.mubr.bf16.gmra.mxu0 %v896_v28  ;;  %832 = vmatmul.mubr.msk.bf16.vlgmr.msra.gmra.mxu1 %vm318_vm0, %v897_v29 }
  0x33   :  { %399 = vmatprep.mubr.bf16.mxu0 %v898_v30  ;;  %835 = vmatprep.mubr.msk.bf16.mxu1 %vm318_vm0, %v900_v31 }
  0x3a   :  { %400 = vmatmul.mubr.bf16.gmra.mxu0 %v901_v32  ;;  %836 = vmatmul.mubr.msk.bf16.gmra.mxu1 %vm318_vm0, %v902_v33 }
  0x3b   :  { %407 = vmatprep.mubr.bf16.mxu0 %v903_v34  ;;  %839 = vmatprep.mubr.msk.bf16.mxu1 %vm318_vm0, %v905_v35 }
  0x42   :  { %408 = vmatmul.mubr.bf16.gmra.mxu0 %v906_v36  ;;  %840 = vmatmul.mubr.msk.bf16.gmra.mxu1 %vm318_vm0, %v907_v37 }
  0x43   :  { %415 = vmatprep.mubr.bf16.mxu0 %v908_v38  ;;  %843 = vmatprep.mubr.msk.bf16.mxu1 %vm318_vm0, %v910_v39 }
  0x4a   :  { %416 = vmatmul.mubr.bf16.gmra.mxu0 %v911_v40  ;;  %844 = vmatmul.mubr.msk.bf16.gmra.mxu1 %vm318_vm0, %v912_v41 }
  0xe2   :  { %v769_v42 = vpop.f32.mrf.mxu0  ;;  %v1067_v43 = vpop.f32.mrf.mxu1 }
  0xe4   :  { %v770_v44 = vpop.f32.mrf.mxu0  ;;  %v1069_v45 = vpop.f32.mrf.mxu1 }
  0xe5   :  { %v771_v57 = vadd.f32 %v770_v44, %v769_v42 }
  0xe6   :  { %v772_v46 = vpop.f32.mrf.mxu0  ;;  %v1071_v47 = vpop.f32.mrf.mxu1 }
  0xe7   :  { %v378_v2 = vadd.f32 %v771_v57, %v1086_v60 }
  0xe8   :  { %v773_v48 = vpop.f32.mrf.mxu0  ;;  %v1073_v49 = vpop.f32.mrf.mxu1 }
  0xe9   :  { %v774_v3 = vadd.f32 %v773_v48, %v772_v46 }
  0xea   :  { %v775_v50 = vpop.f32.mrf.mxu0  ;;  %v1075_v51 = vpop.f32.mrf.mxu1 }
  0xeb   :  { %v381_v17 = vadd.f32 %v774_v3, %v1086_v60 }
  0xec   :  { %v776_v52 = vpop.f32.mrf.mxu0  ;;  %v1077_v53 = vpop.f32.mrf.mxu1 }
  0xed   :  { %v777_v54 = vadd.f32 %v776_v52, %v775_v50 }
  0xee   :  { %v778_v55 = vpop.f32.mrf.mxu0  ;;  %v1079_v56 = vpop.f32.mrf.mxu1 }
  0xef   :  { %v386_v62 = vadd.f32 %v777_v54, %v1086_v60 }
  0xf0   :  { %v779_v58 = vpop.f32.mrf.mxu0  ;;  %v1081_v59 = vpop.f32.mrf.mxu1 }
  0xf1   :  { %v780_v61 = vadd.f32 %v779_v58, %v778_v55 }
  0xf2   :  { %v781_v63 = vpop.f32.mrf.mxu0  ;;  %v833_v0 = vpop.f32.mrf.mxu1 }
  0xf3   :  { %v483_v1 = vadd.f32 %v833_v0, %v386_v62  ;;  %v389_v8 = vadd.f32 %v780_v61, %v1086_v60  ;;  %v813_v0 = vadd.f32 %v1077_v53, %v1075_v51 }
  0xf4   :  { %v782_v4 = vpop.f32.mrf.mxu0  ;;  %v474_v5 = vpop.f32.mrf.mxu1 }
  0xf5   :  { %vm539_vm1 = vcmp.ge.f32.partialorder %v483_v1, 0.0  ;;  %v555_v6 = vmul.f32 0.2, %v483_v1  ;;  %v475_v7 = vadd.f32 %v474_v5, %v378_v2  ;;  %v783_v9 = vadd.f32 %v782_v4, %v781_v63 }
  0xf6   :  { %v784_v10 = vpop.f32.mrf.mxu0  ;;  %v834_v11 = vpop.f32.mrf.mxu1 }
  0xf7   :  { %v571_v12 = vsel %vm539_vm1, %v483_v1, %v555_v6  ;;  %vm537_vm3 = vcmp.ge.f32.partialorder %v475_v7, 0.0  ;;  %v553_v13 = vmul.f32 0.2, %v475_v7  ;;  %v486_v14 = vadd.f32 %v834_v11, %v389_v8 }
  0xf8   :  { %v739_v15 = vpack.c.bf16 %v571_v12, %v571_v12  ;;  %v785_v16 = vpop.f32.mrf.mxu0  ;;  %v477_v18 = vpop.f32.mrf.mxu1  ;;  %v394_v27 = vadd.f32 %v783_v9, %v1086_v60  ;;  %v807_v11 = vadd.f32 %v1069_v45, %v1067_v43  ;;  %v816_v12 = vadd.f32 %v1081_v59, %v1079_v56 }
  0xf9   :  { %v569_v19 = vsel %vm537_vm3, %v475_v7, %v553_v13  ;;  %vm540_vm4 = vcmp.ge.f32.partialorder %v486_v14, 0.0  ;;  %v556_v20 = vmul.f32 0.2, %v486_v14  ;;  %v786_v22 = vadd.f32 %v785_v16, %v784_v10 }
  0xfa   :  { %652 = vst.msk [vmem:[%s1185_s3 + $0x8] sm:$0xf] %vm649_vm2, %v739_v15  ;;  %v737_v21 = vpack.c.bf16 %v569_v19, %v569_v19  ;;  %v478_v23 = vadd.f32 %v477_v18, %v381_v17  ;;  %v787_v24 = vpop.f32.mrf.mxu0  ;;  %v837_v25 = vpop.f32.mrf.mxu1  ;;  %v434_v43 = vadd.f32 %v813_v0, %v1086_v60  ;;  %v810_v45 = vadd.f32 %v1073_v49, %v1071_v47 }
  0xfb   :  { %v572_v26 = vsel %vm540_vm4, %v486_v14, %v556_v20  ;;  %v397_v37 = vadd.f32 %v786_v22, %v1086_v60 }
  0xfc   :  { %650 = vst.msk [vmem:[%s1185_s3] sm:$0xf] %vm649_vm2, %v737_v21  ;;  %v740_v28 = vpack.c.bf16 %v572_v26, %v572_v26  ;;  %vm538_vm5 = vcmp.ge.f32.partialorder %v478_v23, 0.0  ;;  %v554_v29 = vmul.f32 0.2, %v478_v23  ;;  %v788_v30 = vpop.f32.mrf.mxu0  ;;  %v490_v31 = vpop.f32.mrf.mxu1  ;;  %v426_v21 = vadd.f32 %v807_v11, %v1086_v60 }
  0xfd   :  { %v789_v32 = vadd.f32 %v788_v30, %v787_v24  ;;  %v491_v33 = vadd.f32 %v490_v31, %v394_v27  ;;  %v429_v30 = vadd.f32 %v810_v45, %v1086_v60 }
  0xfe   :  { %653 = vst.msk [vmem:[%s1185_s3 + $0xc] sm:$0xf] %vm649_vm2, %v740_v28  ;;  %v570_v34 = vsel %vm538_vm5, %v478_v23, %v554_v29  ;;  %v790_v35 = vpop.f32.mrf.mxu0  ;;  %v838_v36 = vpop.f32.mrf.mxu1  ;;  %v437_v23 = vadd.f32 %v816_v12, %v1086_v60 }
  0xff   :  { %v738_v38 = vpack.c.bf16 %v570_v34, %v570_v34  ;;  %v402_v39 = vadd.f32 %v789_v32, %v1086_v60  ;;  %vm541_vm6 = vcmp.ge.f32.partialorder %v491_v33, 0.0  ;;  %v557_v40 = vmul.f32 0.2, %v491_v33 }
 0x100   :  { %v791_v41 = vpop.f32.mrf.mxu0  ;;  %v493_v42 = vpop.f32.mrf.mxu1 }
 0x101   :  { %651 = vst.msk [vmem:[%s1185_s3 + $0x4] sm:$0xf] %vm649_vm2, %v738_v38  ;;  %v499_v44 = vadd.f32 %v837_v25, %v402_v39  ;;  %v573_v46 = vsel %vm541_vm6, %v491_v33, %v557_v40  ;;  %v792_v48 = vadd.f32 %v791_v41, %v790_v35  ;;  %v494_v50 = vadd.f32 %v493_v42, %v397_v37 }
 0x102   :  { %v741_v52 = vpack.c.bf16 %v573_v46, %v573_v46  ;;  %v793_v54 = vpop.f32.mrf.mxu0  ;;  %v1111_v55 = vpop.f32.mrf.mxu1 }
 0x103   :  { %vm543_vm7 = vcmp.ge.f32.partialorder %v499_v44, 0.0  ;;  %v559_v57 = vmul.f32 0.2, %v499_v44  ;;  %v405_v58 = vadd.f32 %v792_v48, %v1086_v60  ;;  %vm542_vm8 = vcmp.ge.f32.partialorder %v494_v50, 0.0 }
 0x104   :  { %654 = vst.msk [vmem:[%s1185_s3 + $0x10] sm:$0xf] %vm649_vm2, %v741_v52  ;;  %v558_v61 = vmul.f32 0.2, %v494_v50  ;;  %v794_v62 = vpop.f32.mrf.mxu0  ;;  %v506_v63 = vpop.f32.mrf.mxu1 }
 0x105   :  { %v575_v1 = vsel %vm543_vm7, %v499_v44, %v559_v57  ;;  %v502_v2 = vadd.f32 %v838_v36, %v405_v58  ;;  %v795_v3 = vadd.f32 %v794_v62, %v793_v54 }
 0x106   :  { %v743_v4 = vpack.c.bf16 %v575_v1, %v575_v1  ;;  %v574_v5 = vsel %vm542_vm8, %v494_v50, %v558_v61  ;;  %v796_v6 = vpop.f32.mrf.mxu0  ;;  %v1120_v7 = vpop.f32.mrf.mxu1 }
 0x107   :  { %vm544_vm9 = vcmp.ge.f32.partialorder %v502_v2, 0.0  ;;  %v560_v8 = vmul.f32 0.2, %v502_v2  ;;  %v742_v9 = vpack.c.bf16 %v574_v5, %v574_v5  ;;  %v410_v10 = vadd.f32 %v795_v3, %v1086_v60 }
 0x108   :  { %656 = vst.msk [vmem:[%s1185_s3 + $0x18] sm:$0xf] %vm649_vm2, %v743_v4  ;;  %v797_v51 = vpop.f32.mrf.mxu0  ;;  %v509_v53 = vpop.f32.mrf.mxu1 }
 0x109   :  { %v576_v13 = vsel %vm544_vm9, %v502_v2, %v560_v8  ;;  %655 = vst.msk [vmem:[%s1185_s3 + $0x14] sm:$0xf] %vm649_vm2, %v742_v9  ;;  %v507_v14 = vadd.f32 %v506_v63, %v410_v10  ;;  %v798_v15 = vadd.f32 %v797_v51, %v796_v6 }
 0x10a   :  { %v744_v56 = vpack.c.bf16 %v576_v13, %v576_v13  ;;  %v799_v59 = vpop.f32.mrf.mxu0  ;;  %v845_v16 = vpop.f32.mrf.mxu1 }
 0x10b   :  { %vm545_vm10 = vcmp.ge.f32.partialorder %v507_v14, 0.0  ;;  %v561_v17 = vmul.f32 0.2, %v507_v14  ;;  %v413_v18 = vadd.f32 %v798_v15, %v1086_v60  ;;  %v531_v19 = vadd.f32 %v845_v16, %v434_v43 }
 0x10c   :  { %657 = vst.msk [vmem:[%s1185_s3 + $0x1c] sm:$0xf] %vm649_vm2, %v744_v56  ;;  %v800_v20 = vpop.f32.mrf.mxu0  ;;  %v522_v22 = vpop.f32.mrf.mxu1 }
 0x10d   :  { %v577_v47 = vsel %vm545_vm10, %v507_v14, %v561_v17  ;;  %v510_v49 = vadd.f32 %v509_v53, %v413_v18  ;;  %vm551_vm11 = vcmp.ge.f32.partialorder %v531_v19, 0.0  ;;  %v567_v24 = vmul.f32 0.2, %v531_v19 }
 0x10e   :  { %v745_v25 = vpack.c.bf16 %v577_v47, %v577_v47  ;;  %v801_v26 = vadd.f32 %v800_v20, %v799_v59  ;;  %v523_v27 = vadd.f32 %v522_v22, %v426_v21  ;;  %v802_v28 = vpop.f32.mrf.mxu0  ;;  %v846_v29 = vpop.f32.mrf.mxu1 }
 0x10f   :  { %vm546_vm12 = vcmp.ge.f32.partialorder %v510_v49, 0.0  ;;  %v562_v31 = vmul.f32 0.2, %v510_v49  ;;  %v583_v32 = vsel %vm551_vm11, %v531_v19, %v567_v24  ;;  %v534_v33 = vadd.f32 %v846_v29, %v437_v23 }
 0x110   :  { %658 = vst.msk [vmem:[%s1185_s3 + $0x20] sm:$0xf] %vm649_vm2, %v745_v25  ;;  %v751_v34 = vpack.c.bf16 %v583_v32, %v583_v32  ;;  %v418_v35 = vadd.f32 %v801_v26, %v1086_v60  ;;  %vm549_vm13 = vcmp.ge.f32.partialorder %v523_v27, 0.0  ;;  %v565_v36 = vmul.f32 0.2, %v523_v27  ;;  %v803_v37 = vpop.f32.mrf.mxu0  ;;  %v525_v38 = vpop.f32.mrf.mxu1 }
 0x111   :  { %v578_v39 = vsel %vm546_vm12, %v510_v49, %v562_v31  ;;  %vm552_vm14 = vcmp.ge.f32.partialorder %v534_v33, 0.0  ;;  %v568_v40 = vmul.f32 0.2, %v534_v33  ;;  %v804_v41 = vadd.f32 %v803_v37, %v802_v28 }
 0x112   :  { %v746_v42 = vpack.c.bf16 %v578_v39, %v578_v39  ;;  %664 = vst.msk [vmem:[%s1185_s3 + $0x38] sm:$0xf] %vm649_vm2, %v751_v34  ;;  %v515_v44 = vadd.f32 %v1111_v55, %v418_v35  ;;  %v581_v46 = vsel %vm549_vm13, %v523_v27, %v565_v36  ;;  %v526_v48 = vadd.f32 %v525_v38, %v429_v30 }
 0x113   :  { %v749_v50 = vpack.c.bf16 %v581_v46, %v581_v46  ;;  %v584_v52 = vsel %vm552_vm14, %v534_v33, %v568_v40  ;;  %v421_v54 = vadd.f32 %v804_v41, %v1086_v60 }
 0x114   :  { %659 = vst.msk [vmem:[%s1185_s3 + $0x24] sm:$0xf] %vm649_vm2, %v746_v42  ;;  %vm547_vm15 = vcmp.ge.f32.partialorder %v515_v44, 0.0  ;;  %v563_v57 = vmul.f32 0.2, %v515_v44  ;;  %v752_v58 = vpack.c.bf16 %v584_v52, %v584_v52  ;;  %vm550_vm0 = vcmp.ge.f32.partialorder %v526_v48, 0.0 }
 0x115   :  { %662 = vst.msk [vmem:[%s1185_s3 + $0x30] sm:$0xf] %vm649_vm2, %v749_v50  ;;  %v518_v55 = vadd.f32 %v1120_v7, %v421_v54  ;;  %v566_v61 = vmul.f32 0.2, %v526_v48 }
 0x116   :  { %v579_v62 = vsel %vm547_vm15, %v515_v44, %v563_v57  ;;  %665 = vst.msk [vmem:[%s1185_s3 + $0x3c] sm:$0xf] %vm649_vm2, %v752_v58 }
 0x117   :  { %v747_v60 = vpack.c.bf16 %v579_v62, %v579_v62  ;;  %vm548_vm1 = vcmp.ge.f32.partialorder %v518_v55, 0.0  ;;  %v564_v63 = vmul.f32 0.2, %v518_v55  ;;  %v582_v0 = vsel %vm550_vm0, %v526_v48, %v566_v61 }
 0x118   :  { %v750_v1 = vpack.c.bf16 %v582_v0, %v582_v0 }
 0x119   :  { %660 = vst.msk [vmem:[%s1185_s3 + $0x28] sm:$0xf] %vm649_vm2, %v747_v60  ;;  %v580_v2 = vsel %vm548_vm1, %v518_v55, %v564_v63 }
 0x11a   :  { %v748_v3 = vpack.c.bf16 %v580_v2, %v580_v2  ;;  %663 = vst.msk [vmem:[%s1185_s3 + $0x34] sm:$0xf] %vm649_vm2, %v750_v1 }
 0x11c   :  { %661 = vst.msk [vmem:[%s1185_s3 + $0x2c] sm:$0xf] %vm649_vm2, %v748_v3 }

// kernel: unet_forward.32
= control target key start
LH: loop header
LB: loop body
LE: loop exit
PB: predicated region body
PF: predicated region fallthrough
CT: control target
= control target key end

     0   :  { %vm86_vm0 = vcmask 130048   ;;  %vm272_vm1 = vcmask 257024   ;;  %s503_s1 = inlined_call_operand.vmem [shape: bf16[16,32], index: 1, kind: input, shape index: {}]   ;;  %s504_s0 = inlined_call_operand.vmem [shape: bf16[128,16], index: 0, kind: input, shape index: {}]   ;;  %s505_s2 = inlined_call_operand.vmem [shape: f32[1,32], index: 2, kind: input, shape index: {}]   ;;  %s506_s3 = inlined_call_operand.vmem [shape: bf16[128,32], index: 3, kind: output, shape index: {}]  }
   0x1   :  { %v372_v0 = vld [vmem:[%s503_s1] sm:$0xff]   ;;  %v375_v3 = vld [vmem:[%s504_s0 + $0x8] sm:$0xff]   ;;  %v377_v5 = vld [vmem:[%s504_s0 + $0x10] sm:$0xff]  }
   0x2   :  { %v373_v1 = vld [vmem:[%s504_s0] sm:$0xff]   ;;  %352 = vmatprep.subr.bf16.mxu0 %v372_v0  ;;  %370 = vmatprep.subr.bf16.mxu1 %v372_v0  ;;  %v376_v4 = vld [vmem:[%s504_s0 + $0x28] sm:$0xff]   ;;  %v378_v6 = vld [vmem:[%s504_s0 + $0x30] sm:$0xff]  }
   0x3   :  { %v374_v2 = vld [vmem:[%s504_s0 + $0x20] sm:$0xff]   ;;  %353 = vmatpush3.bf16.msra.mxu0 %v372_v0  ;;  %371 = vmatpush3.bf16.msra.mxu1 %v372_v0  ;;  %v379_v7 = vld [vmem:[%s504_s0 + $0x18] sm:$0xff]  }
   0x4   :  { %354 = vmatprep.mubr.msk.bf16.mxu0 %vm86_vm0, %v373_v1  ;;  %362 = vmatprep.mubr.msk.bf16.mxu1 %vm86_vm0, %v374_v2  ;;  %v380_v8 = vld [vmem:[%s504_s0 + $0x38] sm:$0xff]   ;;  %v293_v9 = vld [vmem:[%s505_s2] ss:$0 sm:$0xff] }
   0x6   :  { %355 = vmatmul.mubr.msk.bf16.vlgmr.msra.gmra.mxu0 %vm86_vm0, %v375_v3  ;;  %363 = vmatmul.mubr.msk.bf16.vlgmr.msra.gmra.mxu1 %vm86_vm0, %v376_v4 }
   0x7   :  { %358 = vmatprep.mubr.msk.bf16.mxu0 %vm86_vm0, %v377_v5  ;;  %366 = vmatprep.mubr.msk.bf16.mxu1 %vm86_vm0, %v378_v6 }
   0xe   :  { %359 = vmatmul.mubr.msk.bf16.gmra.mxu0 %vm86_vm0, %v379_v7  ;;  %367 = vmatmul.mubr.msk.bf16.gmra.mxu1 %vm86_vm0, %v380_v8 }
  0xc6   :  { %v356_v10 = vpop.f32.mrf.mxu0  ;;  %v364_v11 = vpop.f32.mrf.mxu1 }
  0xc7   :  { %v154_v12 = vadd.f32 %v356_v10, %v293_v9  ;;  %v186_v13 = vadd.f32 %v364_v11, %v293_v9 }
  0xc8   :  { %v145_v14 = vpop.f32.mrf.mxu0  ;;  %v177_v15 = vpop.f32.mrf.mxu1 }
  0xc9   :  { %v329_v16 = vpack.c.bf16 %v154_v12, %v154_v12  ;;  %v337_v17 = vpack.c.bf16 %v186_v13, %v186_v13  ;;  %v146_v18 = vadd.f32 %v293_v9, %v145_v14  ;;  %v178_v19 = vadd.f32 %v293_v9, %v177_v15 }
  0xca   :  { %v357_v20 = vpop.f32.mrf.mxu0  ;;  %v365_v21 = vpop.f32.mrf.mxu1 }
  0xcb   :  { %275 = vst.msk [vmem:[%s506_s3 + $0x8] sm:$0xf] %vm272_vm1, %v329_v16  ;;  %283 = vst.msk [vmem:[%s506_s3 + $0x28] sm:$0xf] %vm272_vm1, %v337_v17  ;;  %v327_v22 = vpack.c.bf16 %v146_v18, %v146_v18  ;;  %v335_v23 = vpack.c.bf16 %v178_v19, %v178_v19  ;;  %v157_v24 = vadd.f32 %v357_v20, %v293_v9 }
  0xcc   :  { %v189_v25 = vadd.f32 %v365_v21, %v293_v9  ;;  %v148_v26 = vpop.f32.mrf.mxu0  ;;  %v180_v27 = vpop.f32.mrf.mxu1 }
  0xcd   :  { %273 = vst.msk [vmem:[%s506_s3] sm:$0xf] %vm272_vm1, %v327_v22  ;;  %281 = vst.msk [vmem:[%s506_s3 + $0x20] sm:$0xf] %vm272_vm1, %v335_v23  ;;  %v330_v28 = vpack.c.bf16 %v157_v24, %v157_v24  ;;  %v149_v30 = vadd.f32 %v293_v9, %v148_v26  ;;  %v181_v31 = vadd.f32 %v293_v9, %v180_v27 }
  0xce   :  { %v338_v29 = vpack.c.bf16 %v189_v25, %v189_v25  ;;  %v360_v32 = vpop.f32.mrf.mxu0  ;;  %v368_v33 = vpop.f32.mrf.mxu1 }
  0xcf   :  { %276 = vst.msk [vmem:[%s506_s3 + $0xc] sm:$0xf] %vm272_vm1, %v330_v28  ;;  %v328_v34 = vpack.c.bf16 %v149_v30, %v149_v30  ;;  %v336_v35 = vpack.c.bf16 %v181_v31, %v181_v31  ;;  %v170_v36 = vadd.f32 %v360_v32, %v293_v9  ;;  %v202_v37 = vadd.f32 %v368_v33, %v293_v9 }
  0xd0   :  { %284 = vst.msk [vmem:[%s506_s3 + $0x2c] sm:$0xf] %vm272_vm1, %v338_v29  ;;  %v161_v38 = vpop.f32.mrf.mxu0  ;;  %v193_v39 = vpop.f32.mrf.mxu1 }
  0xd1   :  { %274 = vst.msk [vmem:[%s506_s3 + $0x4] sm:$0xf] %vm272_vm1, %v328_v34  ;;  %282 = vst.msk [vmem:[%s506_s3 + $0x24] sm:$0xf] %vm272_vm1, %v336_v35  ;;  %v333_v40 = vpack.c.bf16 %v170_v36, %v170_v36  ;;  %v341_v41 = vpack.c.bf16 %v202_v37, %v202_v37  ;;  %v162_v42 = vadd.f32 %v293_v9, %v161_v38 }
  0xd2   :  { %v194_v43 = vadd.f32 %v293_v9, %v193_v39  ;;  %v361_v44 = vpop.f32.mrf.mxu0  ;;  %v369_v45 = vpop.f32.mrf.mxu1 }
  0xd3   :  { %279 = vst.msk [vmem:[%s506_s3 + $0x18] sm:$0xf] %vm272_vm1, %v333_v40  ;;  %287 = vst.msk [vmem:[%s506_s3 + $0x38] sm:$0xf] %vm272_vm1, %v341_v41  ;;  %v331_v46 = vpack.c.bf16 %v162_v42, %v162_v42  ;;  %v173_v48 = vadd.f32 %v361_v44, %v293_v9  ;;  %v205_v49 = vadd.f32 %v369_v45, %v293_v9 }
  0xd4   :  { %v339_v47 = vpack.c.bf16 %v194_v43, %v194_v43  ;;  %v164_v50 = vpop.f32.mrf.mxu0  ;;  %v196_v51 = vpop.f32.mrf.mxu1 }
  0xd5   :  { %277 = vst.msk [vmem:[%s506_s3 + $0x10] sm:$0xf] %vm272_vm1, %v331_v46  ;;  %v334_v52 = vpack.c.bf16 %v173_v48, %v173_v48  ;;  %v342_v53 = vpack.c.bf16 %v205_v49, %v205_v49  ;;  %v165_v54 = vadd.f32 %v293_v9, %v164_v50  ;;  %v197_v55 = vadd.f32 %v293_v9, %v196_v51 }
  0xd6   :  { %285 = vst.msk [vmem:[%s506_s3 + $0x30] sm:$0xf] %vm272_vm1, %v339_v47 }
  0xd7   :  { %280 = vst.msk [vmem:[%s506_s3 + $0x1c] sm:$0xf] %vm272_vm1, %v334_v52  ;;  %288 = vst.msk [vmem:[%s506_s3 + $0x3c] sm:$0xf] %vm272_vm1, %v342_v53  ;;  %v332_v56 = vpack.c.bf16 %v165_v54, %v165_v54  ;;  %v340_v57 = vpack.c.bf16 %v197_v55, %v197_v55 }
  0xd9   :  { %278 = vst.msk [vmem:[%s506_s3 + $0x14] sm:$0xf] %vm272_vm1, %v332_v56  ;;  %286 = vst.msk [vmem:[%s506_s3 + $0x34] sm:$0xf] %vm272_vm1, %v340_v57 }

// kernel: unet_forward.33
= control target key start
LH: loop header
LB: loop body
LE: loop exit
PB: predicated region body
PF: predicated region fallthrough
CT: control target
= control target key end

     0   :  { %v1707_v0 = vmov 0   ;;  %vm446_vm0 = vcmask 130048   ;;  %vm1280_vm3 = vcmask 60416   ;;  %s2304_s1 = inlined_call_operand.vmem [shape: bf16[144,8], index: 1, kind: input, shape index: {}]   ;;  %s2305_s0 = inlined_call_operand.vmem [shape: bf16[512,144], index: 0, kind: input, shape index: {}]   ;;  %s2306_s2 = inlined_call_operand.vmem [shape: f32[1,8], index: 2, kind: input, shape index: {}]   ;;  %s2307_s3 = inlined_call_operand.vmem [shape: bf16[512,8], index: 3, kind: output, shape index: {}]  }
   0x1   :  { %543 = vmatprep.subr.bf16.mxu0 %v1707_v0  ;;  %1583 = vmatprep.subr.bf16.mxu1 %v1707_v0  ;;  %v1602_v1 = vld [vmem:[%s2304_s1 + $0x38] sm:$0xff]   ;;  %v1603_v2 = vld [vmem:[%s2304_s1 + $0x30] sm:$0xff]   ;;  %v1604_v3 = vld [vmem:[%s2304_s1 + $0x28] sm:$0xff]  }
   0x2   :  { %544 = vmatpush1.bf16.msra.mxu0 %v1602_v1  ;;  %1592 = vmatpush1.bf16.msra.mxu1 %v1602_v1  ;;  %v1605_v4 = vld [vmem:[%s2304_s1 + $0x20] sm:$0xff]   ;;  %v1606_v7 = vld [vmem:[%s2304_s1 + $0x18] sm:$0xff]   ;;  %v1607_v8 = vld [vmem:[%s2304_s1 + $0x10] sm:$0xff]  }
   0x3   :  { %545 = vmatprep.subr.bf16.mxu0 %v1707_v0  ;;  %1584 = vmatprep.subr.bf16.mxu1 %v1707_v0  ;;  %v1613_v5 = vld [vmem:[%s2305_s0 + $0x4] ss:$8 sps:$4 sm:$0xff]   ;;  %v1611_v12 = vld [vmem:[%s2305_s0] ss:$8 sps:$4 sm:$0xff]   ;;  %v1617_v14 = vld [vmem:[%s2305_s0 + $0x14] ss:$8 sps:$4 sm:$0xff]  }
   0x4   :  { %v1616_v6 = vld [vmem:[%s2305_s0 + $0x104] ss:$8 sps:$4 sm:$0xff]   ;;  %1423 = vmatprep.mubr.msk.bf16.mxu0 %vm446_vm0, %v1613_v5  ;;  %v1614_v13 = vld [vmem:[%s2305_s0 + $0x100] ss:$8 sps:$4 sm:$0xff]   ;;  %v1619_v15 = vld [vmem:[%s2305_s0 + $0x114] ss:$8 sps:$4 sm:$0xff]  }
   0x5   :  { %1439 = vmatprep.mubr.msk.bf16.mxu1 %vm446_vm0, %v1616_v6  ;;  %v1608_v9 = vld [vmem:[%s2304_s1 + $0x8] sm:$0xff]   ;;  %v1609_v10 = vld [vmem:[%s2304_s1] sm:$0xff]   ;;  %v1621_v16 = vld [vmem:[%s2305_s0 + $0x10] ss:$8 sps:$4 sm:$0xff]  }
   0x6   :  { %546 = vmatpush1.bf16.msra.mxu0 %v1603_v2  ;;  %1593 = vmatpush1.bf16.msra.mxu1 %v1603_v2  ;;  %v1610_v11 = vld [vmem:[%s2304_s1 + $0x40] sm:$0xff]   ;;  %v1622_v17 = vld [vmem:[%s2305_s0 + $0x110] ss:$8 sps:$4 sm:$0xff]   ;;  %v1629_v22 = vld [vmem:[%s2305_s0 + $0x34] ss:$8 sps:$4 sm:$0xff]  }
   0x7   :  { %547 = vmatprep.subr.bf16.mxu0 %v1707_v0  ;;  %1585 = vmatprep.subr.bf16.mxu1 %v1707_v0  ;;  %v1623_v18 = vld [vmem:[%s2305_s0 + $0x24] ss:$8 sps:$4 sm:$0xff]   ;;  %v1627_v20 = vld [vmem:[%s2305_s0 + $0x20] ss:$8 sps:$4 sm:$0xff]   ;;  %v1631_v23 = vld [vmem:[%s2305_s0 + $0x134] ss:$8 sps:$4 sm:$0xff]  }
   0x8   :  { %v1625_v19 = vld [vmem:[%s2305_s0 + $0x124] ss:$8 sps:$4 sm:$0xff]   ;;  %v1628_v21 = vld [vmem:[%s2305_s0 + $0x120] ss:$8 sps:$4 sm:$0xff]   ;;  %v1633_v24 = vld [vmem:[%s2305_s0 + $0x30] ss:$8 sps:$4 sm:$0xff]  }
   0x9   :  { %v1634_v25 = vld [vmem:[%s2305_s0 + $0x130] ss:$8 sps:$4 sm:$0xff]   ;;  %v1635_v26 = vld [vmem:[%s2305_s0 + $0x44] ss:$8 sps:$4 sm:$0xff]   ;;  %v1639_v28 = vld [vmem:[%s2305_s0 + $0x40] ss:$8 sps:$4 sm:$0xff]  }
   0xa   :  { %548 = vmatpush1.bf16.msra.mxu0 %v1604_v3  ;;  %1594 = vmatpush1.bf16.msra.mxu1 %v1604_v3  ;;  %v1637_v27 = vld [vmem:[%s2305_s0 + $0x144] ss:$8 sps:$4 sm:$0xff]   ;;  %v1640_v29 = vld [vmem:[%s2305_s0 + $0x140] ss:$8 sps:$4 sm:$0xff]   ;;  %v1641_v30 = vld [vmem:[%s2305_s0 + $0x54] ss:$8 sps:$4 sm:$0xff]  }
   0xb   :  { %549 = vmatprep.subr.bf16.mxu0 %v1707_v0  ;;  %1586 = vmatprep.subr.bf16.mxu1 %v1707_v0  ;;  %v1643_v31 = vld [vmem:[%s2305_s0 + $0x154] ss:$8 sps:$4 sm:$0xff]   ;;  %v1645_v32 = vld [vmem:[%s2305_s0 + $0x50] ss:$8 sps:$4 sm:$0xff]   ;;  %v1647_v34 = vld [vmem:[%s2305_s0 + $0x64] ss:$8 sps:$4 sm:$0xff]  }
   0xc   :  { %v1646_v33 = vld [vmem:[%s2305_s0 + $0x150] ss:$8 sps:$4 sm:$0xff]   ;;  %v1649_v35 = vld [vmem:[%s2305_s0 + $0x164] ss:$8 sps:$4 sm:$0xff]   ;;  %v1651_v36 = vld [vmem:[%s2305_s0 + $0x60] ss:$8 sps:$4 sm:$0xff]  }
   0xd   :  { %v1652_v37 = vld [vmem:[%s2305_s0 + $0x160] ss:$8 sps:$4 sm:$0xff]   ;;  %v1653_v38 = vld [vmem:[%s2305_s0 + $0x74] ss:$8 sps:$4 sm:$0xff]   ;;  %v1657_v40 = vld [vmem:[%s2305_s0 + $0x70] ss:$8 sps:$4 sm:$0xff]  }
   0xe   :  { %550 = vmatpush1.bf16.msra.mxu0 %v1605_v4  ;;  %1595 = vmatpush1.bf16.msra.mxu1 %v1605_v4  ;;  %v1655_v39 = vld [vmem:[%s2305_s0 + $0x174] ss:$8 sps:$4 sm:$0xff]   ;;  %v1658_v41 = vld [vmem:[%s2305_s0 + $0x170] ss:$8 sps:$4 sm:$0xff]   ;;  %v1659_v42 = vld [vmem:[%s2305_s0 + $0x84] ss:$8 sps:$4 sm:$0xff]  }
   0xf   :  { %551 = vmatprep.subr.bf16.mxu0 %v1707_v0  ;;  %1587 = vmatprep.subr.bf16.mxu1 %v1707_v0  ;;  %v1661_v43 = vld [vmem:[%s2305_s0 + $0x184] ss:$8 sps:$4 sm:$0xff]   ;;  %v1663_v44 = vld [vmem:[%s2305_s0 + $0x80] ss:$8 sps:$4 sm:$0xff]   ;;  %v1665_v46 = vld [vmem:[%s2305_s0 + $0x94] ss:$8 sps:$4 sm:$0xff]  }
  0x10   :  { %v1664_v45 = vld [vmem:[%s2305_s0 + $0x180] ss:$8 sps:$4 sm:$0xff]   ;;  %v1667_v47 = vld [vmem:[%s2305_s0 + $0x194] ss:$8 sps:$4 sm:$0xff]   ;;  %v1669_v48 = vld [vmem:[%s2305_s0 + $0x90] ss:$8 sps:$4 sm:$0xff]  }
  0x11   :  { %v1670_v49 = vld [vmem:[%s2305_s0 + $0x190] ss:$8 sps:$4 sm:$0xff]   ;;  %v1671_v50 = vld [vmem:[%s2305_s0 + $0xa4] ss:$8 sps:$4 sm:$0xff]   ;;  %v1675_v52 = vld [vmem:[%s2305_s0 + $0xa0] ss:$8 sps:$4 sm:$0xff]  }
  0x12   :  { %552 = vmatpush1.bf16.msra.mxu0 %v1606_v7  ;;  %1596 = vmatpush1.bf16.msra.mxu1 %v1606_v7  ;;  %v1673_v51 = vld [vmem:[%s2305_s0 + $0x1a4] ss:$8 sps:$4 sm:$0xff]   ;;  %v1676_v53 = vld [vmem:[%s2305_s0 + $0x1a0] ss:$8 sps:$4 sm:$0xff]   ;;  %v1677_v54 = vld [vmem:[%s2305_s0 + $0xb4] ss:$8 sps:$4 sm:$0xff]  }
  0x13   :  { %553 = vmatprep.subr.bf16.mxu0 %v1707_v0  ;;  %1588 = vmatprep.subr.bf16.mxu1 %v1707_v0  ;;  %v1679_v55 = vld [vmem:[%s2305_s0 + $0x1b4] ss:$8 sps:$4 sm:$0xff]   ;;  %v1681_v56 = vld [vmem:[%s2305_s0 + $0xb0] ss:$8 sps:$4 sm:$0xff]   ;;  %v1683_v58 = vld [vmem:[%s2305_s0 + $0xc4] ss:$8 sps:$4 sm:$0xff]  }
  0x14   :  { %v1682_v57 = vld [vmem:[%s2305_s0 + $0x1b0] ss:$8 sps:$4 sm:$0xff]   ;;  %v1685_v59 = vld [vmem:[%s2305_s0 + $0x1c4] ss:$8 sps:$4 sm:$0xff]   ;;  %v1687_v60 = vld [vmem:[%s2305_s0 + $0xc0] ss:$8 sps:$4 sm:$0xff]  }
  0x15   :  { %v1688_v61 = vld [vmem:[%s2305_s0 + $0x1c0] ss:$8 sps:$4 sm:$0xff]   ;;  %v1689_v62 = vld [vmem:[%s2305_s0 + $0xd4] ss:$8 sps:$4 sm:$0xff]   ;;  %v1694_v1 = vld [vmem:[%s2305_s0 + $0x1d0] ss:$8 sps:$4 sm:$0xff]  }
  0x16   :  { %554 = vmatpush1.bf16.msra.mxu0 %v1607_v8  ;;  %1597 = vmatpush1.bf16.msra.mxu1 %v1607_v8  ;;  %v1691_v63 = vld [vmem:[%s2305_s0 + $0x1d4] ss:$8 sps:$4 sm:$0xff]   ;;  %v1695_v2 = vld [vmem:[%s2305_s0 + $0xe4] ss:$8 sps:$4 sm:$0xff]   ;;  %v1699_v4 = vld [vmem:[%s2305_s0 + $0xe0] ss:$8 sps:$4 sm:$0xff]  }
  0x17   :  { %555 = vmatprep.subr.bf16.mxu0 %v1707_v0  ;;  %1589 = vmatprep.subr.bf16.mxu1 %v1707_v0  ;;  %v1697_v3 = vld [vmem:[%s2305_s0 + $0x1e4] ss:$8 sps:$4 sm:$0xff]   ;;  %v1700_v5 = vld [vmem:[%s2305_s0 + $0x1e0] ss:$8 sps:$4 sm:$0xff]   ;;  %v1701_v6 = vld [vmem:[%s2305_s0 + $0xf4] ss:$8 sps:$4 sm:$0xff]  }
  0x18   :  { %v1703_v7 = vld [vmem:[%s2305_s0 + $0x1f4] ss:$8 sps:$4 sm:$0xff]   ;;  %v1705_v8 = vld [vmem:[%s2305_s0 + $0xf0] ss:$8 sps:$4 sm:$0xff]  }
  0x1a   :  { %556 = vmatpush1.bf16.msra.mxu0 %v1608_v9  ;;  %1598 = vmatpush1.bf16.msra.mxu1 %v1608_v9  ;;  %v1706_v9 = vld [vmem:[%s2305_s0 + $0x1f0] ss:$8 sps:$4 sm:$0xff]  }
  0x1b   :  { %557 = vmatprep.subr.bf16.mxu0 %v1707_v0  ;;  %1590 = vmatprep.subr.bf16.mxu1 %v1707_v0 }
  0x1e   :  { %558 = vmatpush1.bf16.msra.mxu0 %v1609_v10  ;;  %1599 = vmatpush1.bf16.msra.mxu1 %v1609_v10  ;;  %v1982_v10 = vld [vmem:[%s2306_s2] ss:$0 sm:$0xff] }
  0x1f   :  { %573 = vmatprep.subr.bf16.mxu0 %v1707_v0  ;;  %1591 = vmatprep.subr.bf16.mxu1 %v1707_v0  ;;  %v1693_v0 = vld [vmem:[%s2305_s0 + $0xd0] ss:$8 sps:$4 sm:$0xff]  }
  0x22   :  { %574 = vmatpush2.bf16.msra.mxu0 %v1610_v11  ;;  %1600 = vmatpush2.bf16.msra.mxu1 %v1610_v11 }
  0x25   :  { %576 = vmatmul.mubr.bf16.vlgmr.msra.gmra.mxu0 %v1611_v12  ;;  %704 = vmatmul.mubr.bf16.vlgmr.msra.gmra.mxu1 %v1614_v13 }
  0x26   :  { %1424 = vmatprep.mubr.msk.bf16.mxu0 %vm446_vm0, %v1617_v14  ;;  %1440 = vmatprep.mubr.msk.bf16.mxu1 %vm446_vm0, %v1619_v15 }
  0x2d   :  { %584 = vmatmul.mubr.bf16.gmra.mxu0 %v1621_v16  ;;  %712 = vmatmul.mubr.bf16.gmra.mxu1 %v1622_v17 }
  0x2e   :  { %1425 = vmatprep.mubr.msk.bf16.mxu0 %vm446_vm0, %v1623_v18  ;;  %1441 = vmatprep.mubr.msk.bf16.mxu1 %vm446_vm0, %v1625_v19 }
  0x35   :  { %592 = vmatmul.mubr.bf16.gmra.mxu0 %v1627_v20  ;;  %720 = vmatmul.mubr.bf16.gmra.mxu1 %v1628_v21 }
  0x36   :  { %1426 = vmatprep.mubr.msk.bf16.mxu0 %vm446_vm0, %v1629_v22  ;;  %1442 = vmatprep.mubr.msk.bf16.mxu1 %vm446_vm0, %v1631_v23 }
  0x3d   :  { %600 = vmatmul.mubr.bf16.gmra.mxu0 %v1633_v24  ;;  %728 = vmatmul.mubr.bf16.gmra.mxu1 %v1634_v25 }
  0x3e   :  { %1427 = vmatprep.mubr.msk.bf16.mxu0 %vm446_vm0, %v1635_v26  ;;  %1443 = vmatprep.mubr.msk.bf16.mxu1 %vm446_vm0, %v1637_v27 }
  0x45   :  { %608 = vmatmul.mubr.bf16.gmra.mxu0 %v1639_v28  ;;  %736 = vmatmul.mubr.bf16.gmra.mxu1 %v1640_v29 }
  0x46   :  { %1428 = vmatprep.mubr.msk.bf16.mxu0 %vm446_vm0, %v1641_v30  ;;  %1444 = vmatprep.mubr.msk.bf16.mxu1 %vm446_vm0, %v1643_v31 }
  0x4d   :  { %616 = vmatmul.mubr.bf16.gmra.mxu0 %v1645_v32  ;;  %744 = vmatmul.mubr.bf16.gmra.mxu1 %v1646_v33 }
  0x4e   :  { %1429 = vmatprep.mubr.msk.bf16.mxu0 %vm446_vm0, %v1647_v34  ;;  %1445 = vmatprep.mubr.msk.bf16.mxu1 %vm446_vm0, %v1649_v35 }
  0x55   :  { %624 = vmatmul.mubr.bf16.gmra.mxu0 %v1651_v36  ;;  %752 = vmatmul.mubr.bf16.gmra.mxu1 %v1652_v37 }
  0x56   :  { %1430 = vmatprep.mubr.msk.bf16.mxu0 %vm446_vm0, %v1653_v38  ;;  %1446 = vmatprep.mubr.msk.bf16.mxu1 %vm446_vm0, %v1655_v39 }
  0x5d   :  { %632 = vmatmul.mubr.bf16.gmra.mxu0 %v1657_v40  ;;  %760 = vmatmul.mubr.bf16.gmra.mxu1 %v1658_v41 }
  0x5e   :  { %1431 = vmatprep.mubr.msk.bf16.mxu0 %vm446_vm0, %v1659_v42  ;;  %1447 = vmatprep.mubr.msk.bf16.mxu1 %vm446_vm0, %v1661_v43 }
  0x65   :  { %640 = vmatmul.mubr.bf16.gmra.mxu0 %v1663_v44  ;;  %768 = vmatmul.mubr.bf16.gmra.mxu1 %v1664_v45 }
  0x66   :  { %1432 = vmatprep.mubr.msk.bf16.mxu0 %vm446_vm0, %v1665_v46  ;;  %1448 = vmatprep.mubr.msk.bf16.mxu1 %vm446_vm0, %v1667_v47 }
  0x6d   :  { %648 = vmatmul.mubr.bf16.gmra.mxu0 %v1669_v48  ;;  %776 = vmatmul.mubr.bf16.gmra.mxu1 %v1670_v49 }
  0x6e   :  { %1433 = vmatprep.mubr.msk.bf16.mxu0 %vm446_vm0, %v1671_v50  ;;  %1449 = vmatprep.mubr.msk.bf16.mxu1 %vm446_vm0, %v1673_v51 }
  0x75   :  { %656 = vmatmul.mubr.bf16.gmra.mxu0 %v1675_v52  ;;  %784 = vmatmul.mubr.bf16.gmra.mxu1 %v1676_v53 }
  0x76   :  { %1434 = vmatprep.mubr.msk.bf16.mxu0 %vm446_vm0, %v1677_v54  ;;  %1450 = vmatprep.mubr.msk.bf16.mxu1 %vm446_vm0, %v1679_v55 }
  0x7d   :  { %664 = vmatmul.mubr.bf16.gmra.mxu0 %v1681_v56  ;;  %792 = vmatmul.mubr.bf16.gmra.mxu1 %v1682_v57 }
  0x7e   :  { %1435 = vmatprep.mubr.msk.bf16.mxu0 %vm446_vm0, %v1683_v58  ;;  %1451 = vmatprep.mubr.msk.bf16.mxu1 %vm446_vm0, %v1685_v59 }
  0x85   :  { %672 = vmatmul.mubr.bf16.gmra.mxu0 %v1687_v60  ;;  %800 = vmatmul.mubr.bf16.gmra.mxu1 %v1688_v61 }
  0x86   :  { %1436 = vmatprep.mubr.msk.bf16.mxu0 %vm446_vm0, %v1689_v62  ;;  %1452 = vmatprep.mubr.msk.bf16.mxu1 %vm446_vm0, %v1691_v63 }
  0x8d   :  { %680 = vmatmul.mubr.bf16.gmra.mxu0 %v1693_v0  ;;  %808 = vmatmul.mubr.bf16.gmra.mxu1 %v1694_v1 }
  0x8e   :  { %1437 = vmatprep.mubr.msk.bf16.mxu0 %vm446_vm0, %v1695_v2  ;;  %1453 = vmatprep.mubr.msk.bf16.mxu1 %vm446_vm0, %v1697_v3 }
  0x95   :  { %688 = vmatmul.mubr.bf16.gmra.mxu0 %v1699_v4  ;;  %816 = vmatmul.mubr.bf16.gmra.mxu1 %v1700_v5 }
  0x96   :  { %1438 = vmatprep.mubr.msk.bf16.mxu0 %vm446_vm0, %v1701_v6  ;;  %1454 = vmatprep.mubr.msk.bf16.mxu1 %vm446_vm0, %v1703_v7 }
  0x9d   :  { %696 = vmatmul.mubr.bf16.gmra.mxu0 %v1705_v8  ;;  %824 = vmatmul.mubr.bf16.gmra.mxu1 %v1706_v9 }
  0xe5   :  { %v577_v11 = vpop.f32.mrf.mxu0  ;;  %v705_v12 = vpop.f32.mrf.mxu1 }
  0xe6   :  { %v578_v13 = vadd.f32 %v1982_v10, %v577_v11  ;;  %v706_v14 = vadd.f32 %v1982_v10, %v705_v12 }
  0xe7   :  { %v579_v15 = vpop.f32.mrf.mxu0  ;;  %v707_v16 = vpop.f32.mrf.mxu1 }
  0xe8   :  { %vm832_vm1 = vcmp.ge.f32.partialorder %v578_v13, 0.0  ;;  %v896_v17 = vmul.f32 0.2, %v578_v13  ;;  %vm864_vm2 = vcmp.ge.f32.partialorder %v706_v14, 0.0  ;;  %v928_v18 = vmul.f32 0.2, %v706_v14 }
  0xe9   :  { %v580_v19 = vpop.f32.mrf.mxu0  ;;  %v708_v20 = vpop.f32.mrf.mxu1 }
  0xea   :  { %v960_v21 = vsel %vm832_vm1, %v578_v13, %v896_v17  ;;  %v992_v22 = vsel %vm864_vm2, %v706_v14, %v928_v18  ;;  %v581_v23 = vadd.f32 %v1982_v10, %v580_v19  ;;  %v709_v24 = vadd.f32 %v1982_v10, %v708_v20 }
  0xeb   :  { %v1519_v25 = vpack.c.bf16 %v960_v21, %v960_v21  ;;  %v1551_v26 = vpack.c.bf16 %v992_v22, %v992_v22  ;;  %v582_v27 = vpop.f32.mrf.mxu0  ;;  %v710_v28 = vpop.f32.mrf.mxu1 }
  0xec   :  { %vm833_vm4 = vcmp.ge.f32.partialorder %v581_v23, 0.0  ;;  %v897_v29 = vmul.f32 0.2, %v581_v23  ;;  %vm865_vm5 = vcmp.ge.f32.partialorder %v709_v24, 0.0  ;;  %v929_v30 = vmul.f32 0.2, %v709_v24 }
  0xed   :  { %1281 = vst.msk [vmem:[%s2307_s3] sm:$0xf] %vm1280_vm3, %v1519_v25  ;;  %1313 = vst.msk [vmem:[%s2307_s3 + $0x80] sm:$0xf] %vm1280_vm3, %v1551_v26  ;;  %v585_v31 = vpop.f32.mrf.mxu0  ;;  %v713_v32 = vpop.f32.mrf.mxu1 }
  0xee   :  { %v961_v33 = vsel %vm833_vm4, %v581_v23, %v897_v29  ;;  %v993_v34 = vsel %vm865_vm5, %v709_v24, %v929_v30  ;;  %v586_v35 = vadd.f32 %v1982_v10, %v585_v31  ;;  %v714_v36 = vadd.f32 %v1982_v10, %v713_v32 }
  0xef   :  { %v1520_v37 = vpack.c.bf16 %v961_v33, %v961_v33  ;;  %v1552_v38 = vpack.c.bf16 %v993_v34, %v993_v34  ;;  %v587_v39 = vpop.f32.mrf.mxu0  ;;  %v715_v40 = vpop.f32.mrf.mxu1 }
  0xf0   :  { %vm834_vm6 = vcmp.ge.f32.partialorder %v586_v35, 0.0  ;;  %v898_v41 = vmul.f32 0.2, %v586_v35  ;;  %vm866_vm7 = vcmp.ge.f32.partialorder %v714_v36, 0.0  ;;  %v930_v42 = vmul.f32 0.2, %v714_v36 }
  0xf1   :  { %1282 = vst.msk [vmem:[%s2307_s3 + $0x4] sm:$0xf] %vm1280_vm3, %v1520_v37  ;;  %1314 = vst.msk [vmem:[%s2307_s3 + $0x84] sm:$0xf] %vm1280_vm3, %v1552_v38  ;;  %v588_v43 = vpop.f32.mrf.mxu0  ;;  %v716_v44 = vpop.f32.mrf.mxu1 }
  0xf2   :  { %v962_v45 = vsel %vm834_vm6, %v586_v35, %v898_v41  ;;  %v994_v46 = vsel %vm866_vm7, %v714_v36, %v930_v42  ;;  %v589_v47 = vadd.f32 %v1982_v10, %v588_v43  ;;  %v717_v48 = vadd.f32 %v1982_v10, %v716_v44 }
  0xf3   :  { %v1521_v49 = vpack.c.bf16 %v962_v45, %v962_v45  ;;  %v1553_v50 = vpack.c.bf16 %v994_v46, %v994_v46  ;;  %v590_v51 = vpop.f32.mrf.mxu0  ;;  %v718_v52 = vpop.f32.mrf.mxu1 }
  0xf4   :  { %vm835_vm8 = vcmp.ge.f32.partialorder %v589_v47, 0.0  ;;  %v899_v53 = vmul.f32 0.2, %v589_v47  ;;  %vm867_vm9 = vcmp.ge.f32.partialorder %v717_v48, 0.0  ;;  %v931_v54 = vmul.f32 0.2, %v717_v48 }
  0xf5   :  { %1283 = vst.msk [vmem:[%s2307_s3 + $0x8] sm:$0xf] %vm1280_vm3, %v1521_v49  ;;  %1315 = vst.msk [vmem:[%s2307_s3 + $0x88] sm:$0xf] %vm1280_vm3, %v1553_v50  ;;  %v593_v55 = vpop.f32.mrf.mxu0  ;;  %v721_v56 = vpop.f32.mrf.mxu1 }
  0xf6   :  { %v963_v57 = vsel %vm835_vm8, %v589_v47, %v899_v53  ;;  %v995_v58 = vsel %vm867_vm9, %v717_v48, %v931_v54  ;;  %v594_v59 = vadd.f32 %v1982_v10, %v593_v55  ;;  %v722_v60 = vadd.f32 %v1982_v10, %v721_v56 }
  0xf7   :  { %v1522_v61 = vpack.c.bf16 %v963_v57, %v963_v57  ;;  %v1554_v62 = vpack.c.bf16 %v995_v58, %v995_v58  ;;  %v595_v63 = vpop.f32.mrf.mxu0  ;;  %v723_v0 = vpop.f32.mrf.mxu1 }
  0xf8   :  { %vm836_vm10 = vcmp.ge.f32.partialorder %v594_v59, 0.0  ;;  %v900_v1 = vmul.f32 0.2, %v594_v59  ;;  %vm868_vm11 = vcmp.ge.f32.partialorder %v722_v60, 0.0  ;;  %v932_v2 = vmul.f32 0.2, %v722_v60 }
  0xf9   :  { %1284 = vst.msk [vmem:[%s2307_s3 + $0xc] sm:$0xf] %vm1280_vm3, %v1522_v61  ;;  %1316 = vst.msk [vmem:[%s2307_s3 + $0x8c] sm:$0xf] %vm1280_vm3, %v1554_v62  ;;  %v596_v3 = vpop.f32.mrf.mxu0  ;;  %v724_v4 = vpop.f32.mrf.mxu1 }
  0xfa   :  { %v964_v5 = vsel %vm836_vm10, %v594_v59, %v900_v1  ;;  %v996_v6 = vsel %vm868_vm11, %v722_v60, %v932_v2  ;;  %v597_v7 = vadd.f32 %v1982_v10, %v596_v3  ;;  %v725_v8 = vadd.f32 %v1982_v10, %v724_v4 }
  0xfb   :  { %v1523_v9 = vpack.c.bf16 %v964_v5, %v964_v5  ;;  %v1555_v11 = vpack.c.bf16 %v996_v6, %v996_v6  ;;  %v598_v12 = vpop.f32.mrf.mxu0  ;;  %v726_v13 = vpop.f32.mrf.mxu1 }
  0xfc   :  { %vm837_vm12 = vcmp.ge.f32.partialorder %v597_v7, 0.0  ;;  %v901_v14 = vmul.f32 0.2, %v597_v7  ;;  %vm869_vm13 = vcmp.ge.f32.partialorder %v725_v8, 0.0  ;;  %v933_v15 = vmul.f32 0.2, %v725_v8 }
  0xfd   :  { %1285 = vst.msk [vmem:[%s2307_s3 + $0x10] sm:$0xf] %vm1280_vm3, %v1523_v9  ;;  %1317 = vst.msk [vmem:[%s2307_s3 + $0x90] sm:$0xf] %vm1280_vm3, %v1555_v11  ;;  %v601_v16 = vpop.f32.mrf.mxu0  ;;  %v729_v17 = vpop.f32.mrf.mxu1 }
  0xfe   :  { %v965_v18 = vsel %vm837_vm12, %v597_v7, %v901_v14  ;;  %v997_v19 = vsel %vm869_vm13, %v725_v8, %v933_v15  ;;  %v602_v20 = vadd.f32 %v1982_v10, %v601_v16  ;;  %v730_v21 = vadd.f32 %v1982_v10, %v729_v17 }
  0xff   :  { %v1524_v22 = vpack.c.bf16 %v965_v18, %v965_v18  ;;  %v1556_v23 = vpack.c.bf16 %v997_v19, %v997_v19  ;;  %v603_v24 = vpop.f32.mrf.mxu0  ;;  %v731_v25 = vpop.f32.mrf.mxu1 }
 0x100   :  { %vm838_vm14 = vcmp.ge.f32.partialorder %v602_v20, 0.0  ;;  %v902_v26 = vmul.f32 0.2, %v602_v20  ;;  %vm870_vm15 = vcmp.ge.f32.partialorder %v730_v21, 0.0  ;;  %v934_v27 = vmul.f32 0.2, %v730_v21 }
 0x101   :  { %1286 = vst.msk [vmem:[%s2307_s3 + $0x14] sm:$0xf] %vm1280_vm3, %v1524_v22  ;;  %1318 = vst.msk [vmem:[%s2307_s3 + $0x94] sm:$0xf] %vm1280_vm3, %v1556_v23  ;;  %v604_v28 = vpop.f32.mrf.mxu0  ;;  %v732_v29 = vpop.f32.mrf.mxu1 }
 0x102   :  { %v966_v30 = vsel %vm838_vm14, %v602_v20, %v902_v26  ;;  %v998_v31 = vsel %vm870_vm15, %v730_v21, %v934_v27  ;;  %v605_v32 = vadd.f32 %v1982_v10, %v604_v28  ;;  %v733_v33 = vadd.f32 %v1982_v10, %v732_v29 }
 0x103   :  { %v1525_v34 = vpack.c.bf16 %v966_v30, %v966_v30  ;;  %v1557_v35 = vpack.c.bf16 %v998_v31, %v998_v31  ;;  %v606_v36 = vpop.f32.mrf.mxu0  ;;  %v734_v37 = vpop.f32.mrf.mxu1 }
 0x104   :  { %vm839_vm0 = vcmp.ge.f32.partialorder %v605_v32, 0.0  ;;  %v903_v38 = vmul.f32 0.2, %v605_v32  ;;  %vm871_vm1 = vcmp.ge.f32.partialorder %v733_v33, 0.0  ;;  %v935_v39 = vmul.f32 0.2, %v733_v33 }
 0x105   :  { %1287 = vst.msk [vmem:[%s2307_s3 + $0x18] sm:$0xf] %vm1280_vm3, %v1525_v34  ;;  %1319 = vst.msk [vmem:[%s2307_s3 + $0x98] sm:$0xf] %vm1280_vm3, %v1557_v35  ;;  %v609_v40 = vpop.f32.mrf.mxu0  ;;  %v737_v41 = vpop.f32.mrf.mxu1 }
 0x106   :  { %v967_v42 = vsel %vm839_vm0, %v605_v32, %v903_v38  ;;  %v999_v43 = vsel %vm871_vm1, %v733_v33, %v935_v39  ;;  %v610_v44 = vadd.f32 %v1982_v10, %v609_v40  ;;  %v738_v45 = vadd.f32 %v1982_v10, %v737_v41 }
 0x107   :  { %v1526_v46 = vpack.c.bf16 %v967_v42, %v967_v42  ;;  %v1558_v47 = vpack.c.bf16 %v999_v43, %v999_v43  ;;  %v611_v48 = vpop.f32.mrf.mxu0  ;;  %v739_v49 = vpop.f32.mrf.mxu1 }
 0x108   :  { %vm840_vm2 = vcmp.ge.f32.partialorder %v610_v44, 0.0  ;;  %v904_v50 = vmul.f32 0.2, %v610_v44  ;;  %vm872_vm4 = vcmp.ge.f32.partialorder %v738_v45, 0.0  ;;  %v936_v51 = vmul.f32 0.2, %v738_v45 }
 0x109   :  { %1288 = vst.msk [vmem:[%s2307_s3 + $0x1c] sm:$0xf] %vm1280_vm3, %v1526_v46  ;;  %1320 = vst.msk [vmem:[%s2307_s3 + $0x9c] sm:$0xf] %vm1280_vm3, %v1558_v47  ;;  %v612_v52 = vpop.f32.mrf.mxu0  ;;  %v740_v53 = vpop.f32.mrf.mxu1 }
 0x10a   :  { %v968_v54 = vsel %vm840_vm2, %v610_v44, %v904_v50  ;;  %v1000_v55 = vsel %vm872_vm4, %v738_v45, %v936_v51  ;;  %v613_v56 = vadd.f32 %v1982_v10, %v612_v52  ;;  %v741_v57 = vadd.f32 %v1982_v10, %v740_v53 }
 0x10b   :  { %v1527_v58 = vpack.c.bf16 %v968_v54, %v968_v54  ;;  %v1559_v59 = vpack.c.bf16 %v1000_v55, %v1000_v55  ;;  %v614_v60 = vpop.f32.mrf.mxu0  ;;  %v742_v61 = vpop.f32.mrf.mxu1 }
 0x10c   :  { %vm841_vm5 = vcmp.ge.f32.partialorder %v613_v56, 0.0  ;;  %v905_v62 = vmul.f32 0.2, %v613_v56  ;;  %vm873_vm6 = vcmp.ge.f32.partialorder %v741_v57, 0.0  ;;  %v937_v63 = vmul.f32 0.2, %v741_v57 }
 0x10d   :  { %1289 = vst.msk [vmem:[%s2307_s3 + $0x20] sm:$0xf] %vm1280_vm3, %v1527_v58  ;;  %1321 = vst.msk [vmem:[%s2307_s3 + $0xa0] sm:$0xf] %vm1280_vm3, %v1559_v59  ;;  %v617_v0 = vpop.f32.mrf.mxu0  ;;  %v745_v1 = vpop.f32.mrf.mxu1 }
 0x10e   :  { %v969_v2 = vsel %vm841_vm5, %v613_v56, %v905_v62  ;;  %v1001_v3 = vsel %vm873_vm6, %v741_v57, %v937_v63  ;;  %v618_v4 = vadd.f32 %v1982_v10, %v617_v0  ;;  %v746_v5 = vadd.f32 %v1982_v10, %v745_v1 }
 0x10f   :  { %v1528_v6 = vpack.c.bf16 %v969_v2, %v969_v2  ;;  %v1560_v7 = vpack.c.bf16 %v1001_v3, %v1001_v3  ;;  %v619_v8 = vpop.f32.mrf.mxu0  ;;  %v747_v9 = vpop.f32.mrf.mxu1 }
 0x110   :  { %vm842_vm7 = vcmp.ge.f32.partialorder %v618_v4, 0.0  ;;  %v906_v11 = vmul.f32 0.2, %v618_v4  ;;  %vm874_vm8 = vcmp.ge.f32.partialorder %v746_v5, 0.0  ;;  %v938_v12 = vmul.f32 0.2, %v746_v5 }
 0x111   :  { %1290 = vst.msk [vmem:[%s2307_s3 + $0x24] sm:$0xf] %vm1280_vm3, %v1528_v6  ;;  %1322 = vst.msk [vmem:[%s2307_s3 + $0xa4] sm:$0xf] %vm1280_vm3, %v1560_v7  ;;  %v620_v13 = vpop.f32.mrf.mxu0  ;;  %v748_v14 = vpop.f32.mrf.mxu1 }
 0x112   :  { %v970_v15 = vsel %vm842_vm7, %v618_v4, %v906_v11  ;;  %v1002_v16 = vsel %vm874_vm8, %v746_v5, %v938_v12  ;;  %v621_v17 = vadd.f32 %v1982_v10, %v620_v13  ;;  %v749_v18 = vadd.f32 %v1982_v10, %v748_v14 }
 0x113   :  { %v1529_v19 = vpack.c.bf16 %v970_v15, %v970_v15  ;;  %v1561_v20 = vpack.c.bf16 %v1002_v16, %v1002_v16  ;;  %v622_v21 = vpop.f32.mrf.mxu0  ;;  %v750_v22 = vpop.f32.mrf.mxu1 }
 0x114   :  { %vm843_vm9 = vcmp.ge.f32.partialorder %v621_v17, 0.0  ;;  %v907_v23 = vmul.f32 0.2, %v621_v17  ;;  %vm875_vm10 = vcmp.ge.f32.partialorder %v749_v18, 0.0  ;;  %v939_v24 = vmul.f32 0.2, %v749_v18 }
 0x115   :  { %1291 = vst.msk [vmem:[%s2307_s3 + $0x28] sm:$0xf] %vm1280_vm3, %v1529_v19  ;;  %1323 = vst.msk [vmem:[%s2307_s3 + $0xa8] sm:$0xf] %vm1280_vm3, %v1561_v20  ;;  %v625_v25 = vpop.f32.mrf.mxu0  ;;  %v753_v26 = vpop.f32.mrf.mxu1 }
 0x116   :  { %v971_v27 = vsel %vm843_vm9, %v621_v17, %v907_v23  ;;  %v1003_v28 = vsel %vm875_vm10, %v749_v18, %v939_v24  ;;  %v626_v29 = vadd.f32 %v1982_v10, %v625_v25  ;;  %v754_v30 = vadd.f32 %v1982_v10, %v753_v26 }
 0x117   :  { %v1530_v31 = vpack.c.bf16 %v971_v27, %v971_v27  ;;  %v1562_v32 = vpack.c.bf16 %v1003_v28, %v1003_v28  ;;  %v627_v33 = vpop.f32.mrf.mxu0  ;;  %v755_v34 = vpop.f32.mrf.mxu1 }
 0x118   :  { %vm844_vm11 = vcmp.ge.f32.partialorder %v626_v29, 0.0  ;;  %v908_v35 = vmul.f32 0.2, %v626_v29  ;;  %vm876_vm12 = vcmp.ge.f32.partialorder %v754_v30, 0.0  ;;  %v940_v36 = vmul.f32 0.2, %v754_v30 }
 0x119   :  { %1292 = vst.msk [vmem:[%s2307_s3 + $0x2c] sm:$0xf] %vm1280_vm3, %v1530_v31  ;;  %1324 = vst.msk [vmem:[%s2307_s3 + $0xac] sm:$0xf] %vm1280_vm3, %v1562_v32  ;;  %v628_v37 = vpop.f32.mrf.mxu0  ;;  %v756_v38 = vpop.f32.mrf.mxu1 }
 0x11a   :  { %v972_v39 = vsel %vm844_vm11, %v626_v29, %v908_v35  ;;  %v1004_v40 = vsel %vm876_vm12, %v754_v30, %v940_v36  ;;  %v629_v41 = vadd.f32 %v1982_v10, %v628_v37  ;;  %v757_v42 = vadd.f32 %v1982_v10, %v756_v38 }
 0x11b   :  { %v1531_v43 = vpack.c.bf16 %v972_v39, %v972_v39  ;;  %v1563_v44 = vpack.c.bf16 %v1004_v40, %v1004_v40  ;;  %v630_v45 = vpop.f32.mrf.mxu0  ;;  %v758_v46 = vpop.f32.mrf.mxu1 }
 0x11c   :  { %vm845_vm13 = vcmp.ge.f32.partialorder %v629_v41, 0.0  ;;  %v909_v47 = vmul.f32 0.2, %v629_v41  ;;  %vm877_vm14 = vcmp.ge.f32.partialorder %v757_v42, 0.0  ;;  %v941_v48 = vmul.f32 0.2, %v757_v42 }
 0x11d   :  { %1293 = vst.msk [vmem:[%s2307_s3 + $0x30] sm:$0xf] %vm1280_vm3, %v1531_v43  ;;  %1325 = vst.msk [vmem:[%s2307_s3 + $0xb0] sm:$0xf] %vm1280_vm3, %v1563_v44  ;;  %v633_v49 = vpop.f32.mrf.mxu0  ;;  %v761_v50 = vpop.f32.mrf.mxu1 }
 0x11e   :  { %v973_v51 = vsel %vm845_vm13, %v629_v41, %v909_v47  ;;  %v1005_v52 = vsel %vm877_vm14, %v757_v42, %v941_v48  ;;  %v634_v53 = vadd.f32 %v1982_v10, %v633_v49  ;;  %v762_v54 = vadd.f32 %v1982_v10, %v761_v50 }
 0x11f   :  { %v1532_v55 = vpack.c.bf16 %v973_v51, %v973_v51  ;;  %v1564_v56 = vpack.c.bf16 %v1005_v52, %v1005_v52  ;;  %v635_v57 = vpop.f32.mrf.mxu0  ;;  %v763_v58 = vpop.f32.mrf.mxu1 }
 0x120   :  { %vm846_vm15 = vcmp.ge.f32.partialorder %v634_v53, 0.0  ;;  %v910_v59 = vmul.f32 0.2, %v634_v53  ;;  %vm878_vm0 = vcmp.ge.f32.partialorder %v762_v54, 0.0  ;;  %v942_v60 = vmul.f32 0.2, %v762_v54 }
 0x121   :  { %1294 = vst.msk [vmem:[%s2307_s3 + $0x34] sm:$0xf] %vm1280_vm3, %v1532_v55  ;;  %1326 = vst.msk [vmem:[%s2307_s3 + $0xb4] sm:$0xf] %vm1280_vm3, %v1564_v56  ;;  %v636_v61 = vpop.f32.mrf.mxu0  ;;  %v764_v62 = vpop.f32.mrf.mxu1 }
 0x122   :  { %v974_v63 = vsel %vm846_vm15, %v634_v53, %v910_v59  ;;  %v1006_v0 = vsel %vm878_vm0, %v762_v54, %v942_v60  ;;  %v637_v1 = vadd.f32 %v1982_v10, %v636_v61  ;;  %v765_v2 = vadd.f32 %v1982_v10, %v764_v62 }
 0x123   :  { %v1533_v3 = vpack.c.bf16 %v974_v63, %v974_v63  ;;  %v1565_v4 = vpack.c.bf16 %v1006_v0, %v1006_v0  ;;  %v638_v5 = vpop.f32.mrf.mxu0  ;;  %v766_v6 = vpop.f32.mrf.mxu1 }
 0x124   :  { %vm847_vm1 = vcmp.ge.f32.partialorder %v637_v1, 0.0  ;;  %v911_v7 = vmul.f32 0.2, %v637_v1  ;;  %vm879_vm2 = vcmp.ge.f32.partialorder %v765_v2, 0.0  ;;  %v943_v8 = vmul.f32 0.2, %v765_v2 }
 0x125   :  { %1295 = vst.msk [vmem:[%s2307_s3 + $0x38] sm:$0xf] %vm1280_vm3, %v1533_v3  ;;  %1327 = vst.msk [vmem:[%s2307_s3 + $0xb8] sm:$0xf] %vm1280_vm3, %v1565_v4  ;;  %v641_v9 = vpop.f32.mrf.mxu0  ;;  %v769_v11 = vpop.f32.mrf.mxu1 }
 0x126   :  { %v975_v12 = vsel %vm847_vm1, %v637_v1, %v911_v7  ;;  %v1007_v13 = vsel %vm879_vm2, %v765_v2, %v943_v8  ;;  %v642_v14 = vadd.f32 %v1982_v10, %v641_v9  ;;  %v770_v15 = vadd.f32 %v1982_v10, %v769_v11 }
 0x127   :  { %v1534_v16 = vpack.c.bf16 %v975_v12, %v975_v12  ;;  %v1566_v17 = vpack.c.bf16 %v1007_v13, %v1007_v13  ;;  %v643_v18 = vpop.f32.mrf.mxu0  ;;  %v771_v19 = vpop.f32.mrf.mxu1 }
 0x128   :  { %vm848_vm4 = vcmp.ge.f32.partialorder %v642_v14, 0.0  ;;  %v912_v20 = vmul.f32 0.2, %v642_v14  ;;  %vm880_vm5 = vcmp.ge.f32.partialorder %v770_v15, 0.0  ;;  %v944_v21 = vmul.f32 0.2, %v770_v15 }
 0x129   :  { %1296 = vst.msk [vmem:[%s2307_s3 + $0x3c] sm:$0xf] %vm1280_vm3, %v1534_v16  ;;  %1328 = vst.msk [vmem:[%s2307_s3 + $0xbc] sm:$0xf] %vm1280_vm3, %v1566_v17  ;;  %v644_v22 = vpop.f32.mrf.mxu0  ;;  %v772_v23 = vpop.f32.mrf.mxu1 }
 0x12a   :  { %v976_v24 = vsel %vm848_vm4, %v642_v14, %v912_v20  ;;  %v1008_v25 = vsel %vm880_vm5, %v770_v15, %v944_v21  ;;  %v645_v26 = vadd.f32 %v1982_v10, %v644_v22  ;;  %v773_v27 = vadd.f32 %v1982_v10, %v772_v23 }
 0x12b   :  { %v1535_v28 = vpack.c.bf16 %v976_v24, %v976_v24  ;;  %v1567_v29 = vpack.c.bf16 %v1008_v25, %v1008_v25  ;;  %v646_v30 = vpop.f32.mrf.mxu0  ;;  %v774_v31 = vpop.f32.mrf.mxu1 }
 0x12c   :  { %vm849_vm6 = vcmp.ge.f32.partialorder %v645_v26, 0.0  ;;  %v913_v32 = vmul.f32 0.2, %v645_v26  ;;  %vm881_vm7 = vcmp.ge.f32.partialorder %v773_v27, 0.0  ;;  %v945_v33 = vmul.f32 0.2, %v773_v27 }
 0x12d   :  { %1297 = vst.msk [vmem:[%s2307_s3 + $0x40] sm:$0xf] %vm1280_vm3, %v1535_v28  ;;  %1329 = vst.msk [vmem:[%s2307_s3 + $0xc0] sm:$0xf] %vm1280_vm3, %v1567_v29  ;;  %v649_v34 = vpop.f32.mrf.mxu0  ;;  %v777_v35 = vpop.f32.mrf.mxu1 }
 0x12e   :  { %v977_v36 = vsel %vm849_vm6, %v645_v26, %v913_v32  ;;  %v1009_v37 = vsel %vm881_vm7, %v773_v27, %v945_v33  ;;  %v650_v38 = vadd.f32 %v1982_v10, %v649_v34  ;;  %v778_v39 = vadd.f32 %v1982_v10, %v777_v35 }
 0x12f   :  { %v1536_v40 = vpack.c.bf16 %v977_v36, %v977_v36  ;;  %v1568_v41 = vpack.c.bf16 %v1009_v37, %v1009_v37  ;;  %v651_v42 = vpop.f32.mrf.mxu0  ;;  %v779_v43 = vpop.f32.mrf.mxu1 }
 0x130   :  { %vm850_vm8 = vcmp.ge.f32.partialorder %v650_v38, 0.0  ;;  %v914_v44 = vmul.f32 0.2, %v650_v38  ;;  %vm882_vm9 = vcmp.ge.f32.partialorder %v778_v39, 0.0  ;;  %v946_v45 = vmul.f32 0.2, %v778_v39 }
 0x131   :  { %1298 = vst.msk [vmem:[%s2307_s3 + $0x44] sm:$0xf] %vm1280_vm3, %v1536_v40  ;;  %1330 = vst.msk [vmem:[%s2307_s3 + $0xc4] sm:$0xf] %vm1280_vm3, %v1568_v41  ;;  %v652_v46 = vpop.f32.mrf.mxu0  ;;  %v780_v47 = vpop.f32.mrf.mxu1 }
 0x132   :  { %v978_v48 = vsel %vm850_vm8, %v650_v38, %v914_v44  ;;  %v1010_v49 = vsel %vm882_vm9, %v778_v39, %v946_v45  ;;  %v653_v50 = vadd.f32 %v1982_v10, %v652_v46  ;;  %v781_v51 = vadd.f32 %v1982_v10, %v780_v47 }
 0x133   :  { %v1537_v52 = vpack.c.bf16 %v978_v48, %v978_v48  ;;  %v1569_v53 = vpack.c.bf16 %v1010_v49, %v1010_v49  ;;  %v654_v54 = vpop.f32.mrf.mxu0  ;;  %v782_v55 = vpop.f32.mrf.mxu1 }
 0x134   :  { %vm851_vm10 = vcmp.ge.f32.partialorder %v653_v50, 0.0  ;;  %v915_v56 = vmul.f32 0.2, %v653_v50  ;;  %vm883_vm11 = vcmp.ge.f32.partialorder %v781_v51, 0.0  ;;  %v947_v57 = vmul.f32 0.2, %v781_v51 }
 0x135   :  { %1299 = vst.msk [vmem:[%s2307_s3 + $0x48] sm:$0xf] %vm1280_vm3, %v1537_v52  ;;  %1331 = vst.msk [vmem:[%s2307_s3 + $0xc8] sm:$0xf] %vm1280_vm3, %v1569_v53  ;;  %v657_v58 = vpop.f32.mrf.mxu0  ;;  %v785_v59 = vpop.f32.mrf.mxu1 }
 0x136   :  { %v979_v60 = vsel %vm851_vm10, %v653_v50, %v915_v56  ;;  %v1011_v61 = vsel %vm883_vm11, %v781_v51, %v947_v57  ;;  %v658_v62 = vadd.f32 %v1982_v10, %v657_v58  ;;  %v786_v63 = vadd.f32 %v1982_v10, %v785_v59 }
 0x137   :  { %v1538_v0 = vpack.c.bf16 %v979_v60, %v979_v60  ;;  %v1570_v1 = vpack.c.bf16 %v1011_v61, %v1011_v61  ;;  %v659_v2 = vpop.f32.mrf.mxu0  ;;  %v787_v3 = vpop.f32.mrf.mxu1 }
 0x138   :  { %vm852_vm12 = vcmp.ge.f32.partialorder %v658_v62, 0.0  ;;  %v916_v4 = vmul.f32 0.2, %v658_v62  ;;  %vm884_vm13 = vcmp.ge.f32.partialorder %v786_v63, 0.0  ;;  %v948_v5 = vmul.f32 0.2, %v786_v63 }
 0x139   :  { %1300 = vst.msk [vmem:[%s2307_s3 + $0x4c] sm:$0xf] %vm1280_vm3, %v1538_v0  ;;  %1332 = vst.msk [vmem:[%s2307_s3 + $0xcc] sm:$0xf] %vm1280_vm3, %v1570_v1  ;;  %v660_v6 = vpop.f32.mrf.mxu0  ;;  %v788_v7 = vpop.f32.mrf.mxu1 }
 0x13a   :  { %v980_v8 = vsel %vm852_vm12, %v658_v62, %v916_v4  ;;  %v1012_v9 = vsel %vm884_vm13, %v786_v63, %v948_v5  ;;  %v661_v11 = vadd.f32 %v1982_v10, %v660_v6  ;;  %v789_v12 = vadd.f32 %v1982_v10, %v788_v7 }
 0x13b   :  { %v1539_v13 = vpack.c.bf16 %v980_v8, %v980_v8  ;;  %v1571_v14 = vpack.c.bf16 %v1012_v9, %v1012_v9  ;;  %v662_v15 = vpop.f32.mrf.mxu0  ;;  %v790_v16 = vpop.f32.mrf.mxu1 }
 0x13c   :  { %vm853_vm14 = vcmp.ge.f32.partialorder %v661_v11, 0.0  ;;  %v917_v17 = vmul.f32 0.2, %v661_v11  ;;  %vm885_vm15 = vcmp.ge.f32.partialorder %v789_v12, 0.0  ;;  %v949_v18 = vmul.f32 0.2, %v789_v12 }
 0x13d   :  { %1301 = vst.msk [vmem:[%s2307_s3 + $0x50] sm:$0xf] %vm1280_vm3, %v1539_v13  ;;  %1333 = vst.msk [vmem:[%s2307_s3 + $0xd0] sm:$0xf] %vm1280_vm3, %v1571_v14  ;;  %v665_v19 = vpop.f32.mrf.mxu0  ;;  %v793_v20 = vpop.f32.mrf.mxu1 }
 0x13e   :  { %v981_v21 = vsel %vm853_vm14, %v661_v11, %v917_v17  ;;  %v1013_v22 = vsel %vm885_vm15, %v789_v12, %v949_v18  ;;  %v666_v23 = vadd.f32 %v1982_v10, %v665_v19  ;;  %v794_v24 = vadd.f32 %v1982_v10, %v793_v20 }
 0x13f   :  { %v1540_v25 = vpack.c.bf16 %v981_v21, %v981_v21  ;;  %v1572_v26 = vpack.c.bf16 %v1013_v22, %v1013_v22  ;;  %v667_v27 = vpop.f32.mrf.mxu0  ;;  %v795_v28 = vpop.f32.mrf.mxu1 }
 0x140   :  { %vm854_vm0 = vcmp.ge.f32.partialorder %v666_v23, 0.0  ;;  %v918_v29 = vmul.f32 0.2, %v666_v23  ;;  %vm886_vm1 = vcmp.ge.f32.partialorder %v794_v24, 0.0  ;;  %v950_v30 = vmul.f32 0.2, %v794_v24 }
 0x141   :  { %1302 = vst.msk [vmem:[%s2307_s3 + $0x54] sm:$0xf] %vm1280_vm3, %v1540_v25  ;;  %1334 = vst.msk [vmem:[%s2307_s3 + $0xd4] sm:$0xf] %vm1280_vm3, %v1572_v26  ;;  %v668_v31 = vpop.f32.mrf.mxu0  ;;  %v796_v32 = vpop.f32.mrf.mxu1 }
 0x142   :  { %v982_v33 = vsel %vm854_vm0, %v666_v23, %v918_v29  ;;  %v1014_v34 = vsel %vm886_vm1, %v794_v24, %v950_v30  ;;  %v669_v35 = vadd.f32 %v1982_v10, %v668_v31  ;;  %v797_v36 = vadd.f32 %v1982_v10, %v796_v32 }
 0x143   :  { %v1541_v37 = vpack.c.bf16 %v982_v33, %v982_v33  ;;  %v1573_v38 = vpack.c.bf16 %v1014_v34, %v1014_v34  ;;  %v670_v39 = vpop.f32.mrf.mxu0  ;;  %v798_v40 = vpop.f32.mrf.mxu1 }
 0x144   :  { %vm855_vm2 = vcmp.ge.f32.partialorder %v669_v35, 0.0  ;;  %v919_v41 = vmul.f32 0.2, %v669_v35  ;;  %vm887_vm4 = vcmp.ge.f32.partialorder %v797_v36, 0.0  ;;  %v951_v42 = vmul.f32 0.2, %v797_v36 }
 0x145   :  { %1303 = vst.msk [vmem:[%s2307_s3 + $0x58] sm:$0xf] %vm1280_vm3, %v1541_v37  ;;  %1335 = vst.msk [vmem:[%s2307_s3 + $0xd8] sm:$0xf] %vm1280_vm3, %v1573_v38  ;;  %v673_v43 = vpop.f32.mrf.mxu0  ;;  %v801_v44 = vpop.f32.mrf.mxu1 }
 0x146   :  { %v983_v45 = vsel %vm855_vm2, %v669_v35, %v919_v41  ;;  %v1015_v46 = vsel %vm887_vm4, %v797_v36, %v951_v42  ;;  %v674_v47 = vadd.f32 %v1982_v10, %v673_v43  ;;  %v802_v48 = vadd.f32 %v1982_v10, %v801_v44 }
 0x147   :  { %v1542_v49 = vpack.c.bf16 %v983_v45, %v983_v45  ;;  %v1574_v50 = vpack.c.bf16 %v1015_v46, %v1015_v46  ;;  %v675_v51 = vpop.f32.mrf.mxu0  ;;  %v803_v52 = vpop.f32.mrf.mxu1 }
 0x148   :  { %vm856_vm5 = vcmp.ge.f32.partialorder %v674_v47, 0.0  ;;  %v920_v53 = vmul.f32 0.2, %v674_v47  ;;  %vm888_vm6 = vcmp.ge.f32.partialorder %v802_v48, 0.0  ;;  %v952_v54 = vmul.f32 0.2, %v802_v48 }
 0x149   :  { %1304 = vst.msk [vmem:[%s2307_s3 + $0x5c] sm:$0xf] %vm1280_vm3, %v1542_v49  ;;  %1336 = vst.msk [vmem:[%s2307_s3 + $0xdc] sm:$0xf] %vm1280_vm3, %v1574_v50  ;;  %v676_v55 = vpop.f32.mrf.mxu0  ;;  %v804_v56 = vpop.f32.mrf.mxu1 }
 0x14a   :  { %v984_v57 = vsel %vm856_vm5, %v674_v47, %v920_v53  ;;  %v1016_v58 = vsel %vm888_vm6, %v802_v48, %v952_v54  ;;  %v677_v59 = vadd.f32 %v1982_v10, %v676_v55  ;;  %v805_v60 = vadd.f32 %v1982_v10, %v804_v56 }
 0x14b   :  { %v1543_v61 = vpack.c.bf16 %v984_v57, %v984_v57  ;;  %v1575_v62 = vpack.c.bf16 %v1016_v58, %v1016_v58  ;;  %v678_v63 = vpop.f32.mrf.mxu0  ;;  %v806_v0 = vpop.f32.mrf.mxu1 }
 0x14c   :  { %vm857_vm7 = vcmp.ge.f32.partialorder %v677_v59, 0.0  ;;  %v921_v1 = vmul.f32 0.2, %v677_v59  ;;  %vm889_vm8 = vcmp.ge.f32.partialorder %v805_v60, 0.0  ;;  %v953_v2 = vmul.f32 0.2, %v805_v60 }
 0x14d   :  { %1305 = vst.msk [vmem:[%s2307_s3 + $0x60] sm:$0xf] %vm1280_vm3, %v1543_v61  ;;  %1337 = vst.msk [vmem:[%s2307_s3 + $0xe0] sm:$0xf] %vm1280_vm3, %v1575_v62  ;;  %v681_v3 = vpop.f32.mrf.mxu0  ;;  %v809_v4 = vpop.f32.mrf.mxu1 }
 0x14e   :  { %v985_v5 = vsel %vm857_vm7, %v677_v59, %v921_v1  ;;  %v1017_v6 = vsel %vm889_vm8, %v805_v60, %v953_v2  ;;  %v682_v7 = vadd.f32 %v1982_v10, %v681_v3  ;;  %v810_v8 = vadd.f32 %v1982_v10, %v809_v4 }
 0x14f   :  { %v1544_v9 = vpack.c.bf16 %v985_v5, %v985_v5  ;;  %v1576_v11 = vpack.c.bf16 %v1017_v6, %v1017_v6  ;;  %v683_v12 = vpop.f32.mrf.mxu0  ;;  %v811_v13 = vpop.f32.mrf.mxu1 }
 0x150   :  { %vm858_vm9 = vcmp.ge.f32.partialorder %v682_v7, 0.0  ;;  %v922_v14 = vmul.f32 0.2, %v682_v7  ;;  %vm890_vm10 = vcmp.ge.f32.partialorder %v810_v8, 0.0  ;;  %v954_v15 = vmul.f32 0.2, %v810_v8 }
 0x151   :  { %1306 = vst.msk [vmem:[%s2307_s3 + $0x64] sm:$0xf] %vm1280_vm3, %v1544_v9  ;;  %1338 = vst.msk [vmem:[%s2307_s3 + $0xe4] sm:$0xf] %vm1280_vm3, %v1576_v11  ;;  %v684_v16 = vpop.f32.mrf.mxu0  ;;  %v812_v17 = vpop.f32.mrf.mxu1 }
 0x152   :  { %v986_v18 = vsel %vm858_vm9, %v682_v7, %v922_v14  ;;  %v1018_v19 = vsel %vm890_vm10, %v810_v8, %v954_v15  ;;  %v685_v20 = vadd.f32 %v1982_v10, %v684_v16  ;;  %v813_v21 = vadd.f32 %v1982_v10, %v812_v17 }
 0x153   :  { %v1545_v22 = vpack.c.bf16 %v986_v18, %v986_v18  ;;  %v1577_v23 = vpack.c.bf16 %v1018_v19, %v1018_v19  ;;  %v686_v24 = vpop.f32.mrf.mxu0  ;;  %v814_v25 = vpop.f32.mrf.mxu1 }
 0x154   :  { %vm859_vm11 = vcmp.ge.f32.partialorder %v685_v20, 0.0  ;;  %v923_v26 = vmul.f32 0.2, %v685_v20  ;;  %vm891_vm12 = vcmp.ge.f32.partialorder %v813_v21, 0.0  ;;  %v955_v27 = vmul.f32 0.2, %v813_v21 }
 0x155   :  { %1307 = vst.msk [vmem:[%s2307_s3 + $0x68] sm:$0xf] %vm1280_vm3, %v1545_v22  ;;  %1339 = vst.msk [vmem:[%s2307_s3 + $0xe8] sm:$0xf] %vm1280_vm3, %v1577_v23  ;;  %v689_v28 = vpop.f32.mrf.mxu0  ;;  %v817_v29 = vpop.f32.mrf.mxu1 }
 0x156   :  { %v987_v30 = vsel %vm859_vm11, %v685_v20, %v923_v26  ;;  %v1019_v31 = vsel %vm891_vm12, %v813_v21, %v955_v27  ;;  %v690_v32 = vadd.f32 %v1982_v10, %v689_v28  ;;  %v818_v33 = vadd.f32 %v1982_v10, %v817_v29 }
 0x157   :  { %v1546_v34 = vpack.c.bf16 %v987_v30, %v987_v30  ;;  %v1578_v35 = vpack.c.bf16 %v1019_v31, %v1019_v31  ;;  %v691_v36 = vpop.f32.mrf.mxu0  ;;  %v819_v37 = vpop.f32.mrf.mxu1 }
 0x158   :  { %vm860_vm13 = vcmp.ge.f32.partialorder %v690_v32, 0.0  ;;  %v924_v38 = vmul.f32 0.2, %v690_v32  ;;  %vm892_vm14 = vcmp.ge.f32.partialorder %v818_v33, 0.0  ;;  %v956_v39 = vmul.f32 0.2, %v818_v33 }
 0x159   :  { %1308 = vst.msk [vmem:[%s2307_s3 + $0x6c] sm:$0xf] %vm1280_vm3, %v1546_v34  ;;  %1340 = vst.msk [vmem:[%s2307_s3 + $0xec] sm:$0xf] %vm1280_vm3, %v1578_v35  ;;  %v692_v40 = vpop.f32.mrf.mxu0  ;;  %v820_v41 = vpop.f32.mrf.mxu1 }
 0x15a   :  { %v988_v42 = vsel %vm860_vm13, %v690_v32, %v924_v38  ;;  %v1020_v43 = vsel %vm892_vm14, %v818_v33, %v956_v39  ;;  %v693_v44 = vadd.f32 %v1982_v10, %v692_v40  ;;  %v821_v45 = vadd.f32 %v1982_v10, %v820_v41 }
 0x15b   :  { %v1547_v46 = vpack.c.bf16 %v988_v42, %v988_v42  ;;  %v1579_v47 = vpack.c.bf16 %v1020_v43, %v1020_v43  ;;  %v694_v48 = vpop.f32.mrf.mxu0  ;;  %v822_v49 = vpop.f32.mrf.mxu1 }
 0x15c   :  { %vm861_vm15 = vcmp.ge.f32.partialorder %v693_v44, 0.0  ;;  %v925_v50 = vmul.f32 0.2, %v693_v44  ;;  %vm893_vm0 = vcmp.ge.f32.partialorder %v821_v45, 0.0  ;;  %v957_v51 = vmul.f32 0.2, %v821_v45 }
 0x15d   :  { %1309 = vst.msk [vmem:[%s2307_s3 + $0x70] sm:$0xf] %vm1280_vm3, %v1547_v46  ;;  %1341 = vst.msk [vmem:[%s2307_s3 + $0xf0] sm:$0xf] %vm1280_vm3, %v1579_v47  ;;  %v697_v52 = vpop.f32.mrf.mxu0  ;;  %v825_v53 = vpop.f32.mrf.mxu1 }
 0x15e   :  { %v989_v54 = vsel %vm861_vm15, %v693_v44, %v925_v50  ;;  %v1021_v55 = vsel %vm893_vm0, %v821_v45, %v957_v51  ;;  %v698_v56 = vadd.f32 %v1982_v10, %v697_v52  ;;  %v826_v57 = vadd.f32 %v1982_v10, %v825_v53 }
 0x15f   :  { %v1548_v58 = vpack.c.bf16 %v989_v54, %v989_v54  ;;  %v1580_v59 = vpack.c.bf16 %v1021_v55, %v1021_v55  ;;  %v699_v60 = vpop.f32.mrf.mxu0  ;;  %v827_v61 = vpop.f32.mrf.mxu1 }
 0x160   :  { %vm862_vm1 = vcmp.ge.f32.partialorder %v698_v56, 0.0  ;;  %v926_v62 = vmul.f32 0.2, %v698_v56  ;;  %vm894_vm2 = vcmp.ge.f32.partialorder %v826_v57, 0.0  ;;  %v958_v63 = vmul.f32 0.2, %v826_v57 }
 0x161   :  { %1310 = vst.msk [vmem:[%s2307_s3 + $0x74] sm:$0xf] %vm1280_vm3, %v1548_v58  ;;  %1342 = vst.msk [vmem:[%s2307_s3 + $0xf4] sm:$0xf] %vm1280_vm3, %v1580_v59  ;;  %v700_v0 = vpop.f32.mrf.mxu0  ;;  %v828_v1 = vpop.f32.mrf.mxu1 }
 0x162   :  { %v990_v2 = vsel %vm862_vm1, %v698_v56, %v926_v62  ;;  %v1022_v3 = vsel %vm894_vm2, %v826_v57, %v958_v63  ;;  %v701_v4 = vadd.f32 %v1982_v10, %v700_v0  ;;  %v829_v5 = vadd.f32 %v1982_v10, %v828_v1 }
 0x163   :  { %v1549_v6 = vpack.c.bf16 %v990_v2, %v990_v2  ;;  %v1581_v7 = vpack.c.bf16 %v1022_v3, %v1022_v3  ;;  %v702_v8 = vpop.f32.mrf.mxu0  ;;  %v830_v9 = vpop.f32.mrf.mxu1 }
 0x164   :  { %vm863_vm4 = vcmp.ge.f32.partialorder %v701_v4, 0.0  ;;  %v927_v11 = vmul.f32 0.2, %v701_v4  ;;  %vm895_vm5 = vcmp.ge.f32.partialorder %v829_v5, 0.0  ;;  %v959_v12 = vmul.f32 0.2, %v829_v5 }
 0x165   :  { %1311 = vst.msk [vmem:[%s2307_s3 + $0x78] sm:$0xf] %vm1280_vm3, %v1549_v6  ;;  %1343 = vst.msk [vmem:[%s2307_s3 + $0xf8] sm:$0xf] %vm1280_vm3, %v1581_v7 }
 0x166   :  { %v991_v13 = vsel %vm863_vm4, %v701_v4, %v927_v11  ;;  %v1023_v10 = vsel %vm895_vm5, %v829_v5, %v959_v12 }
 0x167   :  { %v1550_v14 = vpack.c.bf16 %v991_v13, %v991_v13  ;;  %v1582_v15 = vpack.c.bf16 %v1023_v10, %v1023_v10 }
 0x169   :  { %1312 = vst.msk [vmem:[%s2307_s3 + $0x7c] sm:$0xf] %vm1280_vm3, %v1550_v14  ;;  %1344 = vst.msk [vmem:[%s2307_s3 + $0xfc] sm:$0xf] %vm1280_vm3, %v1582_v15 }

// kernel: unet_forward.35
= control target key start
LH: loop header
LB: loop body
LE: loop exit
PB: predicated region body
PF: predicated region fallthrough
CT: control target
= control target key end

     0   :  { %vm379_vm0 = vcmask 1043456   ;;  %vm282_vm1 = vcmask 588800   ;;  %vm672_vm2 = vcmask 15360   ;;  %s1459_s1 = inlined_call_operand.vmem [shape: bf16[72,2], index: 1, kind: input, shape index: {}]   ;;  %s1460_s0 = inlined_call_operand.vmem [shape: bf16[512,72], index: 0, kind: input, shape index: {}]   ;;  %s1461_s2 = inlined_call_operand.vmem [shape: f32[1,2], index: 2, kind: input, shape index: {}]   ;;  %s1462_s3 = inlined_call_operand.vmem [shape: f32[512,2], index: 3, kind: output, shape index: {}]  }
   0x1   :  { %v934_v0 = vld [vmem:[%s1459_s1 + $0x20] ss:$0 sps:$4 sm:$0xff]   ;;  %v935_v1 = vld [vmem:[%s1459_s1 + $0x18] sm:$0xff]   ;;  %v936_v3 = vld [vmem:[%s1459_s1 + $0x10] sm:$0xff]  }
   0x2   :  { %932 = vmatprep.subr.msk.bf16.mxu0 %vm379_vm0, %v934_v0  ;;  %933 = vmatprep.subr.msk.bf16.mxu1 %vm379_vm0, %v934_v0  ;;  %v381_v2 = vsel %vm379_vm0, %v934_v0, 0  ;;  %v939_v4 = vld [vmem:[%s1460_s0] sm:$0xff]   ;;  %v937_v6 = vld [vmem:[%s1459_s1 + $0x8] sm:$0xff]   ;;  %v943_v10 = vld [vmem:[%s1460_s0 + $0x10] sm:$0xff]  }
   0x3   :  { %849 = vmatpush3.bf16.msra.mxu0 %v381_v2  ;;  %927 = vmatpush3.bf16.msra.mxu1 %v381_v2  ;;  %v940_v5 = vld [vmem:[%s1460_s0 + $0x80] sm:$0xff]   ;;  %v941_v8 = vld [vmem:[%s1460_s0 + $0x8] sm:$0xff]   ;;  %v944_v11 = vld [vmem:[%s1460_s0 + $0x90] sm:$0xff]  }
   0x4   :  { %850 = vmatprep.subr.bf16.mxu0 %v935_v1  ;;  %923 = vmatprep.subr.bf16.mxu1 %v935_v1  ;;  %v938_v7 = vld [vmem:[%s1459_s1] sm:$0xff]   ;;  %v942_v9 = vld [vmem:[%s1460_s0 + $0x88] sm:$0xff]   ;;  %v945_v12 = vld [vmem:[%s1460_s0 + $0x18] sm:$0xff]  }
   0x5   :  { %858 = vmatprep.mubr.msk.bf16.mxu0 %vm282_vm1, %v939_v4  ;;  %890 = vmatprep.mubr.msk.bf16.mxu1 %vm282_vm1, %v940_v5  ;;  %v946_v13 = vld [vmem:[%s1460_s0 + $0x98] sm:$0xff]   ;;  %v947_v14 = vld [vmem:[%s1460_s0 + $0x20] sm:$0xff]   ;;  %v949_v16 = vld [vmem:[%s1460_s0 + $0x28] sm:$0xff]  }
   0x6   :  { %v948_v15 = vld [vmem:[%s1460_s0 + $0xa0] sm:$0xff]   ;;  %v950_v17 = vld [vmem:[%s1460_s0 + $0xa8] sm:$0xff]   ;;  %v951_v18 = vld [vmem:[%s1460_s0 + $0x30] sm:$0xff]  }
   0x7   :  { %851 = vmatpush3.bf16.msra.mxu0 %v935_v1  ;;  %928 = vmatpush3.bf16.msra.mxu1 %v935_v1  ;;  %v952_v19 = vld [vmem:[%s1460_s0 + $0xb0] sm:$0xff]   ;;  %v953_v20 = vld [vmem:[%s1460_s0 + $0x38] sm:$0xff]   ;;  %v955_v22 = vld [vmem:[%s1460_s0 + $0x40] sm:$0xff]  }
   0x8   :  { %852 = vmatprep.subr.bf16.mxu0 %v936_v3  ;;  %924 = vmatprep.subr.bf16.mxu1 %v936_v3  ;;  %v954_v21 = vld [vmem:[%s1460_s0 + $0xb8] sm:$0xff]   ;;  %v956_v23 = vld [vmem:[%s1460_s0 + $0xc0] sm:$0xff]   ;;  %v957_v24 = vld [vmem:[%s1460_s0 + $0x48] sm:$0xff]  }
   0x9   :  { %v958_v25 = vld [vmem:[%s1460_s0 + $0xc8] sm:$0xff]   ;;  %v959_v26 = vld [vmem:[%s1460_s0 + $0x50] sm:$0xff]   ;;  %v961_v28 = vld [vmem:[%s1460_s0 + $0x58] sm:$0xff]  }
   0xa   :  { %v960_v27 = vld [vmem:[%s1460_s0 + $0xd0] sm:$0xff]   ;;  %v962_v29 = vld [vmem:[%s1460_s0 + $0xd8] sm:$0xff]   ;;  %v963_v30 = vld [vmem:[%s1460_s0 + $0x60] sm:$0xff]  }
   0xb   :  { %853 = vmatpush3.bf16.msra.mxu0 %v936_v3  ;;  %929 = vmatpush3.bf16.msra.mxu1 %v936_v3  ;;  %v964_v31 = vld [vmem:[%s1460_s0 + $0xe0] sm:$0xff]   ;;  %v965_v32 = vld [vmem:[%s1460_s0 + $0x68] sm:$0xff]   ;;  %v967_v34 = vld [vmem:[%s1460_s0 + $0x70] sm:$0xff]  }
   0xc   :  { %854 = vmatprep.subr.bf16.mxu0 %v937_v6  ;;  %925 = vmatprep.subr.bf16.mxu1 %v937_v6  ;;  %v966_v33 = vld [vmem:[%s1460_s0 + $0xe8] sm:$0xff]   ;;  %v968_v35 = vld [vmem:[%s1460_s0 + $0xf0] sm:$0xff]   ;;  %v969_v36 = vld [vmem:[%s1460_s0 + $0x78] sm:$0xff]  }
   0xd   :  { %v970_v37 = vld [vmem:[%s1460_s0 + $0xf8] sm:$0xff]   ;;  %v1137_v38 = vld [vmem:[%s1461_s2] ss:$0 sm:$0xff] }
   0xf   :  { %855 = vmatpush3.bf16.msra.mxu0 %v937_v6  ;;  %930 = vmatpush3.bf16.msra.mxu1 %v937_v6 }
  0x10   :  { %856 = vmatprep.subr.bf16.mxu0 %v938_v7  ;;  %926 = vmatprep.subr.bf16.mxu1 %v938_v7 }
  0x13   :  { %857 = vmatpush3.bf16.msra.mxu0 %v938_v7  ;;  %931 = vmatpush3.bf16.msra.mxu1 %v938_v7 }
  0x16   :  { %859 = vmatmul.mubr.msk.bf16.vlgmr.msra.gmra.mxu0 %vm282_vm1, %v941_v8  ;;  %891 = vmatmul.mubr.msk.bf16.vlgmr.msra.gmra.mxu1 %vm282_vm1, %v942_v9 }
  0x17   :  { %862 = vmatprep.mubr.msk.bf16.mxu0 %vm282_vm1, %v943_v10  ;;  %894 = vmatprep.mubr.msk.bf16.mxu1 %vm282_vm1, %v944_v11 }
  0x1e   :  { %863 = vmatmul.mubr.msk.bf16.gmra.mxu0 %vm282_vm1, %v945_v12  ;;  %895 = vmatmul.mubr.msk.bf16.gmra.mxu1 %vm282_vm1, %v946_v13 }
  0x1f   :  { %866 = vmatprep.mubr.msk.bf16.mxu0 %vm282_vm1, %v947_v14  ;;  %898 = vmatprep.mubr.msk.bf16.mxu1 %vm282_vm1, %v948_v15 }
  0x26   :  { %867 = vmatmul.mubr.msk.bf16.gmra.mxu0 %vm282_vm1, %v949_v16  ;;  %899 = vmatmul.mubr.msk.bf16.gmra.mxu1 %vm282_vm1, %v950_v17 }
  0x27   :  { %870 = vmatprep.mubr.msk.bf16.mxu0 %vm282_vm1, %v951_v18  ;;  %902 = vmatprep.mubr.msk.bf16.mxu1 %vm282_vm1, %v952_v19 }
  0x2e   :  { %871 = vmatmul.mubr.msk.bf16.gmra.mxu0 %vm282_vm1, %v953_v20  ;;  %903 = vmatmul.mubr.msk.bf16.gmra.mxu1 %vm282_vm1, %v954_v21 }
  0x2f   :  { %874 = vmatprep.mubr.msk.bf16.mxu0 %vm282_vm1, %v955_v22  ;;  %906 = vmatprep.mubr.msk.bf16.mxu1 %vm282_vm1, %v956_v23 }
  0x36   :  { %875 = vmatmul.mubr.msk.bf16.gmra.mxu0 %vm282_vm1, %v957_v24  ;;  %907 = vmatmul.mubr.msk.bf16.gmra.mxu1 %vm282_vm1, %v958_v25 }
  0x37   :  { %878 = vmatprep.mubr.msk.bf16.mxu0 %vm282_vm1, %v959_v26  ;;  %910 = vmatprep.mubr.msk.bf16.mxu1 %vm282_vm1, %v960_v27 }
  0x3e   :  { %879 = vmatmul.mubr.msk.bf16.gmra.mxu0 %vm282_vm1, %v961_v28  ;;  %911 = vmatmul.mubr.msk.bf16.gmra.mxu1 %vm282_vm1, %v962_v29 }
  0x3f   :  { %882 = vmatprep.mubr.msk.bf16.mxu0 %vm282_vm1, %v963_v30  ;;  %914 = vmatprep.mubr.msk.bf16.mxu1 %vm282_vm1, %v964_v31 }
  0x46   :  { %883 = vmatmul.mubr.msk.bf16.gmra.mxu0 %vm282_vm1, %v965_v32  ;;  %915 = vmatmul.mubr.msk.bf16.gmra.mxu1 %vm282_vm1, %v966_v33 }
  0x47   :  { %886 = vmatprep.mubr.msk.bf16.mxu0 %vm282_vm1, %v967_v34  ;;  %918 = vmatprep.mubr.msk.bf16.mxu1 %vm282_vm1, %v968_v35 }
  0x4e   :  { %887 = vmatmul.mubr.msk.bf16.gmra.mxu0 %vm282_vm1, %v969_v36  ;;  %919 = vmatmul.mubr.msk.bf16.gmra.mxu1 %vm282_vm1, %v970_v37 }
  0xd6   :  { %v860_v39 = vpop.f32.mrf.mxu0  ;;  %v892_v40 = vpop.f32.mrf.mxu1 }
  0xd7   :  { %v426_v41 = vadd.f32 %v860_v39, %v1137_v38  ;;  %v554_v42 = vadd.f32 %v892_v40, %v1137_v38 }
  0xd8   :  { %v417_v43 = vpop.f32.mrf.mxu0  ;;  %v545_v44 = vpop.f32.mrf.mxu1 }
  0xd9   :  { %675 = vst.msk [vmem:[%s1462_s3 + $0x10] sm:$0xff] %vm672_vm2, %v426_v41  ;;  %707 = vst.msk [vmem:[%s1462_s3 + $0x110] sm:$0xff] %vm672_vm2, %v554_v42  ;;  %v418_v45 = vadd.f32 %v1137_v38, %v417_v43  ;;  %v546_v46 = vadd.f32 %v1137_v38, %v545_v44 }
  0xda   :  { %v861_v47 = vpop.f32.mrf.mxu0  ;;  %v893_v48 = vpop.f32.mrf.mxu1 }
  0xdb   :  { %673 = vst.msk [vmem:[%s1462_s3] sm:$0xff] %vm672_vm2, %v418_v45  ;;  %705 = vst.msk [vmem:[%s1462_s3 + $0x100] sm:$0xff] %vm672_vm2, %v546_v46  ;;  %v429_v49 = vadd.f32 %v861_v47, %v1137_v38  ;;  %v557_v50 = vadd.f32 %v893_v48, %v1137_v38 }
  0xdc   :  { %v420_v51 = vpop.f32.mrf.mxu0  ;;  %v548_v52 = vpop.f32.mrf.mxu1 }
  0xdd   :  { %676 = vst.msk [vmem:[%s1462_s3 + $0x18] sm:$0xff] %vm672_vm2, %v429_v49  ;;  %708 = vst.msk [vmem:[%s1462_s3 + $0x118] sm:$0xff] %vm672_vm2, %v557_v50  ;;  %v421_v53 = vadd.f32 %v1137_v38, %v420_v51  ;;  %v549_v54 = vadd.f32 %v1137_v38, %v548_v52 }
  0xde   :  { %v864_v55 = vpop.f32.mrf.mxu0  ;;  %v896_v56 = vpop.f32.mrf.mxu1 }
  0xdf   :  { %674 = vst.msk [vmem:[%s1462_s3 + $0x8] sm:$0xff] %vm672_vm2, %v421_v53  ;;  %706 = vst.msk [vmem:[%s1462_s3 + $0x108] sm:$0xff] %vm672_vm2, %v549_v54  ;;  %v442_v57 = vadd.f32 %v864_v55, %v1137_v38  ;;  %v570_v58 = vadd.f32 %v896_v56, %v1137_v38 }
  0xe0   :  { %v433_v59 = vpop.f32.mrf.mxu0  ;;  %v561_v60 = vpop.f32.mrf.mxu1 }
  0xe1   :  { %679 = vst.msk [vmem:[%s1462_s3 + $0x30] sm:$0xff] %vm672_vm2, %v442_v57  ;;  %711 = vst.msk [vmem:[%s1462_s3 + $0x130] sm:$0xff] %vm672_vm2, %v570_v58  ;;  %v434_v61 = vadd.f32 %v1137_v38, %v433_v59  ;;  %v562_v62 = vadd.f32 %v1137_v38, %v561_v60 }
  0xe2   :  { %v865_v63 = vpop.f32.mrf.mxu0  ;;  %v897_v0 = vpop.f32.mrf.mxu1 }
  0xe3   :  { %677 = vst.msk [vmem:[%s1462_s3 + $0x20] sm:$0xff] %vm672_vm2, %v434_v61  ;;  %709 = vst.msk [vmem:[%s1462_s3 + $0x120] sm:$0xff] %vm672_vm2, %v562_v62  ;;  %v445_v1 = vadd.f32 %v865_v63, %v1137_v38  ;;  %v573_v2 = vadd.f32 %v897_v0, %v1137_v38 }
  0xe4   :  { %v436_v3 = vpop.f32.mrf.mxu0  ;;  %v564_v4 = vpop.f32.mrf.mxu1 }
  0xe5   :  { %680 = vst.msk [vmem:[%s1462_s3 + $0x38] sm:$0xff] %vm672_vm2, %v445_v1  ;;  %712 = vst.msk [vmem:[%s1462_s3 + $0x138] sm:$0xff] %vm672_vm2, %v573_v2  ;;  %v437_v5 = vadd.f32 %v1137_v38, %v436_v3  ;;  %v565_v6 = vadd.f32 %v1137_v38, %v564_v4 }
  0xe6   :  { %v868_v7 = vpop.f32.mrf.mxu0  ;;  %v900_v8 = vpop.f32.mrf.mxu1 }
  0xe7   :  { %678 = vst.msk [vmem:[%s1462_s3 + $0x28] sm:$0xff] %vm672_vm2, %v437_v5  ;;  %710 = vst.msk [vmem:[%s1462_s3 + $0x128] sm:$0xff] %vm672_vm2, %v565_v6  ;;  %v458_v9 = vadd.f32 %v868_v7, %v1137_v38  ;;  %v586_v10 = vadd.f32 %v900_v8, %v1137_v38 }
  0xe8   :  { %v449_v11 = vpop.f32.mrf.mxu0  ;;  %v577_v12 = vpop.f32.mrf.mxu1 }
  0xe9   :  { %683 = vst.msk [vmem:[%s1462_s3 + $0x50] sm:$0xff] %vm672_vm2, %v458_v9  ;;  %715 = vst.msk [vmem:[%s1462_s3 + $0x150] sm:$0xff] %vm672_vm2, %v586_v10  ;;  %v450_v13 = vadd.f32 %v1137_v38, %v449_v11  ;;  %v578_v14 = vadd.f32 %v1137_v38, %v577_v12 }
  0xea   :  { %v869_v15 = vpop.f32.mrf.mxu0  ;;  %v901_v16 = vpop.f32.mrf.mxu1 }
  0xeb   :  { %681 = vst.msk [vmem:[%s1462_s3 + $0x40] sm:$0xff] %vm672_vm2, %v450_v13  ;;  %713 = vst.msk [vmem:[%s1462_s3 + $0x140] sm:$0xff] %vm672_vm2, %v578_v14  ;;  %v461_v17 = vadd.f32 %v869_v15, %v1137_v38  ;;  %v589_v18 = vadd.f32 %v901_v16, %v1137_v38 }
  0xec   :  { %v452_v19 = vpop.f32.mrf.mxu0  ;;  %v580_v20 = vpop.f32.mrf.mxu1 }
  0xed   :  { %684 = vst.msk [vmem:[%s1462_s3 + $0x58] sm:$0xff] %vm672_vm2, %v461_v17  ;;  %716 = vst.msk [vmem:[%s1462_s3 + $0x158] sm:$0xff] %vm672_vm2, %v589_v18  ;;  %v453_v21 = vadd.f32 %v1137_v38, %v452_v19  ;;  %v581_v22 = vadd.f32 %v1137_v38, %v580_v20 }
  0xee   :  { %v872_v23 = vpop.f32.mrf.mxu0  ;;  %v904_v24 = vpop.f32.mrf.mxu1 }
  0xef   :  { %682 = vst.msk [vmem:[%s1462_s3 + $0x48] sm:$0xff] %vm672_vm2, %v453_v21  ;;  %714 = vst.msk [vmem:[%s1462_s3 + $0x148] sm:$0xff] %vm672_vm2, %v581_v22  ;;  %v474_v25 = vadd.f32 %v872_v23, %v1137_v38  ;;  %v602_v26 = vadd.f32 %v904_v24, %v1137_v38 }
  0xf0   :  { %v465_v27 = vpop.f32.mrf.mxu0  ;;  %v593_v28 = vpop.f32.mrf.mxu1 }
  0xf1   :  { %687 = vst.msk [vmem:[%s1462_s3 + $0x70] sm:$0xff] %vm672_vm2, %v474_v25  ;;  %719 = vst.msk [vmem:[%s1462_s3 + $0x170] sm:$0xff] %vm672_vm2, %v602_v26  ;;  %v466_v29 = vadd.f32 %v1137_v38, %v465_v27  ;;  %v594_v30 = vadd.f32 %v1137_v38, %v593_v28 }
  0xf2   :  { %v873_v31 = vpop.f32.mrf.mxu0  ;;  %v905_v32 = vpop.f32.mrf.mxu1 }
  0xf3   :  { %685 = vst.msk [vmem:[%s1462_s3 + $0x60] sm:$0xff] %vm672_vm2, %v466_v29  ;;  %717 = vst.msk [vmem:[%s1462_s3 + $0x160] sm:$0xff] %vm672_vm2, %v594_v30  ;;  %v477_v33 = vadd.f32 %v873_v31, %v1137_v38  ;;  %v605_v34 = vadd.f32 %v905_v32, %v1137_v38 }
  0xf4   :  { %v468_v35 = vpop.f32.mrf.mxu0  ;;  %v596_v36 = vpop.f32.mrf.mxu1 }
  0xf5   :  { %688 = vst.msk [vmem:[%s1462_s3 + $0x78] sm:$0xff] %vm672_vm2, %v477_v33  ;;  %720 = vst.msk [vmem:[%s1462_s3 + $0x178] sm:$0xff] %vm672_vm2, %v605_v34  ;;  %v469_v37 = vadd.f32 %v1137_v38, %v468_v35  ;;  %v597_v39 = vadd.f32 %v1137_v38, %v596_v36 }
  0xf6   :  { %v876_v40 = vpop.f32.mrf.mxu0  ;;  %v908_v41 = vpop.f32.mrf.mxu1 }
  0xf7   :  { %686 = vst.msk [vmem:[%s1462_s3 + $0x68] sm:$0xff] %vm672_vm2, %v469_v37  ;;  %718 = vst.msk [vmem:[%s1462_s3 + $0x168] sm:$0xff] %vm672_vm2, %v597_v39  ;;  %v490_v42 = vadd.f32 %v876_v40, %v1137_v38  ;;  %v618_v43 = vadd.f32 %v908_v41, %v1137_v38 }
  0xf8   :  { %v481_v44 = vpop.f32.mrf.mxu0  ;;  %v609_v45 = vpop.f32.mrf.mxu1 }
  0xf9   :  { %691 = vst.msk [vmem:[%s1462_s3 + $0x90] sm:$0xff] %vm672_vm2, %v490_v42  ;;  %723 = vst.msk [vmem:[%s1462_s3 + $0x190] sm:$0xff] %vm672_vm2, %v618_v43  ;;  %v482_v46 = vadd.f32 %v1137_v38, %v481_v44  ;;  %v610_v47 = vadd.f32 %v1137_v38, %v609_v45 }
  0xfa   :  { %v877_v48 = vpop.f32.mrf.mxu0  ;;  %v909_v49 = vpop.f32.mrf.mxu1 }
  0xfb   :  { %689 = vst.msk [vmem:[%s1462_s3 + $0x80] sm:$0xff] %vm672_vm2, %v482_v46  ;;  %721 = vst.msk [vmem:[%s1462_s3 + $0x180] sm:$0xff] %vm672_vm2, %v610_v47  ;;  %v493_v50 = vadd.f32 %v877_v48, %v1137_v38  ;;  %v621_v51 = vadd.f32 %v909_v49, %v1137_v38 }
  0xfc   :  { %v484_v52 = vpop.f32.mrf.mxu0  ;;  %v612_v53 = vpop.f32.mrf.mxu1 }
  0xfd   :  { %692 = vst.msk [vmem:[%s1462_s3 + $0x98] sm:$0xff] %vm672_vm2, %v493_v50  ;;  %724 = vst.msk [vmem:[%s1462_s3 + $0x198] sm:$0xff] %vm672_vm2, %v621_v51  ;;  %v485_v54 = vadd.f32 %v1137_v38, %v484_v52  ;;  %v613_v55 = vadd.f32 %v1137_v38, %v612_v53 }
  0xfe   :  { %v880_v56 = vpop.f32.mrf.mxu0  ;;  %v912_v57 = vpop.f32.mrf.mxu1 }
  0xff   :  { %690 = vst.msk [vmem:[%s1462_s3 + $0x88] sm:$0xff] %vm672_vm2, %v485_v54  ;;  %722 = vst.msk [vmem:[%s1462_s3 + $0x188] sm:$0xff] %vm672_vm2, %v613_v55  ;;  %v506_v58 = vadd.f32 %v880_v56, %v1137_v38  ;;  %v634_v59 = vadd.f32 %v912_v57, %v1137_v38 }
 0x100   :  { %v497_v60 = vpop.f32.mrf.mxu0  ;;  %v625_v61 = vpop.f32.mrf.mxu1 }
 0x101   :  { %695 = vst.msk [vmem:[%s1462_s3 + $0xb0] sm:$0xff] %vm672_vm2, %v506_v58  ;;  %727 = vst.msk [vmem:[%s1462_s3 + $0x1b0] sm:$0xff] %vm672_vm2, %v634_v59  ;;  %v498_v62 = vadd.f32 %v1137_v38, %v497_v60  ;;  %v626_v63 = vadd.f32 %v1137_v38, %v625_v61 }
 0x102   :  { %v881_v0 = vpop.f32.mrf.mxu0  ;;  %v913_v1 = vpop.f32.mrf.mxu1 }
 0x103   :  { %693 = vst.msk [vmem:[%s1462_s3 + $0xa0] sm:$0xff] %vm672_vm2, %v498_v62  ;;  %725 = vst.msk [vmem:[%s1462_s3 + $0x1a0] sm:$0xff] %vm672_vm2, %v626_v63  ;;  %v509_v2 = vadd.f32 %v881_v0, %v1137_v38  ;;  %v637_v3 = vadd.f32 %v913_v1, %v1137_v38 }
 0x104   :  { %v500_v4 = vpop.f32.mrf.mxu0  ;;  %v628_v5 = vpop.f32.mrf.mxu1 }
 0x105   :  { %696 = vst.msk [vmem:[%s1462_s3 + $0xb8] sm:$0xff] %vm672_vm2, %v509_v2  ;;  %728 = vst.msk [vmem:[%s1462_s3 + $0x1b8] sm:$0xff] %vm672_vm2, %v637_v3  ;;  %v501_v6 = vadd.f32 %v1137_v38, %v500_v4  ;;  %v629_v7 = vadd.f32 %v1137_v38, %v628_v5 }
 0x106   :  { %v884_v8 = vpop.f32.mrf.mxu0  ;;  %v916_v9 = vpop.f32.mrf.mxu1 }
 0x107   :  { %694 = vst.msk [vmem:[%s1462_s3 + $0xa8] sm:$0xff] %vm672_vm2, %v501_v6  ;;  %726 = vst.msk [vmem:[%s1462_s3 + $0x1a8] sm:$0xff] %vm672_vm2, %v629_v7  ;;  %v522_v10 = vadd.f32 %v884_v8, %v1137_v38  ;;  %v650_v11 = vadd.f32 %v916_v9, %v1137_v38 }
 0x108   :  { %v513_v12 = vpop.f32.mrf.mxu0  ;;  %v641_v13 = vpop.f32.mrf.mxu1 }
 0x109   :  { %699 = vst.msk [vmem:[%s1462_s3 + $0xd0] sm:$0xff] %vm672_vm2, %v522_v10  ;;  %731 = vst.msk [vmem:[%s1462_s3 + $0x1d0] sm:$0xff] %vm672_vm2, %v650_v11  ;;  %v514_v14 = vadd.f32 %v1137_v38, %v513_v12  ;;  %v642_v15 = vadd.f32 %v1137_v38, %v641_v13 }
 0x10a   :  { %v885_v16 = vpop.f32.mrf.mxu0  ;;  %v917_v17 = vpop.f32.mrf.mxu1 }
 0x10b   :  { %697 = vst.msk [vmem:[%s1462_s3 + $0xc0] sm:$0xff] %vm672_vm2, %v514_v14  ;;  %729 = vst.msk [vmem:[%s1462_s3 + $0x1c0] sm:$0xff] %vm672_vm2, %v642_v15  ;;  %v525_v18 = vadd.f32 %v885_v16, %v1137_v38  ;;  %v653_v19 = vadd.f32 %v917_v17, %v1137_v38 }
 0x10c   :  { %v516_v20 = vpop.f32.mrf.mxu0  ;;  %v644_v21 = vpop.f32.mrf.mxu1 }
 0x10d   :  { %700 = vst.msk [vmem:[%s1462_s3 + $0xd8] sm:$0xff] %vm672_vm2, %v525_v18  ;;  %732 = vst.msk [vmem:[%s1462_s3 + $0x1d8] sm:$0xff] %vm672_vm2, %v653_v19  ;;  %v517_v22 = vadd.f32 %v1137_v38, %v516_v20  ;;  %v645_v23 = vadd.f32 %v1137_v38, %v644_v21 }
 0x10e   :  { %v888_v24 = vpop.f32.mrf.mxu0  ;;  %v920_v25 = vpop.f32.mrf.mxu1 }
 0x10f   :  { %698 = vst.msk [vmem:[%s1462_s3 + $0xc8] sm:$0xff] %vm672_vm2, %v517_v22  ;;  %730 = vst.msk [vmem:[%s1462_s3 + $0x1c8] sm:$0xff] %vm672_vm2, %v645_v23  ;;  %v538_v26 = vadd.f32 %v888_v24, %v1137_v38  ;;  %v666_v27 = vadd.f32 %v920_v25, %v1137_v38 }
 0x110   :  { %v529_v28 = vpop.f32.mrf.mxu0  ;;  %v657_v29 = vpop.f32.mrf.mxu1 }
 0x111   :  { %703 = vst.msk [vmem:[%s1462_s3 + $0xf0] sm:$0xff] %vm672_vm2, %v538_v26  ;;  %735 = vst.msk [vmem:[%s1462_s3 + $0x1f0] sm:$0xff] %vm672_vm2, %v666_v27  ;;  %v530_v30 = vadd.f32 %v1137_v38, %v529_v28  ;;  %v658_v31 = vadd.f32 %v1137_v38, %v657_v29 }
 0x112   :  { %v889_v32 = vpop.f32.mrf.mxu0  ;;  %v921_v33 = vpop.f32.mrf.mxu1 }
 0x113   :  { %701 = vst.msk [vmem:[%s1462_s3 + $0xe0] sm:$0xff] %vm672_vm2, %v530_v30  ;;  %733 = vst.msk [vmem:[%s1462_s3 + $0x1e0] sm:$0xff] %vm672_vm2, %v658_v31  ;;  %v541_v34 = vadd.f32 %v889_v32, %v1137_v38  ;;  %v669_v35 = vadd.f32 %v921_v33, %v1137_v38 }
 0x114   :  { %v532_v36 = vpop.f32.mrf.mxu0  ;;  %v660_v37 = vpop.f32.mrf.mxu1 }
 0x115   :  { %704 = vst.msk [vmem:[%s1462_s3 + $0xf8] sm:$0xff] %vm672_vm2, %v541_v34  ;;  %736 = vst.msk [vmem:[%s1462_s3 + $0x1f8] sm:$0xff] %vm672_vm2, %v669_v35  ;;  %v533_v39 = vadd.f32 %v1137_v38, %v532_v36  ;;  %v661_v40 = vadd.f32 %v1137_v38, %v660_v37 }
 0x117   :  { %702 = vst.msk [vmem:[%s1462_s3 + $0xe8] sm:$0xff] %vm672_vm2, %v533_v39  ;;  %734 = vst.msk [vmem:[%s1462_s3 + $0x1e8] sm:$0xff] %vm672_vm2, %v661_v40 }

</bundles_post_ra>
